<compile_context>
chip_gen: v5e
topology: v5e:2x2
jax: 0.10.0
libtpu: 0.0.40
codegen_flags: <defaults>
</compile_context>

<pallas_src>
import functools

import jax
import jax.numpy as jnp
import numpy as np
from jax import lax
from jax.experimental import pallas as pl
from jax.experimental.pallas import tpu as pltpu


# ---------------------------------------------------------------------------
# Pallas kernels
# ---------------------------------------------------------------------------

def _em_kernel(pixel_ref, st0_ref, u_ref, f_ref, st_out_ref, aff_out_ref, *,
               n_iter, scale, eps):
  """Fused super-token EM loop for one batch element (all matmuls on the MXU).

  pixel_ref  : (1, M, P, C) bf16  pixels grouped per super-token cell
  st0_ref    : (1, M, C)    f32   initial super-tokens (adaptive avg pool)
  u_ref      : (9M, M)      bf16  unfold matrix, row a*9+k -> neighbour_k(a)
  f_ref      : (M, 9M)      bf16  fold (conv_transpose adjoint), col a*9+k
  st_out_ref : (1, M, C)    f32   final super-tokens (C lane-dense)
  aff_out_ref: (1, M, 9P)   f32   final affinity, lane-dense (col = k*P + p)
  """
  pix = pixel_ref[0]                       # (M, P, C) bf16, fed straight to MXU
  M, P, C = pix.shape
  stoken = st0_ref[0]                      # (M, C) f32
  u_flat = u_ref[...]                      # (9M, M) bf16, 0/1 exact
  f_flat = f_ref[...]                      # (M, 9M) bf16, 0/1 exact

  aff = None
  for it in range(n_iter):                 # static unroll, n_iter is small
    last = it == n_iter - 1
    # fold `scale` into the stoken once (instead of 9 (M, P) multiplies)
    st_b = (stoken * scale).astype(jnp.bfloat16)
    # all 9 shifted stokens in ONE tall matmul: (9M, M) @ (M, C)
    st9 = jnp.dot(u_flat, st_b, preferred_element_type=jnp.float32)
    st9 = st9.reshape(M, 9, C).astype(jnp.bfloat16)   # exact copies of st_b rows

    # E-step: logits[m, k, p] = sum_c st9[m,k,c] * pix[m,p,c]   (batched MXU)
    logits = lax.dot_general(st9, pix, (((2,), (2,)), ((0,), (0,))),
                             preferred_element_type=jnp.float32)   # (M, 9, P)
    mx = jnp.max(logits, axis=1, keepdims=True)
    ex = jnp.exp(logits - mx)
    den = jnp.sum(ex, axis=1, keepdims=True)
    if last:
      aff = ex / den                                  # exact: user-visible output
    else:
      aff = ex * pl.reciprocal(den, approx=True)      # EUP slot, effectively free

    # M-step: up[m, k, c] = sum_p aff[m,k,p] * pix[m,p,c]        (batched MXU)
    aff_b = aff.astype(jnp.bfloat16)
    up = lax.dot_general(aff_b, pix, (((2,), (1,)), ((0,), (0,))),
                         preferred_element_type=jnp.float32)       # (M, 9, C)
    # fold: ONE (M, 9M) @ (9M, C) matmul instead of 9 (M, M) matmuls + adds
    numer = jnp.dot(f_flat, up.reshape(M * 9, C).astype(jnp.bfloat16),
                    preferred_element_type=jnp.float32)            # (M, C)
    asum = jnp.sum(aff.reshape(M * 9, P), axis=1, keepdims=True)   # (9M, 1)
    denom = jnp.dot(f_flat, asum.astype(jnp.bfloat16),
                    preferred_element_type=jnp.float32)            # (M, 1)
    stoken = numer / (denom + eps)

  st_out_ref[0] = stoken
  aff_out_ref[0] = aff.reshape(M, 9 * P)   # single lane-dense store


def _refine_kernel(st_ref, aff_ref, u_ref, wqkv_ref, wproj_ref, bp_ref,
                   pix_ref, attn_ref, o_scratch, *, num_heads, scale):
  """Fused refinement attention + pixel reconstruction for one batch element.

  st_ref    : (1, M, C)     f32   super-tokens after the EM loop (tokens=cells)
  aff_ref   : (1, M, 9P)    f32   final affinity from the EM kernel (col k*P+p)
  u_ref     : (9M, M)       bf16  unfold matrix (same as EM kernel)
  wqkv_ref  : (C, 3C)       bf16  concatenated head-major q|k|v weights
  wproj_ref : (C, C)        bf16  projection weight (input channels head-major)
  bp_ref    : (1, C)        f32   projection bias (lane aligned)
  pix_ref   : (1, M, P, C)  f32   reconstructed pixel features (C lane-dense)
  attn_ref  : (1, nh, N, N) f32   attention, already in returned (q, k) order
  o_scratch : (M, C)        f32   per-head attention outputs, head-major columns
  """
  st = st_ref[0]                             # (M, C) == (N, C)
  M, C = st.shape
  P = aff_ref.shape[2] // 9
  hd = C // num_heads

  # qkv for ALL heads in one (M, C) @ (C, 3C) MXU matmul (no nh-way broadcast)
  stb = st.astype(jnp.bfloat16)
  qkv = jnp.dot(stb, wqkv_ref[...], preferred_element_type=jnp.float32)  # (M,3C)

  # per-head attention core: same MXU work as a batched dot_general (the MXU is
  # 2-D anyway), but with only boring 2-D ops.
  for h in range(num_heads):
    q_h = (qkv[:, h * hd:(h + 1) * hd] * scale).astype(jnp.bfloat16)   # (N, hd)
    k_h = qkv[:, C + h * hd:C + (h + 1) * hd].astype(jnp.bfloat16)
    v_h = qkv[:, 2 * C + h * hd:2 * C + (h + 1) * hd].astype(jnp.bfloat16)
    lg = lax.dot_general(q_h, k_h, (((1,), (1,)), ((), ())),
                         preferred_element_type=jnp.float32)           # (N, N)
    mx = jnp.max(lg, axis=-1, keepdims=True)
    ex = jnp.exp(lg - mx)
    pr = ex / jnp.sum(ex, axis=-1, keepdims=True)        # exact: visible output
    attn_ref[0, h] = pr                                  # == torch attn.T(-1,-2)
    o_scratch[:, h * hd:(h + 1) * hd] = jnp.dot(
        pr.astype(jnp.bfloat16), v_h, preferred_element_type=jnp.float32)

  # output projection: ONE (M, C) @ (C, C) matmul over head-major columns
  st_refined = jnp.dot(o_scratch[...].astype(jnp.bfloat16), wproj_ref[...],
                       preferred_element_type=jnp.float32) + bp_ref[...]  # (M,C)

  # pixel reconstruction: unfold the refined stokens with one tall matmul, then
  # one batched MXU contraction over the 9 neighbours (no (M,P,C) VPU temps).
  st9 = jnp.dot(u_ref[...], st_refined.astype(jnp.bfloat16),
                preferred_element_type=jnp.float32)                 # (9M, C)
  st9 = st9.reshape(M, 9, C).astype(jnp.bfloat16)
  aff = aff_ref[0].reshape(M, 9, P)
  aff_t = jnp.swapaxes(aff, 1, 2).astype(jnp.bfloat16)              # (M, P, 9)
  pix = lax.dot_general(aff_t, st9, (((2,), (1,)), ((0,), (0,))),
                        preferred_element_type=jnp.float32)         # (M, P, C)
  pix_ref[0] = pix


# ---------------------------------------------------------------------------
# pallas_call wrappers
# ---------------------------------------------------------------------------

def run_em(pixel_bf16, st0, u_flat, f_flat, *, n_iter, scale):
  B, M, P, C = pixel_bf16.shape
  kern = functools.partial(_em_kernel, n_iter=n_iter, scale=scale, eps=1e-12)
  return pl.pallas_call(
      kern,
      out_shape=(jax.ShapeDtypeStruct((B, M, C), jnp.float32),
                 jax.ShapeDtypeStruct((B, M, 9 * P), jnp.float32)),
      grid=(B,),
      in_specs=[pl.BlockSpec((1, M, P, C), lambda b: (b, 0, 0, 0)),
                pl.BlockSpec((1, M, C), lambda b: (b, 0, 0)),
                pl.BlockSpec((9 * M, M), lambda b: (0, 0)),
                pl.BlockSpec((M, 9 * M), lambda b: (0, 0))],
      out_specs=(pl.BlockSpec((1, M, C), lambda b: (b, 0, 0)),
                 pl.BlockSpec((1, M, 9 * P), lambda b: (b, 0, 0))),
      compiler_params=pltpu.CompilerParams(
          dimension_semantics=("parallel",),
          vmem_limit_bytes=32 * 1024 * 1024),
  )(pixel_bf16, st0, u_flat, f_flat)


def run_refine(stoken, aff_flat, u_flat, wqkv_cat, wproj_cat, bproj_row, *,
               num_heads, scale):
  B, M, C = stoken.shape
  P9 = aff_flat.shape[2]
  P = P9 // 9
  kern = functools.partial(_refine_kernel, num_heads=num_heads, scale=scale)
  return pl.pallas_call(
      kern,
      out_shape=(jax.ShapeDtypeStruct((B, M, P, C), jnp.float32),
                 jax.ShapeDtypeStruct((B, num_heads, M, M), jnp.float32)),
      grid=(B,),
      in_specs=[pl.BlockSpec((1, M, C), lambda b: (b, 0, 0)),
                pl.BlockSpec((1, M, P9), lambda b: (b, 0, 0)),
                pl.BlockSpec((9 * M, M), lambda b: (0, 0)),
                pl.BlockSpec((C, 3 * C), lambda b: (0, 0)),
                pl.BlockSpec((C, C), lambda b: (0, 0)),
                pl.BlockSpec((1, C), lambda b: (0, 0))],
      out_specs=(pl.BlockSpec((1, M, P, C), lambda b: (b, 0, 0, 0)),
                 pl.BlockSpec((1, num_heads, M, M), lambda b: (b, 0, 0, 0))),
      scratch_shapes=[pltpu.VMEM((M, C), jnp.float32)],
      compiler_params=pltpu.CompilerParams(
          dimension_semantics=("parallel",),
          vmem_limit_bytes=32 * 1024 * 1024),
  )(stoken, aff_flat, u_flat, wqkv_cat, wproj_cat, bproj_row)


# ---------------------------------------------------------------------------
# JAX glue: 3x3 identity Unfold / Fold (reference path), neighbour matrices
# ---------------------------------------------------------------------------

def _make_fold_mats(hh, ww):
  """u_flat @ S is the identity 3x3 unfold (row a*9+k = neighbour_k(a));
  f_flat @ (.) is the Fold (conv_transpose2d) adjoint (column a*9+k).
  0/1 entries are exact in bf16, so they are precomputed in bf16 on the host."""
  M = hh * ww
  U = np.zeros((M, 9, M), np.float32)
  F = np.zeros((M, M, 9), np.float32)
  for k in range(9):
    dy, dx = k // 3 - 1, k % 3 - 1
    for y in range(hh):
      for x in range(ww):
        yy, xx = y + dy, x + dx
        if 0 <= yy < hh and 0 <= xx < ww:
          a, b = y * ww + x, yy * ww + xx
          U[a, k, b] = 1.0
          F[b, a, k] = 1.0
  u_flat = jnp.asarray(U.reshape(9 * M, M), jnp.bfloat16)
  f_flat = jnp.asarray(F.reshape(M, 9 * M), jnp.bfloat16)
  return u_flat, f_flat


def _unfold3x3(sf, hh, ww):
  """Unfold(3): (B, C, hh, ww) -> (B, hh*ww, C, 9)   [reference path only]."""
  B, C = sf.shape[0], sf.shape[1]
  sp = jnp.pad(sf, ((0, 0), (0, 0), (1, 1), (1, 1)))
  sl = [sp[:, :, p:p + hh, q:q + ww] for p in range(3) for q in range(3)]
  st = jnp.stack(sl, axis=2)
  return st.transpose(0, 3, 4, 1, 2).reshape(B, hh * ww, C, 9)


def _fold3x3(y, hh, ww):
  """Fold(3) (conv_transpose2d with identity weights)  [reference path only]."""
  pad = [(0, 0)] * (y.ndim - 2) + [(1, 1), (1, 1)]
  yp = jnp.pad(y, pad)
  out = jnp.zeros(y.shape[:-3] + (hh, ww), y.dtype)
  for k in range(9):
    p, q = divmod(k, 3)
    out = out + yp[..., k, 2 - p:2 - p + hh, 2 - q:2 - q + ww]
  return out


def init_params(key, dim):
  """Deterministic synthetic weights matching the module's __init__ shapes."""
  k1, k2, k3 = jax.random.split(key, 3)
  return {
      'wqkv': 0.1 * jax.random.normal(k1, (3 * dim, dim), jnp.float32),
      'wproj': 0.1 * jax.random.normal(k2, (dim, dim), jnp.float32),
      'bproj': 0.1 * jax.random.normal(k3, (dim,), jnp.float32),
  }


def stoken_attention_forward(x, params, *, kernel_size, n_iter=2, num_heads=8,
                             use_pallas=True):
  """JAX/Pallas port of StokenAttention.stoken_forward (refine_attention path).

  x: (B, C, H, W) float32 NCHW. Returns (pixel_features, attn, affinity_map).
  """
  assert n_iter >= 1
  B, C, H0, W0 = x.shape
  assert C % num_heads == 0
  h, w = kernel_size
  pad_r = (w - W0 % w) % w
  pad_b = (h - H0 % h) % h
  if pad_r or pad_b:
    x = jnp.pad(x, ((0, 0), (0, 0), (0, pad_b), (0, pad_r)))
  H, W = x.shape[2], x.shape[3]
  hh, ww = H // h, W // w
  M, P = hh * ww, h * w
  scale = float(C) ** -0.5
  hd = C // num_heads
  attn_scale = float(hd) ** -0.5

  xb = x.reshape(B, C, hh, h, ww, w)
  stoken0 = xb.mean(axis=(3, 5))                                  # adaptive avg pool
  pixel = xb.transpose(0, 2, 4, 3, 5, 1).reshape(B, M, P, C)      # (B, M, P, C)

  if use_pallas:
    u_flat, f_flat = _make_fold_mats(hh, ww)
    st0 = stoken0.reshape(B, C, M).transpose(0, 2, 1)             # (B, M, C)
    # Kernel 1: fused EM loop (bf16 pixel slab kept resident in VMEM).
    stoken_em, aff_flat = run_em(pixel.astype(jnp.bfloat16), st0, u_flat,
                                 f_flat, n_iter=n_iter, scale=scale)

    # host-prepared, head-major, concatenated weights (single-matmul qkv / proj)
    wqkv = params['wqkv']
    rows = (np.arange(num_heads)[:, None] * (3 * hd)
            + np.arange(hd)[None, :]).reshape(-1)
    wq = wqkv[rows]                    # (C, C), row index h*hd+d
    wk = wqkv[rows + hd]
    wv = wqkv[rows + 2 * hd]
    wqkv_cat = jnp.concatenate([wq.T, wk.T, wv.T], axis=1).astype(jnp.bfloat16)
    wproj_cat = params['wproj'].T.astype(jnp.bfloat16)            # (C, C)
    brow = params['bproj'].reshape(1, C).astype(jnp.float32)

    # Kernel 2: fused refinement attention + pixel reconstruction.
    pix, attn = run_refine(stoken_em, aff_flat, u_flat, wqkv_cat, wproj_cat,
                           brow, num_heads=num_heads, scale=attn_scale)

    pix_out = pix.reshape(B, hh, ww, h, w, C).transpose(0, 5, 1, 3, 2, 4)
    pix_out = pix_out.reshape(B, C, H, W)[:, :, :H0, :W0]
    aff_out = aff_flat.reshape(B, hh, ww, 9, h, w).transpose(0, 3, 1, 4, 2, 5)
    aff_out = aff_out.reshape(B, 9, H, W)
    return pix_out, attn, aff_out

  # ---------------- pure-JAX reference path (jnp einsums) ----------------
  pixel_r = pixel.astype(jnp.bfloat16).astype(jnp.float32)  # match bf16 pixel slab
  st = stoken0
  aff = None
  asum_fold = None
  for idx in range(n_iter):
    st9 = _unfold3x3(st, hh, ww)
    logits = jnp.einsum('bmpc,bmck->bmpk', pixel_r, st9) * scale
    aff = jax.nn.softmax(logits, axis=-1)
    asum = aff.sum(axis=2)
    asum_grid = asum.reshape(B, hh, ww, 9).transpose(0, 3, 1, 2)
    asum_fold = _fold3x3(asum_grid, hh, ww)
    if idx < n_iter - 1:
      st_up = jnp.einsum('bmpc,bmpk->bmck', pixel_r, aff)
      st_grid = st_up.reshape(B, hh, ww, C, 9).transpose(0, 3, 4, 1, 2)
      st = _fold3x3(st_grid, hh, ww) / (asum_fold[:, None] + 1e-12)
  st_up = jnp.einsum('bmpc,bmpk->bmck', pixel_r, aff)
  st_grid = st_up.reshape(B, hh, ww, C, 9).transpose(0, 3, 4, 1, 2)
  st = _fold3x3(st_grid, hh, ww) / (asum_fold[:, None] + 1e-12)

  x_tok = st.reshape(B, C, M)
  qkv = jnp.einsum('oc,bcn->bon', params['wqkv'], x_tok).reshape(
      B, num_heads, 3 * hd, M)
  q, k, v = qkv[:, :, :hd], qkv[:, :, hd:2 * hd], qkv[:, :, 2 * hd:]
  logits = jnp.einsum('bhdn,bhdm->bhnm', k, q) * attn_scale
  a = jax.nn.softmax(logits, axis=2)
  o = jnp.einsum('bhdn,bhnm->bhdm', v, a).reshape(B, C, M)
  st_flat = jnp.einsum('oc,bcn->bon', params['wproj'], o) \
      + params['bproj'][None, :, None]
  attn = jnp.swapaxes(a, 2, 3)
  st = st_flat.reshape(B, C, hh, ww)

  st9 = _unfold3x3(st, hh, ww)
  pix_out = jnp.einsum('bmck,bmpk->bmcp', st9, aff)
  pix_out = pix_out.reshape(B, hh, ww, C, h, w).transpose(0, 3, 1, 4, 2, 5)
  pix_out = pix_out.reshape(B, C, H, W)[:, :, :H0, :W0]
  aff_out = aff.reshape(B, hh, ww, h, w, 9).transpose(0, 5, 1, 3, 2, 4)
  aff_out = aff_out.reshape(B, 9, H, W)
  return pix_out, attn, aff_out


# ---------------------------------------------------------------------------

if __name__ == "__main__":
  B, C, H0, W0 = 2, 32, 16, 16
  num_heads = 8
  kernel_size = (4, 4)        # super-token cell size (h, w)
  layers = 2                  # n_iter

  key = jax.random.PRNGKey(0)
  kx, kp = jax.random.split(key)
  x = jax.random.normal(kx, (B, C, H0, W0), jnp.float32)
  params = init_params(kp, C)

  fwd = jax.jit(functools.partial(stoken_attention_forward,
                                  kernel_size=kernel_size, n_iter=layers,
                                  num_heads=num_heads, use_pallas=True))
  pix, attn, aff = fwd(x, params)
  jax.block_until_ready((pix, attn, aff))

  hh, ww = H0 // kernel_size[0], W0 // kernel_size[1]
  M = hh * ww
  assert pix.shape == (B, C, H0, W0)
  assert attn.shape == (B, num_heads, M, M)
  assert aff.shape == (B, 9, H0, W0)
  assert bool(jnp.all(jnp.isfinite(pix))) and bool(jnp.all(jnp.isfinite(attn)))

  # pure-JAX reference (same glue, jnp einsums instead of Pallas kernels)
  ref = jax.jit(functools.partial(stoken_attention_forward,
                                  kernel_size=kernel_size, n_iter=layers,
                                  num_heads=num_heads, use_pallas=False))
  ref_pix, ref_attn, ref_aff = ref(x, params)
  # tolerance accounts for bf16 MXU operands in the EM / fold / attention path
  np.testing.assert_allclose(np.asarray(pix), np.asarray(ref_pix),
                             rtol=2e-2, atol=2e-2)
  np.testing.assert_allclose(np.asarray(attn), np.asarray(ref_attn),
                             rtol=2e-2, atol=2e-2)
  np.testing.assert_allclose(np.asarray(aff), np.asarray(ref_aff),
                             rtol=2e-2, atol=2e-2)

  print("KERNEL_OK")
</pallas_src>

<mosaic_0001>
module attributes {stable_mosaic.version = 11 : i64} {
  func.func @_em_kernel(%arg0: i32, %arg1: memref<1x16x16x32xbf16, #tpu.memory_space<vmem>>, %arg2: memref<1x16x32xf32, #tpu.memory_space<vmem>>, %arg3: memref<144x16xbf16, #tpu.memory_space<vmem>>, %arg4: memref<16x144xbf16, #tpu.memory_space<vmem>>, %arg5: memref<1x16x32xf32, #tpu.memory_space<vmem>>, %arg6: memref<1x16x144xf32, #tpu.memory_space<vmem>>) attributes {dimension_semantics = [#tpu.dimension_semantics<parallel>], iteration_bounds = array<i64: 2>, scalar_prefetch = 0 : i64, scratch_operands = 0 : i64, tpu.core_type = #tpu.core_type<tc>, window_params = [{transform_indices = @transform_0, window_bounds = array<i64: 1, 16, 16, 32>}, {transform_indices = @transform_1, window_bounds = array<i64: 1, 16, 32>}, {pipeline_mode = #tpu.pipeline_mode<synchronous>, transform_indices = @transform_2, window_bounds = array<i64: 144, 16>}, {pipeline_mode = #tpu.pipeline_mode<synchronous>, transform_indices = @transform_3, window_bounds = array<i64: 16, 144>}, {transform_indices = @transform_4, window_bounds = array<i64: 1, 16, 32>}, {transform_indices = @transform_5, window_bounds = array<i64: 1, 16, 144>}]} {
    %c0 = arith.constant 0 : index
    %c0_0 = arith.constant 0 : index
    %c0_1 = arith.constant 0 : index
    %c0_2 = arith.constant 0 : index
    %0 = vector.load %arg1[%c0, %c0_0, %c0_1, %c0_2] : memref<1x16x16x32xbf16, #tpu.memory_space<vmem>>, vector<1x16x16x32xbf16>
    %1 = vector.shape_cast %0 : vector<1x16x16x32xbf16> to vector<16x16x32xbf16>
    %c0_3 = arith.constant 0 : index
    %c0_4 = arith.constant 0 : index
    %c0_5 = arith.constant 0 : index
    %2 = vector.load %arg2[%c0_3, %c0_4, %c0_5] : memref<1x16x32xf32, #tpu.memory_space<vmem>>, vector<1x16x32xf32>
    %3 = vector.shape_cast %2 : vector<1x16x32xf32> to vector<16x32xf32>
    %c0_6 = arith.constant 0 : index
    %c0_7 = arith.constant 0 : index
    %4 = vector.load %arg3[%c0_6, %c0_7] : memref<144x16xbf16, #tpu.memory_space<vmem>>, vector<144x16xbf16>
    %c0_8 = arith.constant 0 : index
    %c0_9 = arith.constant 0 : index
    %5 = vector.load %arg4[%c0_8, %c0_9] : memref<16x144xbf16, #tpu.memory_space<vmem>>, vector<16x144xbf16>
    %cst = arith.constant 0.176776692 : f32
    %6 = vector.broadcast %cst : f32 to vector<16x32xf32>
    %7 = arith.mulf %3, %6 : vector<16x32xf32>
    %8 = arith.truncf %7 : vector<16x32xf32> to vector<16x32xbf16>
    %cst_10 = arith.constant dense<0.000000e+00> : vector<144x32xf32>
    %9 = tpu.matmul %4, %8, %cst_10 {dimension_numbers = #tpu.dot_dimension_numbers<[1], [0], [0], [1], [0, 0, 1, 1], [], []>} : vector<144x16xbf16>, vector<16x32xbf16>, vector<144x32xf32> -> vector<144x32xf32>
    %10 = vector.shape_cast %9 : vector<144x32xf32> to vector<16x9x32xf32>
    %11 = arith.truncf %10 : vector<16x9x32xf32> to vector<16x9x32xbf16>
    %cst_11 = arith.constant dense<0.000000e+00> : vector<16x9x16xf32>
    %12 = tpu.matmul %11, %1, %cst_11 {dimension_numbers = #tpu.dot_dimension_numbers<[2], [2], [1], [1], [0, 0, 0, 1, 1, 1], [0], [0]>} : vector<16x9x32xbf16>, vector<16x16x32xbf16>, vector<16x9x16xf32> -> vector<16x9x16xf32>
    %cst_12 = arith.constant dense<0xFF800000> : vector<16x16xf32>
    %13 = vector.multi_reduction <maximumf>, %12, %cst_12 [1] : vector<16x9x16xf32> to vector<16x16xf32>
    %14 = vector.shape_cast %13 : vector<16x16xf32> to vector<16x1x16xf32>
    %15 = vector.broadcast %14 : vector<16x1x16xf32> to vector<16x9x16xf32>
    %16 = arith.subf %12, %15 : vector<16x9x16xf32>
    %17 = math.exp %16 : vector<16x9x16xf32>
    %cst_13 = arith.constant dense<0.000000e+00> : vector<16x16xf32>
    %18 = vector.multi_reduction <add>, %17, %cst_13 [1] : vector<16x9x16xf32> to vector<16x16xf32>
    %19 = vector.shape_cast %18 : vector<16x16xf32> to vector<16x1x16xf32>
    %20 = tpu.reciprocal %19 {approx = true} : vector<16x1x16xf32> -> vector<16x1x16xf32>
    %21 = vector.broadcast %20 : vector<16x1x16xf32> to vector<16x9x16xf32>
    %22 = arith.mulf %17, %21 : vector<16x9x16xf32>
    %23 = arith.truncf %22 : vector<16x9x16xf32> to vector<16x9x16xbf16>
    %cst_14 = arith.constant dense<0.000000e+00> : vector<16x9x32xf32>
    %24 = tpu.matmul %23, %1, %cst_14 {dimension_numbers = #tpu.dot_dimension_numbers<[2], [1], [1], [2], [0, 0, 0, 1, 1, 2], [0], [0]>} : vector<16x9x16xbf16>, vector<16x16x32xbf16>, vector<16x9x32xf32> -> vector<16x9x32xf32>
    %25 = vector.shape_cast %24 : vector<16x9x32xf32> to vector<144x32xf32>
    %26 = arith.truncf %25 : vector<144x32xf32> to vector<144x32xbf16>
    %cst_15 = arith.constant dense<0.000000e+00> : vector<16x32xf32>
    %27 = tpu.matmul %5, %26, %cst_15 {dimension_numbers = #tpu.dot_dimension_numbers<[1], [0], [0], [1], [0, 0, 1, 1], [], []>} : vector<16x144xbf16>, vector<144x32xbf16>, vector<16x32xf32> -> vector<16x32xf32>
    %28 = vector.shape_cast %22 : vector<16x9x16xf32> to vector<144x16xf32>
    %cst_16 = arith.constant dense<0.000000e+00> : vector<144xf32>
    %29 = vector.multi_reduction <add>, %28, %cst_16 [1] : vector<144x16xf32> to vector<144xf32>
    %30 = vector.shape_cast %29 : vector<144xf32> to vector<144x1xf32>
    %31 = arith.truncf %30 : vector<144x1xf32> to vector<144x1xbf16>
    %cst_17 = arith.constant dense<0.000000e+00> : vector<16x1xf32>
    %32 = tpu.matmul %5, %31, %cst_17 {dimension_numbers = #tpu.dot_dimension_numbers<[1], [0], [0], [1], [0, 0, 1, 1], [], []>} : vector<16x144xbf16>, vector<144x1xbf16>, vector<16x1xf32> -> vector<16x1xf32>
    %cst_18 = arith.constant 9.99999996E-13 : f32
    %33 = vector.broadcast %cst_18 : f32 to vector<16x1xf32>
    %34 = arith.addf %32, %33 : vector<16x1xf32>
    %35 = vector.broadcast %34 : vector<16x1xf32> to vector<16x32xf32>
    %36 = arith.divf %27, %35 : vector<16x32xf32>
    %cst_19 = arith.constant 0.176776692 : f32
    %37 = vector.broadcast %cst_19 : f32 to vector<16x32xf32>
    %38 = arith.mulf %36, %37 : vector<16x32xf32>
    %39 = arith.truncf %38 : vector<16x32xf32> to vector<16x32xbf16>
    %cst_20 = arith.constant dense<0.000000e+00> : vector<144x32xf32>
    %40 = tpu.matmul %4, %39, %cst_20 {dimension_numbers = #tpu.dot_dimension_numbers<[1], [0], [0], [1], [0, 0, 1, 1], [], []>} : vector<144x16xbf16>, vector<16x32xbf16>, vector<144x32xf32> -> vector<144x32xf32>
    %41 = vector.shape_cast %40 : vector<144x32xf32> to vector<16x9x32xf32>
    %42 = arith.truncf %41 : vector<16x9x32xf32> to vector<16x9x32xbf16>
    %cst_21 = arith.constant dense<0.000000e+00> : vector<16x9x16xf32>
    %43 = tpu.matmul %42, %1, %cst_21 {dimension_numbers = #tpu.dot_dimension_numbers<[2], [2], [1], [1], [0, 0, 0, 1, 1, 1], [0], [0]>} : vector<16x9x32xbf16>, vector<16x16x32xbf16>, vector<16x9x16xf32> -> vector<16x9x16xf32>
    %cst_22 = arith.constant dense<0xFF800000> : vector<16x16xf32>
    %44 = vector.multi_reduction <maximumf>, %43, %cst_22 [1] : vector<16x9x16xf32> to vector<16x16xf32>
    %45 = vector.shape_cast %44 : vector<16x16xf32> to vector<16x1x16xf32>
    %46 = vector.broadcast %45 : vector<16x1x16xf32> to vector<16x9x16xf32>
    %47 = arith.subf %43, %46 : vector<16x9x16xf32>
    %48 = math.exp %47 : vector<16x9x16xf32>
    %cst_23 = arith.constant dense<0.000000e+00> : vector<16x16xf32>
    %49 = vector.multi_reduction <add>, %48, %cst_23 [1] : vector<16x9x16xf32> to vector<16x16xf32>
    %50 = vector.shape_cast %49 : vector<16x16xf32> to vector<16x1x16xf32>
    %51 = vector.broadcast %50 : vector<16x1x16xf32> to vector<16x9x16xf32>
    %52 = arith.divf %48, %51 : vector<16x9x16xf32>
    %53 = arith.truncf %52 : vector<16x9x16xf32> to vector<16x9x16xbf16>
    %cst_24 = arith.constant dense<0.000000e+00> : vector<16x9x32xf32>
    %54 = tpu.matmul %53, %1, %cst_24 {dimension_numbers = #tpu.dot_dimension_numbers<[2], [1], [1], [2], [0, 0, 0, 1, 1, 2], [0], [0]>} : vector<16x9x16xbf16>, vector<16x16x32xbf16>, vector<16x9x32xf32> -> vector<16x9x32xf32>
    %55 = vector.shape_cast %54 : vector<16x9x32xf32> to vector<144x32xf32>
    %56 = arith.truncf %55 : vector<144x32xf32> to vector<144x32xbf16>
    %cst_25 = arith.constant dense<0.000000e+00> : vector<16x32xf32>
    %57 = tpu.matmul %5, %56, %cst_25 {dimension_numbers = #tpu.dot_dimension_numbers<[1], [0], [0], [1], [0, 0, 1, 1], [], []>} : vector<16x144xbf16>, vector<144x32xbf16>, vector<16x32xf32> -> vector<16x32xf32>
    %58 = vector.shape_cast %52 : vector<16x9x16xf32> to vector<144x16xf32>
    %cst_26 = arith.constant dense<0.000000e+00> : vector<144xf32>
    %59 = vector.multi_reduction <add>, %58, %cst_26 [1] : vector<144x16xf32> to vector<144xf32>
    %60 = vector.shape_cast %59 : vector<144xf32> to vector<144x1xf32>
    %61 = arith.truncf %60 : vector<144x1xf32> to vector<144x1xbf16>
    %cst_27 = arith.constant dense<0.000000e+00> : vector<16x1xf32>
    %62 = tpu.matmul %5, %61, %cst_27 {dimension_numbers = #tpu.dot_dimension_numbers<[1], [0], [0], [1], [0, 0, 1, 1], [], []>} : vector<16x144xbf16>, vector<144x1xbf16>, vector<16x1xf32> -> vector<16x1xf32>
    %cst_28 = arith.constant 9.99999996E-13 : f32
    %63 = vector.broadcast %cst_28 : f32 to vector<16x1xf32>
    %64 = arith.addf %62, %63 : vector<16x1xf32>
    %65 = vector.broadcast %64 : vector<16x1xf32> to vector<16x32xf32>
    %66 = arith.divf %57, %65 : vector<16x32xf32>
    %c0_29 = arith.constant 0 : index
    %c0_30 = arith.constant 0 : index
    %c0_31 = arith.constant 0 : index
    %67 = vector.load %arg5[%c0_29, %c0_30, %c0_31] : memref<1x16x32xf32, #tpu.memory_space<vmem>>, vector<1x16x32xf32>
    %68 = vector.shape_cast %67 : vector<1x16x32xf32> to vector<16x32xf32>
    %69 = vector.shape_cast %66 : vector<16x32xf32> to vector<1x16x32xf32>
    tpu.vector_store %arg5[%c0_29, %c0_30, %c0_31], %69 {strides = array<i32>} : memref<1x16x32xf32, #tpu.memory_space<vmem>>, vector<1x16x32xf32>,
    %70 = vector.shape_cast %52 : vector<16x9x16xf32> to vector<16x144xf32>
    %c0_32 = arith.constant 0 : index
    %c0_33 = arith.constant 0 : index
    %c0_34 = arith.constant 0 : index
    %71 = vector.load %arg6[%c0_32, %c0_33, %c0_34] : memref<1x16x144xf32, #tpu.memory_space<vmem>>, vector<1x16x144xf32>
    %72 = vector.shape_cast %71 : vector<1x16x144xf32> to vector<16x144xf32>
    %73 = vector.shape_cast %70 : vector<16x144xf32> to vector<1x16x144xf32>
    tpu.vector_store %arg6[%c0_32, %c0_33, %c0_34], %73 {strides = array<i32>} : memref<1x16x144xf32, #tpu.memory_space<vmem>>, vector<1x16x144xf32>,
    return
  }
  func.func @transform_0(%arg0: i32) -> (i32, i32, i32, i32) {
    %c0_i32 = arith.constant 0 : i32
    %c0_i32_0 = arith.constant 0 : i32
    %c0_i32_1 = arith.constant 0 : i32
    %c0_i32_2 = arith.constant 0 : i32
    return %arg0, %c0_i32, %c0_i32_0, %c0_i32_1 : i32, i32, i32, i32
  }
  func.func @transform_1(%arg0: i32) -> (i32, i32, i32) {
    %c0_i32 = arith.constant 0 : i32
    %c0_i32_0 = arith.constant 0 : i32
    %c0_i32_1 = arith.constant 0 : i32
    return %arg0, %c0_i32, %c0_i32_0 : i32, i32, i32
  }
  func.func @transform_2(%arg0: i32) -> (i32, i32) {
    %c0_i32 = arith.constant 0 : i32
    %c0_i32_0 = arith.constant 0 : i32
    %c0_i32_1 = arith.constant 0 : i32
    return %c0_i32, %c0_i32_0 : i32, i32
  }
  func.func @transform_3(%arg0: i32) -> (i32, i32) {
    %c0_i32 = arith.constant 0 : i32
    %c0_i32_0 = arith.constant 0 : i32
    %c0_i32_1 = arith.constant 0 : i32
    return %c0_i32, %c0_i32_0 : i32, i32
  }
  func.func @transform_4(%arg0: i32) -> (i32, i32, i32) {
    %c0_i32 = arith.constant 0 : i32
    %c0_i32_0 = arith.constant 0 : i32
    %c0_i32_1 = arith.constant 0 : i32
    return %arg0, %c0_i32, %c0_i32_0 : i32, i32, i32
  }
  func.func @transform_5(%arg0: i32) -> (i32, i32, i32) {
    %c0_i32 = arith.constant 0 : i32
    %c0_i32_0 = arith.constant 0 : i32
    %c0_i32_1 = arith.constant 0 : i32
    return %arg0, %c0_i32, %c0_i32_0 : i32, i32, i32
  }
}

module attributes {stable_mosaic.version = 11 : i64} {
  func.func @_refine_kernel(%arg0: i32, %arg1: memref<1x16x32xf32, #tpu.memory_space<vmem>>, %arg2: memref<1x16x144xf32, #tpu.memory_space<vmem>>, %arg3: memref<144x16xbf16, #tpu.memory_space<vmem>>, %arg4: memref<32x96xbf16, #tpu.memory_space<vmem>>, %arg5: memref<32x32xbf16, #tpu.memory_space<vmem>>, %arg6: memref<1x32xf32, #tpu.memory_space<vmem>>, %arg7: memref<1x16x16x32xf32, #tpu.memory_space<vmem>>, %arg8: memref<1x8x16x16xf32, #tpu.memory_space<vmem>>, %arg9: memref<16x32xf32, #tpu.memory_space<vmem>>) attributes {dimension_semantics = [#tpu.dimension_semantics<parallel>], iteration_bounds = array<i64: 2>, scalar_prefetch = 0 : i64, scratch_operands = 1 : i64, tpu.core_type = #tpu.core_type<tc>, window_params = [{transform_indices = @transform_0, window_bounds = array<i64: 1, 16, 32>}, {transform_indices = @transform_1, window_bounds = array<i64: 1, 16, 144>}, {pipeline_mode = #tpu.pipeline_mode<synchronous>, transform_indices = @transform_2, window_bounds = array<i64: 144, 16>}, {pipeline_mode = #tpu.pipeline_mode<synchronous>, transform_indices = @transform_3, window_bounds = array<i64: 32, 96>}, {pipeline_mode = #tpu.pipeline_mode<synchronous>, transform_indices = @transform_4, window_bounds = array<i64: 32, 32>}, {pipeline_mode = #tpu.pipeline_mode<synchronous>, transform_indices = @transform_5, window_bounds = array<i64: 1, 32>}, {transform_indices = @transform_6, window_bounds = array<i64: 1, 16, 16, 32>}, {transform_indices = @transform_7, window_bounds = array<i64: 1, 8, 16, 16>}]} {
    %c0 = arith.constant 0 : index
    %c0_0 = arith.constant 0 : index
    %c0_1 = arith.constant 0 : index
    %0 = vector.load %arg1[%c0, %c0_0, %c0_1] : memref<1x16x32xf32, #tpu.memory_space<vmem>>, vector<1x16x32xf32>
    %1 = vector.shape_cast %0 : vector<1x16x32xf32> to vector<16x32xf32>
    %2 = arith.truncf %1 : vector<16x32xf32> to vector<16x32xbf16>
    %c0_2 = arith.constant 0 : index
    %c0_3 = arith.constant 0 : index
    %3 = vector.load %arg4[%c0_2, %c0_3] : memref<32x96xbf16, #tpu.memory_space<vmem>>, vector<32x96xbf16>
    %cst = arith.constant dense<0.000000e+00> : vector<16x96xf32>
    %4 = tpu.matmul %2, %3, %cst {dimension_numbers = #tpu.dot_dimension_numbers<[1], [0], [0], [1], [0, 0, 1, 1], [], []>} : vector<16x32xbf16>, vector<32x96xbf16>, vector<16x96xf32> -> vector<16x96xf32>
    %5 = vector.extract_strided_slice %4 {offsets = [0, 0], sizes = [16, 4], strides = [1, 1]} : vector<16x96xf32> to vector<16x4xf32>
    %cst_4 = arith.constant 5.000000e-01 : f32
    %6 = vector.broadcast %cst_4 : f32 to vector<16x4xf32>
    %7 = arith.mulf %5, %6 : vector<16x4xf32>
    %8 = arith.truncf %7 : vector<16x4xf32> to vector<16x4xbf16>
    %9 = vector.extract_strided_slice %4 {offsets = [0, 32], sizes = [16, 4], strides = [1, 1]} : vector<16x96xf32> to vector<16x4xf32>
    %10 = arith.truncf %9 : vector<16x4xf32> to vector<16x4xbf16>
    %11 = vector.extract_strided_slice %4 {offsets = [0, 64], sizes = [16, 4], strides = [1, 1]} : vector<16x96xf32> to vector<16x4xf32>
    %12 = arith.truncf %11 : vector<16x4xf32> to vector<16x4xbf16>
    %cst_5 = arith.constant dense<0.000000e+00> : vector<16x16xf32>
    %13 = tpu.matmul %8, %10, %cst_5 {dimension_numbers = #tpu.dot_dimension_numbers<[1], [1], [0], [0], [0, 0, 1, 0], [], []>} : vector<16x4xbf16>, vector<16x4xbf16>, vector<16x16xf32> -> vector<16x16xf32>
    %cst_6 = arith.constant dense<0xFF800000> : vector<16xf32>
    %14 = vector.multi_reduction <maximumf>, %13, %cst_6 [1] : vector<16x16xf32> to vector<16xf32>
    %15 = vector.shape_cast %14 : vector<16xf32> to vector<16x1xf32>
    %16 = vector.broadcast %15 : vector<16x1xf32> to vector<16x16xf32>
    %17 = arith.subf %13, %16 : vector<16x16xf32>
    %18 = math.exp %17 : vector<16x16xf32>
    %cst_7 = arith.constant dense<0.000000e+00> : vector<16xf32>
    %19 = vector.multi_reduction <add>, %18, %cst_7 [1] : vector<16x16xf32> to vector<16xf32>
    %20 = vector.shape_cast %19 : vector<16xf32> to vector<16x1xf32>
    %21 = vector.broadcast %20 : vector<16x1xf32> to vector<16x16xf32>
    %22 = arith.divf %18, %21 : vector<16x16xf32>
    %c0_8 = arith.constant 0 : index
    %c0_9 = arith.constant 0 : index
    %c0_10 = arith.constant 0 : index
    %c0_11 = arith.constant 0 : index
    %23 = vector.load %arg8[%c0_8, %c0_9, %c0_10, %c0_11] : memref<1x8x16x16xf32, #tpu.memory_space<vmem>>, vector<1x1x16x16xf32>
    %24 = vector.shape_cast %23 : vector<1x1x16x16xf32> to vector<16x16xf32>
    %25 = vector.shape_cast %22 : vector<16x16xf32> to vector<1x1x16x16xf32>
    tpu.vector_store %arg8[%c0_8, %c0_9, %c0_10, %c0_11], %25 {strides = array<i32>} : memref<1x8x16x16xf32, #tpu.memory_space<vmem>>, vector<1x1x16x16xf32>,
    %26 = arith.truncf %22 : vector<16x16xf32> to vector<16x16xbf16>
    %cst_12 = arith.constant dense<0.000000e+00> : vector<16x4xf32>
    %27 = tpu.matmul %26, %12, %cst_12 {dimension_numbers = #tpu.dot_dimension_numbers<[1], [0], [0], [1], [0, 0, 1, 1], [], []>} : vector<16x16xbf16>, vector<16x4xbf16>, vector<16x4xf32> -> vector<16x4xf32>
    %c0_13 = arith.constant 0 : index
    %c0_14 = arith.constant 0 : index
    %28 = vector.load %arg9[%c0_13, %c0_14] : memref<16x32xf32, #tpu.memory_space<vmem>>, vector<16x4xf32>
    tpu.vector_store %arg9[%c0_13, %c0_14], %27 {strides = array<i32>} : memref<16x32xf32, #tpu.memory_space<vmem>>, vector<16x4xf32>,
    %29 = vector.extract_strided_slice %4 {offsets = [0, 4], sizes = [16, 4], strides = [1, 1]} : vector<16x96xf32> to vector<16x4xf32>
    %cst_15 = arith.constant 5.000000e-01 : f32
    %30 = vector.broadcast %cst_15 : f32 to vector<16x4xf32>
    %31 = arith.mulf %29, %30 : vector<16x4xf32>
    %32 = arith.truncf %31 : vector<16x4xf32> to vector<16x4xbf16>
    %33 = vector.extract_strided_slice %4 {offsets = [0, 36], sizes = [16, 4], strides = [1, 1]} : vector<16x96xf32> to vector<16x4xf32>
    %34 = arith.truncf %33 : vector<16x4xf32> to vector<16x4xbf16>
    %35 = vector.extract_strided_slice %4 {offsets = [0, 68], sizes = [16, 4], strides = [1, 1]} : vector<16x96xf32> to vector<16x4xf32>
    %36 = arith.truncf %35 : vector<16x4xf32> to vector<16x4xbf16>
    %cst_16 = arith.constant dense<0.000000e+00> : vector<16x16xf32>
    %37 = tpu.matmul %32, %34, %cst_16 {dimension_numbers = #tpu.dot_dimension_numbers<[1], [1], [0], [0], [0, 0, 1, 0], [], []>} : vector<16x4xbf16>, vector<16x4xbf16>, vector<16x16xf32> -> vector<16x16xf32>
    %cst_17 = arith.constant dense<0xFF800000> : vector<16xf32>
    %38 = vector.multi_reduction <maximumf>, %37, %cst_17 [1] : vector<16x16xf32> to vector<16xf32>
    %39 = vector.shape_cast %38 : vector<16xf32> to vector<16x1xf32>
    %40 = vector.broadcast %39 : vector<16x1xf32> to vector<16x16xf32>
    %41 = arith.subf %37, %40 : vector<16x16xf32>
    %42 = math.exp %41 : vector<16x16xf32>
    %cst_18 = arith.constant dense<0.000000e+00> : vector<16xf32>
    %43 = vector.multi_reduction <add>, %42, %cst_18 [1] : vector<16x16xf32> to vector<16xf32>
    %44 = vector.shape_cast %43 : vector<16xf32> to vector<16x1xf32>
    %45 = vector.broadcast %44 : vector<16x1xf32> to vector<16x16xf32>
    %46 = arith.divf %42, %45 : vector<16x16xf32>
    %c0_19 = arith.constant 0 : index
    %c1 = arith.constant 1 : index
    %c0_20 = arith.constant 0 : index
    %c0_21 = arith.constant 0 : index
    %47 = vector.load %arg8[%c0_19, %c1, %c0_20, %c0_21] : memref<1x8x16x16xf32, #tpu.memory_space<vmem>>, vector<1x1x16x16xf32>
    %48 = vector.shape_cast %47 : vector<1x1x16x16xf32> to vector<16x16xf32>
    %49 = vector.shape_cast %46 : vector<16x16xf32> to vector<1x1x16x16xf32>
    tpu.vector_store %arg8[%c0_19, %c1, %c0_20, %c0_21], %49 {strides = array<i32>} : memref<1x8x16x16xf32, #tpu.memory_space<vmem>>, vector<1x1x16x16xf32>,
    %50 = arith.truncf %46 : vector<16x16xf32> to vector<16x16xbf16>
    %cst_22 = arith.constant dense<0.000000e+00> : vector<16x4xf32>
    %51 = tpu.matmul %50, %36, %cst_22 {dimension_numbers = #tpu.dot_dimension_numbers<[1], [0], [0], [1], [0, 0, 1, 1], [], []>} : vector<16x16xbf16>, vector<16x4xbf16>, vector<16x4xf32> -> vector<16x4xf32>
    %c0_23 = arith.constant 0 : index
    %c4 = arith.constant 4 : index
    %52 = vector.load %arg9[%c0_23, %c4] : memref<16x32xf32, #tpu.memory_space<vmem>>, vector<16x4xf32>
    tpu.vector_store %arg9[%c0_23, %c4], %51 {strides = array<i32>} : memref<16x32xf32, #tpu.memory_space<vmem>>, vector<16x4xf32>,
    %53 = vector.extract_strided_slice %4 {offsets = [0, 8], sizes = [16, 4], strides = [1, 1]} : vector<16x96xf32> to vector<16x4xf32>
    %cst_24 = arith.constant 5.000000e-01 : f32
    %54 = vector.broadcast %cst_24 : f32 to vector<16x4xf32>
    %55 = arith.mulf %53, %54 : vector<16x4xf32>
    %56 = arith.truncf %55 : vector<16x4xf32> to vector<16x4xbf16>
    %57 = vector.extract_strided_slice %4 {offsets = [0, 40], sizes = [16, 4], strides = [1, 1]} : vector<16x96xf32> to vector<16x4xf32>
    %58 = arith.truncf %57 : vector<16x4xf32> to vector<16x4xbf16>
    %59 = vector.extract_strided_slice %4 {offsets = [0, 72], sizes = [16, 4], strides = [1, 1]} : vector<16x96xf32> to vector<16x4xf32>
    %60 = arith.truncf %59 : vector<16x4xf32> to vector<16x4xbf16>
    %cst_25 = arith.constant dense<0.000000e+00> : vector<16x16xf32>
    %61 = tpu.matmul %56, %58, %cst_25 {dimension_numbers = #tpu.dot_dimension_numbers<[1], [1], [0], [0], [0, 0, 1, 0], [], []>} : vector<16x4xbf16>, vector<16x4xbf16>, vector<16x16xf32> -> vector<16x16xf32>
    %cst_26 = arith.constant dense<0xFF800000> : vector<16xf32>
    %62 = vector.multi_reduction <maximumf>, %61, %cst_26 [1] : vector<16x16xf32> to vector<16xf32>
    %63 = vector.shape_cast %62 : vector<16xf32> to vector<16x1xf32>
    %64 = vector.broadcast %63 : vector<16x1xf32> to vector<16x16xf32>
    %65 = arith.subf %61, %64 : vector<16x16xf32>
    %66 = math.exp %65 : vector<16x16xf32>
    %cst_27 = arith.constant dense<0.000000e+00> : vector<16xf32>
    %67 = vector.multi_reduction <add>, %66, %cst_27 [1] : vector<16x16xf32> to vector<16xf32>
    %68 = vector.shape_cast %67 : vector<16xf32> to vector<16x1xf32>
    %69 = vector.broadcast %68 : vector<16x1xf32> to vector<16x16xf32>
    %70 = arith.divf %66, %69 : vector<16x16xf32>
    %c0_28 = arith.constant 0 : index
    %c2 = arith.constant 2 : index
    %c0_29 = arith.constant 0 : index
    %c0_30 = arith.constant 0 : index
    %71 = vector.load %arg8[%c0_28, %c2, %c0_29, %c0_30] : memref<1x8x16x16xf32, #tpu.memory_space<vmem>>, vector<1x1x16x16xf32>
    %72 = vector.shape_cast %71 : vector<1x1x16x16xf32> to vector<16x16xf32>
    %73 = vector.shape_cast %70 : vector<16x16xf32> to vector<1x1x16x16xf32>
    tpu.vector_store %arg8[%c0_28, %c2, %c0_29, %c0_30], %73 {strides = array<i32>} : memref<1x8x16x16xf32, #tpu.memory_space<vmem>>, vector<1x1x16x16xf32>,
    %74 = arith.truncf %70 : vector<16x16xf32> to vector<16x16xbf16>
    %cst_31 = arith.constant dense<0.000000e+00> : vector<16x4xf32>
    %75 = tpu.matmul %74, %60, %cst_31 {dimension_numbers = #tpu.dot_dimension_numbers<[1], [0], [0], [1], [0, 0, 1, 1], [], []>} : vector<16x16xbf16>, vector<16x4xbf16>, vector<16x4xf32> -> vector<16x4xf32>
    %c0_32 = arith.constant 0 : index
    %c8 = arith.constant 8 : index
    %76 = vector.load %arg9[%c0_32, %c8] : memref<16x32xf32, #tpu.memory_space<vmem>>, vector<16x4xf32>
    tpu.vector_store %arg9[%c0_32, %c8], %75 {strides = array<i32>} : memref<16x32xf32, #tpu.memory_space<vmem>>, vector<16x4xf32>,
    %77 = vector.extract_strided_slice %4 {offsets = [0, 12], sizes = [16, 4], strides = [1, 1]} : vector<16x96xf32> to vector<16x4xf32>
    %cst_33 = arith.constant 5.000000e-01 : f32
    %78 = vector.broadcast %cst_33 : f32 to vector<16x4xf32>
    %79 = arith.mulf %77, %78 : vector<16x4xf32>
    %80 = arith.truncf %79 : vector<16x4xf32> to vector<16x4xbf16>
    %81 = vector.extract_strided_slice %4 {offsets = [0, 44], sizes = [16, 4], strides = [1, 1]} : vector<16x96xf32> to vector<16x4xf32>
    %82 = arith.truncf %81 : vector<16x4xf32> to vector<16x4xbf16>
    %83 = vector.extract_strided_slice %4 {offsets = [0, 76], sizes = [16, 4], strides = [1, 1]} : vector<16x96xf32> to vector<16x4xf32>
    %84 = arith.truncf %83 : vector<16x4xf32> to vector<16x4xbf16>
    %cst_34 = arith.constant dense<0.000000e+00> : vector<16x16xf32>
    %85 = tpu.matmul %80, %82, %cst_34 {dimension_numbers = #tpu.dot_dimension_numbers<[1], [1], [0], [0], [0, 0, 1, 0], [], []>} : vector<16x4xbf16>, vector<16x4xbf16>, vector<16x16xf32> -> vector<16x16xf32>
    %cst_35 = arith.constant dense<0xFF800000> : vector<16xf32>
    %86 = vector.multi_reduction <maximumf>, %85, %cst_35 [1] : vector<16x16xf32> to vector<16xf32>
    %87 = vector.shape_cast %86 : vector<16xf32> to vector<16x1xf32>
    %88 = vector.broadcast %87 : vector<16x1xf32> to vector<16x16xf32>
    %89 = arith.subf %85, %88 : vector<16x16xf32>
    %90 = math.exp %89 : vector<16x16xf32>
    %cst_36 = arith.constant dense<0.000000e+00> : vector<16xf32>
    %91 = vector.multi_reduction <add>, %90, %cst_36 [1] : vector<16x16xf32> to vector<16xf32>
    %92 = vector.shape_cast %91 : vector<16xf32> to vector<16x1xf32>
    %93 = vector.broadcast %92 : vector<16x1xf32> to vector<16x16xf32>
    %94 = arith.divf %90, %93 : vector<16x16xf32>
    %c0_37 = arith.constant 0 : index
    %c3 = arith.constant 3 : index
    %c0_38 = arith.constant 0 : index
    %c0_39 = arith.constant 0 : index
    %95 = vector.load %arg8[%c0_37, %c3, %c0_38, %c0_39] : memref<1x8x16x16xf32, #tpu.memory_space<vmem>>, vector<1x1x16x16xf32>
    %96 = vector.shape_cast %95 : vector<1x1x16x16xf32> to vector<16x16xf32>
    %97 = vector.shape_cast %94 : vector<16x16xf32> to vector<1x1x16x16xf32>
    tpu.vector_store %arg8[%c0_37, %c3, %c0_38, %c0_39], %97 {strides = array<i32>} : memref<1x8x16x16xf32, #tpu.memory_space<vmem>>, vector<1x1x16x16xf32>,
    %98 = arith.truncf %94 : vector<16x16xf32> to vector<16x16xbf16>
    %cst_40 = arith.constant dense<0.000000e+00> : vector<16x4xf32>
    %99 = tpu.matmul %98, %84, %cst_40 {dimension_numbers = #tpu.dot_dimension_numbers<[1], [0], [0], [1], [0, 0, 1, 1], [], []>} : vector<16x16xbf16>, vector<16x4xbf16>, vector<16x4xf32> -> vector<16x4xf32>
    %c0_41 = arith.constant 0 : index
    %c12 = arith.constant 12 : index
    %100 = vector.load %arg9[%c0_41, %c12] : memref<16x32xf32, #tpu.memory_space<vmem>>, vector<16x4xf32>
    tpu.vector_store %arg9[%c0_41, %c12], %99 {strides = array<i32>} : memref<16x32xf32, #tpu.memory_space<vmem>>, vector<16x4xf32>,
    %101 = vector.extract_strided_slice %4 {offsets = [0, 16], sizes = [16, 4], strides = [1, 1]} : vector<16x96xf32> to vector<16x4xf32>
    %cst_42 = arith.constant 5.000000e-01 : f32
    %102 = vector.broadcast %cst_42 : f32 to vector<16x4xf32>
    %103 = arith.mulf %101, %102 : vector<16x4xf32>
    %104 = arith.truncf %103 : vector<16x4xf32> to vector<16x4xbf16>
    %105 = vector.extract_strided_slice %4 {offsets = [0, 48], sizes = [16, 4], strides = [1, 1]} : vector<16x96xf32> to vector<16x4xf32>
    %106 = arith.truncf %105 : vector<16x4xf32> to vector<16x4xbf16>
    %107 = vector.extract_strided_slice %4 {offsets = [0, 80], sizes = [16, 4], strides = [1, 1]} : vector<16x96xf32> to vector<16x4xf32>
    %108 = arith.truncf %107 : vector<16x4xf32> to vector<16x4xbf16>
    %cst_43 = arith.constant dense<0.000000e+00> : vector<16x16xf32>
    %109 = tpu.matmul %104, %106, %cst_43 {dimension_numbers = #tpu.dot_dimension_numbers<[1], [1], [0], [0], [0, 0, 1, 0], [], []>} : vector<16x4xbf16>, vector<16x4xbf16>, vector<16x16xf32> -> vector<16x16xf32>
    %cst_44 = arith.constant dense<0xFF800000> : vector<16xf32>
    %110 = vector.multi_reduction <maximumf>, %109, %cst_44 [1] : vector<16x16xf32> to vector<16xf32>
    %111 = vector.shape_cast %110 : vector<16xf32> to vector<16x1xf32>
    %112 = vector.broadcast %111 : vector<16x1xf32> to vector<16x16xf32>
    %113 = arith.subf %109, %112 : vector<16x16xf32>
    %114 = math.exp %113 : vector<16x16xf32>
    %cst_45 = arith.constant dense<0.000000e+00> : vector<16xf32>
    %115 = vector.multi_reduction <add>, %114, %cst_45 [1] : vector<16x16xf32> to vector<16xf32>
    %116 = vector.shape_cast %115 : vector<16xf32> to vector<16x1xf32>
    %117 = vector.broadcast %116 : vector<16x1xf32> to vector<16x16xf32>
    %118 = arith.divf %114, %117 : vector<16x16xf32>
    %c0_46 = arith.constant 0 : index
    %c4_47 = arith.constant 4 : index
    %c0_48 = arith.constant 0 : index
    %c0_49 = arith.constant 0 : index
    %119 = vector.load %arg8[%c0_46, %c4_47, %c0_48, %c0_49] : memref<1x8x16x16xf32, #tpu.memory_space<vmem>>, vector<1x1x16x16xf32>
    %120 = vector.shape_cast %119 : vector<1x1x16x16xf32> to vector<16x16xf32>
    %121 = vector.shape_cast %118 : vector<16x16xf32> to vector<1x1x16x16xf32>
    tpu.vector_store %arg8[%c0_46, %c4_47, %c0_48, %c0_49], %121 {strides = array<i32>} : memref<1x8x16x16xf32, #tpu.memory_space<vmem>>, vector<1x1x16x16xf32>,
    %122 = arith.truncf %118 : vector<16x16xf32> to vector<16x16xbf16>
    %cst_50 = arith.constant dense<0.000000e+00> : vector<16x4xf32>
    %123 = tpu.matmul %122, %108, %cst_50 {dimension_numbers = #tpu.dot_dimension_numbers<[1], [0], [0], [1], [0, 0, 1, 1], [], []>} : vector<16x16xbf16>, vector<16x4xbf16>, vector<16x4xf32> -> vector<16x4xf32>
    %c0_51 = arith.constant 0 : index
    %c16 = arith.constant 16 : index
    %124 = vector.load %arg9[%c0_51, %c16] : memref<16x32xf32, #tpu.memory_space<vmem>>, vector<16x4xf32>
    tpu.vector_store %arg9[%c0_51, %c16], %123 {strides = array<i32>} : memref<16x32xf32, #tpu.memory_space<vmem>>, vector<16x4xf32>,
    %125 = vector.extract_strided_slice %4 {offsets = [0, 20], sizes = [16, 4], strides = [1, 1]} : vector<16x96xf32> to vector<16x4xf32>
    %cst_52 = arith.constant 5.000000e-01 : f32
    %126 = vector.broadcast %cst_52 : f32 to vector<16x4xf32>
    %127 = arith.mulf %125, %126 : vector<16x4xf32>
    %128 = arith.truncf %127 : vector<16x4xf32> to vector<16x4xbf16>
    %129 = vector.extract_strided_slice %4 {offsets = [0, 52], sizes = [16, 4], strides = [1, 1]} : vector<16x96xf32> to vector<16x4xf32>
    %130 = arith.truncf %129 : vector<16x4xf32> to vector<16x4xbf16>
    %131 = vector.extract_strided_slice %4 {offsets = [0, 84], sizes = [16, 4], strides = [1, 1]} : vector<16x96xf32> to vector<16x4xf32>
    %132 = arith.truncf %131 : vector<16x4xf32> to vector<16x4xbf16>
    %cst_53 = arith.constant dense<0.000000e+00> : vector<16x16xf32>
    %133 = tpu.matmul %128, %130, %cst_53 {dimension_numbers = #tpu.dot_dimension_numbers<[1], [1], [0], [0], [0, 0, 1, 0], [], []>} : vector<16x4xbf16>, vector<16x4xbf16>, vector<16x16xf32> -> vector<16x16xf32>
    %cst_54 = arith.constant dense<0xFF800000> : vector<16xf32>
    %134 = vector.multi_reduction <maximumf>, %133, %cst_54 [1] : vector<16x16xf32> to vector<16xf32>
    %135 = vector.shape_cast %134 : vector<16xf32> to vector<16x1xf32>
    %136 = vector.broadcast %135 : vector<16x1xf32> to vector<16x16xf32>
    %137 = arith.subf %133, %136 : vector<16x16xf32>
    %138 = math.exp %137 : vector<16x16xf32>
    %cst_55 = arith.constant dense<0.000000e+00> : vector<16xf32>
    %139 = vector.multi_reduction <add>, %138, %cst_55 [1] : vector<16x16xf32> to vector<16xf32>
    %140 = vector.shape_cast %139 : vector<16xf32> to vector<16x1xf32>
    %141 = vector.broadcast %140 : vector<16x1xf32> to vector<16x16xf32>
    %142 = arith.divf %138, %141 : vector<16x16xf32>
    %c0_56 = arith.constant 0 : index
    %c5 = arith.constant 5 : index
    %c0_57 = arith.constant 0 : index
    %c0_58 = arith.constant 0 : index
    %143 = vector.load %arg8[%c0_56, %c5, %c0_57, %c0_58] : memref<1x8x16x16xf32, #tpu.memory_space<vmem>>, vector<1x1x16x16xf32>
    %144 = vector.shape_cast %143 : vector<1x1x16x16xf32> to vector<16x16xf32>
    %145 = vector.shape_cast %142 : vector<16x16xf32> to vector<1x1x16x16xf32>
    tpu.vector_store %arg8[%c0_56, %c5, %c0_57, %c0_58], %145 {strides = array<i32>} : memref<1x8x16x16xf32, #tpu.memory_space<vmem>>, vector<1x1x16x16xf32>,
    %146 = arith.truncf %142 : vector<16x16xf32> to vector<16x16xbf16>
    %cst_59 = arith.constant dense<0.000000e+00> : vector<16x4xf32>
    %147 = tpu.matmul %146, %132, %cst_59 {dimension_numbers = #tpu.dot_dimension_numbers<[1], [0], [0], [1], [0, 0, 1, 1], [], []>} : vector<16x16xbf16>, vector<16x4xbf16>, vector<16x4xf32> -> vector<16x4xf32>
    %c0_60 = arith.constant 0 : index
    %c20 = arith.constant 20 : index
    %148 = vector.load %arg9[%c0_60, %c20] : memref<16x32xf32, #tpu.memory_space<vmem>>, vector<16x4xf32>
    tpu.vector_store %arg9[%c0_60, %c20], %147 {strides = array<i32>} : memref<16x32xf32, #tpu.memory_space<vmem>>, vector<16x4xf32>,
    %149 = vector.extract_strided_slice %4 {offsets = [0, 24], sizes = [16, 4], strides = [1, 1]} : vector<16x96xf32> to vector<16x4xf32>
    %cst_61 = arith.constant 5.000000e-01 : f32
    %150 = vector.broadcast %cst_61 : f32 to vector<16x4xf32>
    %151 = arith.mulf %149, %150 : vector<16x4xf32>
    %152 = arith.truncf %151 : vector<16x4xf32> to vector<16x4xbf16>
    %153 = vector.extract_strided_slice %4 {offsets = [0, 56], sizes = [16, 4], strides = [1, 1]} : vector<16x96xf32> to vector<16x4xf32>
    %154 = arith.truncf %153 : vector<16x4xf32> to vector<16x4xbf16>
    %155 = vector.extract_strided_slice %4 {offsets = [0, 88], sizes = [16, 4], strides = [1, 1]} : vector<16x96xf32> to vector<16x4xf32>
    %156 = arith.truncf %155 : vector<16x4xf32> to vector<16x4xbf16>
    %cst_62 = arith.constant dense<0.000000e+00> : vector<16x16xf32>
    %157 = tpu.matmul %152, %154, %cst_62 {dimension_numbers = #tpu.dot_dimension_numbers<[1], [1], [0], [0], [0, 0, 1, 0], [], []>} : vector<16x4xbf16>, vector<16x4xbf16>, vector<16x16xf32> -> vector<16x16xf32>
    %cst_63 = arith.constant dense<0xFF800000> : vector<16xf32>
    %158 = vector.multi_reduction <maximumf>, %157, %cst_63 [1] : vector<16x16xf32> to vector<16xf32>
    %159 = vector.shape_cast %158 : vector<16xf32> to vector<16x1xf32>
    %160 = vector.broadcast %159 : vector<16x1xf32> to vector<16x16xf32>
    %161 = arith.subf %157, %160 : vector<16x16xf32>
    %162 = math.exp %161 : vector<16x16xf32>
    %cst_64 = arith.constant dense<0.000000e+00> : vector<16xf32>
    %163 = vector.multi_reduction <add>, %162, %cst_64 [1] : vector<16x16xf32> to vector<16xf32>
    %164 = vector.shape_cast %163 : vector<16xf32> to vector<16x1xf32>
    %165 = vector.broadcast %164 : vector<16x1xf32> to vector<16x16xf32>
    %166 = arith.divf %162, %165 : vector<16x16xf32>
    %c0_65 = arith.constant 0 : index
    %c6 = arith.constant 6 : index
    %c0_66 = arith.constant 0 : index
    %c0_67 = arith.constant 0 : index
    %167 = vector.load %arg8[%c0_65, %c6, %c0_66, %c0_67] : memref<1x8x16x16xf32, #tpu.memory_space<vmem>>, vector<1x1x16x16xf32>
    %168 = vector.shape_cast %167 : vector<1x1x16x16xf32> to vector<16x16xf32>
    %169 = vector.shape_cast %166 : vector<16x16xf32> to vector<1x1x16x16xf32>
    tpu.vector_store %arg8[%c0_65, %c6, %c0_66, %c0_67], %169 {strides = array<i32>} : memref<1x8x16x16xf32, #tpu.memory_space<vmem>>, vector<1x1x16x16xf32>,
    %170 = arith.truncf %166 : vector<16x16xf32> to vector<16x16xbf16>
    %cst_68 = arith.constant dense<0.000000e+00> : vector<16x4xf32>
    %171 = tpu.matmul %170, %156, %cst_68 {dimension_numbers = #tpu.dot_dimension_numbers<[1], [0], [0], [1], [0, 0, 1, 1], [], []>} : vector<16x16xbf16>, vector<16x4xbf16>, vector<16x4xf32> -> vector<16x4xf32>
    %c0_69 = arith.constant 0 : index
    %c24 = arith.constant 24 : index
    %172 = vector.load %arg9[%c0_69, %c24] : memref<16x32xf32, #tpu.memory_space<vmem>>, vector<16x4xf32>
    tpu.vector_store %arg9[%c0_69, %c24], %171 {strides = array<i32>} : memref<16x32xf32, #tpu.memory_space<vmem>>, vector<16x4xf32>,
    %173 = vector.extract_strided_slice %4 {offsets = [0, 28], sizes = [16, 4], strides = [1, 1]} : vector<16x96xf32> to vector<16x4xf32>
    %cst_70 = arith.constant 5.000000e-01 : f32
    %174 = vector.broadcast %cst_70 : f32 to vector<16x4xf32>
    %175 = arith.mulf %173, %174 : vector<16x4xf32>
    %176 = arith.truncf %175 : vector<16x4xf32> to vector<16x4xbf16>
    %177 = vector.extract_strided_slice %4 {offsets = [0, 60], sizes = [16, 4], strides = [1, 1]} : vector<16x96xf32> to vector<16x4xf32>
    %178 = arith.truncf %177 : vector<16x4xf32> to vector<16x4xbf16>
    %179 = vector.extract_strided_slice %4 {offsets = [0, 92], sizes = [16, 4], strides = [1, 1]} : vector<16x96xf32> to vector<16x4xf32>
    %180 = arith.truncf %179 : vector<16x4xf32> to vector<16x4xbf16>
    %cst_71 = arith.constant dense<0.000000e+00> : vector<16x16xf32>
    %181 = tpu.matmul %176, %178, %cst_71 {dimension_numbers = #tpu.dot_dimension_numbers<[1], [1], [0], [0], [0, 0, 1, 0], [], []>} : vector<16x4xbf16>, vector<16x4xbf16>, vector<16x16xf32> -> vector<16x16xf32>
    %cst_72 = arith.constant dense<0xFF800000> : vector<16xf32>
    %182 = vector.multi_reduction <maximumf>, %181, %cst_72 [1] : vector<16x16xf32> to vector<16xf32>
    %183 = vector.shape_cast %182 : vector<16xf32> to vector<16x1xf32>
    %184 = vector.broadcast %183 : vector<16x1xf32> to vector<16x16xf32>
    %185 = arith.subf %181, %184 : vector<16x16xf32>
    %186 = math.exp %185 : vector<16x16xf32>
    %cst_73 = arith.constant dense<0.000000e+00> : vector<16xf32>
    %187 = vector.multi_reduction <add>, %186, %cst_73 [1] : vector<16x16xf32> to vector<16xf32>
    %188 = vector.shape_cast %187 : vector<16xf32> to vector<16x1xf32>
    %189 = vector.broadcast %188 : vector<16x1xf32> to vector<16x16xf32>
    %190 = arith.divf %186, %189 : vector<16x16xf32>
    %c0_74 = arith.constant 0 : index
    %c7 = arith.constant 7 : index
    %c0_75 = arith.constant 0 : index
    %c0_76 = arith.constant 0 : index
    %191 = vector.load %arg8[%c0_74, %c7, %c0_75, %c0_76] : memref<1x8x16x16xf32, #tpu.memory_space<vmem>>, vector<1x1x16x16xf32>
    %192 = vector.shape_cast %191 : vector<1x1x16x16xf32> to vector<16x16xf32>
    %193 = vector.shape_cast %190 : vector<16x16xf32> to vector<1x1x16x16xf32>
    tpu.vector_store %arg8[%c0_74, %c7, %c0_75, %c0_76], %193 {strides = array<i32>} : memref<1x8x16x16xf32, #tpu.memory_space<vmem>>, vector<1x1x16x16xf32>,
    %194 = arith.truncf %190 : vector<16x16xf32> to vector<16x16xbf16>
    %cst_77 = arith.constant dense<0.000000e+00> : vector<16x4xf32>
    %195 = tpu.matmul %194, %180, %cst_77 {dimension_numbers = #tpu.dot_dimension_numbers<[1], [0], [0], [1], [0, 0, 1, 1], [], []>} : vector<16x16xbf16>, vector<16x4xbf16>, vector<16x4xf32> -> vector<16x4xf32>
    %c0_78 = arith.constant 0 : index
    %c28 = arith.constant 28 : index
    %196 = vector.load %arg9[%c0_78, %c28] : memref<16x32xf32, #tpu.memory_space<vmem>>, vector<16x4xf32>
    tpu.vector_store %arg9[%c0_78, %c28], %195 {strides = array<i32>} : memref<16x32xf32, #tpu.memory_space<vmem>>, vector<16x4xf32>,
    %c0_79 = arith.constant 0 : index
    %c0_80 = arith.constant 0 : index
    %197 = vector.load %arg9[%c0_79, %c0_80] : memref<16x32xf32, #tpu.memory_space<vmem>>, vector<16x32xf32>
    %198 = arith.truncf %197 : vector<16x32xf32> to vector<16x32xbf16>
    %c0_81 = arith.constant 0 : index
    %c0_82 = arith.constant 0 : index
    %199 = vector.load %arg5[%c0_81, %c0_82] : memref<32x32xbf16, #tpu.memory_space<vmem>>, vector<32x32xbf16>
    %cst_83 = arith.constant dense<0.000000e+00> : vector<16x32xf32>
    %200 = tpu.matmul %198, %199, %cst_83 {dimension_numbers = #tpu.dot_dimension_numbers<[1], [0], [0], [1], [0, 0, 1, 1], [], []>} : vector<16x32xbf16>, vector<32x32xbf16>, vector<16x32xf32> -> vector<16x32xf32>
    %c0_84 = arith.constant 0 : index
    %c0_85 = arith.constant 0 : index
    %201 = vector.load %arg6[%c0_84, %c0_85] : memref<1x32xf32, #tpu.memory_space<vmem>>, vector<1x32xf32>
    %202 = vector.broadcast %201 : vector<1x32xf32> to vector<16x32xf32>
    %203 = arith.addf %200, %202 : vector<16x32xf32>
    %c0_86 = arith.constant 0 : index
    %c0_87 = arith.constant 0 : index
    %204 = vector.load %arg3[%c0_86, %c0_87] : memref<144x16xbf16, #tpu.memory_space<vmem>>, vector<144x16xbf16>
    %205 = arith.truncf %203 : vector<16x32xf32> to vector<16x32xbf16>
    %cst_88 = arith.constant dense<0.000000e+00> : vector<144x32xf32>
    %206 = tpu.matmul %204, %205, %cst_88 {dimension_numbers = #tpu.dot_dimension_numbers<[1], [0], [0], [1], [0, 0, 1, 1], [], []>} : vector<144x16xbf16>, vector<16x32xbf16>, vector<144x32xf32> -> vector<144x32xf32>
    %207 = vector.shape_cast %206 : vector<144x32xf32> to vector<16x9x32xf32>
    %208 = arith.truncf %207 : vector<16x9x32xf32> to vector<16x9x32xbf16>
    %c0_89 = arith.constant 0 : index
    %c0_90 = arith.constant 0 : index
    %c0_91 = arith.constant 0 : index
    %209 = vector.load %arg2[%c0_89, %c0_90, %c0_91] : memref<1x16x144xf32, #tpu.memory_space<vmem>>, vector<1x16x144xf32>
    %210 = vector.shape_cast %209 : vector<1x16x144xf32> to vector<16x144xf32>
    %211 = vector.shape_cast %210 : vector<16x144xf32> to vector<16x9x16xf32>
    %212 = tpu.transpose %211, [0, 2, 1] : vector<16x9x16xf32> -> vector<16x16x9xf32>
    %213 = arith.truncf %212 : vector<16x16x9xf32> to vector<16x16x9xbf16>
    %cst_92 = arith.constant dense<0.000000e+00> : vector<16x16x32xf32>
    %214 = tpu.matmul %213, %208, %cst_92 {dimension_numbers = #tpu.dot_dimension_numbers<[2], [1], [1], [2], [0, 0, 0, 1, 1, 2], [0], [0]>} : vector<16x16x9xbf16>, vector<16x9x32xbf16>, vector<16x16x32xf32> -> vector<16x16x32xf32>
    %c0_93 = arith.constant 0 : index
    %c0_94 = arith.constant 0 : index
    %c0_95 = arith.constant 0 : index
    %c0_96 = arith.constant 0 : index
    %215 = vector.load %arg7[%c0_93, %c0_94, %c0_95, %c0_96] : memref<1x16x16x32xf32, #tpu.memory_space<vmem>>, vector<1x16x16x32xf32>
    %216 = vector.shape_cast %215 : vector<1x16x16x32xf32> to vector<16x16x32xf32>
    %217 = vector.shape_cast %214 : vector<16x16x32xf32> to vector<1x16x16x32xf32>
    tpu.vector_store %arg7[%c0_93, %c0_94, %c0_95, %c0_96], %217 {strides = array<i32>} : memref<1x16x16x32xf32, #tpu.memory_space<vmem>>, vector<1x16x16x32xf32>,
    return
  }
  func.func @transform_0(%arg0: i32) -> (i32, i32, i32) {
    %c0_i32 = arith.constant 0 : i32
    %c0_i32_0 = arith.constant 0 : i32
    %c0_i32_1 = arith.constant 0 : i32
    return %arg0, %c0_i32, %c0_i32_0 : i32, i32, i32
  }
  func.func @transform_1(%arg0: i32) -> (i32, i32, i32) {
    %c0_i32 = arith.constant 0 : i32
    %c0_i32_0 = arith.constant 0 : i32
    %c0_i32_1 = arith.constant 0 : i32
    return %arg0, %c0_i32, %c0_i32_0 : i32, i32, i32
  }
  func.func @transform_2(%arg0: i32) -> (i32, i32) {
    %c0_i32 = arith.constant 0 : i32
    %c0_i32_0 = arith.constant 0 : i32
    %c0_i32_1 = arith.constant 0 : i32
    return %c0_i32, %c0_i32_0 : i32, i32
  }
  func.func @transform_3(%arg0: i32) -> (i32, i32) {
    %c0_i32 = arith.constant 0 : i32
    %c0_i32_0 = arith.constant 0 : i32
    %c0_i32_1 = arith.constant 0 : i32
    return %c0_i32, %c0_i32_0 : i32, i32
  }
  func.func @transform_4(%arg0: i32) -> (i32, i32) {
    %c0_i32 = arith.constant 0 : i32
    %c0_i32_0 = arith.constant 0 : i32
    %c0_i32_1 = arith.constant 0 : i32
    return %c0_i32, %c0_i32_0 : i32, i32
  }
  func.func @transform_5(%arg0: i32) -> (i32, i32) {
    %c0_i32 = arith.constant 0 : i32
    %c0_i32_0 = arith.constant 0 : i32
    %c0_i32_1 = arith.constant 0 : i32
    return %c0_i32, %c0_i32_0 : i32, i32
  }
  func.func @transform_6(%arg0: i32) -> (i32, i32, i32, i32) {
    %c0_i32 = arith.constant 0 : i32
    %c0_i32_0 = arith.constant 0 : i32
    %c0_i32_1 = arith.constant 0 : i32
    %c0_i32_2 = arith.constant 0 : i32
    return %arg0, %c0_i32, %c0_i32_0, %c0_i32_1 : i32, i32, i32, i32
  }
  func.func @transform_7(%arg0: i32) -> (i32, i32, i32, i32) {
    %c0_i32 = arith.constant 0 : i32
    %c0_i32_0 = arith.constant 0 : i32
    %c0_i32_1 = arith.constant 0 : i32
    %c0_i32_2 = arith.constant 0 : i32
    return %arg0, %c0_i32, %c0_i32_0, %c0_i32_1 : i32, i32, i32, i32
  }
}

</mosaic_0001>

<bundles_post_ra>
// kernel: stoken_attention_forward.3
= control target key start
LH: loop header
LB: loop body
LE: loop exit
PB: predicated region body
PF: predicated region fallthrough
CT: control target
= control target key end

     0   :  { %13 = vsyncpa [#allocation4], 0  ;;  %s4586_s0 = inlined_call_operand.vmem [shape: f32[2,16,32], index: 0, kind: input, shape index: {}]   ;;  %s4587_s1 = inlined_call_operand.vmem [shape: f32[2,16,144], index: 1, kind: input, shape index: {}]   ;;  %s4588_s2 = inlined_call_operand.vmem [shape: bf16[144,16], index: 2, kind: input, shape index: {}]   ;;  %s4589_s3 = inlined_call_operand.vmem [shape: bf16[32,96], index: 3, kind: input, shape index: {}]   ;;  %s4590_s4 = inlined_call_operand.vmem [shape: bf16[32,32], index: 4, kind: input, shape index: {}]   ;;  %s4591_s5 = inlined_call_operand.vmem [shape: f32[1,32], index: 5, kind: input, shape index: {}]   ;;  %s4592_s6 = inlined_call_operand.vmem [shape: f32[2,16,16,32], index: 6, kind: output, shape index: {0}]   ;;  %s4593_s7 = inlined_call_operand.hbm [shape: f32[2,8,16,16], index: 7, kind: output, shape index: {1}]  }
   0x1   :  { %15 = vsyncpa [#allocation4 + $0x1], 0  ;;  %s3828_s24 = smov 0   ;;  %s3830_s25 = smov 0  }
   0x2   :  { %s3832_s26 = smov 0   ;;  %s3834_s27 = smov 0  }
   0x3 LB: > { %s3849_s28 = sadd.s32 4294967295, %s3751_s27   ;;  %s3309_s29 = sadd.s32 4294967294, %s3751_s27   ;;  %s3751_s27 = sphi %s3834_s27, %s4603_s27   ;;  %s3747_s26 = sphi %s3832_s26, %s4602_s26   ;;  %s3743_s25 = sphi %s3830_s25, %s4601_s25   ;;  %s3739_s24 = sphi %s3828_s24, %s4600_s24  }
   0x4   : > { %s3853_s30 = sadd.s32 1, %s3751_s27   ;;  %s190_s8 = sadd.s32 1, %s3747_s26 }
   0x5   : > { %s187_s9 = ssub.s32 %s3751_s27, %s3853_s30  ;;  %p200_p0 = scmp.ne.s32.totalorder %s3747_s26, %s3743_s25 }
   0x6   : > { %p188_p1 = scmp.eq.s32.totalorder %s187_s9, 0  ;;  %p201_p2 = scmp.eq.s32.totalorder %s3849_s28, 1 }
   0x7   : > { %p206_p3 = scmp.ne.s32.totalorder %s3743_s25, %s3739_s24  ;;  %p207_p4 = scmp.eq.s32.totalorder %s3309_s29, 1 }
   0x8   : > { %s3864_s10 = scalar_select %p188_p1, %s3747_s26, %s190_s8  }
   0x9   : > { %p3866_p5 = por %p201_p2, %p200_p0  ;;  %p3870_p6 = por %p207_p4, %p206_p3 }
   0xa   : > { %p3312_p7 = scmp.ge.s32.totalorder %s3751_s27, 1  ;;  %p253_p8 = scmp.lt.s32.totalorder %s3751_s27, 3 }
   0xc   : > { %p254_p9 = pnand %p3312_p7, %p253_p8 }
   0xd   : > { %p295_p10 = scmp.lt.s32.totalorder (!%p254_p9), %s3849_s28, 1  ;;  %s3753_s22 = smov (!%p254_p9), 96  }
   0xe   : > { %257 = sbr.rel (%p254_p9) target bundleno = 2325 (0x915), region = 44  ;;  %s3754_s23 = smov (!%p254_p9), 88  }
   0xf   : > { %s3755_s29 = smov (!%p254_p9), 92   ;;  %s3756_s8 = smov (!%p254_p9), 120  }
  0x10   : > { %s3757_s9 = smov (!%p254_p9), 124   ;;  %s3758_s13 = smov (!%p254_p9), 84  }
  0x11   : > { %s3759_s14 = smov (!%p254_p9), 56   ;;  %s3760_s15 = smov (!%p254_p9), 76  }
  0x12   : > { %s3761_s16 = smov (!%p254_p9), 108   ;;  %s3763_s19 = smov (!%p254_p9), 72  }
  0x13   : > { %v3438_v0 = vld [vmem:[%s4589_s3 + $0x8] sm:$0xff]  ;;  %v3437_v1 = vld [vmem:[%s4589_s3] sm:$0xff]  ;;  %s3884_s17 = scalar_select %p295_p10, %s3849_s28, 1  ;;  %vm330_vm0 = vcmask 261120   ;;  %vm355_vm1 = vcmask 31744   ;;  %vm376_vm2 = vcmask 130048  }
  0x14   : > { %340 = vmatpush.bf16.msra.mxu0 %v3438_v0  ;;  %s3764_s20 = smov 116  }
  0x15   : > { %s3434_s18 = sshll.u32 %s3884_s17, 4 }
  0x16   : > { %s299_s21 = scalar_lea.vmem %s4586_s0, %s3434_s18  ;;  %s3762_s18 = smov 68  }
  0x17   : > { %v311_v2 = vld [vmem:[%s299_s21] sm:$0xff]  ;;  %v312_v3 = vld [vmem:[%s299_s21 + $0x8] sm:$0xff]  ;;  %s3765_s21 = smov 100  }
  0x18   : > { %341 = vmatpush.bf16.msra.mxu0 %v3437_v1  ;;  %v313_v4 = vpack.c.bf16 %v312_v3, %v311_v2 }
  0x1b   : > { %3328 = vmatmul.msk.bf16.vlgmr.msra.gmra.mxu0 %vm330_vm0, %v313_v4 }
  0x98   : > { %v343_v5 = vpop.f32.mrf.mxu0 }
  0x99   : > { %v348_v9 = vmul.f32 0.5, %v343_v5 }
  0xa0   : > { %v345_v6 = vpop.f32.mrf.mxu0 }
  0xa1   : > { %v3891_v7 = vpack.c.bf16 %v345_v6, %v343_v5  ;;  %v349_v8 = vmul.f32 0.5, %v345_v6 }
  0xa3   : > { %353 = vrot.lane.b32.xlu2 %v3891_v7, %s3753_s22  ;;  %560 = vrot.lane.b32.xlu0 %v3891_v7, %s3754_s23  ;;  %v3896_v10 = vpack.c.bf16 %v349_v8, %v348_v9  ;;  %s3766_s23 = smov 80  }
  0xab   : > { %453 = vrot.lane.b32.xlu2 %v3891_v7, %s3755_s29  ;;  %558 = vrot.lane.b32.xlu0 %v3896_v10, %s3756_s8  ;;  %s3767_s29 = smov 112   ;;  %s3768_s8 = smov 104  }
  0xb3   : > { %451 = vrot.lane.b32.xlu0 %v3896_v10, %s3757_s9  ;;  %s4595_s9 = sand.u32 1, %s3743_s25  }
  0xbb   : > { %667 = vrot.lane.b32.xlu0 %v3891_v7, %s3758_s13  ;;  %s3313_s13 = sshll.u32 %s4595_s9, 7 }
  0xc3   : > { %634 = vrot.lane.b32.xlu0 %v3891_v7, %s3759_s14  ;;  %s3946_s14 = scalar_lea.vmem [#allocation3], %s3313_s13  ;;  %s4594_s13 = smov 8  }
  0xcb   : > { %881 = vrot.lane.b32.xlu0 %v3891_v7, %s3760_s15  ;;  %s3769_s15 = smov 64  }
  0xd3   : > { %879 = vrot.lane.b32.xlu0 %v3896_v10, %s3761_s16  ;;  %s3770_s16 = smov 52  }
  0xdb   : > { %1095 = vrot.lane.b32.xlu0 %v3891_v7, %s3762_s18  ;;  %s3771_s18 = smov 60  }
  0xe3   : > { %988 = vrot.lane.b32.xlu0 %v3891_v7, %s3763_s19  ;;  %s3772_s19 = smov 48  }
  0xfd   : > { %v354_v11 = vpop.permute.xlu2 %353 }
  0xfe   : > { %v360_v12 = vsel %vm355_vm1, %v354_v11, 0 }
  0xff   : > { %369 = vmatpush.bf16.xpose.msra.mxu2 %v360_v12 }
 0x105   : > { %v454_v13 = vpop.permute.xlu2 %453 }
 0x106   : > { %3329 = vmatmul.msk.bf16.vlgmr.msra.gmra.mxu2 %vm355_vm1, %v3896_v10  ;;  %v459_v14 = vsel %vm355_vm1, %v454_v13, 0 }
 0x107   : > { %468 = vmatpush.bf16.xpose.msra.mxu3 %v459_v14 }
 0x115   : > { %v561_v15 = vpop.permute.xlu0 %560 }
 0x116   : > { %v566_v16 = vsel %vm355_vm1, %v561_v15, 0 }
 0x117   : > { %575 = vmatpush.bf16.xpose.msrb.mxu0 %v566_v16 }
 0x11d   : > { %v559_v17 = vpop.permute.xlu0 %558 }
 0x11e   : > { %3335 = vmatmul.msk.bf16.vlgmr.msrb.gmra.mxu0 %vm355_vm1, %v559_v17 }
 0x125   : > { %v452_v18 = vpop.permute.xlu0 %451 }
 0x126   : > { %3331 = vmatmul.msk.bf16.vlgmr.msra.gmra.mxu3 %vm355_vm1, %v452_v18 }
 0x12d   : > { %v668_v19 = vpop.permute.xlu0 %667 }
 0x12e   : > { %v673_v20 = vsel %vm355_vm1, %v668_v19, 0 }
 0x12f   : > { %682 = vmatpush.bf16.xpose.msrb.mxu3 %v673_v20 }
 0x135   : > { %v635_v21 = vpop.permute.xlu0 %634 }
 0x136   : > { %647 = vmatpush.bf16.msra.mxu0 %v635_v21 }
 0x13d   : > { %v882_v22 = vpop.permute.xlu0 %881 }
 0x13e   : > { %v887_v23 = vsel %vm355_vm1, %v882_v22, 0 }
 0x13f   : > { %896 = vmatpush.bf16.xpose.msra.mxu3 %v887_v23 }
 0x145   : > { %v880_v51 = vpop.permute.xlu0 %879 }
 0x14d   : > { %v1096_v2 = vpop.permute.xlu0 %1095 }
 0x14e   : > { %v1101_v8 = vsel %vm355_vm1, %v1096_v2, 0 }
 0x155   : > { %v989_v12 = vpop.permute.xlu0 %988 }
 0x156   : > { %v994_v15 = vsel %vm355_vm1, %v989_v12, 0 }
 0x189   : > { %v3916_v24 = vpop.f32.mrf.mxu2 }
 0x18a   : > { %v377_v25 = vsel %vm376_vm2, %v3916_v24, -inf }
 0x18b   : > { %378 = vmax.xlane.f32.xlu0 %v377_v25 }
 0x191   : > { %v3939_v44 = vpop.f32.mrf.mxu2 }
 0x192   : > { %v380_v45 = vsel %vm376_vm2, %v3939_v44, -inf }
 0x19b   : > { %v577_v26 = vpop.f32.mrf.mxu0 }
 0x19c   : > { %v582_v27 = vsel %vm376_vm2, %v577_v26, -inf }
 0x19d   : > { %583 = vmax.xlane.f32.xlu1 %v582_v27 }
 0x1a3   : > { %v579_v28 = vpop.f32.mrf.mxu0 }
 0x1a4   : > { %v585_v29 = vsel %vm376_vm2, %v579_v28, -inf }
 0x1a5   : > { %586 = vmax.xlane.f32.xlu1 %v585_v29 }
 0x1a9   : > { %v3922_v30 = vpop.f32.mrf.mxu3 }
 0x1aa   : > { %v475_v43 = vsel %vm376_vm2, %v3922_v30, -inf }
 0x1b1   : > { %v3924_v31 = vpop.f32.mrf.mxu3 }
 0x1b2   : > { %v478_v32 = vsel %vm376_vm2, %v3924_v31, -inf }
 0x1b3   : > { %479 = vmax.xlane.f32.xlu0 %v478_v32 }
 0x1fe   : > { %v379_v19 = vpop.xlane.xlu0 %378 }
 0x1ff   : > { %v383_v20 = vsub.f32 %v3916_v24, %v379_v19 }
 0x201   : > { %v385_v23 = vmul.f32 1.442695, %v383_v20 }
 0x210   : > { %v584_v33 = vpop.xlane.xlu1 %583 }
 0x211   : > { %v588_v34 = vsub.f32 %v577_v26, %v584_v33 }
 0x213   : > { %v590_v35 = vmul.f32 1.442695, %v588_v34 }
 0x215   : > { %3625 = vpow2.f32 %v590_v35 }
 0x218   : > { %v587_v36 = vpop.xlane.xlu1 %586 }
 0x219   : > { %v589_v37 = vsub.f32 %v579_v28, %v587_v36 }
 0x21b   : > { %v3626_v38 = vpop.eup %3625  ;;  %v592_v39 = vmul.f32 1.442695, %v589_v37 }
 0x21c   : > { %v594_v40 = vsel %vm376_vm2, %v3626_v38, 0.0 }
 0x21d   : > { %3627 = vpow2.f32 %v592_v39  ;;  %595 = vadd.xlane.f32.xlu1 %v594_v40 }
 0x223   : > { %v3628_v41 = vpop.eup %3627 }
 0x224   : > { %v597_v42 = vsel %vm376_vm2, %v3628_v41, 0.0 }
 0x225   : > { %598 = vadd.xlane.f32.xlu2 %v597_v42 }
 0x236   : > { %665 = vrot.lane.b32.xlu1 %v3896_v10, %s3764_s20  ;;  %s3773_s20 = smov 40  }
 0x23d   : > { %1093 = vrot.lane.b32.xlu2 %v3896_v10, %s3765_s21  ;;  %s3774_s21 = smov 44  }
 0x23e   : > { %774 = vrot.lane.b32.xlu1 %v3891_v7, %s3766_s23 }
 0x246   : > { %772 = vrot.lane.b32.xlu1 %v3896_v10, %s3767_s29 }
 0x24e   : > { %986 = vrot.lane.b32.xlu1 %v3896_v10, %s3768_s8  ;;  %s3775_s8 = smov 36  }
 0x266   : > { %476 = vmax.xlane.f32.xlu2 %v475_v43 }
 0x278   : > { %381 = vmax.xlane.f32.xlu1 %v380_v45 }
 0x290   : > { %v596_v46 = vpop.xlane.xlu1 %595 }
 0x291   : > { %3629 = vrcp.f32 %v596_v46  ;;  %v611_v52 = vand.u32 2147483648, %v596_v46  ;;  %v609_v54 = vand.u32 2147483647, %v596_v46  ;;  %vm605_vm4 = vweird.f32 %v596_v46 }
 0x293   : > { %v612_v57 = vor.u32 1.1754944e-38, %v611_v52  ;;  %vm610_vm6 = vcmp.eq.f32.partialorder %v609_v54, 8.507059e+37 }
 0x297   : > { %v3630_v47 = vpop.eup %3629 }
 0x298   : > { %v601_v48 = vmul.f32 %v3630_v47, %v596_v46  ;;  %v599_v49 = vpop.xlane.xlu2 %598  ;;  %vm606_vm3 = vweird.f32 %v3630_v47  ;;  %v480_v46 = vpop.xlane.xlu0 %479 }
 0x299   : > { %3631 = vrcp.f32 %v599_v49  ;;  %vm607_vm5 = vmor %vm605_vm4, %vm606_vm3  ;;  %v626_v63 = vand.u32 2147483648, %v599_v49  ;;  %v624_v1 = vand.u32 2147483647, %v599_v49  ;;  %vm620_vm8 = vweird.f32 %v599_v49 }
 0x29a   : > { %v602_v50 = vsub.f32 1.0, %v601_v48  ;;  %3633 = vpow2.f32 %v385_v23 }
 0x29b   : > { %v627_v4 = vor.u32 1.1754944e-38, %v626_v63  ;;  %vm625_vm10 = vcmp.eq.f32.partialorder %v624_v1, 8.507059e+37 }
 0x29c   : > { %v603_v53 = vmul.f32 %v3630_v47, %v602_v50 }
 0x29e   : > { %v604_v55 = vadd.f32 %v3630_v47, %v603_v53 }
 0x29f   : > { %v3632_v56 = vpop.eup %3631 }
 0x2a0   : > { %v608_v58 = vsel %vm607_vm5, %v3630_v47, %v604_v55  ;;  %v616_v59 = vmul.f32 %v3632_v56, %v599_v49  ;;  %vm621_vm7 = vweird.f32 %v3632_v56  ;;  %v1094_v17 = vpop.permute.xlu2 %1093  ;;  %v3965_v32 = vpop.eup %3633  ;;  %v482_v47 = vsub.f32 %v3924_v31, %v480_v46 }
 0x2a1   : > { %v613_v60 = vsel %vm610_vm6, %v612_v57, %v608_v58  ;;  %vm622_vm9 = vmor %vm620_vm8, %vm621_vm7  ;;  %v389_v34 = vsel %vm376_vm2, %v3965_v32, 0.0 }
 0x2a2   : > { %v614_v61 = vmul.f32 %v3626_v38, %v613_v60  ;;  %v617_v62 = vsub.f32 1.0, %v616_v59  ;;  %v485_v48 = vmul.f32 1.442695, %v482_v47 }
 0x2a4   : > { %3336 = vst.msk [vmem:[%s3946_s14 + $0x20] sm:$0xff] %vm376_vm2, %v614_v61  ;;  %v618_v0 = vmul.f32 %v3632_v56, %v617_v62 }
 0x2a6   : > { %v619_v3 = vadd.f32 %v3632_v56, %v618_v0 }
 0x2a8   : > { %v623_v5 = vsel %vm622_vm9, %v3632_v56, %v619_v3  ;;  %v666_v6 = vpop.permute.xlu1 %665 }
 0x2a9   : > { %v628_v9 = vsel %vm625_vm10, %v627_v4, %v623_v5  ;;  %3339 = vmatmul.msk.bf16.vlgmr.msrb.gmra.mxu3 %vm355_vm1, %v666_v6 }
 0x2aa   : > { %v629_v10 = vmul.f32 %v3628_v41, %v628_v9  ;;  %1110 = vmatpush.bf16.xpose.msrb.mxu3 %v1101_v8 }
 0x2ac   : > { %3337 = vst.msk [vmem:[%s3946_s14 + $0x28] sm:$0xff] %vm376_vm2, %v629_v10  ;;  %v633_v11 = vpack.c.bf16 %v629_v10, %v614_v61 }
 0x2ae   : > { %3338 = vmatmul.msk.bf16.vlgmr.msra.gmra.mxu0 %vm376_vm2, %v633_v11 }
 0x2b0   : > { %v775_v13 = vpop.permute.xlu1 %774 }
 0x2b1   : > { %v780_v14 = vsel %vm355_vm1, %v775_v13, 0 }
 0x2b2   : > { %789 = vmatpush.bf16.xpose.msrb.mxu0 %v780_v14 }
 0x2b8   : > { %v773_v16 = vpop.permute.xlu1 %772 }
 0x2b9   : > { %3347 = vmatmul.msk.bf16.vlgmr.msra.gmra.mxu3 %vm355_vm1, %v880_v51 }
 0x2ba   : > { %1003 = vmatpush.bf16.xpose.msra.mxu0 %v994_v15 }
 0x2be   : > { %3343 = vmatmul.msk.bf16.vlgmr.msrb.gmra.mxu0 %vm355_vm1, %v773_v16 }
 0x2c0   : > { %v987_v18 = vpop.permute.xlu1 %986 }
 0x2c9   : > { %3355 = vmatmul.msk.bf16.vlgmr.msrb.gmra.mxu3 %vm355_vm1, %v1094_v17 }
 0x2ce   : > { %3351 = vmatmul.msk.bf16.vlgmr.msra.gmra.mxu0 %vm355_vm1, %v987_v18 }
 0x2d9   : > { %v477_v25 = vpop.xlane.xlu2 %476 }
 0x2da   : > { %v481_v26 = vsub.f32 %v3922_v30, %v477_v25 }
 0x2dc   : > { %v483_v29 = vmul.f32 1.442695, %v481_v26 }
 0x2de   : > { %3635 = vpow2.f32 %v483_v29 }
 0x2e4   : > { %v3970_v35 = vpop.eup %3635 }
 0x2e5   : > { %v487_v30 = vsel %vm376_vm2, %v3970_v35, 0.0 }
 0x2eb   : > { %v382_v42 = vpop.xlane.xlu1 %381 }
 0x2ec   : > { %v384_v43 = vsub.f32 %v3939_v44, %v382_v42 }
 0x2ee   : > { %v387_v45 = vmul.f32 1.442695, %v384_v43 }
 0x2f0   : > { %3637 = vpow2.f32 %v387_v45 }
 0x2f1   : > { %3639 = vpow2.f32 %v485_v48 }
 0x2f6   : > { %v3990_v49 = vpop.eup %3637 }
 0x2f7   : > { %v392_v50 = vsel %vm376_vm2, %v3990_v49, 0.0  ;;  %v3996_v52 = vpop.eup %3639 }
 0x2f8   : > { %v490_v44 = vsel %vm376_vm2, %v3996_v52, 0.0 }
 0x32b   : > { %v3994_v51 = vpop.f32.mrf.mxu0 }
 0x32c   : > { %v684_v21 = vpop.f32.mrf.mxu3 }
 0x32d   : > { %v689_v22 = vsel %vm376_vm2, %v684_v21, -inf }
 0x32e   : > { %690 = vmax.xlane.f32.xlu1 %v689_v22 }
 0x333   : > { %v4000_v53 = vpop.f32.mrf.mxu0 }
 0x334   : > { %v686_v27 = vpop.f32.mrf.mxu3 }
 0x335   : > { %v692_v28 = vsel %vm376_vm2, %v686_v27, -inf }
 0x336   : > { %693 = vmax.xlane.f32.xlu0 %v692_v28 }
 0x33b   : > { %v4002_v56 = vpop.f32.mrf.mxu0 }
 0x33c   : > { %v898_v33 = vpop.f32.mrf.mxu3  ;;  %v796_v4 = vsel %vm376_vm2, %v4002_v56, -inf }
 0x33d   : > { %v903_v24 = vsel %vm376_vm2, %v898_v33, -inf }
 0x33e   : > { %904 = vmax.xlane.f32.xlu2 %v903_v24  ;;  %390 = vadd.xlane.f32.xlu0 %v389_v34 }
 0x343   : > { %v4009_v62 = vpop.f32.mrf.mxu0 }
 0x344   : > { %v3972_v36 = vpop.f32.mrf.mxu3  ;;  %v799_v15 = vsel %vm376_vm2, %v4009_v62, -inf }
 0x345   : > { %v906_v37 = vsel %vm376_vm2, %v3972_v36, -inf }
 0x346   : > { %488 = vadd.xlane.f32.xlu0 %v487_v30  ;;  %907 = vmax.xlane.f32.xlu1 %v906_v37 }
 0x34b   : > { %v4017_v11 = vpop.f32.mrf.mxu0 }
 0x34c   : > { %v3978_v38 = vpop.f32.mrf.mxu3  ;;  %v1010_v18 = vsel %vm376_vm2, %v4017_v11, -inf }
 0x34d   : > { %v1117_v39 = vsel %vm376_vm2, %v3978_v38, -inf }
 0x34e   : > { %1118 = vmax.xlane.f32.xlu2 %v1117_v39 }
 0x354   : > { %v3982_v40 = vpop.f32.mrf.mxu3 }
 0x355   : > { %v1120_v41 = vsel %vm376_vm2, %v3982_v40, -inf }
 0x356   : > { %1121 = vmax.xlane.f32.xlu1 %v1120_v41 }
 0x366   : > { %428 = vrot.lane.b32.xlu2 %v3891_v7, %s3769_s15 }
 0x38f   : > { %393 = vadd.xlane.f32.xlu2 %v392_v50 }
 0x397   : > { %491 = vadd.xlane.f32.xlu2 %v490_v44 }
 0x3a1   : > { %v691_v31 = vpop.xlane.xlu1 %690 }
 0x3a2   : > { %v695_v54 = vsub.f32 %v684_v21, %v691_v31 }
 0x3a4   : > { %v697_v55 = vmul.f32 1.442695, %v695_v54 }
 0x3a6   : > { %3641 = vpow2.f32 %v697_v55 }
 0x3a9   : > { %v694_v57 = vpop.xlane.xlu0 %693 }
 0x3aa   : > { %v696_v58 = vsub.f32 %v686_v27, %v694_v57 }
 0x3ac   : > { %v4004_v59 = vpop.eup %3641  ;;  %v699_v60 = vmul.f32 1.442695, %v696_v58 }
 0x3ad   : > { %v701_v61 = vsel %vm376_vm2, %v4004_v59, 0.0 }
 0x3ae   : > { %3643 = vpow2.f32 %v699_v60  ;;  %702 = vadd.xlane.f32.xlu1 %v701_v61 }
 0x3af   : > { %741 = vrot.lane.b32.xlu2 %v3891_v7, %s3770_s16  ;;  %s3777_s16 = smov 4  }
 0x3b1   : > { %v905_v63 = vpop.xlane.xlu2 %904  ;;  %v391_v0 = vpop.xlane.xlu0 %390 }
 0x3b2   : > { %3645 = vrcp.f32 %v391_v0  ;;  %v909_v2 = vsub.f32 %v898_v33, %v905_v63  ;;  %v406_v13 = vand.u32 2147483648, %v391_v0  ;;  %v404_v17 = vand.u32 2147483647, %v391_v0 }
 0x3b3   : > { %vm400_vm12 = vweird.f32 %v391_v0 }
 0x3b4   : > { %v4011_v1 = vpop.eup %3643  ;;  %v911_v6 = vmul.f32 1.442695, %v909_v2  ;;  %v407_v21 = vor.u32 1.1754944e-38, %v406_v13  ;;  %vm405_vm14 = vcmp.eq.f32.partialorder %v404_v17, 8.507059e+37 }
 0x3b5   : > { %v704_v3 = vsel %vm376_vm2, %v4011_v1, 0.0 }
 0x3b6   : > { %705 = vadd.xlane.f32.xlu0 %v704_v3  ;;  %797 = vmax.xlane.f32.xlu1 %v796_v4 }
 0x3b8   : > { %v3646_v5 = vpop.eup %3645 }
 0x3b9   : > { %v396_v8 = vmul.f32 %v3646_v5, %v391_v0  ;;  %v489_v9 = vpop.xlane.xlu0 %488  ;;  %v908_v10 = vpop.xlane.xlu1 %907  ;;  %vm401_vm11 = vweird.f32 %v3646_v5 }
 0x3ba   : > { %3647 = vrcp.f32 %v489_v9  ;;  %v910_v14 = vsub.f32 %v3972_v36, %v908_v10  ;;  %vm402_vm13 = vmor %vm400_vm12, %vm401_vm11  ;;  %v504_v24 = vand.u32 2147483648, %v489_v9  ;;  %v502_v36 = vand.u32 2147483647, %v489_v9 }
 0x3bb   : > { %v397_v12 = vsub.f32 1.0, %v396_v8  ;;  %3649 = vpow2.f32 %v911_v6  ;;  %vm498_vm3 = vweird.f32 %v489_v9 }
 0x3bc   : > { %v913_v22 = vmul.f32 1.442695, %v910_v14  ;;  %v505_v39 = vor.u32 1.1754944e-38, %v504_v24  ;;  %vm503_vm5 = vcmp.eq.f32.partialorder %v502_v36, 8.507059e+37 }
 0x3bd   : > { %v398_v16 = vmul.f32 %v3646_v5, %v397_v12 }
 0x3be   : > { %800 = vmax.xlane.f32.xlu0 %v799_v15  ;;  %1011 = vmax.xlane.f32.xlu1 %v1010_v18  ;;  %3651 = vpow2.f32 %v913_v22 }
 0x3bf   : > { %v399_v19 = vadd.f32 %v3646_v5, %v398_v16 }
 0x3c0   : > { %v3648_v20 = vpop.eup %3647 }
 0x3c1   : > { %v403_v23 = vsel %vm402_vm13, %v3646_v5, %v399_v19  ;;  %v494_v25 = vmul.f32 %v3648_v20, %v489_v9  ;;  %v1119_v26 = vpop.xlane.xlu2 %1118  ;;  %v4024_v27 = vpop.eup %3649  ;;  %vm499_vm15 = vweird.f32 %v3648_v20 }
 0x3c2   : > { %v408_v28 = vsel %vm405_vm14, %v407_v21, %v403_v23  ;;  %v915_v30 = vsel %vm376_vm2, %v4024_v27, 0.0  ;;  %vm500_vm4 = vmor %vm498_vm3, %vm499_vm15  ;;  %v1123_v54 = vsub.f32 %v3978_v38, %v1119_v26 }
 0x3c3   : > { %v495_v29 = vsub.f32 1.0, %v494_v25  ;;  %v4027_v33 = vmul.f32 %v3965_v32, %v408_v28 }
 0x3c4   : > { %v4034_v43 = vpop.eup %3651  ;;  %v1125_v55 = vmul.f32 1.442695, %v1123_v54 }
 0x3c5   : > { %v496_v34 = vmul.f32 %v3648_v20, %v495_v29  ;;  %425 = vst.msk [vmem:[%s3946_s14] sm:$0xff] %vm376_vm2, %v4027_v33  ;;  %v918_v50 = vsel %vm376_vm2, %v4034_v43, 0.0 }
 0x3c6   : > { %916 = vadd.xlane.f32.xlu0 %v915_v30 }
 0x3c7   : > { %v497_v37 = vadd.f32 %v3648_v20, %v496_v34 }
 0x3c9   : > { %v501_v41 = vsel %vm500_vm4, %v3648_v20, %v497_v37  ;;  %v429_v32 = vpop.permute.xlu2 %428  ;;  %v1122_v42 = vpop.xlane.xlu1 %1121 }
 0x3ca   : > { %v506_v45 = vsel %vm503_vm5, %v505_v39, %v501_v41  ;;  %v1124_v46 = vsub.f32 %v3982_v40, %v1122_v42  ;;  %441 = vmatpush.bf16.msrb.mxu2 %v429_v32 }
 0x3cb   : > { %v4038_v47 = vmul.f32 %v3970_v35, %v506_v45  ;;  %v4050_v35 = vpop.f32.mrf.mxu0 }
 0x3cc   : > { %v1127_v48 = vmul.f32 1.442695, %v1124_v46  ;;  %v1013_v40 = vsel %vm376_vm2, %v4050_v35, -inf }
 0x3cd   : > { %3332 = vst.msk [vmem:[%s3946_s14 + $0x10] sm:$0xff] %vm376_vm2, %v4038_v47 }
 0x3ce   : > { %3653 = vpow2.f32 %v1127_v48  ;;  %919 = vadd.xlane.f32.xlu0 %v918_v50 }
 0x3cf   : > { %3655 = vpow2.f32 %v1125_v55 }
 0x3d4   : > { %v4045_v44 = vpop.eup %3653 }
 0x3d5   : > { %v1132_v31 = vsel %vm376_vm2, %v4045_v44, 0.0  ;;  %v4055_v57 = vpop.eup %3655 }
 0x3d6   : > { %1133 = vadd.xlane.f32.xlu0 %v1132_v31  ;;  %v1129_v58 = vsel %vm376_vm2, %v4055_v57, 0.0 }
 0x3d7   : > { %527 = vrot.lane.b32.xlu1 %v3891_v7, %s3771_s18  ;;  %s3778_s18 = smov 12  }
 0x3de   : > { %1014 = vmax.xlane.f32.xlu0 %v1013_v40 }
 0x401   : > { %1130 = vadd.xlane.f32.xlu1 %v1129_v58 }
 0x402   : > { %v394_v60 = vpop.xlane.xlu2 %393 }
 0x403   : > { %3657 = vrcp.f32 %v394_v60  ;;  %v421_v3 = vand.u32 2147483648, %v394_v60  ;;  %v419_v5 = vand.u32 2147483647, %v394_v60  ;;  %vm415_vm7 = vweird.f32 %v394_v60 }
 0x405   : > { %v422_v8 = vor.u32 1.1754944e-38, %v421_v3  ;;  %vm420_vm9 = vcmp.eq.f32.partialorder %v419_v5, 8.507059e+37 }
 0x409   : > { %v3658_v61 = vpop.eup %3657 }
 0x40a   : > { %v411_v63 = vmul.f32 %v3658_v61, %v394_v60  ;;  %v492_v0 = vpop.xlane.xlu2 %491  ;;  %vm416_vm6 = vweird.f32 %v3658_v61 }
 0x40b   : > { %3659 = vrcp.f32 %v492_v0  ;;  %vm417_vm8 = vmor %vm415_vm7, %vm416_vm6  ;;  %v519_v15 = vand.u32 2147483648, %v492_v0  ;;  %v517_v17 = vand.u32 2147483647, %v492_v0  ;;  %vm513_vm11 = vweird.f32 %v492_v0 }
 0x40c   : > { %v412_v2 = vsub.f32 1.0, %v411_v63 }
 0x40d   : > { %v520_v20 = vor.u32 1.1754944e-38, %v519_v15  ;;  %vm518_vm13 = vcmp.eq.f32.partialorder %v517_v17, 8.507059e+37 }
 0x40e   : > { %v413_v4 = vmul.f32 %v3658_v61, %v412_v2 }
 0x410   : > { %v414_v38 = vadd.f32 %v3658_v61, %v413_v4 }
 0x411   : > { %v3660_v6 = vpop.eup %3659 }
 0x412   : > { %v418_v9 = vsel %vm417_vm8, %v3658_v61, %v414_v38  ;;  %v509_v10 = vmul.f32 %v3660_v6, %v492_v0  ;;  %vm514_vm10 = vweird.f32 %v3660_v6 }
 0x413   : > { %v423_v12 = vsel %vm420_vm9, %v422_v8, %v418_v9  ;;  %vm515_vm12 = vmor %vm513_vm11, %vm514_vm10 }
 0x414   : > { %v510_v13 = vsub.f32 1.0, %v509_v10  ;;  %v424_v14 = vmul.f32 %v3990_v49, %v423_v12 }
 0x416   : > { %v511_v16 = vmul.f32 %v3660_v6, %v510_v13  ;;  %426 = vst.msk [vmem:[%s3946_s14 + $0x8] sm:$0xff] %vm376_vm2, %v424_v14  ;;  %v427_v18 = vpack.c.bf16 %v424_v14, %v4027_v33 }
 0x418   : > { %v512_v19 = vadd.f32 %v3660_v6, %v511_v16  ;;  %3330 = vmatmul.msk.bf16.vlgmr.msrb.gmra.mxu2 %vm376_vm2, %v427_v18 }
 0x41a   : > { %v516_v21 = vsel %vm515_vm12, %v3660_v6, %v512_v19  ;;  %848 = vrot.lane.b32.xlu1 %v3891_v7, %s3772_s19 }
 0x41b   : > { %v521_v49 = vsel %vm518_vm13, %v520_v20, %v516_v21  ;;  %v742_v20 = vpop.permute.xlu2 %741 }
 0x41c   : > { %v4067_v22 = vmul.f32 %v3996_v52, %v521_v49 }
 0x41e   : > { %3333 = vst.msk [vmem:[%s3946_s14 + $0x18] sm:$0xff] %vm376_vm2, %v4067_v22 }
 0x421   : > { %v703_v23 = vpop.xlane.xlu1 %702 }
 0x422   : > { %3661 = vrcp.f32 %v703_v23  ;;  %1062 = vrot.lane.b32.xlu1 %v3891_v7, %s3773_s20  ;;  %v718_v34 = vand.u32 2147483648, %v703_v23  ;;  %v716_v52 = vand.u32 2147483647, %v703_v23  ;;  %vm712_vm15 = vweird.f32 %v703_v23  ;;  %s3779_s20 = smov 20  }
 0x424   : > { %v719_v41 = vor.u32 1.1754944e-38, %v718_v34  ;;  %vm717_vm4 = vcmp.eq.f32.partialorder %v716_v52, 8.507059e+37 }
 0x428   : > { %v3662_v25 = vpop.eup %3661 }
 0x429   : > { %v708_v26 = vmul.f32 %v3662_v25, %v703_v23  ;;  %v706_v28 = vpop.xlane.xlu0 %705  ;;  %v798_v29 = vpop.xlane.xlu1 %797  ;;  %vm713_vm14 = vweird.f32 %v3662_v25 }
 0x42a   : > { %3663 = vrcp.f32 %v706_v28  ;;  %v802_v24 = vsub.f32 %v4002_v56, %v798_v29  ;;  %vm714_vm3 = vmor %vm712_vm15, %vm713_vm14  ;;  %v733_v31 = vand.u32 2147483648, %v706_v28  ;;  %v731_v58 = vand.u32 2147483647, %v706_v28 }
 0x42b   : > { %v709_v33 = vsub.f32 1.0, %v708_v26  ;;  %vm727_vm6 = vweird.f32 %v706_v28 }
 0x42c   : > { %v804_v30 = vmul.f32 1.442695, %v802_v24  ;;  %vm732_vm8 = vcmp.eq.f32.partialorder %v731_v58, 8.507059e+37 }
 0x42d   : > { %v710_v36 = vmul.f32 %v3662_v25, %v709_v33 }
 0x42e   : > { %3665 = vpow2.f32 %v804_v30 }
 0x42f   : > { %v711_v37 = vadd.f32 %v3662_v25, %v710_v36 }
 0x430   : > { %v3664_v39 = vpop.eup %3663 }
 0x431   : > { %v715_v32 = vsel %vm714_vm3, %v3662_v25, %v711_v37  ;;  %v723_v42 = vmul.f32 %v3664_v39, %v706_v28  ;;  %v801_v45 = vpop.xlane.xlu0 %800  ;;  %vm728_vm5 = vweird.f32 %v3664_v39  ;;  %v4095_v38 = vpop.xlane.xlu1 %1011  ;;  %v526_v25 = vpack.c.bf16 %v4067_v22, %v4038_v47 }
 0x432   : > { %v720_v46 = vsel %vm717_vm4, %v719_v41, %v715_v32  ;;  %v803_v48 = vsub.f32 %v4009_v62, %v801_v45  ;;  %vm729_vm7 = vmor %vm727_vm6, %vm728_vm5  ;;  %v1016_v58 = vsub.f32 %v4017_v11, %v4095_v38 }
 0x433   : > { %v4076_v56 = vmul.f32 %v4004_v59, %v720_v46  ;;  %v724_v50 = vsub.f32 1.0, %v723_v42  ;;  %v734_v59 = vor.u32 1.1754944e-38, %v733_v31 }
 0x434   : > { %v806_v40 = vmul.f32 1.442695, %v803_v48  ;;  %v4078_v54 = vpop.eup %3665 }
 0x435   : > { %3340 = vst.msk [vmem:[%s3946_s14 + $0x30] sm:$0xff] %vm376_vm2, %v4076_v56  ;;  %v725_v55 = vmul.f32 %v3664_v39, %v724_v50  ;;  %v808_v60 = vsel %vm376_vm2, %v4078_v54, 0.0 }
 0x436   : > { %3667 = vpow2.f32 %v806_v40  ;;  %809 = vadd.xlane.f32.xlu0 %v808_v60  ;;  %v1018_v60 = vmul.f32 1.442695, %v1016_v58 }
 0x437   : > { %v726_v62 = vadd.f32 %v3664_v39, %v725_v55 }
 0x439   : > { %v730_v61 = vsel %vm729_vm7, %v3664_v39, %v726_v62  ;;  %v917_v63 = vpop.xlane.xlu0 %916 }
 0x43a   : > { %v735_v0 = vsel %vm732_vm8, %v734_v59, %v730_v61  ;;  %3669 = vrcp.f32 %v917_v63  ;;  %v932_v10 = vand.u32 2147483648, %v917_v63  ;;  %vm926_vm10 = vweird.f32 %v917_v63 }
 0x43b   : > { %v4086_v2 = vmul.f32 %v4011_v1, %v735_v0  ;;  %v930_v1 = vand.u32 2147483647, %v917_v63 }
 0x43c   : > { %v4088_v3 = vpop.eup %3667  ;;  %v933_v15 = vor.u32 1.1754944e-38, %v932_v10 }
 0x43d   : > { %3341 = vst.msk [vmem:[%s3946_s14 + $0x38] sm:$0xff] %vm376_vm2, %v4086_v2  ;;  %v811_v4 = vsel %vm376_vm2, %v4088_v3, 0.0  ;;  %vm931_vm12 = vcmp.eq.f32.partialorder %v930_v1, 8.507059e+37  ;;  %v740_v31 = vpack.c.bf16 %v4086_v2, %v4076_v56 }
 0x43e   : > { %812 = vadd.xlane.f32.xlu2 %v811_v4 }
 0x440   : > { %v3670_v5 = vpop.eup %3669 }
 0x441   : > { %v922_v6 = vmul.f32 %v3670_v5, %v917_v63  ;;  %v920_v8 = vpop.xlane.xlu0 %919  ;;  %vm927_vm9 = vweird.f32 %v3670_v5 }
 0x442   : > { %3671 = vrcp.f32 %v920_v8  ;;  %vm928_vm11 = vmor %vm926_vm10, %vm927_vm9  ;;  %v947_v26 = vand.u32 2147483648, %v920_v8  ;;  %v945_v29 = vand.u32 2147483647, %v920_v8  ;;  %vm941_vm14 = vweird.f32 %v920_v8 }
 0x443   : > { %v923_v9 = vsub.f32 1.0, %v922_v6 }
 0x444   : > { %v948_v24 = vor.u32 1.1754944e-38, %v947_v26  ;;  %vm946_vm3 = vcmp.eq.f32.partialorder %v945_v29, 8.507059e+37 }
 0x445   : > { %v924_v12 = vmul.f32 %v3670_v5, %v923_v9 }
 0x447   : > { %v925_v13 = vadd.f32 %v3670_v5, %v924_v12 }
 0x448   : > { %v3672_v14 = vpop.eup %3671 }
 0x449   : > { %v929_v16 = vsel %vm928_vm11, %v3670_v5, %v925_v13  ;;  %v937_v17 = vmul.f32 %v3672_v14, %v920_v8  ;;  %v1134_v18 = vpop.xlane.xlu0 %1133  ;;  %v528_v19 = vpop.permute.xlu1 %527  ;;  %vm942_vm13 = vweird.f32 %v3672_v14 }
 0x44a   : > { %v934_v21 = vsel %vm931_vm12, %v933_v15, %v929_v16  ;;  %3673 = vrcp.f32 %v1134_v18  ;;  %540 = vmatpush.bf16.msra.mxu2 %v528_v19  ;;  %955 = vrot.lane.b32.xlu0 %v3891_v7, %s3774_s21  ;;  %vm943_vm15 = vmor %vm941_vm14, %vm942_vm13  ;;  %v1161_v39 = vand.u32 2147483648, %v1134_v18  ;;  %v1159_v42 = vand.u32 2147483647, %v1134_v18  ;;  %s3780_s21 = smov 16  }
 0x44b   : > { %v4098_v49 = vmul.f32 %v4024_v27, %v934_v21  ;;  %v938_v23 = vsub.f32 1.0, %v937_v17  ;;  %vm1155_vm5 = vweird.f32 %v1134_v18 }
 0x44c   : > { %vm1160_vm7 = vcmp.eq.f32.partialorder %v1159_v42, 8.507059e+37 }
 0x44d   : > { %3348 = vst.msk [vmem:[%s3946_s14 + $0x50] sm:$0xff] %vm376_vm2, %v4098_v49  ;;  %v939_v28 = vmul.f32 %v3672_v14, %v938_v23  ;;  %3334 = vmatmul.msk.bf16.vlgmr.msra.gmra.mxu2 %vm376_vm2, %v526_v25 }
 0x44e   : > { %754 = vmatpush.bf16.msrb.mxu2 %v742_v20 }
 0x44f   : > { %v940_v27 = vadd.f32 %v3672_v14, %v939_v28 }
 0x450   : > { %v3674_v33 = vpop.eup %3673 }
 0x451   : > { %v944_v34 = vsel %vm943_vm15, %v3672_v14, %v940_v27  ;;  %v1151_v36 = vmul.f32 %v3674_v33, %v1134_v18  ;;  %v1015_v52 = vpop.xlane.xlu0 %1014  ;;  %vm1156_vm4 = vweird.f32 %v3674_v33 }
 0x452   : > { %v949_v47 = vsel %vm946_vm3, %v948_v24, %v944_v34  ;;  %v1017_v22 = vsub.f32 %v4050_v35, %v1015_v52  ;;  %vm1157_vm6 = vmor %vm1155_vm5, %vm1156_vm4  ;;  %v1162_v35 = vor.u32 1.1754944e-38, %v1161_v39 }
 0x453   : > { %v4109_v30 = vmul.f32 %v4034_v43, %v949_v47  ;;  %v1152_v37 = vsub.f32 1.0, %v1151_v36 }
 0x454   : > { %v1020_v41 = vmul.f32 1.442695, %v1017_v22 }
 0x455   : > { %3349 = vst.msk [vmem:[%s3946_s14 + $0x58] sm:$0xff] %vm376_vm2, %v4109_v30  ;;  %v1153_v32 = vmul.f32 %v3674_v33, %v1152_v37  ;;  %v954_v45 = vpack.c.bf16 %v4109_v30, %v4098_v49 }
 0x456   : > { %3675 = vpow2.f32 %v1020_v41 }
 0x457   : > { %v1154_v46 = vadd.f32 %v3674_v33, %v1153_v32  ;;  %3677 = vpow2.f32 %v1018_v60 }
 0x459   : > { %v1158_v43 = vsel %vm1157_vm6, %v3674_v33, %v1154_v46 }
 0x45a   : > { %v1163_v48 = vsel %vm1160_vm7, %v1162_v35, %v1158_v43 }
 0x45b   : > { %v4117_v50 = vmul.f32 %v4045_v44, %v1163_v48 }
 0x45c   : > { %v4121_v40 = vpop.eup %3675 }
 0x45d   : > { %3357 = vst.msk [vmem:[%s3946_s14 + $0x78] sm:$0xff] %vm376_vm2, %v4117_v50  ;;  %3342 = vmatmul.msk.bf16.vlgmr.msrb.gmra.mxu2 %vm376_vm2, %v740_v31  ;;  %v1025_v55 = vsel %vm376_vm2, %v4121_v40, 0.0  ;;  %v4131_v44 = vpop.eup %3677 }
 0x45e   : > { %1026 = vadd.xlane.f32.xlu2 %v1025_v55  ;;  %v1022_v56 = vsel %vm376_vm2, %v4131_v44, 0.0 }
 0x474   : > { %v1131_v62 = vpop.xlane.xlu1 %1130  ;;  %1023 = vadd.xlane.f32.xlu0 %v1022_v56 }
 0x475   : > { %3679 = vrcp.f32 %v1131_v62  ;;  %v1146_v0 = vand.u32 2147483648, %v1131_v62  ;;  %v1144_v11 = vand.u32 2147483647, %v1131_v62  ;;  %vm1140_vm9 = vweird.f32 %v1131_v62 }
 0x476   : > { %1169 = vrot.lane.b32.xlu2 %v3891_v7, %s3775_s8  ;;  %s3781_s8 = smov 28  }
 0x477   : > { %v1147_v5 = vor.u32 1.1754944e-38, %v1146_v0  ;;  %vm1145_vm11 = vcmp.eq.f32.partialorder %v1144_v11, 8.507059e+37 }
 0x47b   : > { %v3680_v59 = vpop.eup %3679 }
 0x47c   : > { %v1136_v61 = vmul.f32 %v3680_v59, %v1131_v62  ;;  %vm1141_vm8 = vweird.f32 %v3680_v59 }
 0x47d   : > { %vm1142_vm10 = vmor %vm1140_vm9, %vm1141_vm8 }
 0x47e   : > { %v1137_v63 = vsub.f32 1.0, %v1136_v61 }
 0x480   : > { %v1138_v2 = vmul.f32 %v3680_v59, %v1137_v63 }
 0x482   : > { %v1139_v4 = vadd.f32 %v3680_v59, %v1138_v2 }
 0x484   : > { %v1143_v38 = vsel %vm1142_vm10, %v3680_v59, %v1139_v4 }
 0x485   : > { %v1148_v6 = vsel %vm1145_vm11, %v1147_v5, %v1143_v38 }
 0x486   : > { %v4137_v8 = vmul.f32 %v4055_v57, %v1148_v6 }
 0x488   : > { %3356 = vst.msk [vmem:[%s3946_s14 + $0x70] sm:$0xff] %vm376_vm2, %v4137_v8  ;;  %v1168_v7 = vpack.c.bf16 %v4117_v50, %v4137_v8  ;;  %656 = vrot.lane.b32.xlu0 %v3994_v51, %s4594_s13 }
 0x48c   : > { %v849_v9 = vpop.permute.xlu1 %848 }
 0x48d   : > { %861 = vmatpush.bf16.msra.mxu1 %v849_v9 }
 0x494   : > { %v1063_v10 = vpop.permute.xlu1 %1062 }
 0x495   : > { %1075 = vmatpush.bf16.msrb.mxu1 %v1063_v10 }
 0x49b   : > { %v443_v12 = vpop.f32.mrf.mxu2 }
 0x49c   : > { %448 = vst.msk [vmem:[#allocation2] sm:$0xff] %vm355_vm1, %v443_v12 }
 0x4a3   : > { %v445_v1 = vpop.f32.mrf.mxu2 }
 0x4a4   : > { %449 = vst.msk [vmem:[#allocation2 + $0x8] sm:$0xff] %vm355_vm1, %v445_v1 }
 0x4a9   : > { %v810_v57 = vpop.xlane.xlu0 %809 }
 0x4aa   : > { %3681 = vrcp.f32 %v810_v57  ;;  %v825_v17 = vand.u32 2147483648, %v810_v57  ;;  %v823_v51 = vand.u32 2147483647, %v810_v57  ;;  %vm819_vm13 = vweird.f32 %v810_v57 }
 0x4ac   : > { %v826_v21 = vor.u32 1.1754944e-38, %v825_v17  ;;  %vm824_vm15 = vcmp.eq.f32.partialorder %v823_v51, 8.507059e+37 }
 0x4b0   : > { %v3682_v13 = vpop.eup %3681 }
 0x4b1   : > { %v813_v14 = vpop.xlane.xlu2 %812  ;;  %v815_v15 = vmul.f32 %v3682_v13, %v810_v57  ;;  %vm820_vm12 = vweird.f32 %v3682_v13 }
 0x4b2   : > { %3683 = vrcp.f32 %v813_v14  ;;  %vm821_vm14 = vmor %vm819_vm13, %vm820_vm12  ;;  %v840_v29 = vand.u32 2147483648, %v813_v14  ;;  %v838_v24 = vand.u32 2147483647, %v813_v14  ;;  %vm834_vm3 = vweird.f32 %v813_v14 }
 0x4b3   : > { %v816_v16 = vsub.f32 1.0, %v815_v15 }
 0x4b4   : > { %v841_v52 = vor.u32 1.1754944e-38, %v840_v29  ;;  %vm839_vm5 = vcmp.eq.f32.partialorder %v838_v24, 8.507059e+37  ;;  %v3439_v29 = vld [vmem:[%s4590_s4] sm:$0xff] }
 0x4b5   : > { %v817_v18 = vmul.f32 %v3682_v13, %v816_v16 }
 0x4b7   : > { %v818_v20 = vadd.f32 %v3682_v13, %v817_v18 }
 0x4b8   : > { %v3684_v19 = vpop.eup %3683 }
 0x4b9   : > { %v830_v23 = vmul.f32 %v3684_v19, %v813_v14  ;;  %v822_v25 = vsel %vm821_vm14, %v3682_v13, %v818_v20  ;;  %vm835_vm1 = vweird.f32 %v3684_v19  ;;  %vm555_vm14 = vcmask 64544  }
 0x4ba   : > { %v827_v28 = vsel %vm824_vm15, %v826_v21, %v822_v25  ;;  %vm836_vm4 = vmor %vm834_vm3, %vm835_vm1  ;;  %vm662_vm15 = vcmask 97344   ;;  %vm769_vm1 = vcmask 130144   ;;  %vm876_vm3 = vcmask 162944  }
 0x4bb   : > { %v831_v26 = vsub.f32 1.0, %v830_v23  ;;  %v828_v27 = vmul.f32 %v4078_v54, %v827_v28  ;;  %v3440_v28 = vld [vmem:[%s4590_s4 + $0x8] sm:$0xff] }
 0x4bc   : > { %v956_v34 = vpop.permute.xlu0 %955  ;;  %1232 = vmatpush.bf16.msrb.mxu0 %v3440_v28 }
 0x4bd   : > { %v832_v33 = vmul.f32 %v3684_v19, %v831_v26  ;;  %968 = vmatpush.bf16.msra.mxu2 %v956_v34  ;;  %3344 = vst.msk [vmem:[%s3946_s14 + $0x40] sm:$0xff] %vm376_vm2, %v828_v27 }
 0x4bf   : > { %v833_v36 = vadd.f32 %v3684_v19, %v832_v33 }
 0x4c0   : > { %3350 = vmatmul.msk.bf16.vlgmr.msra.gmra.mxu2 %vm376_vm2, %v954_v45  ;;  %1233 = vmatpush.bf16.msrb.mxu0 %v3439_v29 }
 0x4c1   : > { %v837_v47 = vsel %vm836_vm4, %v3684_v19, %v833_v36  ;;  %vm983_vm4 = vcmask 195744  }
 0x4c2   : > { %v842_v54 = vsel %vm839_vm5, %v841_v52, %v837_v47  ;;  %vm1090_vm5 = vcmask 228544   ;;  %v3624_v47 = vld [vmem:[%s4591_s5] ss:$0 sm:$0xff] }
 0x4c3   : > { %v843_v22 = vmul.f32 %v4088_v3, %v842_v54 }
 0x4c5   : > { %3345 = vst.msk [vmem:[%s3946_s14 + $0x48] sm:$0xff] %vm376_vm2, %v843_v22  ;;  %v847_v37 = vpack.c.bf16 %v843_v22, %v828_v27 }
 0x4c7   : > { %3346 = vmatmul.msk.bf16.vlgmr.msra.gmra.mxu1 %vm376_vm2, %v847_v37 }
 0x4d0   : > { %v542_v39 = vpop.f32.mrf.mxu2 }
 0x4d1   : > { %v1027_v41 = vpop.xlane.xlu2 %1026  ;;  %549 = vrot.lane.b32.xlu2 %v542_v39, %s3777_s16 }
 0x4d2   : > { %3685 = vrcp.f32 %v1027_v41  ;;  %v1054_v30 = vand.u32 2147483648, %v1027_v41  ;;  %v1052_v35 = vand.u32 2147483647, %v1027_v41  ;;  %vm1048_vm7 = vweird.f32 %v1027_v41 }
 0x4d4   : > { %v1055_v48 = vor.u32 1.1754944e-38, %v1054_v30  ;;  %vm1053_vm9 = vcmp.eq.f32.partialorder %v1052_v35, 8.507059e+37 }
 0x4d8   : > { %v3686_v32 = vpop.eup %3685  ;;  %v544_v42 = vpop.f32.mrf.mxu2 }
 0x4d9   : > { %v1044_v46 = vmul.f32 %v3686_v32, %v1027_v41  ;;  %v1170_v49 = vpop.permute.xlu2 %1169  ;;  %658 = vrot.lane.b32.xlu2 %v4000_v53, %s4594_s13  ;;  %551 = vrot.lane.b32.xlu1 %v544_v42, %s3777_s16  ;;  %vm1049_vm6 = vweird.f32 %v3686_v32  ;;  %s3435_s16 = sshll.u32 %s3884_s17, 5  ;;  %s3783_s13 = smov 32   ;;  %v3441_v41 = vld [vmem:[%s4588_s2] sm:$0xff] }
 0x4da   : > { %1182 = vmatpush.bf16.msrb.mxu2 %v1170_v49  ;;  %vm1050_vm8 = vmor %vm1048_vm7, %vm1049_vm6  ;;  %s4178_s9 = scalar_lea.vmem %s4587_s1, %s3435_s16  ;;  %vm1197_vm6 = vcmask 261344   ;;  %vm1825_vm7 = vcmask 1047556  }
 0x4db   : > { %v1045_v3 = vsub.f32 1.0, %v1044_v46  ;;  %v4181_v15 = vld [vmem:[%s4178_s9] sm:$0xff]  ;;  %v4188_v16 = vld [vmem:[%s4178_s9 + $0x10] sm:$0xff] }
 0x4dd   : > { %v1046_v45 = vmul.f32 %v3686_v32, %v1045_v3  ;;  %3358 = vmatmul.msk.bf16.vlgmr.msrb.gmra.mxu2 %vm376_vm2, %v1168_v7  ;;  %v3784_v3 = vmov 1983009808  }
 0x4de   : > { %v1830_v30 = vunpack.c.l.s4 %v3784_v3  ;;  %v1827_v3 = vrot.slane %v4181_v15, 4 }
 0x4df   : > { %v1047_v43 = vadd.f32 %v3686_v32, %v1046_v45 }
 0x4e0   : > { %v756_v31 = vpop.f32.mrf.mxu2 }
 0x4e1   : > { %v1051_v55 = vsel %vm1050_vm8, %v3686_v32, %v1047_v43  ;;  %763 = vrot.lane.b32.xlu1 %v756_v31, %s3778_s18  ;;  %vm2683_vm8 = vcmask 1043456  }
 0x4e2   : > { %v1056_v53 = vsel %vm1053_vm9, %v1055_v48, %v1051_v55  ;;  %v4230_v48 = vunpack.c.0.s8 %v1830_v30  ;;  %vm2684_vm9 = vcmask 1044480  }
 0x4e3   : > { %v1057_v58 = vmul.f32 %v4121_v40, %v1056_v53 }
 0x4e5   : > { %3353 = vst.msk [vmem:[%s3946_s14 + $0x68] sm:$0xff] %vm376_vm2, %v1057_v58 }
 0x4e7   : > { %v1024_v60 = vpop.xlane.xlu0 %1023 }
 0x4e8   : > { %v758_v56 = vpop.f32.mrf.mxu2  ;;  %3687 = vrcp.f32 %v1024_v60  ;;  %v1039_v61 = vand.u32 2147483648, %v1024_v60  ;;  %v1037_v0 = vand.u32 2147483647, %v1024_v60  ;;  %vm1033_vm11 = vweird.f32 %v1024_v60 }
 0x4e9   : > { %765 = vrot.lane.b32.xlu2 %v758_v56, %s3778_s18  ;;  %s3207_s18 = sshll.u32 %s3946_s14, 4  ;;  %s3208_s18 = int_to_ptr.vmem [resolvable:$true] %s3207_s18 }
 0x4ea   : > { %v1040_v11 = vor.u32 1.1754944e-38, %v1039_v61  ;;  %vm1038_vm13 = vcmp.eq.f32.partialorder %v1037_v0, 8.507059e+37 }
 0x4ee   : > { %v3688_v50 = vpop.eup %3687 }
 0x4ef   : > { %v1029_v62 = vmul.f32 %v3688_v50, %v1024_v60  ;;  %vm1034_vm10 = vweird.f32 %v3688_v50 }
 0x4f0   : > { %vm1035_vm12 = vmor %vm1033_vm11, %vm1034_vm10 }
 0x4f1   : > { %v1030_v59 = vsub.f32 1.0, %v1029_v62 }
 0x4f3   : > { %v1031_v63 = vmul.f32 %v3688_v50, %v1030_v59  ;;  %v3442_v59 = vld [vmem:[%s4588_s2 + $0x8] sm:$0xff] }
 0x4f5   : > { %v1032_v2 = vadd.f32 %v3688_v50, %v1031_v63 }
 0x4f7   : > { %v1036_v4 = vsel %vm1035_vm12, %v3688_v50, %v1032_v2 }
 0x4f8   : > { %v1041_v40 = vsel %vm1038_vm13, %v1040_v11, %v1036_v4 }
 0x4f9   : > { %v1042_v5 = vmul.f32 %v4131_v44, %v1041_v40 }
 0x4fa   : > { %v657_v8 = vpop.permute.xlu0 %656 }
 0x4fb   : > { %3352 = vst.msk [vmem:[%s3946_s14 + $0x60] sm:$0xff] %vm376_vm2, %v1042_v5  ;;  %v1061_v38 = vpack.c.bf16 %v1057_v58, %v1042_v5  ;;  %v4253_v5 = vld [vmem:[%s4178_s9 + $0x8] sm:$0xff] }
 0x4fd   : > { %3354 = vmatmul.msk.bf16.vlgmr.msrb.gmra.mxu1 %vm376_vm2, %v1061_v38 }
 0x52b   : > { %v550_v6 = vpop.permute.xlu2 %549 }
 0x52c   : > { %556 = vst.msk [vmem:[#allocation2] sm:$0xff] %vm555_vm14, %v550_v6  ;;  %v3785_v6 = vmov 1934713408  }
 0x52d   : > { %663 = vst.msk [vmem:[#allocation2] sm:$0xff] %vm662_vm15, %v657_v8  ;;  %v1878_v8 = vunpack.c.l.s4 %v3785_v6 }
 0x533   : > { %v659_v10 = vpop.permute.xlu2 %658 }
 0x543   : > { %v970_v7 = vpop.f32.mrf.mxu2  ;;  %v766_v57 = vpop.permute.xlu2 %765 }
 0x544   : > { %v863_v9 = vpop.f32.mrf.mxu1  ;;  %977 = vrot.lane.b32.xlu0 %v970_v7, %s3779_s20  ;;  %v1942_v7 = vperm.slane %v4253_v5, %v4230_v48 }
 0x54b   : > { %v552_v12 = vpop.permute.xlu1 %551  ;;  %v972_v44 = vpop.f32.mrf.mxu2 }
 0x54c   : > { %557 = vst.msk [vmem:[#allocation2 + $0x8] sm:$0xff] %vm555_vm14, %v552_v12  ;;  %v865_v1 = vpop.f32.mrf.mxu1  ;;  %979 = vrot.lane.b32.xlu1 %v972_v44, %s3779_s20  ;;  %s3782_s20 = smov 24   ;;  %v4261_v44 = vunpack.c.0.s8 %v1878_v8 }
 0x54d   : > { %664 = vst.msk [vmem:[#allocation2 + $0x8] sm:$0xff] %vm662_vm15, %v659_v10  ;;  %872 = vrot.lane.b32.xlu2 %v865_v1, %s3780_s21 }
 0x54e   : > { %771 = vst.msk [vmem:[#allocation2 + $0x8] sm:$0xff] %vm769_vm1, %v766_v57 }
 0x553   : > { %v764_v13 = vpop.permute.xlu1 %763 }
 0x554   : > { %770 = vst.msk [vmem:[#allocation2] sm:$0xff] %vm769_vm1, %v764_v13  ;;  %870 = vrot.lane.b32.xlu1 %v863_v9, %s3780_s21 }
 0x560   : > { %v1184_v14 = vpop.f32.mrf.mxu2 }
 0x561   : > { %1191 = vrot.lane.b32.xlu1 %v1184_v14, %s3781_s8 }
 0x568   : > { %v1186_v18 = vpop.f32.mrf.mxu2 }
 0x569   : > { %1794 = vrot.lane.b32.xlu1 %v4181_v15, %s3766_s23 }
 0x571   : > { %1782 = vrot.lane.b32.xlu1 %v4181_v15, %s3767_s29 }
 0x579   : > { %1796 = vrot.lane.b32.xlu1 %v4188_v16, %s3766_s23  ;;  %s3436_s23 = sshll.u32 %s3884_s17, 8  ;;  %s3450_s17 = sshll.u32 %s3849_s28, 7 }
 0x57a   : > { %v1077_v17 = vpop.f32.mrf.mxu1  ;;  %s3206_s16 = scalar_lea.hbm %s4593_s7, %s3450_s17 }
 0x57b   : > { %1084 = vrot.lane.b32.xlu2 %v1077_v17, %s3782_s20  ;;  %v1952_v17 = vperm.slane %v1942_v7, %v4261_v44 }
 0x57d   : > { %v1967_v28 = vrot.slane %v1952_v17, 4 }
 0x581   : > { %1820 = vrot.lane.b32.xlu1 %v4188_v16, %s3780_s21 }
 0x582   : > { %v1079_v51 = vpop.f32.mrf.mxu1 }
 0x583   : > { %1193 = vrot.lane.b32.xlu2 %v1186_v18, %s3781_s8  ;;  %1086 = vrot.lane.b32.xlu0 %v1079_v51, %s3782_s20  ;;  %s4598_s20 = sand.u32 1, %s3743_s25  }
 0x589   : > { %1802 = vrot.lane.b32.xlu1 %v4188_v16, %s3769_s15 }
 0x58b   : > { %1818 = vrot.lane.b32.xlu0 %v4181_v15, %s3780_s21  ;;  %1806 = vrot.lane.b32.xlu2 %v4181_v15, %s3772_s19 }
 0x593   : > { %1812 = vrot.lane.b32.xlu0 %v4181_v15, %s3783_s13  ;;  %1788 = vrot.lane.b32.xlu2 %v4181_v15, %s3753_s22 }
 0x59b   : > { %1800 = vrot.lane.b32.xlu0 %v4181_v15, %s3769_s15  ;;  %1784 = vrot.lane.b32.xlu2 %v4188_v16, %s3767_s29  ;;  %s3709_s15 = scalar_lea.hbm %s4593_s7, 256 }
 0x5a3   : > { %1790 = vrot.lane.b32.xlu0 %v4188_v16, %s3753_s22  ;;  %1808 = vrot.lane.b32.xlu2 %v4188_v16, %s3772_s19  ;;  %s4481_s19 = scalar_lea.vmem %s4592_s6, %s3436_s23 }
 0x5a7   : > { %v873_v19 = vpop.permute.xlu2 %872 }
 0x5a8   : > { %878 = vst.msk [vmem:[#allocation2 + $0x8] sm:$0xff] %vm876_vm3, %v873_v19 }
 0x5ab   : > { %1814 = vrot.lane.b32.xlu0 %v4188_v16, %s3783_s13  ;;  %s3192_s13 = scalar_lea.sflag [#allocation4], %s4598_s20 }
 0x5b6   : > { %v978_v23 = vpop.permute.xlu0 %977 }
 0x5be   : > { %v980_v20 = vpop.permute.xlu1 %979 }
 0x5bf   : > { %985 = vst.msk [vmem:[#allocation2 + $0x8] sm:$0xff] %vm983_vm4, %v980_v20 }
 0x5c6   : > { %v871_v21 = vpop.permute.xlu1 %870 }
 0x5c7   : > { %877 = vst.msk [vmem:[#allocation2] sm:$0xff] %vm876_vm3, %v871_v21 }
 0x5c8   : > { %984 = vst.msk [vmem:[#allocation2] sm:$0xff] %vm983_vm4, %v978_v23 }
 0x5d3   : > { %v1192_v26 = vpop.permute.xlu1 %1191 }
 0x5d5   : > { %v1085_v25 = vpop.permute.xlu2 %1084 }
 0x5d6   : > { %1091 = vst.msk [vmem:[#allocation2] sm:$0xff] %vm1090_vm5, %v1085_v25 }
 0x5d7   : > { %1198 = vst.msk [vmem:[#allocation2] sm:$0xff] %vm1197_vm6, %v1192_v26 }
 0x5db   : > { %v4224_v49 = vpop.permute.xlu1 %1794 }
 0x5dc   : > { %v1837_v43 = vrot.slane %v4224_v49, 4 }
 0x5dd   : > { %v1194_v33 = vpop.permute.xlu2 %1193 }
 0x5de   : > { %v1200_v24 = vld [vmem:[#allocation2] sm:$0xff] }
 0x5e3   : > { %v4238_v60 = vpop.permute.xlu1 %1782 }
 0x5e4   : > { %v1838_v56 = vsel %vm1825_vm7, %v1837_v43, %v4238_v60  ;;  %v1839_v30 = vrot.slane %v4238_v60, 4 }
 0x5e5   : > { %v1807_v42 = vpop.permute.xlu2 %1806  ;;  %v1844_v62 = vperm.slane %v1838_v56, %v4230_v48 }
 0x5e6   : > { %v1863_v46 = vrot.slane %v1807_v42, 4 }
 0x5e7   : > { %v1873_v11 = vrot.slane %v1844_v62, 4 }
 0x5ed   : > { %v4234_v55 = vpop.permute.xlu2 %1788 }
 0x5ee   : > { %v1824_v58 = vrot.slane %v4234_v55, 4  ;;  %v1828_v43 = vsel %vm1825_vm7, %v4234_v55, %v1827_v3 }
 0x5f0   : > { %v1826_v50 = vsel %vm1825_vm7, %v1824_v58, %v4181_v15 }
 0x5f1   : > { %v1832_v63 = vperm.slane %v1826_v50, %v4230_v48  ;;  %v1836_v50 = vperm.slane %v1828_v43, %v4230_v48 }
 0x5f3   : > { %v1875_v2 = vrot.slane %v1832_v63, 4  ;;  %v1874_v12 = vsel %vm1825_vm7, %v1873_v11, %v1832_v63 }
 0x5f4   : > { %v1880_v13 = vperm.slane %v1874_v12, %v4261_v44 }
 0x5f5   : > { %v1087_v27 = vpop.permute.xlu0 %1086  ;;  %v1876_v9 = vsel %vm1825_vm7, %v1844_v62, %v1875_v2 }
 0x5f6   : > { %1092 = vst.msk [vmem:[#allocation2 + $0x8] sm:$0xff] %vm1090_vm5, %v1087_v27  ;;  %v1884_v18 = vperm.slane %v1876_v9, %v4261_v44  ;;  %v1923_v20 = vrot.slane %v1880_v13, 4  ;;  %v3446_v9 = vld [vmem:[%s4588_s2 + $0x28] sm:$0xff] }
 0x5f7   : > { %1199 = vst.msk [vmem:[#allocation2 + $0x8] sm:$0xff] %vm1197_vm6, %v1194_v33 }
 0x5f8   : > { %v1927_v23 = vrot.slane %v1884_v18, 4 }
 0x5fd   : > { %v1819_v32 = vpop.permute.xlu0 %1818 }
 0x5fe   : > { %v1201_v34 = vld [vmem:[#allocation2 + $0x8] sm:$0xff]  ;;  %v4227_v45 = vsel %vm1825_vm7, %v1819_v32, %v1863_v46  ;;  %v1861_v35 = vrot.slane %v1819_v32, 4  ;;  %v3445_v46 = vld [vmem:[%s4588_s2 + $0x20] sm:$0xff] }
 0x5ff   : > { %v1202_v36 = vpack.c.bf16 %v1201_v34, %v1200_v24  ;;  %v3443_v34 = vld [vmem:[%s4588_s2 + $0x10] sm:$0xff]  ;;  %v1872_v56 = vperm.slane %v4227_v45, %v4230_v48 }
 0x600   : > { %v1862_v53 = vsel %vm1825_vm7, %v1861_v35, %v1807_v42  ;;  %v3444_v42 = vld [vmem:[%s4588_s2 + $0x18] sm:$0xff] }
 0x601   : > { %3367 = vmatmul.msk.bf16.vlgmr.msrb.gmra.mxu0 %vm330_vm0, %v1202_v36  ;;  %v1868_v61 = vperm.slane %v1862_v53, %v4230_v48  ;;  %v1840_v53 = vsel %vm1825_vm7, %v4224_v49, %v1839_v30  ;;  %v1909_v60 = vrot.slane %v1872_v56, 4 }
 0x602   : > { %v1848_v62 = vperm.slane %v1840_v53, %v4230_v48 }
 0x603   : > { %v1897_v4 = vrot.slane %v1868_v61, 4 }
 0x605   : > { %v4232_v31 = vpop.permute.xlu0 %1812 }
 0x606   : > { %v1849_v0 = vrot.slane %v4232_v31, 4 }
 0x60d   : > { %v1801_v40 = vpop.permute.xlu0 %1800 }
 0x60e   : > { %v1850_v38 = vsel %vm1825_vm7, %v1849_v0, %v1801_v40  ;;  %v1851_v35 = vrot.slane %v1801_v40, 4 }
 0x60f   : > { %v1856_v10 = vperm.slane %v1850_v38, %v4230_v48 }
 0x610   : > { %v1852_v58 = vsel %vm1825_vm7, %v4232_v31, %v1851_v35  ;;  %v1977_v35 = vrot.slane %v4188_v16, 4 }
 0x611   : > { %v1898_v1 = vsel %vm1825_vm7, %v1897_v4, %v1856_v10  ;;  %v1899_v57 = vrot.slane %v1856_v10, 4  ;;  %v1860_v15 = vperm.slane %v1852_v58, %v4230_v48 }
 0x612   : > { %v1904_v14 = vperm.slane %v1898_v1, %v4261_v44 }
 0x613   : > { %v1900_v51 = vsel %vm1825_vm7, %v1868_v61, %v1899_v57  ;;  %v1885_v61 = vrot.slane %v1848_v62, 4  ;;  %v1911_v63 = vrot.slane %v1860_v15, 4  ;;  %v1910_v0 = vsel %vm1825_vm7, %v1909_v60, %v1860_v15 }
 0x614   : > { %v1921_v19 = vrot.slane %v1904_v14, 4  ;;  %v1908_v21 = vperm.slane %v1900_v51, %v4261_v44  ;;  %v1924_v26 = vsel %vm1825_vm7, %v1904_v14, %v1923_v20  ;;  %v1916_v45 = vperm.slane %v1910_v0, %v4261_v44 }
 0x615   : > { %v1886_v55 = vsel %vm1825_vm7, %v1885_v61, %v1836_v50  ;;  %v1912_v31 = vsel %vm1825_vm7, %v1872_v56, %v1911_v63 }
 0x616   : > { %v1922_v25 = vsel %vm1825_vm7, %v1921_v19, %v1880_v13  ;;  %v1925_v29 = vrot.slane %v1908_v21, 4  ;;  %v1928_v33 = vsel %vm1825_vm7, %v1908_v21, %v1927_v23  ;;  %v1920_v2 = vperm.slane %v1912_v31, %v4261_v44 }
 0x617   : > { %v3526_v27 = vpack.i.bf16 %v1924_v26, %v1922_v25  ;;  %v1892_v11 = vperm.slane %v1886_v55, %v4261_v44  ;;  %v1929_v40 = vrot.slane %v1916_v45, 4  ;;  %v1937_v13 = vrot.slane %v4253_v5, 4  ;;  %v1797_v25 = vpop.permute.xlu1 %1796  ;;  %v1785_v26 = vpop.permute.xlu2 %1784 }
 0x618   : > { %v1926_v24 = vsel %vm1825_vm7, %v1925_v29, %v1884_v18  ;;  %v1933_v38 = vrot.slane %v1920_v2, 4 }
 0x619   : > { %3527 = vxpose.xlu2.b32.start [1/2] (short) (narrow) %v3526_v27, 16  ;;  %v3540_v36 = vpack.i.bf16 %v1926_v24, %v1928_v33  ;;  %v1930_v6 = vsel %vm1825_vm7, %v1929_v40, %v1892_v11  ;;  %v1931_v10 = vrot.slane %v1892_v11, 4  ;;  %v1791_v24 = vpop.permute.xlu0 %1790  ;;  %v3447_v11 = vld [vmem:[%s4588_s2 + $0x30] sm:$0xff] }
 0x61b   : > { %3541 = vxpose.xlu0.b32.start [1/2] (short) (narrow) %v3540_v36, 16  ;;  %v1932_v1 = vsel %vm1825_vm7, %v1916_v45, %v1931_v10 }
 0x67e   : > { %v1235_v52 = vpop.f32.mrf.mxu0 }
 0x67f   : > { %v1236_v22 = vadd.f32 %v3624_v47, %v1235_v52  ;;  %v1968_v52 = vsel %vm1825_vm7, 0.0, %v1967_v28 }
 0x686   : > { %v1237_v54 = vpop.f32.mrf.mxu0 }
 0x687   : > { %v1238_v37 = vadd.f32 %v3624_v47, %v1237_v54  ;;  %v3528_v47 = vpack.i.bf16 %v1968_v52, %v1952_v17  ;;  %v1947_v54 = vrot.slane %v1942_v7, 4  ;;  %v1938_v17 = vsel %vm1825_vm7, 0.0, %v1937_v13 }
 0x688   : > { %v1946_v18 = vperm.slane %v1938_v17, %v4230_v48 }
 0x689   : > { %v1258_v39 = vpack.c.bf16 %v1238_v37, %v1236_v22  ;;  %v1948_v22 = vsel %vm1825_vm7, 0.0, %v1947_v54  ;;  %3529 = vxpose.xlu2.b32.end [2/2] (short) (narrow) %v3528_v47, 16  ;;  %v1989_v54 = vrot.slane %v1785_v26, 4 }
 0x68a   : > { %v1956_v37 = vperm.slane %v1948_v22, %v4261_v44  ;;  %v1957_v51 = vrot.slane %v1946_v18, 4  ;;  %v1962_v20 = vperm.slane %v1946_v18, %v4261_v44  ;;  %v1975_v22 = vrot.slane %v1791_v24, 4 }
 0x68b   : > { %1338 = vmatpush.bf16.msra.mxu1 %v1258_v39 }
 0x68c   : > { %v1969_v39 = vrot.slane %v1956_v37, 4  ;;  %v1958_v19 = vsel %vm1825_vm7, 0.0, %v1957_v51  ;;  %v1971_v3 = vrot.slane %v1962_v20, 4 }
 0x68d   : > { %v1966_v21 = vperm.slane %v1958_v19, %v4261_v44 }
 0x68e   : > { %3404 = vmatmul.msk.bf16.vlgmr.msra.gmra.mxu1 %vm376_vm2, %v3441_v41  ;;  %v1970_v41 = vsel %vm1825_vm7, 0.0, %v1969_v39  ;;  %v1987_v39 = vrot.slane %v1797_v25, 4 }
 0x68f   : > { %v3542_v32 = vpack.i.bf16 %v1956_v37, %v1970_v41  ;;  %v3556_v23 = vpack.i.bf16 %v1966_v21, %v1962_v20  ;;  %v1809_v37 = vpop.permute.xlu2 %1808  ;;  %v1990_v41 = vsel %vm1825_vm7, %v1797_v25, %v1989_v54  ;;  %v1973_v53 = vrot.slane %v1966_v21, 4 }
 0x690   : > { %v4330_v58 = vperm.slane %v1990_v41, %v4230_v48 }
 0x691   : > { %3543 = vxpose.xlu0.b32.end [2/2] (short) (narrow) %v3542_v32, 16  ;;  %v1976_v32 = vsel %vm1825_vm7, %v1975_v22, %v4188_v16  ;;  %v1972_v16 = vsel %vm1825_vm7, 0.0, %v1971_v3  ;;  %v1974_v55 = vsel %vm1825_vm7, 0.0, %v1973_v53  ;;  %v1779_v53 = vld [vmem:[%s4178_s9 + $0x18] sm:$0xff]  ;;  %s3209_s9 = sshll.u32 %s3206_s16, 4  ;;  %s3210_s9 = int_to_ptr.hbm [resolvable:$true] %s3209_s9 }
 0x692   : > { %v4333_v56 = vperm.slane %v1976_v32, %v4230_v48  ;;  %v2035_v45 = vrot.slane %v4330_v58, 4  ;;  %v3570_v40 = vpack.i.bf16 %v1974_v55, %v1972_v16  ;;  %s3703_s22 = sshra.s32 %s3210_s9, 4  ;;  %s3704_s22 = int_to_ptr.hbm [resolvable:$true] %s3703_s22 }
 0x693   : > { %s3705_s23 = scalar_lea.hbm %s3704_s22, 128  ;;  %p3710_p0 = scmp.lt.s32.totalorder %s3704_s22, %s4593_s7 }
 0x694   : > { %p3706_p11 = scmp.ne.s32.totalorder %s3704_s22, %s3705_s23  ;;  %p3711_p1 = scmp.lt.s32.totalorder %s3709_s15, %s3705_s23 }
 0x696   : > { %p3707_p12 = pnand %p3706_p11, %p3866_p5  ;;  %p3712_p2 = por %p3711_p1, %p3710_p0 }
 0x698   : > { %p3708_p13 = pneg %p3707_p12 }
 0x69a   : > { %p3713_p3 = pnand %p3712_p2, %p3708_p13 }
 0x69e   : > { %3405 = vmatmul.msk.bf16.gmra.mxu1 %vm376_vm2, %v3442_v59  ;;  %v1887_v59 = vrot.slane %v1836_v50, 4  ;;  %v1988_v50 = vsel %vm1825_vm7, %v1987_v39, %v1785_v26 }
 0x69f   : > { %v4345_v31 = vperm.slane %v1988_v50, %v4230_v48 }
 0x6a0   : > { %v1888_v49 = vsel %vm1825_vm7, %v1848_v62, %v1887_v59 }
 0x6a1   : > { %v1896_v4 = vperm.slane %v1888_v49, %v4261_v44  ;;  %v1978_v49 = vsel %vm1825_vm7, %v1791_v24, %v1977_v35  ;;  %v2023_v41 = vrot.slane %v4345_v31, 4 }
 0x6a3   : > { %v1934_v8 = vsel %vm1825_vm7, %v1933_v38, %v1896_v4  ;;  %v1935_v12 = vrot.slane %v1896_v4, 4 }
 0x6a4   : > { %v3554_v7 = vpack.i.bf16 %v1934_v8, %v1930_v6  ;;  %v4356_v8 = vperm.slane %v1978_v49, %v4230_v48 }
 0x6a5   : > { %v1936_v57 = vsel %vm1825_vm7, %v1920_v2, %v1935_v12  ;;  %v2025_v2 = vrot.slane %v4333_v56, 4 }
 0x6a6   : > { %3555 = vxpose.xlu1.b32.start [1/2] (short) (narrow) %v3554_v7, 16  ;;  %v3568_v14 = vpack.i.bf16 %v1936_v57, %v1932_v1  ;;  %v2036_v18 = vsel %vm1825_vm7, %v2035_v45, %v4356_v8 }
 0x6a7   : > { %v2026_v20 = vsel %vm1825_vm7, %v4345_v31, %v2025_v2 }
 0x6a8   : > { %3569 = vxpose.xlu0.b32.start [1/2] (short) (narrow) %v3568_v14, 16 }
 0x6ae   : > { %3406 = vmatmul.msk.bf16.gmra.mxu1 %vm376_vm2, %v3443_v34  ;;  %3557 = vxpose.xlu1.b32.end [2/2] (short) (narrow) %v3556_v23, 16  ;;  %v1821_v34 = vpop.permute.xlu1 %1820 }
 0x6af   : > { %v2011_v43 = vrot.slane %v1821_v34, 4 }
 0x6b0   : > { %3571 = vxpose.xlu0.b32.end [2/2] (short) (narrow) %v3570_v40, 16 }
 0x6b1   : > { %v2012_v0 = vsel %vm1825_vm7, %v2011_v43, %v1809_v37  ;;  %v2024_v43 = vsel %vm1825_vm7, %v2023_v41, %v4333_v56 }
 0x6b2   : > { %v2018_v7 = vperm.slane %v2012_v0, %v4230_v48  ;;  %v2030_v50 = vperm.slane %v2024_v43, %v4261_v44 }
 0x6b6   : > { %v1803_v30 = vpop.permute.xlu1 %1802 }
 0x6b7   : > { %v2001_v60 = vrot.slane %v1803_v30, 4 }
 0x6be   : > { %3407 = vmatmul.msk.bf16.gmra.mxu1 %vm376_vm2, %v3444_v42  ;;  %v2013_v42 = vrot.slane %v1809_v37, 4 }
 0x6c0   : > { %v2014_v62 = vsel %vm1825_vm7, %v1821_v34, %v2013_v42 }
 0x6c1   : > { %v4338_v63 = vperm.slane %v2014_v62, %v4230_v48 }
 0x6c3   : > { %v2059_v4 = vrot.slane %v4338_v63, 4 }
 0x6ce   : > { %3408 = vmatmul.msk.bf16.gmra.mxu1 %vm376_vm2, %v3445_v46  ;;  %v1815_v46 = vpop.permute.xlu0 %1814 }
 0x6cf   : > { %v1999_v15 = vrot.slane %v1815_v46, 4  ;;  %v2002_v6 = vsel %vm1825_vm7, %v1815_v46, %v2001_v60  ;;  %v2092_v60 = vperm.slane %v1779_v53, %v4230_v48 }
 0x6d0   : > { %v4362_v10 = vperm.slane %v2002_v6, %v4230_v48 }
 0x6d1   : > { %v2000_v38 = vsel %vm1825_vm7, %v1999_v15, %v1803_v30  ;;  %v2087_v15 = vrot.slane %v1779_v53, 4  ;;  %v2097_v55 = vrot.slane %v2092_v60, 4  ;;  %v2102_v6 = vperm.slane %v2092_v60, %v4261_v44 }
 0x6d2   : > { %v2060_v57 = vsel %vm1825_vm7, %v2059_v4, %v4362_v10 }
 0x6d3   : > { %v4367_v14 = vperm.slane %v2060_v57, %v4261_v44  ;;  %v2088_v16 = vsel %vm1825_vm7, 0.0, %v2087_v15  ;;  %v2098_v2 = vsel %vm1825_vm7, 0.0, %v2097_v55 }
 0x6d4   : > { %v4402_v0 = vperm.slane %v2088_v16, %v4230_v48  ;;  %v4408_v4 = vperm.slane %v2098_v2, %v4261_v44 }
 0x6d5   : > { %v2079_v24 = vrot.slane %v4367_v14, 4 }
 0x6d6   : > { %v4412_v40 = vperm.slane %v4402_v0, %v4261_v44 }
 0x6de   : > { %3409 = vmatmul.msk.bf16.gmra.mxu1 %vm376_vm2, %v3446_v9  ;;  %v2006_v9 = vperm.slane %v2000_v38, %v4230_v48  ;;  %v2061_v38 = vrot.slane %v4362_v10, 4  ;;  %v3598_v48 = vpack.i.bf16 %v4412_v40, %v4408_v4 }
 0x6e0   : > { %v2049_v1 = vrot.slane %v2006_v9, 4  ;;  %v2062_v57 = vsel %vm1825_vm7, %v4338_v63, %v2061_v38  ;;  %v2119_v38 = vrot.slane %v4408_v4, 4 }
 0x6e2   : > { %v2050_v19 = vsel %vm1825_vm7, %v2018_v7, %v2049_v1 }
 0x6ee   : > { %3410 = vmatmul.msk.bf16.gmra.mxu1 %vm376_vm2, %v3447_v11 }
 0x70b   : > { %v1340_v28 = vpop.f32.mrf.mxu1 }
 0x70c   : > { %v1403_v29 = vrot.slane %v1340_v28, 1  ;;  %v1404_v5 = vrot.slane %v1340_v28, 2  ;;  %v1405_v27 = vrot.slane %v1340_v28, 3  ;;  %1529 = vst [vmem:[#allocation1] ss:$9 sm:$0xff] %v1340_v28  ;;  %v1406_v33 = vrot.slane %v1340_v28, 4 }
 0x70d   : > { %v1407_v36 = vrot.slane %v1340_v28, 5  ;;  %v1408_v52 = vrot.slane %v1340_v28, 6  ;;  %v1409_v47 = vrot.slane %v1340_v28, 7  ;;  %v3786_v28 = vmov 65535  }
 0x70e   : > { %1531 = vst [vmem:[#allocation1 + $0x1] ss:$9 sm:$0xff] %v1403_v29  ;;  %v2685_v29 = vsel %vm2683_vm8, 4294967295, %v3786_v28 }
 0x70f   : > { %1533 = vst [vmem:[#allocation1 + $0x2] ss:$9 sm:$0xff] %v1404_v5  ;;  %v4375_v5 = vperm.slane %v2026_v20, %v4261_v44  ;;  %v4384_v22 = vsel %vm2684_vm9, %v2685_v29, 0 }
 0x710   : > { %1535 = vst [vmem:[#allocation1 + $0x3] ss:$9 sm:$0xff] %v1405_v27  ;;  %v4378_v27 = vperm.slane %v2036_v18, %v4261_v44 }
 0x711   : > { %1537 = vst [vmem:[#allocation1 + $0x4] ss:$9 sm:$0xff] %v1406_v33  ;;  %v4381_v33 = vperm.slane %v2050_v19, %v4261_v44 }
 0x712   : > { %1539 = vst [vmem:[#allocation1 + $0x5] ss:$9 sm:$0xff] %v1407_v36  ;;  %v2080_v39 = vsel %vm1825_vm7, %v2079_v24, %v4378_v27 }
 0x713   : > { %1541 = vst [vmem:[#allocation1 + $0x6] ss:$9 sm:$0xff] %v1408_v52  ;;  %v1342_v61 = vpop.f32.mrf.mxu1  ;;  %v2075_v37 = vrot.slane %v4381_v33, 4 }
 0x714   : > { %1543 = vst [vmem:[#allocation1 + $0x7] ss:$9 sm:$0xff] %v1409_v47  ;;  %v1410_v12 = vrot.slane %v1342_v61, 1  ;;  %v1411_v13 = vrot.slane %v1342_v61, 2  ;;  %v1412_v21 = vrot.slane %v1342_v61, 3  ;;  %v1413_v23 = vrot.slane %v1342_v61, 4 }
 0x715   : > { %v1414_v25 = vrot.slane %v1342_v61, 5  ;;  %v1415_v34 = vrot.slane %v1342_v61, 6  ;;  %v2047_v47 = vrot.slane %v2018_v7, 4  ;;  %v1416_v54 = vrot.slane %v1342_v61, 7 }
 0x716   : > { %v2076_v46 = vsel %vm1825_vm7, %v2075_v37, %v4375_v5  ;;  %v2037_v7 = vrot.slane %v4356_v8, 4 }
 0x717   : > { %v2048_v30 = vsel %vm1825_vm7, %v2047_v47, %v2006_v9  ;;  %v3596_v35 = vpack.i.bf16 %v2080_v39, %v2076_v46  ;;  %v2117_v9 = vrot.slane %v2102_v6, 4  ;;  %v2077_v47 = vrot.slane %v4375_v5, 4 }
 0x718   : > { %v2054_v62 = vperm.slane %v2048_v30, %v4261_v44  ;;  %v2038_v8 = vsel %vm1825_vm7, %v4330_v58, %v2037_v7 }
 0x719   : > { %3597 = vxpose.xlu0.b32.start [1/2] (short) (narrow) %v3596_v35, 16  ;;  %v2118_v20 = vsel %vm1825_vm7, 0.0, %v2117_v9  ;;  %v2046_v28 = vperm.slane %v2038_v8, %v4261_v44  ;;  %v2078_v41 = vsel %vm1825_vm7, %v4381_v33, %v2077_v47 }
 0x71a   : > { %v3584_v63 = vpack.i.bf16 %v2102_v6, %v2118_v20 }
 0x71b   : > { %v1544_v59 = vld [vmem:[#allocation1] sm:$0xff]  ;;  %v1345_v42 = vpop.f32.mrf.mxu1 }
 0x71c   : > { %1545 = vst [vmem:[#allocation1] ss:$9 sm:$0xff] %v1342_v61  ;;  %v1744_v51 = vpack.c.bf16 %v1544_v59, %v1544_v59  ;;  %v2071_v59 = vrot.slane %v2054_v62, 4  ;;  %v2073_v61 = vrot.slane %v2030_v50, 4  ;;  %v1417_v49 = vrot.slane %v1345_v42, 1 }
 0x71d   : > { %v1420_v18 = vrot.slane %v1345_v42, 4  ;;  %v1422_v19 = vrot.slane %v1345_v42, 6  ;;  %v1423_v29 = vrot.slane %v1345_v42, 7 }
 0x71e   : > { %v2676_v36 = vunpack.c.l.b16 %v1744_v51  ;;  %v2072_v56 = vsel %vm1825_vm7, %v2071_v59, %v2030_v50  ;;  %v2074_v45 = vsel %vm1825_vm7, %v2054_v62, %v2073_v61  ;;  %v1421_v51 = vrot.slane %v1345_v42, 5 }
 0x71f   : > { %v3582_v11 = vpack.i.bf16 %v2072_v56, %v2074_v45 }
 0x721   : > { %3583 = vxpose.xlu2.b32.start [1/2] (short) (narrow) %v3582_v11, 16  ;;  %3599 = vxpose.xlu0.b32.end [2/2] (short) (narrow) %v3598_v48, 16  ;;  %v2121_v48 = vrot.slane %v4412_v40, 4 }
 0x723   : > { %v1546_v17 = vld [vmem:[#allocation1] sm:$0xff] }
 0x724   : > { %1547 = vst [vmem:[#allocation1] ss:$9 sm:$0xff] %v1410_v12  ;;  %v1745_v26 = vpack.c.bf16 %v1546_v17, %v1546_v17  ;;  %v1418_v12 = vrot.slane %v1345_v42, 2 }
 0x725   : > { %1548 = vst [vmem:[#allocation1 + $0x1] ss:$9 sm:$0xff] %v1411_v13  ;;  %v1419_v13 = vrot.slane %v1345_v42, 3 }
 0x726   : > { %1549 = vst [vmem:[#allocation1 + $0x2] ss:$9 sm:$0xff] %v1412_v21  ;;  %v2677_v52 = vunpack.c.l.b16 %v1745_v26  ;;  %v2070_v21 = vperm.slane %v2062_v57, %v4261_v44  ;;  %v2122_v57 = vsel %vm1825_vm7, 0.0, %v2121_v48 }
 0x727   : > { %1550 = vst [vmem:[#allocation1 + $0x3] ss:$9 sm:$0xff] %v1413_v23  ;;  %v1347_v23 = vpop.f32.mrf.mxu1 }
 0x728   : > { %1551 = vst [vmem:[#allocation1 + $0x4] ss:$9 sm:$0xff] %v1414_v25  ;;  %v2678_v32 = vpack.c.b16 %v2677_v52, %v2676_v36  ;;  %v2083_v24 = vrot.slane %v2070_v21, 4  ;;  %v2085_v36 = vrot.slane %v2046_v28, 4  ;;  %v1424_v52 = vrot.slane %v1347_v23, 1 }
 0x729   : > { %1552 = vst [vmem:[#allocation1 + $0x5] ss:$9 sm:$0xff] %v1415_v34  ;;  %3585 = vxpose.xlu2.b32.end [2/2] (short) (narrow) %v3584_v63, 16  ;;  %v1425_v5 = vrot.slane %v1347_v23, 2  ;;  %v1427_v35 = vrot.slane %v1347_v23, 4  ;;  %v1428_v33 = vrot.slane %v1347_v23, 5 }
 0x72a   : > { %1553 = vst [vmem:[#allocation1 + $0x6] ss:$9 sm:$0xff] %v1416_v54  ;;  %v2688_v3 = vand.u32 %v4384_v22, %v2678_v32  ;;  %v2084_v58 = vsel %vm1825_vm7, %v2083_v24, %v2046_v28  ;;  %v2081_v54 = vrot.slane %v4378_v27, 4  ;;  %v2086_v39 = vsel %vm1825_vm7, %v2070_v21, %v2085_v36  ;;  %v3448_v27 = vld [vmem:[%s4588_s2 + $0x38] sm:$0xff] }
 0x72b   : > { %1554 = vst [vmem:[#allocation1 + $0x7] ss:$9 sm:$0xff] %v1345_v42  ;;  %2573 = vxpose.xlu0.b32.start [1/2] (short) (narrow) %v2084_v58, 16  ;;  %2605 = vxpose.xlu1.b32.start [1/2] (short) (narrow) %v2086_v39, 16  ;;  %v1430_v62 = vrot.slane %v1347_v23, 7 }
 0x72c   : > { %2697 = vmatpush.bf16.msra.mxu3 %v2688_v3  ;;  %v2082_v32 = vsel %vm1825_vm7, %v4367_v14, %v2081_v54  ;;  %3411 = vmatmul.msk.bf16.gmra.mxu1 %vm376_vm2, %v3448_v27  ;;  %v1426_v3 = vrot.slane %v1347_v23, 3  ;;  %v1429_v14 = vrot.slane %v1347_v23, 6 }
 0x72d   : > { %v3610_v42 = vpack.i.bf16 %v2082_v32, %v2078_v41 }
 0x72f   : > { %v1350_v50 = vpop.f32.mrf.mxu1 }
 0x730   : > { %v1431_v15 = vrot.slane %v1350_v50, 1  ;;  %v1432_v61 = vrot.slane %v1350_v50, 2  ;;  %v1434_v56 = vrot.slane %v1350_v50, 4  ;;  %v1435_v2 = vrot.slane %v1350_v50, 5 }
 0x731   : > { %3611 = vxpose.xlu2.b32.start [1/2] (short) (narrow) %v3610_v42, 16  ;;  %v1436_v6 = vrot.slane %v1350_v50, 6 }
 0x732   : > { %v1555_v31 = vld [vmem:[#allocation1] sm:$0xff] }
 0x733   : > { %1556 = vst [vmem:[#allocation1] ss:$9 sm:$0xff] %v1417_v49  ;;  %v1746_v1 = vpack.c.bf16 %v1555_v31, %v1555_v31  ;;  %v1433_v49 = vrot.slane %v1350_v50, 3 }
 0x735   : > { %v2711_v25 = vunpack.c.l.b16 %v1746_v1  ;;  %v2120_v1 = vsel %vm1825_vm7, 0.0, %v2119_v38 }
 0x737   : > { %v1352_v7 = vpop.f32.mrf.mxu1 }
 0x738   : > { %v1440_v40 = vrot.slane %v1352_v7, 3  ;;  %v1441_v63 = vrot.slane %v1352_v7, 4  ;;  %v1442_v28 = vrot.slane %v1352_v7, 5  ;;  %v1443_v24 = vrot.slane %v1352_v7, 6 }
 0x73a   : > { %v1557_v17 = vld [vmem:[#allocation1] sm:$0xff] }
 0x73b   : > { %1558 = vst [vmem:[#allocation1] ss:$9 sm:$0xff] %v1418_v12  ;;  %v1747_v10 = vpack.c.bf16 %v1557_v17, %v1557_v17  ;;  %v1437_v12 = vrot.slane %v1350_v50, 7 }
 0x73c   : > { %1559 = vst [vmem:[#allocation1 + $0x1] ss:$9 sm:$0xff] %v1419_v13 }
 0x73d   : > { %1560 = vst [vmem:[#allocation1 + $0x2] ss:$9 sm:$0xff] %v1420_v18  ;;  %v2712_v26 = vunpack.c.l.b16 %v1747_v10  ;;  %v3612_v18 = vpack.i.bf16 %v2122_v57, %v2120_v1  ;;  %v1439_v10 = vrot.slane %v1352_v7, 2 }
 0x73e   : > { %1561 = vst [vmem:[#allocation1 + $0x3] ss:$9 sm:$0xff] %v1421_v51  ;;  %v1438_v51 = vrot.slane %v1352_v7, 1 }
 0x73f   : > { %1562 = vst [vmem:[#allocation1 + $0x4] ss:$9 sm:$0xff] %v1422_v19  ;;  %v2713_v34 = vpack.c.b16 %v2712_v26, %v2711_v25  ;;  %3613 = vxpose.xlu2.b32.end [2/2] (short) (narrow) %v3612_v18, 16  ;;  %v2107_v19 = vrot.slane %v4402_v0, 4  ;;  %v3449_v25 = vld [vmem:[%s4588_s2 + $0x40] sm:$0xff]  ;;  %v1355_v36 = vpop.f32.mrf.mxu1 }
 0x740   : > { %1563 = vst [vmem:[#allocation1 + $0x5] ss:$9 sm:$0xff] %v1423_v29  ;;  %3412 = vmatmul.msk.bf16.gmra.mxu1 %vm376_vm2, %v3449_v25  ;;  %v1446_v47 = vrot.slane %v1355_v36, 2  ;;  %v1447_v54 = vrot.slane %v1355_v36, 3  ;;  %v1448_v41 = vrot.slane %v1355_v36, 4  ;;  %v1449_v27 = vrot.slane %v1355_v36, 5 }
 0x741   : > { %1564 = vst [vmem:[#allocation1 + $0x6] ss:$9 sm:$0xff] %v1347_v23  ;;  %v2718_v37 = vand.u32 %v2713_v34, %v4384_v22  ;;  %v2108_v8 = vsel %vm1825_vm7, 0.0, %v2107_v19  ;;  %vm2679_vm2 = vcmask 72704  }
 0x742   : > { %1565 = vst [vmem:[#allocation1 + $0x7] ss:$9 sm:$0xff] %v1424_v52  ;;  %v2116_v21 = vperm.slane %v2108_v8, %v4261_v44  ;;  %v1444_v44 = vrot.slane %v1352_v7, 7  ;;  %v1445_v52 = vrot.slane %v1355_v36, 1 }
 0x743   : > { %2727 = vmatpush.bf16.msra.mxu2 %v2718_v37 }
 0x744   : > { %v2123_v23 = vrot.slane %v2116_v21, 4  ;;  %2574 = vxpose.xlu0.b32.end [2/2] (short) (narrow) %v2116_v21, 16 }
 0x746   : > { %v2124_v26 = vsel %vm1825_vm7, 0.0, %v2123_v23 }
 0x747   : > { %2606 = vxpose.xlu1.b32.end [2/2] (short) (narrow) %v2124_v26, 16 }
 0x749   : > { %v1566_v46 = vld [vmem:[#allocation1] sm:$0xff] }
 0x74a   : > { %1567 = vst [vmem:[#allocation1] ss:$9 sm:$0xff] %v1425_v5  ;;  %v1748_v30 = vpack.c.bf16 %v1566_v46, %v1566_v46  ;;  %v3530_v5 = vpop.trf.xlu2 }
 0x74c   : > { %v2741_v60 = vunpack.c.l.b16 %v1748_v30  ;;  %v1357_v30 = vpop.f32.mrf.mxu1 }
 0x74d   : > { %v1458_v57 = vrot.slane %v1357_v30, 7 }
 0x751   : > { %v1568_v43 = vld [vmem:[#allocation1] sm:$0xff] }
 0x752   : > { %1569 = vst [vmem:[#allocation1] ss:$9 sm:$0xff] %v1426_v3  ;;  %v1749_v53 = vpack.c.bf16 %v1568_v43, %v1568_v43  ;;  %v1450_v3 = vrot.slane %v1355_v36, 6  ;;  %v1451_v43 = vrot.slane %v1355_v36, 7 }
 0x753   : > { %1570 = vst [vmem:[#allocation1 + $0x1] ss:$9 sm:$0xff] %v1427_v35 }
 0x754   : > { %1571 = vst [vmem:[#allocation1 + $0x2] ss:$9 sm:$0xff] %v1428_v33  ;;  %v2742_v59 = vunpack.c.l.b16 %v1749_v53  ;;  %v3531_v53 = vunpack.i.l.bf16 %v3530_v5  ;;  %v1360_v1 = vpop.f32.mrf.mxu1 }
 0x755   : > { %1572 = vst [vmem:[#allocation1 + $0x3] ss:$9 sm:$0xff] %v1429_v14  ;;  %v1462_v8 = vrot.slane %v1360_v1, 4  ;;  %v1463_v21 = vrot.slane %v1360_v1, 5 }
 0x756   : > { %1573 = vst [vmem:[#allocation1 + $0x4] ss:$9 sm:$0xff] %v1430_v62  ;;  %v2743_v16 = vpack.c.b16 %v2742_v59, %v2741_v60  ;;  %v1453_v62 = vrot.slane %v1357_v30, 2  ;;  %v1454_v59 = vrot.slane %v1357_v30, 3 }
 0x757   : > { %1574 = vst [vmem:[#allocation1 + $0x5] ss:$9 sm:$0xff] %v1350_v50  ;;  %v1452_v50 = vrot.slane %v1357_v30, 1 }
 0x758   : > { %1575 = vst [vmem:[#allocation1 + $0x6] ss:$9 sm:$0xff] %v1431_v15  ;;  %v2748_v55 = vand.u32 %v2743_v16, %v4384_v22  ;;  %v1455_v16 = vrot.slane %v1357_v30, 4 }
 0x759   : > { %1576 = vst [vmem:[#allocation1 + $0x7] ss:$9 sm:$0xff] %v1432_v61  ;;  %v2637_v61 = vpack.c.bf16 %v3531_v53, %v3531_v53 }
 0x75a   : > { %2757 = vmatpush.bf16.msra.mxu0 %v2748_v55 }
 0x760   : > { %v1577_v31 = vld [vmem:[#allocation1] sm:$0xff] }
 0x761   : > { %1578 = vst [vmem:[#allocation1] ss:$9 sm:$0xff] %v1433_v49  ;;  %v1750_v45 = vpack.c.bf16 %v1577_v31, %v1577_v31  ;;  %v3535_v49 = vpop.trf.xlu2  ;;  %v1456_v31 = vrot.slane %v1357_v30, 5 }
 0x763   : > { %v2771_v13 = vunpack.c.l.b16 %v1750_v45 }
 0x768   : > { %v1579_v11 = vld [vmem:[#allocation1] sm:$0xff] }
 0x769   : > { %1580 = vst [vmem:[#allocation1] ss:$9 sm:$0xff] %v1434_v56  ;;  %v1751_v9 = vpack.c.bf16 %v1579_v11, %v1579_v11  ;;  %v3536_v56 = vunpack.i.l.bf16 %v3535_v49 }
 0x76a   : > { %1581 = vst [vmem:[#allocation1 + $0x1] ss:$9 sm:$0xff] %v1435_v2  ;;  %v2671_v2 = vunpack.c.l.b16 %v2637_v61 }
 0x76b   : > { %1582 = vst [vmem:[#allocation1 + $0x2] ss:$9 sm:$0xff] %v1436_v6  ;;  %v2772_v17 = vunpack.c.l.b16 %v1751_v9  ;;  %v2638_v11 = vpack.c.bf16 %v3536_v56, %v3536_v56  ;;  %v1457_v6 = vrot.slane %v1357_v30, 6  ;;  %v3534_v9 = vunpack.i.h.bf16 %v3530_v5 }
 0x76c   : > { %1583 = vst [vmem:[#allocation1 + $0x3] ss:$9 sm:$0xff] %v1437_v12 }
 0x76d   : > { %1584 = vst [vmem:[#allocation1 + $0x4] ss:$9 sm:$0xff] %v1352_v7  ;;  %v2773_v4 = vpack.c.b16 %v2772_v17, %v2771_v13  ;;  %v2672_v38 = vunpack.c.l.b16 %v2638_v11  ;;  %v2639_v12 = vpack.c.bf16 %v3534_v9, %v3534_v9  ;;  %v1459_v13 = vrot.slane %v1360_v1, 1 }
 0x76e   : > { %1585 = vst [vmem:[#allocation1 + $0x5] ss:$9 sm:$0xff] %v1438_v51  ;;  %v3539_v17 = vunpack.i.h.bf16 %v3535_v49 }
 0x76f   : > { %1586 = vst [vmem:[#allocation1 + $0x6] ss:$9 sm:$0xff] %v1439_v10  ;;  %v2778_v20 = vand.u32 %v2773_v4, %v4384_v22  ;;  %v2673_v48 = vpack.c.b16 %v2672_v38, %v2671_v2  ;;  %v1460_v10 = vrot.slane %v1360_v1, 2  ;;  %v1461_v4 = vrot.slane %v1360_v1, 3 }
 0x770   : > { %1587 = vst [vmem:[#allocation1 + $0x7] ss:$9 sm:$0xff] %v1440_v40  ;;  %v2706_v40 = vunpack.c.l.b16 %v2639_v12  ;;  %v2640_v19 = vpack.c.bf16 %v3539_v17, %v3539_v17 }
 0x771   : > { %2787 = vmatpush.bf16.msrb.mxu3 %v2778_v20 }
 0x772   : > { %3413 = vmatmul.msk.bf16.vlgmr.msra.gmra.mxu3 %vm2679_vm2, %v2673_v48  ;;  %v2707_v23 = vunpack.c.l.b16 %v2640_v19  ;;  %v3558_v19 = vpop.trf.xlu1 }
 0x777   : > { %v1588_v0 = vld [vmem:[#allocation1] sm:$0xff] }
 0x778   : > { %1589 = vst [vmem:[#allocation1] ss:$9 sm:$0xff] %v1441_v63  ;;  %v1752_v29 = vpack.c.bf16 %v1588_v0, %v1588_v0  ;;  %v1464_v63 = vrot.slane %v1360_v1, 6  ;;  %v2708_v0 = vpack.c.b16 %v2707_v23, %v2706_v40 }
 0x77a   : > { %v2801_v37 = vunpack.c.l.b16 %v1752_v29  ;;  %3414 = vmatmul.msk.bf16.vlgmr.msra.gmra.mxu2 %vm2679_vm2, %v2708_v0  ;;  %v3563_v0 = vpop.trf.xlu1 }
 0x77f   : > { %v1590_v34 = vld [vmem:[#allocation1] sm:$0xff] }
 0x780   : > { %1591 = vst [vmem:[#allocation1] ss:$9 sm:$0xff] %v1442_v28  ;;  %v1753_v58 = vpack.c.bf16 %v1590_v34, %v1590_v34 }
 0x781   : > { %1592 = vst [vmem:[#allocation1 + $0x1] ss:$9 sm:$0xff] %v1443_v24  ;;  %v1465_v24 = vrot.slane %v1360_v1, 7 }
 0x782   : > { %1593 = vst [vmem:[#allocation1 + $0x2] ss:$9 sm:$0xff] %v1444_v44  ;;  %v2802_v39 = vunpack.c.l.b16 %v1753_v58  ;;  %v1362_v44 = vpop.f32.mrf.mxu1 }
 0x783   : > { %1594 = vst [vmem:[#allocation1 + $0x3] ss:$9 sm:$0xff] %v1355_v36  ;;  %v3544_v36 = vpop.trf.xlu0 }
 0x784   : > { %1595 = vst [vmem:[#allocation1 + $0x4] ss:$9 sm:$0xff] %v1445_v52  ;;  %v2803_v32 = vpack.c.b16 %v2802_v39, %v2801_v37  ;;  %v1468_v39 = vrot.slane %v1362_v44, 3  ;;  %v3545_v61 = vunpack.i.l.bf16 %v3544_v36 }
 0x785   : > { %1596 = vst [vmem:[#allocation1 + $0x5] ss:$9 sm:$0xff] %v1446_v47  ;;  %v1466_v47 = vrot.slane %v1362_v44, 1 }
 0x786   : > { %1597 = vst [vmem:[#allocation1 + $0x6] ss:$9 sm:$0xff] %v1447_v54  ;;  %v2808_v42 = vand.u32 %v2803_v32, %v4384_v22  ;;  %v1467_v54 = vrot.slane %v1362_v44, 2  ;;  %v1470_v32 = vrot.slane %v1362_v44, 5  ;;  %v2643_v49 = vpack.c.bf16 %v3545_v61, %v3545_v61 }
 0x787   : > { %1598 = vst [vmem:[#allocation1 + $0x7] ss:$9 sm:$0xff] %v1448_v41  ;;  %v1469_v41 = vrot.slane %v1362_v44, 4 }
 0x788   : > { %2817 = vmatpush.bf16.msrb.mxu2 %v2808_v42  ;;  %v2766_v38 = vunpack.c.l.b16 %v2643_v49 }
 0x78e   : > { %v1599_v46 = vld [vmem:[#allocation1] sm:$0xff] }
 0x78f   : > { %1600 = vst [vmem:[#allocation1] ss:$9 sm:$0xff] %v1449_v27  ;;  %v1754_v35 = vpack.c.bf16 %v1599_v46, %v1599_v46  ;;  %v3549_v27 = vpop.trf.xlu0  ;;  %v3548_v46 = vunpack.i.h.bf16 %v3544_v36 }
 0x791   : > { %v2831_v15 = vunpack.c.l.b16 %v1754_v35 }
 0x796   : > { %v1601_v33 = vld [vmem:[#allocation1] sm:$0xff] }
 0x797   : > { %1602 = vst [vmem:[#allocation1] ss:$9 sm:$0xff] %v1450_v3  ;;  %v1755_v14 = vpack.c.bf16 %v1601_v33, %v1601_v33  ;;  %v3553_v3 = vunpack.i.h.bf16 %v3549_v27  ;;  %v2641_v33 = vpack.c.bf16 %v3548_v46, %v3548_v46  ;;  %v3572_v46 = vpop.trf.xlu0 }
 0x798   : > { %1603 = vst [vmem:[#allocation1 + $0x1] ss:$9 sm:$0xff] %v1451_v43  ;;  %v1472_v43 = vrot.slane %v1362_v44, 7  ;;  %v3573_v61 = vunpack.i.l.bf16 %v3572_v46 }
 0x799   : > { %1604 = vst [vmem:[#allocation1 + $0x2] ss:$9 sm:$0xff] %v1357_v30  ;;  %v2832_v60 = vunpack.c.l.b16 %v1755_v14  ;;  %v1471_v30 = vrot.slane %v1362_v44, 6  ;;  %v2642_v53 = vpack.c.bf16 %v3553_v3, %v3553_v3  ;;  %v3562_v3 = vunpack.i.h.bf16 %v3558_v19 }
 0x79a   : > { %1605 = vst [vmem:[#allocation1 + $0x3] ss:$9 sm:$0xff] %v1452_v50  ;;  %v2736_v50 = vunpack.c.l.b16 %v2641_v33 }
 0x79b   : > { %1606 = vst [vmem:[#allocation1 + $0x4] ss:$9 sm:$0xff] %v1453_v62  ;;  %v2833_v55 = vpack.c.b16 %v2832_v60, %v2831_v15  ;;  %v2737_v62 = vunpack.c.l.b16 %v2642_v53 }
 0x79c   : > { %1607 = vst [vmem:[#allocation1 + $0x5] ss:$9 sm:$0xff] %v1454_v59  ;;  %v1365_v59 = vpop.f32.mrf.mxu1 }
 0x79d   : > { %1608 = vst [vmem:[#allocation1 + $0x6] ss:$9 sm:$0xff] %v1455_v16  ;;  %v2838_v45 = vand.u32 %v2833_v55, %v4384_v22  ;;  %v2738_v15 = vpack.c.b16 %v2737_v62, %v2736_v50  ;;  %v3550_v16 = vunpack.i.l.bf16 %v3549_v27  ;;  %v1473_v55 = vrot.slane %v1365_v59, 1 }
 0x79e   : > { %1609 = vst [vmem:[#allocation1 + $0x7] ss:$9 sm:$0xff] %v1456_v31  ;;  %v1475_v11 = vrot.slane %v1365_v59, 3  ;;  %v1477_v9 = vrot.slane %v1365_v59, 5  ;;  %v1479_v17 = vrot.slane %v1365_v59, 7 }
 0x79f   : > { %2847 = vmatpush.bf16.msrb.mxu0 %v2838_v45  ;;  %v2644_v31 = vpack.c.bf16 %v3550_v16, %v3550_v16  ;;  %v1474_v45 = vrot.slane %v1365_v59, 2 }
 0x7a0   : > { %3415 = vmatmul.msk.bf16.vlgmr.msra.gmra.mxu0 %vm2679_vm2, %v2738_v15 }
 0x7a1   : > { %v2767_v48 = vunpack.c.l.b16 %v2644_v31 }
 0x7a3   : > { %v2768_v12 = vpack.c.b16 %v2767_v48, %v2766_v38  ;;  %v3577_v48 = vpop.trf.xlu0 }
 0x7a5   : > { %v1610_v7 = vld [vmem:[#allocation1] sm:$0xff]  ;;  %3416 = vmatmul.msk.bf16.vlgmr.msrb.gmra.mxu3 %vm2679_vm2, %v2768_v12 }
 0x7a6   : > { %1611 = vst [vmem:[#allocation1] ss:$9 sm:$0xff] %v1457_v6  ;;  %v1756_v18 = vpack.c.bf16 %v1610_v7, %v1610_v7  ;;  %v1476_v7 = vrot.slane %v1365_v59, 4 }
 0x7a8   : > { %v2861_v25 = vunpack.c.l.b16 %v1756_v18 }
 0x7ad   : > { %v1612_v51 = vld [vmem:[#allocation1] sm:$0xff] }
 0x7ae   : > { %1613 = vst [vmem:[#allocation1] ss:$9 sm:$0xff] %v1458_v57  ;;  %v1757_v20 = vpack.c.bf16 %v1612_v51, %v1612_v51  ;;  %v1367_v51 = vpop.f32.mrf.mxu1 }
 0x7af   : > { %1614 = vst [vmem:[#allocation1 + $0x1] ss:$9 sm:$0xff] %v1360_v1 }
 0x7b0   : > { %1615 = vst [vmem:[#allocation1 + $0x2] ss:$9 sm:$0xff] %v1459_v13  ;;  %v2862_v26 = vunpack.c.l.b16 %v1757_v20  ;;  %v1478_v13 = vrot.slane %v1365_v59, 6  ;;  %v1481_v20 = vrot.slane %v1367_v51, 2 }
 0x7b1   : > { %1616 = vst [vmem:[#allocation1 + $0x3] ss:$9 sm:$0xff] %v1460_v10 }
 0x7b2   : > { %1617 = vst [vmem:[#allocation1 + $0x4] ss:$9 sm:$0xff] %v1461_v4  ;;  %v2863_v28 = vpack.c.b16 %v2862_v26, %v2861_v25  ;;  %v1480_v4 = vrot.slane %v1367_v51, 1  ;;  %v1483_v25 = vrot.slane %v1367_v51, 4  ;;  %v1484_v26 = vrot.slane %v1367_v51, 5 }
 0x7b3   : > { %1618 = vst [vmem:[#allocation1 + $0x5] ss:$9 sm:$0xff] %v1462_v8 }
 0x7b4   : > { %1619 = vst [vmem:[#allocation1 + $0x6] ss:$9 sm:$0xff] %v1463_v21  ;;  %v2868_v29 = vand.u32 %v2863_v28, %v4384_v22  ;;  %v1482_v21 = vrot.slane %v1367_v51, 3  ;;  %v3559_v28 = vunpack.i.l.bf16 %v3558_v19 }
 0x7b5   : > { %1620 = vst [vmem:[#allocation1 + $0x7] ss:$9 sm:$0xff] %v1464_v63 }
 0x7b6   : > { %2877 = vmatpush.bf16.msra.mxu3 %v2868_v29  ;;  %v3564_v29 = vunpack.i.l.bf16 %v3563_v0 }
 0x7bc   : > { %v1621_v34 = vld [vmem:[#allocation1] sm:$0xff] }
 0x7bd   : > { %1622 = vst [vmem:[#allocation1] ss:$9 sm:$0xff] %v1465_v24  ;;  %v1758_v52 = vpack.c.bf16 %v1621_v34, %v1621_v34  ;;  %v1485_v24 = vrot.slane %v1367_v51, 6  ;;  %v1370_v34 = vpop.f32.mrf.mxu1 }
 0x7be   : > { %v1489_v33 = vrot.slane %v1370_v34, 3  ;;  %v1490_v62 = vrot.slane %v1370_v34, 4  ;;  %v1493_v31 = vrot.slane %v1370_v34, 7 }
 0x7bf   : > { %v2891_v42 = vunpack.c.l.b16 %v1758_v52  ;;  %v1486_v52 = vrot.slane %v1367_v51, 7 }
 0x7c4   : > { %v1623_v58 = vld [vmem:[#allocation1] sm:$0xff] }
 0x7c5   : > { %1624 = vst [vmem:[#allocation1] ss:$9 sm:$0xff] %v1362_v44  ;;  %v1759_v37 = vpack.c.bf16 %v1623_v58, %v1623_v58  ;;  %v1487_v58 = vrot.slane %v1370_v34, 1  ;;  %v1372_v49 = vpop.f32.mrf.mxu1 }
 0x7c6   : > { %1625 = vst [vmem:[#allocation1 + $0x1] ss:$9 sm:$0xff] %v1466_v47  ;;  %v2645_v47 = vpack.c.bf16 %v3559_v28, %v3559_v28 }
 0x7c7   : > { %1626 = vst [vmem:[#allocation1 + $0x2] ss:$9 sm:$0xff] %v1467_v54  ;;  %v2892_v5 = vunpack.c.l.b16 %v1759_v37  ;;  %v2646_v54 = vpack.c.bf16 %v3564_v29, %v3564_v29 }
 0x7c8   : > { %1627 = vst [vmem:[#allocation1 + $0x3] ss:$9 sm:$0xff] %v1468_v39  ;;  %v2796_v39 = vunpack.c.l.b16 %v2645_v47 }
 0x7c9   : > { %1628 = vst [vmem:[#allocation1 + $0x4] ss:$9 sm:$0xff] %v1469_v41  ;;  %v2893_v35 = vpack.c.b16 %v2892_v5, %v2891_v42  ;;  %v2797_v41 = vunpack.c.l.b16 %v2646_v54  ;;  %v1488_v5 = vrot.slane %v1370_v34, 2 }
 0x7ca   : > { %1629 = vst [vmem:[#allocation1 + $0x5] ss:$9 sm:$0xff] %v1470_v32 }
 0x7cb   : > { %1630 = vst [vmem:[#allocation1 + $0x6] ss:$9 sm:$0xff] %v1471_v30  ;;  %v2898_v14 = vand.u32 %v2893_v35, %v4384_v22  ;;  %v2798_v42 = vpack.c.b16 %v2797_v41, %v2796_v39  ;;  %v3567_v30 = vunpack.i.h.bf16 %v3563_v0  ;;  %v2649_v35 = vpack.c.bf16 %v3562_v3, %v3562_v3 }
 0x7cc   : > { %1631 = vst [vmem:[#allocation1 + $0x7] ss:$9 sm:$0xff] %v1472_v43  ;;  %v1498_v0 = vrot.slane %v1372_v49, 5 }
 0x7cd   : > { %2907 = vmatpush.bf16.msra.mxu2 %v2898_v14  ;;  %v2650_v43 = vpack.c.bf16 %v3567_v30, %v3567_v30  ;;  %v2856_v53 = vunpack.c.l.b16 %v2649_v35 }
 0x7ce   : > { %3417 = vmatmul.msk.bf16.vlgmr.msrb.gmra.mxu2 %vm2679_vm2, %v2798_v42 }
 0x7cf   : > { %v2857_v14 = vunpack.c.l.b16 %v2650_v43 }
 0x7d3   : > { %v1632_v60 = vld [vmem:[#allocation1] sm:$0xff] }
 0x7d4   : > { %1633 = vst [vmem:[#allocation1] ss:$9 sm:$0xff] %v1365_v59  ;;  %v1760_v56 = vpack.c.bf16 %v1632_v60, %v1632_v60  ;;  %v1491_v60 = vrot.slane %v1370_v34, 5  ;;  %v2858_v59 = vpack.c.b16 %v2857_v14, %v2856_v53 }
 0x7d6   : > { %v2921_v1 = vunpack.c.l.b16 %v1760_v56  ;;  %3419 = vmatmul.msk.bf16.vlgmr.msra.gmra.mxu3 %vm2679_vm2, %v2858_v59 }
 0x7db   : > { %v1634_v2 = vld [vmem:[#allocation1] sm:$0xff] }
 0x7dc   : > { %1635 = vst [vmem:[#allocation1] ss:$9 sm:$0xff] %v1473_v55  ;;  %v1761_v6 = vpack.c.bf16 %v1634_v2, %v1634_v2  ;;  %v1492_v55 = vrot.slane %v1370_v34, 6  ;;  %v2647_v2 = vpack.c.bf16 %v3573_v61, %v3573_v61 }
 0x7dd   : > { %1636 = vst [vmem:[#allocation1 + $0x1] ss:$9 sm:$0xff] %v1474_v45 }
 0x7de   : > { %1637 = vst [vmem:[#allocation1 + $0x2] ss:$9 sm:$0xff] %v1475_v11  ;;  %v2922_v57 = vunpack.c.l.b16 %v1761_v6  ;;  %v1494_v11 = vrot.slane %v1372_v49, 1  ;;  %v1495_v6 = vrot.slane %v1372_v49, 2  ;;  %v2826_v12 = vunpack.c.l.b16 %v2647_v2 }
 0x7df   : > { %1638 = vst [vmem:[#allocation1 + $0x3] ss:$9 sm:$0xff] %v1476_v7  ;;  %v3578_v7 = vunpack.i.l.bf16 %v3577_v48 }
 0x7e0   : > { %1639 = vst [vmem:[#allocation1 + $0x4] ss:$9 sm:$0xff] %v1477_v9  ;;  %v2923_v18 = vpack.c.b16 %v2922_v57, %v2921_v1  ;;  %v3576_v57 = vunpack.i.h.bf16 %v3572_v46 }
 0x7e1   : > { %1640 = vst [vmem:[#allocation1 + $0x5] ss:$9 sm:$0xff] %v1478_v13  ;;  %v2648_v1 = vpack.c.bf16 %v3578_v7, %v3578_v7 }
 0x7e2   : > { %1641 = vst [vmem:[#allocation1 + $0x6] ss:$9 sm:$0xff] %v1479_v17  ;;  %v2928_v10 = vand.u32 %v2923_v18, %v4384_v22  ;;  %v2651_v18 = vpack.c.bf16 %v3576_v57, %v3576_v57 }
 0x7e3   : > { %1642 = vst [vmem:[#allocation1 + $0x7] ss:$9 sm:$0xff] %v1367_v51  ;;  %v2827_v13 = vunpack.c.l.b16 %v2648_v1  ;;  %v1496_v51 = vrot.slane %v1372_v49, 3 }
 0x7e4   : > { %2937 = vmatpush.bf16.msra.mxu0 %v2928_v10  ;;  %v2886_v19 = vunpack.c.l.b16 %v2651_v18 }
 0x7e5   : > { %v2828_v17 = vpack.c.b16 %v2827_v13, %v2826_v12 }
 0x7e7   : > { %3418 = vmatmul.msk.bf16.vlgmr.msrb.gmra.mxu0 %vm2679_vm2, %v2828_v17 }
 0x7ea   : > { %v1643_v40 = vld [vmem:[#allocation1] sm:$0xff] }
 0x7eb   : > { %1644 = vst [vmem:[#allocation1] ss:$9 sm:$0xff] %v1480_v4  ;;  %v1762_v8 = vpack.c.bf16 %v1643_v40, %v1643_v40  ;;  %v3581_v4 = vunpack.i.h.bf16 %v3577_v48  ;;  %v3586_v40 = vpop.trf.xlu2 }
 0x7ec   : > { %v3587_v29 = vunpack.i.l.bf16 %v3586_v40 }
 0x7ed   : > { %v2951_v36 = vunpack.c.l.b16 %v1762_v8 }
 0x7ee   : > { %v2655_v42 = vpack.c.bf16 %v3587_v29, %v3587_v29 }
 0x7f0   : > { %v2946_v53 = vunpack.c.l.b16 %v2655_v42 }
 0x7f2   : > { %v1645_v23 = vld [vmem:[#allocation1] sm:$0xff] }
 0x7f3   : > { %1646 = vst [vmem:[#allocation1] ss:$9 sm:$0xff] %v1481_v20  ;;  %v1763_v63 = vpack.c.bf16 %v1645_v23, %v1645_v23  ;;  %v2652_v20 = vpack.c.bf16 %v3581_v4, %v3581_v4  ;;  %v1497_v23 = vrot.slane %v1372_v49, 4 }
 0x7f4   : > { %1647 = vst [vmem:[#allocation1 + $0x1] ss:$9 sm:$0xff] %v1482_v21 }
 0x7f5   : > { %1648 = vst [vmem:[#allocation1 + $0x2] ss:$9 sm:$0xff] %v1483_v25  ;;  %v2952_v44 = vunpack.c.l.b16 %v1763_v63  ;;  %v2887_v8 = vunpack.c.l.b16 %v2652_v20  ;;  %v3600_v63 = vpop.trf.xlu0 }
 0x7f6   : > { %1649 = vst [vmem:[#allocation1 + $0x3] ss:$9 sm:$0xff] %v1484_v26  ;;  %v3590_v26 = vunpack.i.h.bf16 %v3586_v40 }
 0x7f7   : > { %1650 = vst [vmem:[#allocation1 + $0x4] ss:$9 sm:$0xff] %v1485_v24  ;;  %v2953_v37 = vpack.c.b16 %v2952_v44, %v2951_v36  ;;  %v2888_v21 = vpack.c.b16 %v2887_v8, %v2886_v19  ;;  %v1499_v24 = vrot.slane %v1372_v49, 6  ;;  %v1375_v36 = vpop.f32.mrf.mxu1 }
 0x7f8   : > { %1651 = vst [vmem:[#allocation1 + $0x5] ss:$9 sm:$0xff] %v1486_v52  ;;  %v3591_v52 = vpop.trf.xlu2  ;;  %v1502_v47 = vrot.slane %v1375_v36, 2  ;;  %v2653_v54 = vpack.c.bf16 %v3590_v26, %v3590_v26  ;;  %v1507_v57 = vrot.slane %v1375_v36, 7 }
 0x7f9   : > { %1652 = vst [vmem:[#allocation1 + $0x6] ss:$9 sm:$0xff] %v1370_v34  ;;  %v2958_v32 = vand.u32 %v2953_v37, %v4384_v22  ;;  %3420 = vmatmul.msk.bf16.vlgmr.msra.gmra.mxu2 %vm2679_vm2, %v2888_v21  ;;  %v1500_v34 = vrot.slane %v1372_v49, 7  ;;  %v3595_v41 = vunpack.i.h.bf16 %v3591_v52  ;;  %v3592_v30 = vunpack.i.l.bf16 %v3591_v52 }
 0x7fa   : > { %1653 = vst [vmem:[#allocation1 + $0x7] ss:$9 sm:$0xff] %v1487_v58  ;;  %v1501_v58 = vrot.slane %v1375_v36, 1  ;;  %v2916_v3 = vunpack.c.l.b16 %v2653_v54 }
 0x7fb   : > { %2967 = vmatpush.bf16.msrb.mxu3 %v2958_v32  ;;  %v1503_v32 = vrot.slane %v1375_v36, 3  ;;  %v2654_v46 = vpack.c.bf16 %v3595_v41, %v3595_v41 }
 0x7fd   : > { %v2917_v43 = vunpack.c.l.b16 %v2654_v46 }
 0x801   : > { %v1654_v27 = vld [vmem:[#allocation1] sm:$0xff] }
 0x802   : > { %1655 = vst [vmem:[#allocation1] ss:$9 sm:$0xff] %v1488_v5  ;;  %v1764_v50 = vpack.c.bf16 %v1654_v27, %v1654_v27  ;;  %v3601_v27 = vunpack.i.l.bf16 %v3600_v63 }
 0x804   : > { %v2981_v56 = vunpack.c.l.b16 %v1764_v50  ;;  %v2657_v14 = vpack.c.bf16 %v3601_v27, %v3601_v27  ;;  %v2656_v50 = vpack.c.bf16 %v3592_v30, %v3592_v30 }
 0x806   : > { %v2976_v59 = vunpack.c.l.b16 %v2657_v14 }
 0x809   : > { %v1656_v15 = vld [vmem:[#allocation1] sm:$0xff] }
 0x80a   : > { %1657 = vst [vmem:[#allocation1] ss:$9 sm:$0xff] %v1489_v33  ;;  %v1765_v16 = vpack.c.bf16 %v1656_v15, %v1656_v15  ;;  %v3605_v33 = vpop.trf.xlu0  ;;  %v2947_v15 = vunpack.c.l.b16 %v2656_v50 }
 0x80b   : > { %1658 = vst [vmem:[#allocation1 + $0x1] ss:$9 sm:$0xff] %v1490_v62  ;;  %v2918_v62 = vpack.c.b16 %v2917_v43, %v2916_v3  ;;  %v3609_v2 = vunpack.i.h.bf16 %v3605_v33 }
 0x80c   : > { %1659 = vst [vmem:[#allocation1 + $0x2] ss:$9 sm:$0xff] %v1491_v60  ;;  %v2982_v45 = vunpack.c.l.b16 %v1765_v16  ;;  %v3606_v60 = vunpack.i.l.bf16 %v3605_v33  ;;  %v2948_v61 = vpack.c.b16 %v2947_v15, %v2946_v53 }
 0x80d   : > { %1660 = vst [vmem:[#allocation1 + $0x3] ss:$9 sm:$0xff] %v1492_v55  ;;  %3421 = vmatmul.msk.bf16.vlgmr.msra.gmra.mxu0 %vm2679_vm2, %v2918_v62  ;;  %v1504_v55 = vrot.slane %v1375_v36, 4  ;;  %v2662_v1 = vpack.c.bf16 %v3609_v2, %v3609_v2 }
 0x80e   : > { %1661 = vst [vmem:[#allocation1 + $0x4] ss:$9 sm:$0xff] %v1493_v31  ;;  %v2983_v38 = vpack.c.b16 %v2982_v45, %v2981_v56  ;;  %v2658_v16 = vpack.c.bf16 %v3606_v60, %v3606_v60  ;;  %3422 = vmatmul.msk.bf16.vlgmr.msrb.gmra.mxu3 %vm2679_vm2, %v2948_v61  ;;  %v3604_v45 = vunpack.i.h.bf16 %v3600_v63 }
 0x80f   : > { %1662 = vst [vmem:[#allocation1 + $0x5] ss:$9 sm:$0xff] %v1372_v49  ;;  %v3037_v19 = vunpack.c.l.b16 %v2662_v1  ;;  %v2729_v1 = vpop.f32.mrf.mxu2 }
 0x810   : > { %1663 = vst [vmem:[#allocation1 + $0x6] ss:$9 sm:$0xff] %v1494_v11  ;;  %v2988_v9 = vand.u32 %v2983_v38, %v4384_v22  ;;  %v2977_v31 = vunpack.c.l.b16 %v2658_v16  ;;  %v1505_v11 = vrot.slane %v1375_v36, 5  ;;  %v1506_v38 = vrot.slane %v1375_v36, 6 }
 0x811   : > { %1664 = vst [vmem:[#allocation1 + $0x7] ss:$9 sm:$0xff] %v1495_v6  ;;  %v3614_v6 = vpop.trf.xlu2  ;;  %v2661_v12 = vpack.c.bf16 %v3604_v45, %v3604_v45 }
 0x812   : > { %2997 = vmatpush.bf16.msrb.mxu2 %v2988_v9  ;;  %v2978_v56 = vpack.c.b16 %v2977_v31, %v2976_v59  ;;  %v1377_v9 = vpop.f32.mrf.mxu1  ;;  %v3615_v17 = vunpack.i.l.bf16 %v3614_v6  ;;  %v3618_v52 = vunpack.i.h.bf16 %v3614_v6  ;;  %v2589_v60 = vpop.trf.xlu0  ;;  %3156 = vst.msk [vmem:[%s4481_s19 + $0x10] sm:$0xff] %vm330_vm0, %v2729_v1 }
 0x813   : > { %v1508_v18 = vrot.slane %v1377_v9, 1  ;;  %v1509_v4 = vrot.slane %v1377_v9, 2  ;;  %v3036_v40 = vunpack.c.l.b16 %v2661_v12  ;;  %v1510_v20 = vrot.slane %v1377_v9, 3  ;;  %v2699_v12 = vpop.f32.mrf.mxu3 }
 0x814   : > { %v1511_v21 = vrot.slane %v1377_v9, 4  ;;  %v2663_v42 = vpack.c.bf16 %v3618_v52, %v3618_v52  ;;  %v2665_v45 = vpack.c.bf16 %v2589_v60, %v2589_v60  ;;  %3154 = vst.msk [vmem:[%s4481_s19] sm:$0xff] %vm330_vm0, %v2699_v12 }
 0x815   : > { %3423 = vmatmul.msk.bf16.vlgmr.msrb.gmra.mxu2 %vm2679_vm2, %v2978_v56  ;;  %v3038_v63 = vpack.c.b16 %v3037_v19, %v3036_v40 }
 0x816   : > { %v3066_v53 = vunpack.c.l.b16 %v2663_v42 }
 0x818   : > { %v1665_v10 = vld [vmem:[#allocation1] sm:$0xff] }
 0x819   : > { %1666 = vst [vmem:[#allocation1] ss:$9 sm:$0xff] %v1496_v51  ;;  %v1766_v25 = vpack.c.bf16 %v1665_v10, %v1665_v10  ;;  %v3619_v26 = vpop.trf.xlu2 }
 0x81a   : > { %v1380_v54 = vpop.f32.mrf.mxu1  ;;  %v2590_v16 = vpop.trf.xlu0 }
 0x81b   : > { %v3011_v37 = vunpack.c.l.b16 %v1766_v25  ;;  %v1515_v41 = vrot.slane %v1380_v54, 1  ;;  %v1516_v27 = vrot.slane %v1380_v54, 2  ;;  %v1517_v3 = vrot.slane %v1380_v54, 3 }
 0x81c   : > { %v1518_v30 = vrot.slane %v1380_v54, 4  ;;  %v1519_v33 = vrot.slane %v1380_v54, 5  ;;  %v1520_v59 = vrot.slane %v1380_v54, 6  ;;  %v2666_v2 = vpack.c.bf16 %v2590_v16, %v2590_v16 }
 0x820   : > { %v1667_v28 = vld [vmem:[#allocation1] sm:$0xff] }
 0x821   : > { %1668 = vst [vmem:[#allocation1] ss:$9 sm:$0xff] %v1497_v23  ;;  %v1767_v44 = vpack.c.bf16 %v1667_v28, %v1667_v28  ;;  %v2659_v23 = vpack.c.bf16 %v3615_v17, %v3615_v17  ;;  %v3097_v17 = vunpack.c.l.b16 %v2666_v2 }
 0x822   : > { %1669 = vst [vmem:[#allocation1 + $0x1] ss:$9 sm:$0xff] %v1498_v0  ;;  %v3620_v0 = vunpack.i.l.bf16 %v3619_v26 }
 0x823   : > { %1670 = vst [vmem:[#allocation1 + $0x2] ss:$9 sm:$0xff] %v1499_v24  ;;  %v3012_v39 = vunpack.c.l.b16 %v1767_v44  ;;  %v3006_v28 = vunpack.c.l.b16 %v2659_v23 }
 0x824   : > { %1671 = vst [vmem:[#allocation1 + $0x3] ss:$9 sm:$0xff] %v1500_v34  ;;  %v2660_v29 = vpack.c.bf16 %v3620_v0, %v3620_v0  ;;  %v1512_v34 = vrot.slane %v1377_v9, 5 }
 0x825   : > { %1672 = vst [vmem:[#allocation1 + $0x4] ss:$9 sm:$0xff] %v1375_v36  ;;  %v3013_v5 = vpack.c.b16 %v3012_v39, %v3011_v37  ;;  %v1514_v39 = vrot.slane %v1377_v9, 7 }
 0x826   : > { %1673 = vst [vmem:[#allocation1 + $0x5] ss:$9 sm:$0xff] %v1501_v58  ;;  %v3007_v24 = vunpack.c.l.b16 %v2660_v29  ;;  %v3623_v58 = vunpack.i.h.bf16 %v3619_v26 }
 0x827   : > { %1674 = vst [vmem:[#allocation1 + $0x6] ss:$9 sm:$0xff] %v1502_v47  ;;  %v3018_v35 = vand.u32 %v3013_v5, %v4384_v22  ;;  %v1513_v47 = vrot.slane %v1377_v9, 6 }
 0x828   : > { %1675 = vst [vmem:[#allocation1 + $0x7] ss:$9 sm:$0xff] %v1503_v32  ;;  %v3008_v36 = vpack.c.b16 %v3007_v24, %v3006_v28  ;;  %v2664_v5 = vpack.c.bf16 %v3623_v58, %v3623_v58 }
 0x829   : > { %3027 = vmatpush.bf16.msrb.mxu0 %v3018_v35 }
 0x82a   : > { %v3067_v14 = vunpack.c.l.b16 %v2664_v5 }
 0x82c   : > { %3424 = vmatmul.msk.bf16.vlgmr.msrb.gmra.mxu0 %vm2679_vm2, %v3008_v36  ;;  %v3068_v15 = vpack.c.b16 %v3067_v14, %v3066_v53 }
 0x82f   : > { %v1676_v49 = vld [vmem:[#allocation1] sm:$0xff] }
 0x830   : > { %1677 = vst [vmem:[#allocation1] ss:$9 sm:$0xff] %v1504_v55  ;;  %v1768_v48 = vpack.c.bf16 %v1676_v49, %v1676_v49  ;;  %v1382_v55 = vpop.f32.mrf.mxu1  ;;  %v1521_v49 = vrot.slane %v1380_v54, 7 }
 0x831   : > { %v1524_v6 = vrot.slane %v1382_v55, 3 }
 0x832   : > { %v3041_v51 = vunpack.c.l.b16 %v1768_v48  ;;  %v1523_v48 = vrot.slane %v1382_v55, 2 }
 0x837   : > { %v1678_v7 = vld [vmem:[#allocation1] sm:$0xff] }
 0x838   : > { %1679 = vst [vmem:[#allocation1] ss:$9 sm:$0xff] %v1505_v11  ;;  %v1769_v13 = vpack.c.bf16 %v1678_v7, %v1678_v7  ;;  %v1522_v11 = vrot.slane %v1382_v55, 1 }
 0x839   : > { %1680 = vst [vmem:[#allocation1 + $0x1] ss:$9 sm:$0xff] %v1506_v38 }
 0x83a   : > { %1681 = vst [vmem:[#allocation1 + $0x2] ss:$9 sm:$0xff] %v1507_v57  ;;  %v3042_v10 = vunpack.c.l.b16 %v1769_v13  ;;  %v1525_v57 = vrot.slane %v1382_v55, 4  ;;  %v3096_v13 = vunpack.c.l.b16 %v2665_v45 }
 0x83b   : > { %1682 = vst [vmem:[#allocation1 + $0x3] ss:$9 sm:$0xff] %v1377_v9 }
 0x83c   : > { %1683 = vst [vmem:[#allocation1 + $0x4] ss:$9 sm:$0xff] %v1508_v18  ;;  %v3043_v8 = vpack.c.b16 %v3042_v10, %v3041_v51  ;;  %v2759_v18 = vpop.f32.mrf.mxu0  ;;  %v1526_v51 = vrot.slane %v1382_v55, 5  ;;  %v3098_v19 = vpack.c.b16 %v3097_v17, %v3096_v13 }
 0x83d   : > { %1684 = vst [vmem:[#allocation1 + $0x5] ss:$9 sm:$0xff] %v1509_v4  ;;  %v1527_v4 = vrot.slane %v1382_v55, 6 }
 0x83e   : > { %1685 = vst [vmem:[#allocation1 + $0x6] ss:$9 sm:$0xff] %v1510_v20  ;;  %v3048_v25 = vand.u32 %v3043_v8, %v4384_v22  ;;  %v2701_v20 = vpop.f32.mrf.mxu3  ;;  %v2731_v8 = vpop.f32.mrf.mxu2 }
 0x83f   : > { %1686 = vst [vmem:[#allocation1 + $0x7] ss:$9 sm:$0xff] %v1511_v21  ;;  %v2621_v21 = vpop.trf.xlu1 }
 0x840   : > { %3057 = vmatpush.bf16.msra.mxu3 %v3048_v25  ;;  %3158 = vst.msk [vmem:[%s4481_s19 + $0x20] sm:$0xff] %vm330_vm0, %v2759_v18  ;;  %v1528_v25 = vrot.slane %v1382_v55, 7 }
 0x841   : > { %3155 = vst.msk [vmem:[%s4481_s19 + $0x8] sm:$0xff] %vm330_vm0, %v2701_v20 }
 0x842   : > { %3157 = vst.msk [vmem:[%s4481_s19 + $0x18] sm:$0xff] %vm330_vm0, %v2731_v8 }
 0x843   : > { %3425 = vmatmul.msk.bf16.vlgmr.msra.gmra.mxu3 %vm2679_vm2, %v3038_v63 }
 0x844   : > { %v2761_v23 = vpop.f32.mrf.mxu0 }
 0x845   : > { %3159 = vst.msk [vmem:[%s4481_s19 + $0x28] sm:$0xff] %vm330_vm0, %v2761_v23 }
 0x846   : > { %v1687_v44 = vld [vmem:[#allocation1] sm:$0xff]  ;;  %v2789_v63 = vpop.f32.mrf.mxu3 }
 0x847   : > { %1688 = vst [vmem:[#allocation1] ss:$9 sm:$0xff] %v1512_v34  ;;  %v1770_v37 = vpack.c.bf16 %v1687_v44, %v1687_v44  ;;  %v2622_v0 = vpop.trf.xlu1  ;;  %v2667_v34 = vpack.c.bf16 %v2621_v21, %v2621_v21 }
 0x848   : > { %3160 = vst.msk [vmem:[%s4481_s19 + $0x30] sm:$0xff] %vm330_vm0, %v2789_v63  ;;  %v2668_v36 = vpack.c.bf16 %v2622_v0, %v2622_v0 }
 0x849   : > { %v3071_v35 = vunpack.c.l.b16 %v1770_v37  ;;  %v3126_v37 = vunpack.c.l.b16 %v2667_v34 }
 0x84e   : > { %v1689_v32 = vld [vmem:[#allocation1] sm:$0xff] }
 0x84f   : > { %v1771_v46 = vpack.c.bf16 %v1689_v32, %v1689_v32  ;;  %1690 = vst [vmem:[#allocation1] ss:$9 sm:$0xff] %v1513_v47  ;;  %v2791_v47 = vpop.f32.mrf.mxu3 }
 0x850   : > { %1691 = vst [vmem:[#allocation1 + $0x1] ss:$9 sm:$0xff] %v1514_v39  ;;  %v3127_v39 = vunpack.c.l.b16 %v2668_v36 }
 0x851   : > { %v3072_v43 = vunpack.c.l.b16 %v1771_v46  ;;  %1692 = vst [vmem:[#allocation1 + $0x2] ss:$9 sm:$0xff] %v1380_v54  ;;  %v2819_v58 = vpop.f32.mrf.mxu2 }
 0x852   : > { %1693 = vst [vmem:[#allocation1 + $0x3] ss:$9 sm:$0xff] %v1515_v41  ;;  %v3128_v32 = vpack.c.b16 %v3127_v39, %v3126_v37 }
 0x853   : > { %v3073_v50 = vpack.c.b16 %v3072_v43, %v3071_v35  ;;  %1694 = vst [vmem:[#allocation1 + $0x4] ss:$9 sm:$0xff] %v1516_v27 }
 0x854   : > { %1695 = vst [vmem:[#allocation1 + $0x5] ss:$9 sm:$0xff] %v1517_v3 }
 0x855   : > { %v3078_v62 = vand.u32 %v3073_v50, %v4384_v22  ;;  %1696 = vst [vmem:[#allocation1 + $0x6] ss:$9 sm:$0xff] %v1518_v30 }
 0x856   : > { %1697 = vst [vmem:[#allocation1 + $0x7] ss:$9 sm:$0xff] %v1519_v33 }
 0x857   : > { %3087 = vmatpush.bf16.msra.mxu2 %v3078_v62  ;;  %3162 = vst.msk [vmem:[%s4481_s19 + $0x40] sm:$0xff] %vm330_vm0, %v2819_v58 }
 0x858   : > { %3161 = vst.msk [vmem:[%s4481_s19 + $0x38] sm:$0xff] %vm330_vm0, %v2791_v47 }
 0x859   : > { %v2821_v42 = vpop.f32.mrf.mxu2  ;;  %v2879_v5 = vpop.f32.mrf.mxu3 }
 0x85a   : > { %3426 = vmatmul.msk.bf16.vlgmr.msra.gmra.mxu2 %vm2679_vm2, %v3068_v15  ;;  %3163 = vst.msk [vmem:[%s4481_s19 + $0x48] sm:$0xff] %vm330_vm0, %v2821_v42 }
 0x85b   : > { %3166 = vst.msk [vmem:[%s4481_s19 + $0x60] sm:$0xff] %vm330_vm0, %v2879_v5 }
 0x85d   : > { %v1698_v61 = vld [vmem:[#allocation1] sm:$0xff] }
 0x85e   : > { %1699 = vst [vmem:[#allocation1] ss:$9 sm:$0xff] %v1520_v59  ;;  %v1772_v31 = vpack.c.bf16 %v1698_v61, %v1698_v61 }
 0x860   : > { %v3101_v7 = vunpack.c.l.b16 %v1772_v31 }
 0x865   : > { %v1700_v56 = vld [vmem:[#allocation1] sm:$0xff] }
 0x866   : > { %v1773_v38 = vpack.c.bf16 %v1700_v56, %v1700_v56  ;;  %1701 = vst [vmem:[#allocation1] ss:$9 sm:$0xff] %v1521_v49 }
 0x867   : > { %1702 = vst [vmem:[#allocation1 + $0x1] ss:$9 sm:$0xff] %v1382_v55 }
 0x868   : > { %v3102_v9 = vunpack.c.l.b16 %v1773_v38  ;;  %1703 = vst [vmem:[#allocation1 + $0x2] ss:$9 sm:$0xff] %v1522_v11 }
 0x869   : > { %1704 = vst [vmem:[#allocation1 + $0x3] ss:$9 sm:$0xff] %v1523_v48 }
 0x86a   : > { %v3103_v10 = vpack.c.b16 %v3102_v9, %v3101_v7  ;;  %1705 = vst [vmem:[#allocation1 + $0x4] ss:$9 sm:$0xff] %v1524_v6 }
 0x86b   : > { %1706 = vst [vmem:[#allocation1 + $0x5] ss:$9 sm:$0xff] %v1525_v57 }
 0x86c   : > { %v3108_v40 = vand.u32 %v3103_v10, %v4384_v22  ;;  %1707 = vst [vmem:[#allocation1 + $0x6] ss:$9 sm:$0xff] %v1526_v51 }
 0x86d   : > { %1708 = vst [vmem:[#allocation1 + $0x7] ss:$9 sm:$0xff] %v1527_v4 }
 0x86e   : > { %3117 = vmatpush.bf16.msra.mxu0 %v3108_v40 }
 0x871   : > { %3427 = vmatmul.msk.bf16.vlgmr.msra.gmra.mxu0 %vm2679_vm2, %v3098_v19 }
 0x874   : > { %v1709_v26 = vld [vmem:[#allocation1] sm:$0xff] }
 0x875   : > { %1710 = vst [vmem:[#allocation1] ss:$9 sm:$0xff] %v1528_v25  ;;  %v1774_v28 = vpack.c.bf16 %v1709_v26, %v1709_v26 }
 0x877   : > { %v3131_v44 = vunpack.c.l.b16 %v1774_v28 }
 0x87c   : > { %v1711_v29 = vld [vmem:[#allocation1] sm:$0xff] }
 0x87d   : > { %v1775_v24 = vpack.c.bf16 %v1711_v29, %v1711_v29 }
 0x87f   : > { %v3132_v52 = vunpack.c.l.b16 %v1775_v24 }
 0x881   : > { %v3133_v54 = vpack.c.b16 %v3132_v52, %v3131_v44 }
 0x883   : > { %v3138_v41 = vand.u32 %v3133_v54, %v4384_v22  ;;  %v2849_v22 = vpop.f32.mrf.mxu0 }
 0x884   : > { %3164 = vst.msk [vmem:[%s4481_s19 + $0x50] sm:$0xff] %vm330_vm0, %v2849_v22 }
 0x885   : > { %3147 = vmatpush.bf16.msrb.mxu3 %v3138_v41 }
 0x888   : > { %3428 = vmatmul.msk.bf16.vlgmr.msrb.gmra.mxu3 %vm2679_vm2, %v3128_v32 }
 0x889   : > { %3716 = shalt.err (!%p3713_p3)
}
 0x88a   : > { %s3787_s21 = smov 128   ;;  %s4599_s8 = smov 8   ;;  %v2881_v27 = vpop.f32.mrf.mxu3  ;;  %v2909_v3 = vpop.f32.mrf.mxu2 }
 0x88b   : > { %3451 = dma.vmem_to_hbm [thread:$0]  (%p3866_p5), %s3208_s18, 2048, %s3210_s9, %s3192_s13, %s3787_s21, %s3787_s21, %s4599_s8   ;;  %v2851_v46 = vpop.f32.mrf.mxu0 }
 0x88c   : > { %3167 = vst.msk [vmem:[%s4481_s19 + $0x68] sm:$0xff] %vm330_vm0, %v2881_v27 }
 0x88d   : > { %3165 = vst.msk [vmem:[%s4481_s19 + $0x58] sm:$0xff] %vm330_vm0, %v2851_v46 }
 0x88e   : > { %3168 = vst.msk [vmem:[%s4481_s19 + $0x70] sm:$0xff] %vm330_vm0, %v2909_v3 }
 0x892   : > { %v2911_v35 = vpop.f32.mrf.mxu2  ;;  %v2969_v33 = vpop.f32.mrf.mxu3 }
 0x893   : > { %v2939_v30 = vpop.f32.mrf.mxu0  ;;  %3169 = vst.msk [vmem:[%s4481_s19 + $0x78] sm:$0xff] %vm330_vm0, %v2911_v35 }
 0x894   : > { %3170 = vst.msk [vmem:[%s4481_s19 + $0x80] sm:$0xff] %vm330_vm0, %v2939_v30 }
 0x895   : > { %3172 = vst.msk [vmem:[%s4481_s19 + $0x90] sm:$0xff] %vm330_vm0, %v2969_v33 }
 0x89a   : > { %v2999_v53 = vpop.f32.mrf.mxu2  ;;  %v2971_v14 = vpop.f32.mrf.mxu3 }
 0x89b   : > { %v2941_v43 = vpop.f32.mrf.mxu0  ;;  %3174 = vst.msk [vmem:[%s4481_s19 + $0xa0] sm:$0xff] %vm330_vm0, %v2999_v53 }
 0x89c   : > { %3171 = vst.msk [vmem:[%s4481_s19 + $0x88] sm:$0xff] %vm330_vm0, %v2941_v43 }
 0x89d   : > { %3173 = vst.msk [vmem:[%s4481_s19 + $0x98] sm:$0xff] %vm330_vm0, %v2971_v14 }
 0x8a2   : > { %v3001_v50 = vpop.f32.mrf.mxu2 }
 0x8a3   : > { %3175 = vst.msk [vmem:[%s4481_s19 + $0xa8] sm:$0xff] %vm330_vm0, %v3001_v50 }
 0x8a9   : > { %v3029_v62 = vpop.f32.mrf.mxu0 }
 0x8aa   : > { %3176 = vst.msk [vmem:[%s4481_s19 + $0xb0] sm:$0xff] %vm330_vm0, %v3029_v62 }
 0x8b1   : > { %v3031_v60 = vpop.f32.mrf.mxu0 }
 0x8b2   : > { %3177 = vst.msk [vmem:[%s4481_s19 + $0xb8] sm:$0xff] %vm330_vm0, %v3031_v60 }
 0x8c6   : > { %v3059_v15 = vpop.f32.mrf.mxu3 }
 0x8c7   : > { %3178 = vst.msk [vmem:[%s4481_s19 + $0xc0] sm:$0xff] %vm330_vm0, %v3059_v15 }
 0x8ce   : > { %v3061_v59 = vpop.f32.mrf.mxu3 }
 0x8cf   : > { %3179 = vst.msk [vmem:[%s4481_s19 + $0xc8] sm:$0xff] %vm330_vm0, %v3061_v59 }
 0x8dd   : > { %v3089_v61 = vpop.f32.mrf.mxu2 }
 0x8de   : > { %3180 = vst.msk [vmem:[%s4481_s19 + $0xd0] sm:$0xff] %vm330_vm0, %v3089_v61 }
 0x8e5   : > { %v3091_v16 = vpop.f32.mrf.mxu2 }
 0x8e6   : > { %3181 = vst.msk [vmem:[%s4481_s19 + $0xd8] sm:$0xff] %vm330_vm0, %v3091_v16 }
 0x8ee   : > { %v3119_v55 = vpop.f32.mrf.mxu0 }
 0x8ef   : > { %3182 = vst.msk [vmem:[%s4481_s19 + $0xe0] sm:$0xff] %vm330_vm0, %v3119_v55 }
 0x8f6   : > { %v3121_v49 = vpop.f32.mrf.mxu0 }
 0x8f7   : > { %3183 = vst.msk [vmem:[%s4481_s19 + $0xe8] sm:$0xff] %vm330_vm0, %v3121_v49 }
 0x90b   : > { %v3149_v31 = vpop.f32.mrf.mxu3 }
 0x90c   : > { %3184 = vst.msk [vmem:[%s4481_s19 + $0xf0] sm:$0xff] %vm330_vm0, %v3149_v31 }
 0x913   : > { %v3151_v56 = vpop.f32.mrf.mxu3 }
 0x914   : > { %3185 = vst.msk [vmem:[%s4481_s19 + $0xf8] sm:$0xff] %vm330_vm0, %v3151_v56 }
 0x915 PF: > { %p3457_p4 = scmp.ge.s32.totalorder %s3751_s27, 2  ;;  %s3232_s11 = sand.u32 1, %s3739_s24  }
 0x916   : > { %s3233_s16 = scalar_lea.sflag [#allocation4], %s3232_s11 }
 0x917   : > { %p3454_p5 = pnand %p3457_p4, %p3870_p6 }
 0x919   : > { %p3455_p7 = pneg %p3454_p5 }
 0x91b   : > { %3734 = dma.done.wait (%p3455_p7), %s3233_s16, 2048  }
 0x91c   : > { %3736 = vsyncadd (%p3455_p7), %s3233_s16, 4294965248  ;;  %p18_p8 = scmp.ge.s32.totalorder %s3853_s30, 4   ;;  %s4600_s24 = smov %s3743_s25 }
 0x91d   : > { %s4601_s25 = smov %s3747_s26  ;;  %s4602_s26 = smov %s3864_s10 }
 0x91e   : > { %s4603_s27 = smov %s3853_s30  ;;  %20 = sbr.rel (!%p18_p8) target bundleno = 3 (0x3), region = 108 }
 0x923   :  { %3239 = vsyncpa [#allocation4], 1 }
 0x924   :  { %3241 = vsyncpa [#allocation4 + $0x1], 1 }

// kernel: stoken_attention_forward.2
= control target key start
LH: loop header
LB: loop body
LE: loop exit
PB: predicated region body
PF: predicated region fallthrough
CT: control target
= control target key end

     0   :  { %s6663_s18 = smov 0   ;;  %s8941_s0 = inlined_call_operand.vmem [shape: bf16[2,16,16,32], index: 0, kind: input, shape index: {}]   ;;  %s8942_s1 = inlined_call_operand.vmem [shape: f32[2,16,32], index: 1, kind: input, shape index: {}]   ;;  %s8943_s2 = inlined_call_operand.vmem [shape: bf16[144,16], index: 2, kind: input, shape index: {}]   ;;  %s8944_s3 = inlined_call_operand.vmem [shape: bf16[16,144], index: 3, kind: input, shape index: {}]   ;;  %s8945_s4 = inlined_call_operand.vmem [shape: f32[2,16,32], index: 4, kind: output, shape index: {0}]   ;;  %s8946_s5 = inlined_call_operand.vmem [shape: f32[2,16,144], index: 5, kind: output, shape index: {1}]  }
   0x1 LB: > { %s6126_s19 = sadd.s32 4294967295, %s6621_s18   ;;  %p6130_p0 = scmp.ge.s32.totalorder %s6621_s18, 1  ;;  %s6621_s18 = sphi %s6663_s18, %s16_s18  }
   0x2   : > { %p200_p1 = scmp.lt.s32.totalorder %s6621_s18, 3 }
   0x4   : > { %p201_p2 = pnand %p6130_p0, %p200_p1 }
   0x6   : > { %204 = sbr.rel (%p201_p2) target bundleno = 3160 (0xc58), region = 36 }
   0xb   : > { %p238_p3 = scmp.lt.s32.totalorder %s6126_s19, 1  ;;  %v6355_v5 = vld [vmem:[%s8943_s2] sm:$0xff]  ;;  %vm361_vm0 = vcmask 130048   ;;  %v6356_v6 = vld [vmem:[%s8943_s2 + $0x8] sm:$0xff]  ;;  %v6357_v7 = vld [vmem:[%s8943_s2 + $0x10] sm:$0xff]  ;;  %vm844_vm1 = vcmask 261120  }
   0xc   : > { %v6358_v8 = vld [vmem:[%s8943_s2 + $0x18] sm:$0xff]  ;;  %v6359_v9 = vld [vmem:[%s8943_s2 + $0x20] sm:$0xff]  ;;  %v6360_v10 = vld [vmem:[%s8943_s2 + $0x28] sm:$0xff]  ;;  %vm1316_vm2 = vcmask 122880   ;;  %s6626_s7 = smov 16   ;;  %s6627_s8 = smov 32  }
   0xd   : > { %s9116_s19 = smov (!%p238_p3, %s6126_s19), 1  ;;  %v6361_v23 = vld [vmem:[%s8943_s2 + $0x30] sm:$0xff]  ;;  %v6362_v59 = vld [vmem:[%s8943_s2 + $0x38] sm:$0xff]  ;;  %s6628_s9 = smov 48  }
   0xe   : > { %s6336_s20 = sshll.u32 %s9116_s19, 4  ;;  %s6335_s11 = sshll.u32 %s9116_s19, 7 }
   0xf   : > { %s247_s23 = scalar_lea.vmem %s8942_s1, %s6336_s20  ;;  %s6707_s14 = scalar_lea.vmem %s8941_s0, %s6335_s11 }
  0x10   : > { %v291_v0 = vld [vmem:[%s247_s23] sm:$0xff]  ;;  %v292_v1 = vld [vmem:[%s247_s23 + $0x8] sm:$0xff]  ;;  %v6341_v54 = vld [vmem:[%s6707_s14 + $0x10] sm:$0xff]  ;;  %s6629_s10 = smov 64   ;;  %s6630_s11 = smov 96  }
  0x11   : > { %v313_v2 = vmul.f32 0.17677669, %v291_v0  ;;  %v314_v3 = vmul.f32 0.17677669, %v292_v1  ;;  %v6710_v16 = vld [vmem:[%s6707_s14] sm:$0xff]  ;;  %v6722_v25 = vld [vmem:[%s6707_s14 + $0x8] sm:$0xff]  ;;  %s8912_s17 = scalar_lea.vmem %s8945_s4, %s6336_s20 }
  0x12   : > { %v6714_v19 = vsel %vm844_vm1, %v6710_v16, 0  ;;  %v6726_v33 = vsel %vm844_vm1, %v6722_v25, 0  ;;  %v6732_v57 = vsel %vm844_vm1, %v6341_v54, 0  ;;  %v6741_v61 = vld [vmem:[%s6707_s14 + $0x18] sm:$0xff]  ;;  %s6631_s12 = smov 112   ;;  %s6632_s13 = smov 80  }
  0x13   : > { %v315_v4 = vpack.c.bf16 %v314_v3, %v313_v2  ;;  %9000 = vst [vmem:[#allocation2_spill] sm:$0xff] %v6714_v19  ;;  %858 = vmatpush.bf16.xpose.msra.mxu1 %v6714_v19  ;;  %888 = vmatpush.bf16.xpose.msra.mxu2 %v6726_v33  ;;  %v6745_v0 = vsel %vm844_vm1, %v6741_v61, 0 }
  0x14   : > { %9001 = vst [vmem:[#allocation3_spill] sm:$0xff] %v6732_v57  ;;  %918 = vmatpush.bf16.xpose.msra.mxu3 %v6732_v57 }
  0x15   : > { %396 = vmatpush.bf16.msra.mxu0 %v315_v4  ;;  %9002 = vst [vmem:[#allocation4_spill] sm:$0xff] %v6745_v0 }
  0x18   : > { %6175 = vmatmul.msk.bf16.vlgmr.msra.gmra.mxu0 %vm361_vm0, %v6355_v5 }
  0x1b   : > { %948 = vmatpush.bf16.xpose.msrb.mxu1 %v6745_v0 }
  0x28   : > { %6176 = vmatmul.msk.bf16.gmra.mxu0 %vm361_vm0, %v6356_v6 }
  0x38   : > { %6177 = vmatmul.msk.bf16.gmra.mxu0 %vm361_vm0, %v6357_v7 }
  0x48   : > { %6178 = vmatmul.msk.bf16.gmra.mxu0 %vm361_vm0, %v6358_v8 }
  0x58   : > { %6179 = vmatmul.msk.bf16.gmra.mxu0 %vm361_vm0, %v6359_v9 }
  0x68   : > { %6180 = vmatmul.msk.bf16.gmra.mxu0 %vm361_vm0, %v6360_v10 }
  0x78   : > { %6181 = vmatmul.msk.bf16.gmra.mxu0 %vm361_vm0, %v6361_v23 }
  0x88   : > { %6182 = vmatmul.msk.bf16.gmra.mxu0 %vm361_vm0, %v6362_v59 }
  0x95   : > { %v398_v11 = vpop.f32.mrf.mxu0 }
  0x96   : > { %v461_v12 = vrot.slane %v398_v11, 1  ;;  %v462_v13 = vrot.slane %v398_v11, 2  ;;  %v463_v14 = vrot.slane %v398_v11, 3  ;;  %587 = vst [vmem:[#allocation1] ss:$9 sm:$0xff] %v398_v11  ;;  %v464_v15 = vrot.slane %v398_v11, 4 }
  0x97   : > { %v465_v17 = vrot.slane %v398_v11, 5  ;;  %v466_v18 = vrot.slane %v398_v11, 6  ;;  %v467_v20 = vrot.slane %v398_v11, 7 }
  0x98   : > { %589 = vst [vmem:[#allocation1 + $0x1] ss:$9 sm:$0xff] %v461_v12 }
  0x99   : > { %591 = vst [vmem:[#allocation1 + $0x2] ss:$9 sm:$0xff] %v462_v13 }
  0x9a   : > { %593 = vst [vmem:[#allocation1 + $0x3] ss:$9 sm:$0xff] %v463_v14 }
  0x9b   : > { %595 = vst [vmem:[#allocation1 + $0x4] ss:$9 sm:$0xff] %v464_v15 }
  0x9c   : > { %597 = vst [vmem:[#allocation1 + $0x5] ss:$9 sm:$0xff] %v465_v17 }
  0x9d   : > { %599 = vst [vmem:[#allocation1 + $0x6] ss:$9 sm:$0xff] %v466_v18  ;;  %v400_v22 = vpop.f32.mrf.mxu0 }
  0x9e   : > { %601 = vst [vmem:[#allocation1 + $0x7] ss:$9 sm:$0xff] %v467_v20  ;;  %v468_v24 = vrot.slane %v400_v22, 1  ;;  %v469_v26 = vrot.slane %v400_v22, 2  ;;  %v470_v29 = vrot.slane %v400_v22, 3  ;;  %v471_v30 = vrot.slane %v400_v22, 4 }
  0x9f   : > { %v472_v32 = vrot.slane %v400_v22, 5  ;;  %v473_v34 = vrot.slane %v400_v22, 6  ;;  %v474_v37 = vrot.slane %v400_v22, 7 }
  0xa5   : > { %v602_v21 = vld [vmem:[#allocation1] sm:$0xff]  ;;  %v403_v39 = vpop.f32.mrf.mxu0 }
  0xa6   : > { %603 = vst [vmem:[#allocation1] ss:$9 sm:$0xff] %v400_v22  ;;  %v802_v28 = vpack.c.bf16 %v602_v21, %v602_v21  ;;  %v475_v40 = vrot.slane %v403_v39, 1  ;;  %v476_v42 = vrot.slane %v403_v39, 2  ;;  %v477_v44 = vrot.slane %v403_v39, 3 }
  0xa7   : > { %v478_v46 = vrot.slane %v403_v39, 4  ;;  %v479_v48 = vrot.slane %v403_v39, 5  ;;  %v480_v49 = vrot.slane %v403_v39, 6  ;;  %v481_v53 = vrot.slane %v403_v39, 7 }
  0xa8   : > { %v836_v35 = vunpack.c.l.b16 %v802_v28 }
  0xad   : > { %v604_v27 = vld [vmem:[#allocation1] sm:$0xff]  ;;  %v405_v50 = vpop.f32.mrf.mxu0 }
  0xae   : > { %605 = vst [vmem:[#allocation1] ss:$9 sm:$0xff] %v468_v24  ;;  %v803_v31 = vpack.c.bf16 %v604_v27, %v604_v27  ;;  %v482_v56 = vrot.slane %v405_v50, 1  ;;  %v483_v58 = vrot.slane %v405_v50, 2  ;;  %v484_v62 = vrot.slane %v405_v50, 3 }
  0xaf   : > { %606 = vst [vmem:[#allocation1 + $0x1] ss:$9 sm:$0xff] %v469_v26  ;;  %v485_v1 = vrot.slane %v405_v50, 4  ;;  %v486_v3 = vrot.slane %v405_v50, 5  ;;  %v487_v5 = vrot.slane %v405_v50, 6  ;;  %v488_v7 = vrot.slane %v405_v50, 7 }
  0xb0   : > { %607 = vst [vmem:[#allocation1 + $0x2] ss:$9 sm:$0xff] %v470_v29  ;;  %v837_v36 = vunpack.c.l.b16 %v803_v31  ;;  %v6343_v26 = vld [vmem:[%s6707_s14 + $0x20] sm:$0xff] }
  0xb1   : > { %608 = vst [vmem:[#allocation1 + $0x3] ss:$9 sm:$0xff] %v471_v30  ;;  %v6751_v30 = vsel %vm844_vm1, %v6343_v26, 0 }
  0xb2   : > { %609 = vst [vmem:[#allocation1 + $0x4] ss:$9 sm:$0xff] %v472_v32  ;;  %v838_v38 = vpack.c.b16 %v837_v36, %v836_v35  ;;  %978 = vmatpush.bf16.xpose.msrb.mxu2 %v6751_v30  ;;  %v6363_v35 = vld [vmem:[%s8943_s2 + $0x40] sm:$0xff] }
  0xb3   : > { %610 = vst [vmem:[#allocation1 + $0x5] ss:$9 sm:$0xff] %v473_v34  ;;  %6183 = vmatmul.msk.bf16.gmra.mxu0 %vm361_vm0, %v6363_v35 }
  0xb4   : > { %611 = vst [vmem:[#allocation1 + $0x6] ss:$9 sm:$0xff] %v474_v37  ;;  %6188 = vmatmul.msk.bf16.vlgmr.msra.gmra.mxu1 %vm844_vm1, %v838_v38  ;;  %v6344_v38 = vld [vmem:[%s6707_s14 + $0x28] sm:$0xff] }
  0xb5   : > { %612 = vst [vmem:[#allocation1 + $0x7] ss:$9 sm:$0xff] %v403_v39  ;;  %v408_v6 = vpop.f32.mrf.mxu0  ;;  %v6761_v39 = vsel %vm844_vm1, %v6344_v38, 0 }
  0xb6   : > { %v489_v8 = vrot.slane %v408_v6, 1  ;;  %v490_v11 = vrot.slane %v408_v6, 2  ;;  %v491_v13 = vrot.slane %v408_v6, 3  ;;  %v492_v15 = vrot.slane %v408_v6, 4  ;;  %9003 = vst [vmem:[#allocation5_spill] sm:$0xff] %v6761_v39  ;;  %1008 = vmatpush.bf16.xpose.msrb.mxu3 %v6761_v39 }
  0xb7   : > { %v493_v18 = vrot.slane %v408_v6, 5  ;;  %v494_v21 = vrot.slane %v408_v6, 6  ;;  %v495_v24 = vrot.slane %v408_v6, 7 }
  0xbc   : > { %v613_v41 = vld [vmem:[#allocation1] sm:$0xff] }
  0xbd   : > { %614 = vst [vmem:[#allocation1] ss:$9 sm:$0xff] %v475_v40  ;;  %v804_v43 = vpack.c.bf16 %v613_v41, %v613_v41  ;;  %v410_v22 = vpop.f32.mrf.mxu0 }
  0xbe   : > { %v496_v29 = vrot.slane %v410_v22, 1  ;;  %v497_v31 = vrot.slane %v410_v22, 2  ;;  %v498_v34 = vrot.slane %v410_v22, 3  ;;  %v499_v36 = vrot.slane %v410_v22, 4 }
  0xbf   : > { %v867_v51 = vunpack.c.l.b16 %v804_v43  ;;  %v500_v40 = vrot.slane %v410_v22, 5 }
  0xc4   : > { %v615_v45 = vld [vmem:[#allocation1] sm:$0xff] }
  0xc5   : > { %616 = vst [vmem:[#allocation1] ss:$9 sm:$0xff] %v476_v42  ;;  %v805_v47 = vpack.c.bf16 %v615_v45, %v615_v45  ;;  %v501_v42 = vrot.slane %v410_v22, 6  ;;  %v502_v45 = vrot.slane %v410_v22, 7 }
  0xc6   : > { %617 = vst [vmem:[#allocation1 + $0x1] ss:$9 sm:$0xff] %v477_v44  ;;  %v413_v44 = vpop.f32.mrf.mxu0 }
  0xc7   : > { %618 = vst [vmem:[#allocation1 + $0x2] ss:$9 sm:$0xff] %v478_v46  ;;  %v868_v52 = vunpack.c.l.b16 %v805_v47  ;;  %v503_v46 = vrot.slane %v413_v44, 1  ;;  %v507_v54 = vrot.slane %v413_v44, 5 }
  0xc8   : > { %619 = vst [vmem:[#allocation1 + $0x3] ss:$9 sm:$0xff] %v479_v48  ;;  %v504_v48 = vrot.slane %v413_v44, 2 }
  0xc9   : > { %620 = vst [vmem:[#allocation1 + $0x4] ss:$9 sm:$0xff] %v480_v49  ;;  %v869_v55 = vpack.c.b16 %v868_v52, %v867_v51  ;;  %v505_v49 = vrot.slane %v413_v44, 3  ;;  %v506_v52 = vrot.slane %v413_v44, 4 }
  0xca   : > { %621 = vst [vmem:[#allocation1 + $0x5] ss:$9 sm:$0xff] %v481_v53 }
  0xcb   : > { %622 = vst [vmem:[#allocation1 + $0x6] ss:$9 sm:$0xff] %v405_v50  ;;  %6193 = vmatmul.msk.bf16.vlgmr.msra.gmra.mxu2 %vm844_vm1, %v869_v55 }
  0xcc   : > { %623 = vst [vmem:[#allocation1 + $0x7] ss:$9 sm:$0xff] %v482_v56  ;;  %v508_v56 = vrot.slane %v413_v44, 6 }
  0xd3   : > { %v624_v60 = vld [vmem:[#allocation1] sm:$0xff] }
  0xd4   : > { %625 = vst [vmem:[#allocation1] ss:$9 sm:$0xff] %v483_v58  ;;  %v806_v63 = vpack.c.bf16 %v624_v60, %v624_v60  ;;  %v415_v58 = vpop.f32.mrf.mxu0  ;;  %v509_v60 = vrot.slane %v413_v44, 7 }
  0xd6   : > { %v897_v9 = vunpack.c.l.b16 %v806_v63 }
  0xdb   : > { %v626_v2 = vld [vmem:[#allocation1] sm:$0xff] }
  0xdc   : > { %627 = vst [vmem:[#allocation1] ss:$9 sm:$0xff] %v484_v62  ;;  %v807_v4 = vpack.c.bf16 %v626_v2, %v626_v2  ;;  %v6766_v2 = vld [vmem:[%s6707_s14 + $0x30] sm:$0xff] }
  0xdd   : > { %628 = vst [vmem:[#allocation1 + $0x1] ss:$9 sm:$0xff] %v485_v1  ;;  %v510_v1 = vrot.slane %v415_v58, 1 }
  0xde   : > { %629 = vst [vmem:[#allocation1 + $0x2] ss:$9 sm:$0xff] %v486_v3  ;;  %v898_v10 = vunpack.c.l.b16 %v807_v4  ;;  %v511_v3 = vrot.slane %v415_v58, 2 }
  0xdf   : > { %630 = vst [vmem:[#allocation1 + $0x3] ss:$9 sm:$0xff] %v487_v5 }
  0xe0   : > { %631 = vst [vmem:[#allocation1 + $0x4] ss:$9 sm:$0xff] %v488_v7  ;;  %v899_v12 = vpack.c.b16 %v898_v10, %v897_v9  ;;  %v6770_v7 = vsel %vm844_vm1, %v6766_v2, 0  ;;  %v514_v10 = vrot.slane %v415_v58, 5 }
  0xe1   : > { %632 = vst [vmem:[#allocation1 + $0x5] ss:$9 sm:$0xff] %v408_v6  ;;  %v512_v6 = vrot.slane %v415_v58, 3  ;;  %1038 = vmatpush.bf16.xpose.msra.mxu1 %v6770_v7 }
  0xe2   : > { %633 = vst [vmem:[#allocation1 + $0x6] ss:$9 sm:$0xff] %v489_v8  ;;  %6198 = vmatmul.msk.bf16.vlgmr.msra.gmra.mxu3 %vm844_vm1, %v899_v12  ;;  %v513_v8 = vrot.slane %v415_v58, 4 }
  0xe3   : > { %634 = vst [vmem:[#allocation1 + $0x7] ss:$9 sm:$0xff] %v490_v11  ;;  %v515_v11 = vrot.slane %v415_v58, 6 }
  0xe4   : > { %9004 = vst [vmem:[#allocation6_spill] sm:$0xff] %v6770_v7 }
  0xea   : > { %v635_v14 = vld [vmem:[#allocation1] sm:$0xff] }
  0xeb   : > { %636 = vst [vmem:[#allocation1] ss:$9 sm:$0xff] %v491_v13  ;;  %v808_v17 = vpack.c.bf16 %v635_v14, %v635_v14  ;;  %v418_v13 = vpop.f32.mrf.mxu0  ;;  %v516_v14 = vrot.slane %v415_v58, 7 }
  0xec   : > { %v521_v26 = vrot.slane %v418_v13, 5 }
  0xed   : > { %v927_v27 = vunpack.c.l.b16 %v808_v17 }
  0xf2   : > { %v637_v20 = vld [vmem:[#allocation1] sm:$0xff] }
  0xf3   : > { %638 = vst [vmem:[#allocation1] ss:$9 sm:$0xff] %v492_v15  ;;  %v809_v23 = vpack.c.bf16 %v637_v20, %v637_v20  ;;  %v517_v15 = vrot.slane %v418_v13, 1  ;;  %v518_v20 = vrot.slane %v418_v13, 2 }
  0xf4   : > { %639 = vst [vmem:[#allocation1 + $0x1] ss:$9 sm:$0xff] %v493_v18 }
  0xf5   : > { %640 = vst [vmem:[#allocation1 + $0x2] ss:$9 sm:$0xff] %v494_v21  ;;  %v928_v28 = vunpack.c.l.b16 %v809_v23  ;;  %v519_v21 = vrot.slane %v418_v13, 3  ;;  %v6775_v23 = vld [vmem:[%s6707_s14 + $0x38] sm:$0xff] }
  0xf6   : > { %641 = vst [vmem:[#allocation1 + $0x3] ss:$9 sm:$0xff] %v495_v24  ;;  %v520_v24 = vrot.slane %v418_v13, 4 }
  0xf7   : > { %642 = vst [vmem:[#allocation1 + $0x4] ss:$9 sm:$0xff] %v410_v22  ;;  %v929_v32 = vpack.c.b16 %v928_v28, %v927_v27 }
  0xf8   : > { %643 = vst [vmem:[#allocation1 + $0x5] ss:$9 sm:$0xff] %v496_v29  ;;  %v6779_v29 = vsel %vm844_vm1, %v6775_v23, 0 }
  0xf9   : > { %644 = vst [vmem:[#allocation1 + $0x6] ss:$9 sm:$0xff] %v497_v31  ;;  %6203 = vmatmul.msk.bf16.vlgmr.msrb.gmra.mxu1 %vm844_vm1, %v929_v32  ;;  %v522_v31 = vrot.slane %v418_v13, 6  ;;  %1068 = vmatpush.bf16.xpose.msra.mxu2 %v6779_v29 }
  0xfa   : > { %645 = vst [vmem:[#allocation1 + $0x7] ss:$9 sm:$0xff] %v498_v34  ;;  %v523_v34 = vrot.slane %v418_v13, 7 }
  0xfb   : > { %9005 = vst [vmem:[#allocation7_spill] sm:$0xff] %v6779_v29 }
 0x101   : > { %v646_v37 = vld [vmem:[#allocation1] sm:$0xff] }
 0x102   : > { %647 = vst [vmem:[#allocation1] ss:$9 sm:$0xff] %v499_v36  ;;  %v810_v41 = vpack.c.bf16 %v646_v37, %v646_v37  ;;  %v420_v36 = vpop.f32.mrf.mxu0 }
 0x104   : > { %v957_v50 = vunpack.c.l.b16 %v810_v41  ;;  %v6347_v41 = vld [vmem:[%s6707_s14 + $0x40] sm:$0xff] }
 0x109   : > { %v648_v43 = vld [vmem:[#allocation1] sm:$0xff] }
 0x10a   : > { %649 = vst [vmem:[#allocation1] ss:$9 sm:$0xff] %v500_v40  ;;  %v811_v47 = vpack.c.bf16 %v648_v43, %v648_v43  ;;  %v524_v40 = vrot.slane %v420_v36, 1 }
 0x10b   : > { %650 = vst [vmem:[#allocation1 + $0x1] ss:$9 sm:$0xff] %v501_v42  ;;  %v525_v42 = vrot.slane %v420_v36, 2 }
 0x10c   : > { %651 = vst [vmem:[#allocation1 + $0x2] ss:$9 sm:$0xff] %v502_v45  ;;  %v958_v51 = vunpack.c.l.b16 %v811_v47  ;;  %v6785_v45 = vsel %vm844_vm1, %v6347_v41, 0 }
 0x10d   : > { %652 = vst [vmem:[#allocation1 + $0x3] ss:$9 sm:$0xff] %v413_v44  ;;  %v526_v44 = vrot.slane %v420_v36, 3  ;;  %1098 = vmatpush.bf16.xpose.msra.mxu3 %v6785_v45 }
 0x10e   : > { %653 = vst [vmem:[#allocation1 + $0x4] ss:$9 sm:$0xff] %v503_v46  ;;  %v959_v53 = vpack.c.b16 %v958_v51, %v957_v50  ;;  %v527_v46 = vrot.slane %v420_v36, 4  ;;  %v529_v50 = vrot.slane %v420_v36, 6 }
 0x10f   : > { %654 = vst [vmem:[#allocation1 + $0x5] ss:$9 sm:$0xff] %v504_v48 }
 0x110   : > { %655 = vst [vmem:[#allocation1 + $0x6] ss:$9 sm:$0xff] %v505_v49  ;;  %6208 = vmatmul.msk.bf16.vlgmr.msrb.gmra.mxu2 %vm844_vm1, %v959_v53  ;;  %v528_v49 = vrot.slane %v420_v36, 5 }
 0x111   : > { %656 = vst [vmem:[#allocation1 + $0x7] ss:$9 sm:$0xff] %v506_v52  ;;  %v530_v52 = vrot.slane %v420_v36, 7 }
 0x112   : > { %9006 = vst [vmem:[#allocation8_spill] sm:$0xff] %v6785_v45 }
 0x118   : > { %v657_v55 = vld [vmem:[#allocation1] sm:$0xff] }
 0x119   : > { %658 = vst [vmem:[#allocation1] ss:$9 sm:$0xff] %v507_v54  ;;  %v812_v59 = vpack.c.bf16 %v657_v55, %v657_v55  ;;  %v423_v54 = vpop.f32.mrf.mxu0 }
 0x11a   : > { %v531_v55 = vrot.slane %v423_v54, 1 }
 0x11b   : > { %v987_v4 = vunpack.c.l.b16 %v812_v59 }
 0x120   : > { %v659_v62 = vld [vmem:[#allocation1] sm:$0xff] }
 0x121   : > { %660 = vst [vmem:[#allocation1] ss:$9 sm:$0xff] %v508_v56  ;;  %v813_v63 = vpack.c.bf16 %v659_v62, %v659_v62 }
 0x122   : > { %661 = vst [vmem:[#allocation1 + $0x1] ss:$9 sm:$0xff] %v509_v60  ;;  %v533_v60 = vrot.slane %v423_v54, 3 }
 0x123   : > { %662 = vst [vmem:[#allocation1 + $0x2] ss:$9 sm:$0xff] %v415_v58  ;;  %v988_v5 = vunpack.c.l.b16 %v813_v63  ;;  %v532_v58 = vrot.slane %v423_v54, 2  ;;  %v534_v63 = vrot.slane %v423_v54, 4 }
 0x124   : > { %663 = vst [vmem:[#allocation1 + $0x3] ss:$9 sm:$0xff] %v510_v1  ;;  %v535_v1 = vrot.slane %v423_v54, 5 }
 0x125   : > { %664 = vst [vmem:[#allocation1 + $0x4] ss:$9 sm:$0xff] %v511_v3  ;;  %v989_v9 = vpack.c.b16 %v988_v5, %v987_v4  ;;  %v536_v5 = vrot.slane %v423_v54, 6 }
 0x126   : > { %665 = vst [vmem:[#allocation1 + $0x5] ss:$9 sm:$0xff] %v512_v6  ;;  %v537_v6 = vrot.slane %v423_v54, 7 }
 0x127   : > { %666 = vst [vmem:[#allocation1 + $0x6] ss:$9 sm:$0xff] %v513_v8  ;;  %6213 = vmatmul.msk.bf16.vlgmr.msrb.gmra.mxu3 %vm844_vm1, %v989_v9  ;;  %v6790_v9 = vld [vmem:[%s6707_s14 + $0x48] sm:$0xff] }
 0x128   : > { %667 = vst [vmem:[#allocation1 + $0x7] ss:$9 sm:$0xff] %v514_v10  ;;  %v425_v10 = vpop.f32.mrf.mxu0 }
 0x12f   : > { %v668_v12 = vld [vmem:[#allocation1] sm:$0xff] }
 0x130   : > { %669 = vst [vmem:[#allocation1] ss:$9 sm:$0xff] %v515_v11  ;;  %v814_v17 = vpack.c.bf16 %v668_v12, %v668_v12  ;;  %v6795_v11 = vsel %vm844_vm1, %v6790_v9, 0  ;;  %v538_v12 = vrot.slane %v425_v10, 1 }
 0x131   : > { %9007 = vst [vmem:[#allocation9_spill] sm:$0xff] %v6795_v11  ;;  %1128 = vmatpush.bf16.xpose.msrb.mxu1 %v6795_v11 }
 0x132   : > { %v1017_v27 = vunpack.c.l.b16 %v814_v17  ;;  %v539_v17 = vrot.slane %v425_v10, 2 }
 0x137   : > { %v670_v18 = vld [vmem:[#allocation1] sm:$0xff] }
 0x138   : > { %671 = vst [vmem:[#allocation1] ss:$9 sm:$0xff] %v516_v14  ;;  %v815_v22 = vpack.c.bf16 %v670_v18, %v670_v18  ;;  %v6798_v14 = vpop.f32.mrf.mxu1 }
 0x139   : > { %672 = vst [vmem:[#allocation1 + $0x1] ss:$9 sm:$0xff] %v418_v13  ;;  %v1315_v41 = vsel %vm361_vm0, %v6798_v14, -inf }
 0x13a   : > { %673 = vst [vmem:[#allocation1 + $0x2] ss:$9 sm:$0xff] %v517_v15  ;;  %v1018_v28 = vunpack.c.l.b16 %v815_v22  ;;  %v6801_v15 = vld [vmem:[%s6707_s14 + $0x50] sm:$0xff] }
 0x13b   : > { %674 = vst [vmem:[#allocation1 + $0x3] ss:$9 sm:$0xff] %v518_v20  ;;  %v540_v20 = vrot.slane %v425_v10, 3  ;;  %v6805_v22 = vsel %vm844_vm1, %v6801_v15, 0 }
 0x13c   : > { %675 = vst [vmem:[#allocation1 + $0x4] ss:$9 sm:$0xff] %v519_v21  ;;  %v1019_v32 = vpack.c.b16 %v1018_v28, %v1017_v27  ;;  %1158 = vmatpush.bf16.xpose.msrb.mxu2 %v6805_v22  ;;  %v542_v27 = vrot.slane %v425_v10, 5  ;;  %v543_v28 = vrot.slane %v425_v10, 6 }
 0x13d   : > { %676 = vst [vmem:[#allocation1 + $0x5] ss:$9 sm:$0xff] %v520_v24  ;;  %v541_v24 = vrot.slane %v425_v10, 4 }
 0x13e   : > { %677 = vst [vmem:[#allocation1 + $0x6] ss:$9 sm:$0xff] %v521_v26  ;;  %6218 = vmatmul.msk.bf16.vlgmr.msra.gmra.mxu1 %vm844_vm1, %v1019_v32 }
 0x13f   : > { %678 = vst [vmem:[#allocation1 + $0x7] ss:$9 sm:$0xff] %v522_v31  ;;  %v428_v31 = vpop.f32.mrf.mxu0 }
 0x140   : > { %9008 = vst [vmem:[#allocation10_spill] sm:$0xff] %v6805_v22 }
 0x146   : > { %v679_v35 = vld [vmem:[#allocation1] sm:$0xff] }
 0x147   : > { %680 = vst [vmem:[#allocation1] ss:$9 sm:$0xff] %v523_v34  ;;  %v816_v37 = vpack.c.bf16 %v679_v35, %v679_v35  ;;  %v544_v35 = vrot.slane %v425_v10, 7 }
 0x149   : > { %v1047_v47 = vunpack.c.l.b16 %v816_v37 }
 0x14e   : > { %v681_v38 = vld [vmem:[#allocation1] sm:$0xff] }
 0x14f   : > { %682 = vst [vmem:[#allocation1] ss:$9 sm:$0xff] %v420_v36  ;;  %v817_v43 = vpack.c.bf16 %v681_v38, %v681_v38  ;;  %v545_v36 = vrot.slane %v428_v31, 1  ;;  %v6808_v38 = vpop.f32.mrf.mxu1 }
 0x150   : > { %683 = vst [vmem:[#allocation1 + $0x1] ss:$9 sm:$0xff] %v524_v40  ;;  %v1317_v40 = vsel %vm1316_vm2, %v6808_v38, -inf }
 0x151   : > { %684 = vst [vmem:[#allocation1 + $0x2] ss:$9 sm:$0xff] %v525_v42  ;;  %v1048_v48 = vunpack.c.l.b16 %v817_v43  ;;  %v1318_v42 = vmax.f32 %v1315_v41, %v1317_v40  ;;  %v546_v43 = vrot.slane %v428_v31, 2 }
 0x152   : > { %685 = vst [vmem:[#allocation1 + $0x3] ss:$9 sm:$0xff] %v526_v44 }
 0x153   : > { %686 = vst [vmem:[#allocation1 + $0x4] ss:$9 sm:$0xff] %v527_v46  ;;  %v1049_v51 = vpack.c.b16 %v1048_v48, %v1047_v47  ;;  %v1319_v46 = vrot.slane %v1318_v42, 4  ;;  %v6815_v47 = vpop.f32.mrf.mxu2 }
 0x154   : > { %687 = vst [vmem:[#allocation1 + $0x5] ss:$9 sm:$0xff] %v528_v49  ;;  %v547_v49 = vrot.slane %v428_v31, 3 }
 0x155   : > { %688 = vst [vmem:[#allocation1 + $0x6] ss:$9 sm:$0xff] %v529_v50  ;;  %6223 = vmatmul.msk.bf16.vlgmr.msra.gmra.mxu2 %vm844_vm1, %v1049_v51  ;;  %v1320_v48 = vmax.f32 %v1318_v42, %v1319_v46  ;;  %v548_v50 = vrot.slane %v428_v31, 4 }
 0x156   : > { %689 = vst [vmem:[#allocation1 + $0x7] ss:$9 sm:$0xff] %v530_v52 }
 0x15d   : > { %v690_v53 = vld [vmem:[#allocation1] sm:$0xff] }
 0x15e   : > { %691 = vst [vmem:[#allocation1] ss:$9 sm:$0xff] %v423_v54  ;;  %v818_v56 = vpack.c.bf16 %v690_v53, %v690_v53  ;;  %v549_v53 = vrot.slane %v428_v31, 5  ;;  %v1321_v54 = vrot.slane %v1320_v48, 2 }
 0x160   : > { %v1077_v3 = vunpack.c.l.b16 %v818_v56  ;;  %v550_v56 = vrot.slane %v428_v31, 6 }
 0x165   : > { %v692_v59 = vld [vmem:[#allocation1] sm:$0xff] }
 0x166   : > { %693 = vst [vmem:[#allocation1] ss:$9 sm:$0xff] %v531_v55  ;;  %v819_v62 = vpack.c.bf16 %v692_v59, %v692_v59  ;;  %v551_v59 = vrot.slane %v428_v31, 7 }
 0x167   : > { %694 = vst [vmem:[#allocation1 + $0x1] ss:$9 sm:$0xff] %v532_v58  ;;  %v6817_v58 = vpop.f32.mrf.mxu0 }
 0x168   : > { %695 = vst [vmem:[#allocation1 + $0x2] ss:$9 sm:$0xff] %v533_v60  ;;  %v1078_v4 = vunpack.c.l.b16 %v819_v62  ;;  %v6350_v62 = vld [vmem:[%s6707_s14 + $0x58] sm:$0xff]  ;;  %v555_v42 = vrot.slane %v6817_v58, 4 }
 0x169   : > { %696 = vst [vmem:[#allocation1 + $0x3] ss:$9 sm:$0xff] %v534_v63  ;;  %v6820_v63 = vpop.f32.mrf.mxu2  ;;  %2049 = vmatpush.bf16.msrb.mxu0 %v6350_v62 }
 0x16a   : > { %697 = vst [vmem:[#allocation1 + $0x4] ss:$9 sm:$0xff] %v535_v1  ;;  %v1079_v8 = vpack.c.b16 %v1078_v4, %v1077_v3  ;;  %v1322_v3 = vmax.f32 %v1320_v48, %v1321_v54  ;;  %v552_v4 = vrot.slane %v6817_v58, 1  ;;  %v556_v48 = vrot.slane %v6817_v58, 5 }
 0x16b   : > { %698 = vst [vmem:[#allocation1 + $0x5] ss:$9 sm:$0xff] %v536_v5  ;;  %v553_v5 = vrot.slane %v6817_v58, 2  ;;  %v558_v54 = vrot.slane %v6817_v58, 7 }
 0x16c   : > { %699 = vst [vmem:[#allocation1 + $0x6] ss:$9 sm:$0xff] %v537_v6  ;;  %6228 = vmatmul.msk.bf16.vlgmr.msra.gmra.mxu3 %vm844_vm1, %v1079_v8  ;;  %v6826_v8 = vsel %vm844_vm1, %v6350_v62, 0 }
 0x16d   : > { %700 = vst [vmem:[#allocation1 + $0x7] ss:$9 sm:$0xff] %v425_v10  ;;  %v1326_v10 = vsel %vm1316_vm2, %v6820_v63, -inf  ;;  %1188 = vmatpush.bf16.xpose.msrb.mxu3 %v6826_v8 }
 0x16e   : > { %9009 = vst [vmem:[#allocation11_spill] sm:$0xff] %v6826_v8 }
 0x174   : > { %v701_v13 = vld [vmem:[#allocation1] sm:$0xff] }
 0x175   : > { %702 = vst [vmem:[#allocation1] ss:$9 sm:$0xff] %v538_v12  ;;  %v820_v18 = vpack.c.bf16 %v701_v13, %v701_v13  ;;  %v1323_v12 = vrot.slane %v1322_v3, 1  ;;  %v1325_v13 = vsel %vm361_vm0, %v6815_v47, -inf }
 0x177   : > { %v1107_v32 = vunpack.c.l.b16 %v820_v18  ;;  %v6834_v18 = vpop.f32.mrf.mxu1 }
 0x17c   : > { %v703_v21 = vld [vmem:[#allocation1] sm:$0xff] }
 0x17d   : > { %704 = vst [vmem:[#allocation1] ss:$9 sm:$0xff] %v539_v17  ;;  %v821_v26 = vpack.c.bf16 %v703_v21, %v703_v21  ;;  %v1327_v17 = vmax.f32 %v1325_v13, %v1326_v10  ;;  %v554_v21 = vrot.slane %v6817_v58, 3 }
 0x17e   : > { %705 = vst [vmem:[#allocation1 + $0x1] ss:$9 sm:$0xff] %v540_v20  ;;  %v1324_v20 = vmax.f32 %v1322_v3, %v1323_v12 }
 0x17f   : > { %706 = vst [vmem:[#allocation1 + $0x2] ss:$9 sm:$0xff] %v541_v24  ;;  %v1108_v34 = vunpack.c.l.b16 %v821_v26  ;;  %v1328_v24 = vrot.slane %v1327_v17, 4 }
 0x180   : > { %707 = vst [vmem:[#allocation1 + $0x3] ss:$9 sm:$0xff] %v542_v27  ;;  %v1460_v27 = vsub.f32 %v6798_v14, %v1324_v20 }
 0x181   : > { %708 = vst [vmem:[#allocation1 + $0x4] ss:$9 sm:$0xff] %v543_v28  ;;  %v1109_v37 = vpack.c.b16 %v1108_v34, %v1107_v32  ;;  %v1329_v28 = vmax.f32 %v1327_v17, %v1328_v24  ;;  %v1461_v32 = vsub.f32 %v6808_v38, %v1324_v20  ;;  %v1343_v34 = vsel %vm361_vm0, %v6834_v18, -inf }
 0x182   : > { %709 = vst [vmem:[#allocation1 + $0x5] ss:$9 sm:$0xff] %v544_v35  ;;  %v1492_v41 = vmul.f32 1.442695, %v1460_v27 }
 0x183   : > { %710 = vst [vmem:[#allocation1 + $0x6] ss:$9 sm:$0xff] %v428_v31  ;;  %6233 = vmatmul.msk.bf16.vlgmr.msrb.gmra.mxu1 %vm844_vm1, %v1109_v37  ;;  %v6838_v31 = vpop.f32.mrf.mxu1  ;;  %v6848_v37 = vpop.f32.mrf.mxu3  ;;  %v1494_v46 = vmul.f32 1.442695, %v1461_v32 }
 0x184   : > { %711 = vst [vmem:[#allocation1 + $0x7] ss:$9 sm:$0xff] %v545_v36  ;;  %v1344_v35 = vsel %vm1316_vm2, %v6838_v31, -inf  ;;  %v6846_v36 = vld [vmem:[%s6707_s14 + $0x60] sm:$0xff]  ;;  %6386 = vpow2.f32 %v1492_v41  ;;  %v1334_v24 = vsel %vm361_vm0, %v6848_v37, -inf }
 0x185   : > { %v1345_v40 = vmax.f32 %v1343_v34, %v1344_v35  ;;  %v6852_v14 = vsel %vm844_vm1, %v6846_v36, 0  ;;  %6388 = vpow2.f32 %v1494_v46 }
 0x186   : > { %9010 = vst [vmem:[#allocation12_spill] sm:$0xff] %v6852_v14  ;;  %1218 = vmatpush.bf16.xpose.msra.mxu1 %v6852_v14 }
 0x18a   : > { %v6868_v10 = vpop.eup %6386 }
 0x18b   : > { %v712_v44 = vld [vmem:[#allocation1] sm:$0xff]  ;;  %v6870_v13 = vpop.eup %6388 }
 0x18c   : > { %713 = vst [vmem:[#allocation1] ss:$9 sm:$0xff] %v546_v43  ;;  %v822_v52 = vpack.c.bf16 %v712_v44, %v712_v44  ;;  %v1330_v43 = vrot.slane %v1329_v28, 2  ;;  %v1346_v44 = vrot.slane %v1345_v40, 4  ;;  %v1557_v27 = vsel %vm1316_vm2, %v6870_v13, 0.0 }
 0x18e   : > { %v1137_v1 = vunpack.c.l.b16 %v822_v52 }
 0x193   : > { %v714_v51 = vld [vmem:[#allocation1] sm:$0xff] }
 0x194   : > { %715 = vst [vmem:[#allocation1] ss:$9 sm:$0xff] %v547_v49  ;;  %v823_v55 = vpack.c.bf16 %v714_v51, %v714_v51  ;;  %v6858_v51 = vpop.f32.mrf.mxu0 }
 0x195   : > { %716 = vst [vmem:[#allocation1 + $0x1] ss:$9 sm:$0xff] %v548_v50  ;;  %v557_v50 = vrot.slane %v6817_v58, 6  ;;  %v562_v34 = vrot.slane %v6858_v51, 4 }
 0x196   : > { %717 = vst [vmem:[#allocation1 + $0x2] ss:$9 sm:$0xff] %v549_v53  ;;  %v1138_v60 = vunpack.c.l.b16 %v823_v55  ;;  %v1347_v53 = vmax.f32 %v1345_v40, %v1346_v44  ;;  %v559_v55 = vrot.slane %v6858_v51, 1 }
 0x197   : > { %718 = vst [vmem:[#allocation1 + $0x3] ss:$9 sm:$0xff] %v550_v56  ;;  %v1331_v56 = vmax.f32 %v1329_v28, %v1330_v43 }
 0x198   : > { %719 = vst [vmem:[#allocation1 + $0x4] ss:$9 sm:$0xff] %v551_v59  ;;  %v1139_v6 = vpack.c.b16 %v1138_v60, %v1137_v1  ;;  %v560_v59 = vrot.slane %v6858_v51, 2  ;;  %v561_v1 = vrot.slane %v6858_v51, 3  ;;  %v1348_v3 = vrot.slane %v1347_v53, 2 }
 0x199   : > { %720 = vst [vmem:[#allocation1 + $0x5] ss:$9 sm:$0xff] %v6817_v58  ;;  %v1332_v58 = vrot.slane %v1331_v56, 1 }
 0x19a   : > { %721 = vst [vmem:[#allocation1 + $0x6] ss:$9 sm:$0xff] %v552_v4  ;;  %6238 = vmatmul.msk.bf16.vlgmr.msrb.gmra.mxu2 %vm844_vm1, %v1139_v6  ;;  %v6865_v6 = vpop.f32.mrf.mxu3 }
 0x19b   : > { %722 = vst [vmem:[#allocation1 + $0x7] ss:$9 sm:$0xff] %v553_v5  ;;  %v1349_v5 = vmax.f32 %v1347_v53, %v1348_v3  ;;  %v1335_v17 = vsel %vm1316_vm2, %v6865_v6, -inf  ;;  %v1333_v20 = vmax.f32 %v1331_v56, %v1332_v58  ;;  %v564_v53 = vrot.slane %v6858_v51, 6 }
 0x19c   : > { %v1336_v28 = vmax.f32 %v1334_v24, %v1335_v17  ;;  %v565_v56 = vrot.slane %v6858_v51, 7 }
 0x19d   : > { %v1350_v12 = vrot.slane %v1349_v5, 1  ;;  %v1462_v40 = vsub.f32 %v6815_v47, %v1333_v20  ;;  %v1463_v43 = vsub.f32 %v6820_v63, %v1333_v20 }
 0x1a2   : > { %v723_v26 = vld [vmem:[#allocation1] sm:$0xff] }
 0x1a3   : > { %724 = vst [vmem:[#allocation1] ss:$9 sm:$0xff] %v554_v21  ;;  %v824_v38 = vpack.c.bf16 %v723_v26, %v723_v26  ;;  %v1351_v21 = vmax.f32 %v1349_v5, %v1350_v12  ;;  %v1556_v26 = vsel %vm361_vm0, %v6868_v10, 0.0 }
 0x1a5   : > { %v1167_v60 = vunpack.c.l.b16 %v824_v38  ;;  %v1466_v32 = vsub.f32 %v6834_v18, %v1351_v21  ;;  %v1467_v35 = vsub.f32 %v6838_v31, %v1351_v21  ;;  %v1337_v38 = vrot.slane %v1336_v28, 4 }
 0x1a6   : > { %v563_v31 = vrot.slane %v6858_v51, 5 }
 0x1a7   : > { %v1504_v44 = vmul.f32 1.442695, %v1466_v32  ;;  %v1506_v46 = vmul.f32 1.442695, %v1467_v35  ;;  %v1338_v18 = vmax.f32 %v1336_v28, %v1337_v38 }
 0x1a9   : > { %6390 = vpow2.f32 %v1504_v44 }
 0x1aa   : > { %v725_v49 = vld [vmem:[#allocation1] sm:$0xff]  ;;  %6392 = vpow2.f32 %v1506_v46 }
 0x1ab   : > { %726 = vst [vmem:[#allocation1] ss:$9 sm:$0xff] %v555_v42  ;;  %v825_v52 = vpack.c.bf16 %v725_v49, %v725_v49  ;;  %v1558_v42 = vadd.f32 %v1557_v27, %v1556_v26 }
 0x1ac   : > { %727 = vst [vmem:[#allocation1 + $0x1] ss:$9 sm:$0xff] %v556_v48  ;;  %v1496_v48 = vmul.f32 1.442695, %v1462_v40 }
 0x1ad   : > { %728 = vst [vmem:[#allocation1 + $0x2] ss:$9 sm:$0xff] %v557_v50  ;;  %v1168_v62 = vunpack.c.l.b16 %v825_v52  ;;  %v1559_v49 = vrot.slane %v1558_v42, 4  ;;  %v1498_v50 = vmul.f32 1.442695, %v1463_v43  ;;  %v6885_v52 = vpop.f32.mrf.mxu2 }
 0x1ae   : > { %729 = vst [vmem:[#allocation1 + $0x3] ss:$9 sm:$0xff] %v558_v54  ;;  %6394 = vpow2.f32 %v1496_v48  ;;  %v6889_v54 = vpop.f32.mrf.mxu0  ;;  %v1352_v40 = vsel %vm361_vm0, %v6885_v52, -inf }
 0x1af   : > { %730 = vst [vmem:[#allocation1 + $0x4] ss:$9 sm:$0xff] %v6858_v51  ;;  %v1169_v4 = vpack.c.b16 %v1168_v62, %v1167_v60  ;;  %6396 = vpow2.f32 %v1498_v50  ;;  %v1339_v60 = vrot.slane %v1338_v18, 2  ;;  %v6893_v62 = vld [vmem:[%s6707_s14 + $0x68] sm:$0xff]  ;;  %v6896_v5 = vpop.eup %6390  ;;  %v567_v58 = vrot.slane %v6889_v54, 2 }
 0x1b0   : > { %731 = vst [vmem:[#allocation1 + $0x5] ss:$9 sm:$0xff] %v559_v55  ;;  %v1560_v55 = vadd.f32 %v1559_v49, %v1558_v42  ;;  %v6902_v51 = vsel %vm844_vm1, %v6893_v62, 0  ;;  %v6904_v12 = vpop.eup %6392  ;;  %v568_v20 = vrot.slane %v6889_v54, 3  ;;  %v569_v26 = vrot.slane %v6889_v54, 4 }
 0x1b1   : > { %732 = vst [vmem:[#allocation1 + $0x6] ss:$9 sm:$0xff] %v560_v59  ;;  %6243 = vmatmul.msk.bf16.vlgmr.msrb.gmra.mxu3 %vm844_vm1, %v1169_v4  ;;  %1248 = vmatpush.bf16.xpose.msra.mxu2 %v6902_v51  ;;  %v1340_v27 = vmax.f32 %v1338_v18, %v1339_v60  ;;  %v1584_v35 = vsel %vm1316_vm2, %v6904_v12, 0.0 }
 0x1b2   : > { %733 = vst [vmem:[#allocation1 + $0x7] ss:$9 sm:$0xff] %v561_v1  ;;  %v566_v1 = vrot.slane %v6889_v54, 1  ;;  %v1561_v17 = vrot.slane %v1560_v55, 2 }
 0x1b3   : > { %9011 = vst [vmem:[#allocation13_spill] sm:$0xff] %v6902_v51  ;;  %v1341_v44 = vrot.slane %v1340_v27, 1 }
 0x1b4   : > { %v6908_v24 = vpop.eup %6394 }
 0x1b5   : > { %v6912_v28 = vpop.eup %6396  ;;  %v6915_v32 = vpop.f32.mrf.mxu2  ;;  %v1565_v43 = vsel %vm361_vm0, %v6908_v24, 0.0 }
 0x1b6   : > { %v1566_v38 = vsel %vm1316_vm2, %v6912_v28, 0.0 }
 0x1b7   : > { %v1567_v50 = vadd.f32 %v1566_v38, %v1565_v43 }
 0x1b9   : > { %v734_v41 = vld [vmem:[#allocation1] sm:$0xff]  ;;  %1796 = vmatpush.bf16.msrb.mxu2 %v6710_v16  ;;  %v1353_v16 = vsel %vm1316_vm2, %v6915_v32, -inf  ;;  %v1568_v60 = vrot.slane %v1567_v50, 4 }
 0x1ba   : > { %735 = vst [vmem:[#allocation1] ss:$9 sm:$0xff] %v562_v34  ;;  %v826_v47 = vpack.c.bf16 %v734_v41, %v734_v41  ;;  %v1583_v34 = vsel %vm361_vm0, %v6896_v5, 0.0  ;;  %v1562_v41 = vadd.f32 %v1561_v17, %v1560_v55  ;;  %v1354_v42 = vmax.f32 %v1352_v40, %v1353_v16  ;;  %v6930_v55 = vpop.f32.mrf.mxu3 }
 0x1bb   : > { %v1585_v46 = vadd.f32 %v1584_v35, %v1583_v34  ;;  %v572_v34 = vrot.slane %v6889_v54, 7  ;;  %v6943_v35 = vpop.f32.mrf.mxu0 }
 0x1bc   : > { %v1197_v3 = vunpack.c.l.b16 %v826_v47  ;;  %v1355_v48 = vrot.slane %v1354_v42, 4  ;;  %v1563_v49 = vrot.slane %v1562_v41, 1  ;;  %v1342_v47 = vmax.f32 %v1340_v27, %v1341_v44 }
 0x1bd   : > { %v571_v27 = vrot.slane %v6889_v54, 6  ;;  %v573_v40 = vrot.slane %v6943_v35, 1  ;;  %v574_v43 = vrot.slane %v6943_v35, 2  ;;  %v1361_v44 = vsel %vm361_vm0, %v6930_v55, -inf }
 0x1be   : > { %v1356_v18 = vmax.f32 %v1354_v42, %v1355_v48 }
 0x1c1   : > { %v736_v63 = vld [vmem:[#allocation1] sm:$0xff] }
 0x1c2   : > { %737 = vst [vmem:[#allocation1] ss:$9 sm:$0xff] %v563_v31  ;;  %v827_v59 = vpack.c.bf16 %v736_v63, %v736_v63  ;;  %v570_v31 = vrot.slane %v6889_v54, 5  ;;  %v1586_v63 = vrot.slane %v1585_v46, 4 }
 0x1c3   : > { %738 = vst [vmem:[#allocation1 + $0x1] ss:$9 sm:$0xff] %v564_v53 }
 0x1c4   : > { %739 = vst [vmem:[#allocation1 + $0x2] ss:$9 sm:$0xff] %v565_v56  ;;  %v1198_v4 = vunpack.c.l.b16 %v827_v59  ;;  %v1357_v56 = vrot.slane %v1356_v18, 2  ;;  %v1564_v59 = vadd.f32 %v1563_v49, %v1562_v41  ;;  %v1587_v17 = vadd.f32 %v1586_v63, %v1585_v46 }
 0x1c5   : > { %740 = vst [vmem:[#allocation1 + $0x3] ss:$9 sm:$0xff] %v6889_v54  ;;  %v6951_v54 = vpop.f32.mrf.mxu3 }
 0x1c6   : > { %741 = vst [vmem:[#allocation1 + $0x4] ss:$9 sm:$0xff] %v566_v1  ;;  %v1199_v21 = vpack.c.b16 %v1198_v4, %v1197_v3  ;;  %v1464_v1 = vsub.f32 %v6848_v37, %v1342_v47  ;;  %v1465_v3 = vsub.f32 %v6865_v6, %v1342_v47  ;;  %v1358_v4 = vmax.f32 %v1356_v18, %v1357_v56 }
 0x1c7   : > { %742 = vst [vmem:[#allocation1 + $0x5] ss:$9 sm:$0xff] %v567_v58  ;;  %v6935_v58 = vld [vmem:[%s6707_s14 + $0x70] sm:$0xff]  ;;  %6398 = vrcp.f32 %v1564_v59  ;;  %v1588_v42 = vrot.slane %v1587_v17, 2  ;;  %v575_v18 = vrot.slane %v6943_v35, 3 }
 0x1c8   : > { %743 = vst [vmem:[#allocation1 + $0x6] ss:$9 sm:$0xff] %v568_v20  ;;  %6248 = vmatmul.msk.bf16.vlgmr.msra.gmra.mxu1 %vm844_vm1, %v1199_v21  ;;  %v1359_v20 = vrot.slane %v1358_v4, 1  ;;  %v6939_v21 = vsel %vm844_vm1, %v6935_v58, 0  ;;  %v1500_v37 = vmul.f32 1.442695, %v1464_v1 }
 0x1c9   : > { %744 = vst [vmem:[#allocation1 + $0x7] ss:$9 sm:$0xff] %v569_v26  ;;  %v1569_v26 = vadd.f32 %v1568_v60, %v1567_v50  ;;  %1278 = vmatpush.bf16.xpose.msra.mxu3 %v6939_v21  ;;  %v1502_v6 = vmul.f32 1.442695, %v1465_v3  ;;  %v1362_v50 = vsel %vm1316_vm2, %v6951_v54, -inf  ;;  %v1589_v59 = vadd.f32 %v1588_v42, %v1587_v17 }
 0x1ca   : > { %9012 = vst [vmem:[#allocation14_spill] sm:$0xff] %v6939_v21  ;;  %v1360_v16 = vmax.f32 %v1358_v4, %v1359_v20  ;;  %v1363_v47 = vmax.f32 %v1361_v44, %v1362_v50  ;;  %6400 = vpow2.f32 %v1500_v37  ;;  %v577_v60 = vrot.slane %v6943_v35, 5 }
 0x1cb   : > { %6402 = vpow2.f32 %v1502_v6  ;;  %v1590_v17 = vrot.slane %v1589_v59, 1 }
 0x1cc   : > { %v1468_v46 = vsub.f32 %v6885_v52, %v1360_v16  ;;  %v1469_v48 = vsub.f32 %v6915_v32, %v1360_v16  ;;  %v1364_v4 = vrot.slane %v1363_v47, 4 }
 0x1cd   : > { %v6399_v32 = vpop.eup %6398  ;;  %v1591_v44 = vadd.f32 %v1590_v17, %v1589_v59 }
 0x1ce   : > { %v1508_v63 = vmul.f32 1.442695, %v1468_v46  ;;  %v1510_v52 = vmul.f32 1.442695, %v1469_v48  ;;  %v6964_v20 = vmul.f32 %v6399_v32, %v6870_v13  ;;  %v1365_v37 = vmax.f32 %v1363_v47, %v1364_v4 }
 0x1cf   : > { %v578_v47 = vrot.slane %v6943_v35, 6 }
 0x1d0   : > { %v745_v53 = vld [vmem:[#allocation1] sm:$0xff]  ;;  %6404 = vpow2.f32 %v1508_v63  ;;  %v6970_v6 = vpop.eup %6400  ;;  %v1366_v13 = vrot.slane %v1365_v37, 2 }
 0x1d1   : > { %746 = vst [vmem:[#allocation1] ss:$9 sm:$0xff] %v570_v31  ;;  %1819 = vmatpush.bf16.msrb.mxu3 %v6722_v25  ;;  %v828_v38 = vpack.c.bf16 %v745_v53, %v745_v53  ;;  %v1570_v25 = vrot.slane %v1569_v26, 2  ;;  %v576_v31 = vrot.slane %v6943_v35, 4  ;;  %v6959_v53 = vpop.f32.mrf.mxu1  ;;  %6406 = vpow2.f32 %v1510_v52 }
 0x1d2   : > { %v1574_v50 = vsel %vm361_vm0, %v6970_v6, 0.0  ;;  %6408 = vrcp.f32 %v1591_v44  ;;  %v579_v44 = vrot.slane %v6943_v35, 7 }
 0x1d3   : > { %v1227_v1 = vunpack.c.l.b16 %v828_v38 }
 0x1d8   : > { %v747_v41 = vld [vmem:[#allocation1] sm:$0xff] }
 0x1d9   : > { %748 = vst [vmem:[#allocation1] ss:$9 sm:$0xff] %v571_v27  ;;  %v829_v49 = vpack.c.bf16 %v747_v41, %v747_v41  ;;  %v1571_v27 = vadd.f32 %v1570_v25, %v1569_v26  ;;  %v6975_v16 = vpop.f32.mrf.mxu1  ;;  %v1749_v26 = vpack.c.bf16 %v6964_v20, %v6964_v20 }
 0x1da   : > { %749 = vst [vmem:[#allocation1 + $0x1] ss:$9 sm:$0xff] %v572_v34  ;;  %v6967_v34 = vmul.f32 %v6399_v32, %v6868_v10  ;;  %v1370_v10 = vsel %vm361_vm0, %v6959_v53, -inf  ;;  %v1371_v42 = vsel %vm1316_vm2, %v6975_v16, -inf }
 0x1db   : > { %750 = vst [vmem:[#allocation1 + $0x2] ss:$9 sm:$0xff] %v6943_v35  ;;  %v1228_v56 = vunpack.c.l.b16 %v829_v49  ;;  %v1572_v41 = vrot.slane %v1571_v27, 1  ;;  %v1372_v48 = vmax.f32 %v1370_v10, %v1371_v42 }
 0x1dc   : > { %751 = vst [vmem:[#allocation1 + $0x3] ss:$9 sm:$0xff] %v573_v40  ;;  %v6973_v40 = vpop.eup %6402  ;;  %v1748_v46 = vpack.c.bf16 %v6967_v34, %v6967_v34 }
 0x1dd   : > { %752 = vst [vmem:[#allocation1 + $0x4] ss:$9 sm:$0xff] %v574_v43  ;;  %v1229_v3 = vpack.c.b16 %v1228_v56, %v1227_v1  ;;  %v6354_v43 = vld [vmem:[%s6707_s14 + $0x78] sm:$0xff]  ;;  %v6984_v38 = vpop.eup %6404  ;;  %v1575_v25 = vsel %vm1316_vm2, %v6973_v40, 0.0  ;;  %v1373_v56 = vrot.slane %v1372_v48, 4  ;;  %v1573_v17 = vadd.f32 %v1572_v41, %v1571_v27 }
 0x1de   : > { %753 = vst [vmem:[#allocation1 + $0x5] ss:$9 sm:$0xff] %v575_v18  ;;  %v6988_v49 = vpop.eup %6406  ;;  %v1592_v18 = vsel %vm361_vm0, %v6984_v38, 0.0  ;;  %2141 = vmatpush.bf16.msra.mxu0 %v6354_v43  ;;  %v1576_v1 = vadd.f32 %v1575_v25, %v1574_v50  ;;  %v7007_v50 = vpop.f32.mrf.mxu0 }
 0x1df   : > { %754 = vst [vmem:[#allocation1 + $0x6] ss:$9 sm:$0xff] %v576_v31  ;;  %6253 = vmatmul.msk.bf16.vlgmr.msra.gmra.mxu2 %vm844_vm1, %v1229_v3  ;;  %v6997_v31 = vsel %vm844_vm1, %v6354_v43, 0  ;;  %v1593_v63 = vsel %vm1316_vm2, %v6988_v49, 0.0  ;;  %v1374_v4 = vmax.f32 %v1372_v48, %v1373_v56  ;;  %v1783_v43 = vunpack.c.l.b16 %v1749_v26  ;;  %v6409_v27 = vpop.eup %6408 }
 0x1e0   : > { %755 = vst [vmem:[#allocation1 + $0x7] ss:$9 sm:$0xff] %v577_v60  ;;  %1865 = vmatpush.bf16.msra.mxu2 %v6741_v61  ;;  %v1367_v61 = vmax.f32 %v1365_v37, %v1366_v13  ;;  %1308 = vmatpush.bf16.xpose.msrb.mxu1 %v6997_v31  ;;  %v1594_v59 = vadd.f32 %v1593_v63, %v1592_v18  ;;  %v6586_v60 = vld [vmem:[%s6707_s14 + $0x10] sm:$0xff]  ;;  %v1782_v13 = vunpack.c.l.b16 %v1748_v46  ;;  %6410 = vrcp.f32 %v1573_v17 }
 0x1e1   : > { %9013 = vst [vmem:[#allocation15_spill] sm:$0xff] %v6997_v31  ;;  %v1375_v21 = vrot.slane %v1374_v4, 2  ;;  %v1577_v31 = vrot.slane %v1576_v1, 4  ;;  %v580_v25 = vrot.slane %v7007_v50, 1  ;;  %v7012_v35 = vmul.f32 %v6409_v27, %v6896_v5 }
 0x1e2   : > { %v1368_v52 = vrot.slane %v1367_v61, 1  ;;  %v1595_v37 = vrot.slane %v1594_v59, 4  ;;  %v1784_v46 = vpack.c.b16 %v1783_v43, %v1782_v13  ;;  %v582_v56 = vrot.slane %v7007_v50, 3 }
 0x1e3   : > { %v1376_v63 = vmax.f32 %v1374_v4, %v1375_v21  ;;  %v1578_v26 = vadd.f32 %v1577_v31, %v1576_v1  ;;  %v584_v1 = vrot.slane %v7007_v50, 5 }
 0x1e4   : > { %v1369_v3 = vmax.f32 %v1367_v61, %v1368_v52  ;;  %v1596_v51 = vadd.f32 %v1595_v37, %v1594_v59  ;;  %v7015_v52 = vmul.f32 %v6409_v27, %v6904_v12  ;;  %v583_v12 = vrot.slane %v7007_v50, 4 }
 0x1e6   : > { %v1470_v10 = vsub.f32 %v6930_v55, %v1369_v3  ;;  %v1471_v42 = vsub.f32 %v6951_v54, %v1369_v3  ;;  %v1597_v61 = vrot.slane %v1596_v51, 2  ;;  %v1377_v55 = vrot.slane %v1376_v63, 1 }
 0x1e7   : > { %v756_v32 = vld [vmem:[#allocation1] sm:$0xff] }
 0x1e8   : > { %1842 = vmatpush.bf16.msra.mxu1 %v6586_v60  ;;  %757 = vst [vmem:[#allocation1] ss:$9 sm:$0xff] %v578_v47  ;;  %v1512_v14 = vmul.f32 1.442695, %v1470_v10  ;;  %v1514_v18 = vmul.f32 1.442695, %v1471_v42  ;;  %v830_v41 = vpack.c.bf16 %v756_v32, %v756_v32  ;;  %v1598_v54 = vadd.f32 %v1597_v61, %v1596_v51  ;;  %v7020_v51 = vpop.f32.mrf.mxu2  ;;  %v6411_v60 = vpop.eup %6410 }
 0x1e9   : > { %v1378_v21 = vmax.f32 %v1376_v63, %v1377_v55  ;;  %v1579_v10 = vrot.slane %v1578_v26, 2  ;;  %v1755_v42 = vpack.c.bf16 %v7015_v52, %v7015_v52  ;;  %v7042_v63 = vmul.f32 %v6411_v60, %v6908_v24  ;;  %v6587_v61 = vld [vmem:[%s6707_s14 + $0x20] sm:$0xff] }
 0x1ea   : > { %6412 = vpow2.f32 %v1512_v14  ;;  %v581_v14 = vrot.slane %v7007_v50, 2  ;;  %v1257_v31 = vunpack.c.l.b16 %v830_v41  ;;  %v1599_v3 = vrot.slane %v1598_v54, 1 }
 0x1eb   : > { %6414 = vpow2.f32 %v1514_v18  ;;  %v1472_v59 = vsub.f32 %v6959_v53, %v1378_v21  ;;  %v1473_v5 = vsub.f32 %v6975_v16, %v1378_v21  ;;  %v585_v53 = vrot.slane %v7007_v50, 6 }
 0x1ec   : > { %v1754_v18 = vpack.c.bf16 %v7012_v35, %v7012_v35  ;;  %v7046_v27 = vmul.f32 %v6411_v60, %v6912_v28 }
 0x1ed   : > { %v1516_v37 = vmul.f32 1.442695, %v1472_v59 }
 0x1ee   : > { %v1751_v28 = vpack.c.bf16 %v7046_v27, %v7046_v27 }
 0x1ef   : > { %v758_v48 = vld [vmem:[#allocation1] sm:$0xff]  ;;  %6264 = vmatmul.msk.bf16.vlgmr.msrb.gmra.mxu2 %vm361_vm0, %v1784_v46  ;;  %6416 = vpow2.f32 %v1516_v37  ;;  %v1580_v46 = vadd.f32 %v1579_v10, %v1578_v26 }
 0x1f0   : > { %759 = vst [vmem:[#allocation1] ss:$9 sm:$0xff] %v579_v44  ;;  %v831_v47 = vpack.c.bf16 %v758_v48, %v758_v48  ;;  %1934 = vmatpush.bf16.msrb.mxu2 %v6766_v2  ;;  %v7027_v4 = vpop.eup %6412  ;;  %v1518_v2 = vmul.f32 1.442695, %v1473_v5  ;;  %v1600_v44 = vadd.f32 %v1599_v3, %v1598_v54  ;;  %v7048_v55 = vpop.f32.mrf.mxu2  ;;  %v1851_v48 = vunpack.c.l.b16 %v1754_v18 }
 0x1f1   : > { %760 = vst [vmem:[#allocation1 + $0x1] ss:$9 sm:$0xff] %v7007_v50  ;;  %v7029_v13 = vpop.eup %6414  ;;  %v1601_v16 = vsel %vm361_vm0, %v7027_v4, 0.0  ;;  %v1380_v24 = vsel %vm1316_vm2, %v7048_v55, -inf  ;;  %v1750_v54 = vpack.c.bf16 %v7042_v63, %v7042_v63  ;;  %v1581_v59 = vrot.slane %v1580_v46, 1 }
 0x1f2   : > { %761 = vst [vmem:[#allocation1 + $0x2] ss:$9 sm:$0xff] %v580_v25  ;;  %v1258_v32 = vunpack.c.l.b16 %v831_v47  ;;  %v1602_v43 = vsel %vm1316_vm2, %v7029_v13, 0.0  ;;  %6418 = vpow2.f32 %v1518_v2  ;;  %v1852_v25 = vunpack.c.l.b16 %v1755_v42 }
 0x1f3   : > { %762 = vst [vmem:[#allocation1 + $0x3] ss:$9 sm:$0xff] %v581_v14  ;;  %v1603_v41 = vadd.f32 %v1602_v43, %v1601_v16  ;;  %v1379_v47 = vsel %vm361_vm0, %v7020_v51, -inf  ;;  %6420 = vrcp.f32 %v1600_v44  ;;  %v1806_v37 = vunpack.c.l.b16 %v1751_v28 }
 0x1f4   : > { %763 = vst [vmem:[#allocation1 + $0x4] ss:$9 sm:$0xff] %v582_v56  ;;  %v1259_v17 = vpack.c.b16 %v1258_v32, %v1257_v31  ;;  %v1381_v21 = vmax.f32 %v1379_v47, %v1380_v24  ;;  %v586_v31 = vrot.slane %v7007_v50, 7  ;;  %v7068_v50 = vpop.f32.mrf.mxu3  ;;  %v1582_v16 = vadd.f32 %v1581_v59, %v1580_v46 }
 0x1f5   : > { %764 = vst [vmem:[#allocation1 + $0x5] ss:$9 sm:$0xff] %v583_v12  ;;  %v7056_v14 = vpop.eup %6416  ;;  %v1604_v26 = vrot.slane %v1603_v41, 4  ;;  %v1853_v12 = vpack.c.b16 %v1852_v25, %v1851_v48 }
 0x1f6   : > { %765 = vst [vmem:[#allocation1 + $0x6] ss:$9 sm:$0xff] %v584_v1  ;;  %6258 = vmatmul.msk.bf16.vlgmr.msra.gmra.mxu3 %vm844_vm1, %v1259_v17  ;;  %v1382_v32 = vrot.slane %v1381_v21, 4  ;;  %v1610_v60 = vsel %vm361_vm0, %v7056_v14, 0.0  ;;  %v1805_v1 = vunpack.c.l.b16 %v1750_v54  ;;  %6422 = vrcp.f32 %v1582_v16 }
 0x1f7   : > { %766 = vst [vmem:[#allocation1 + $0x7] ss:$9 sm:$0xff] %v585_v53  ;;  %1888 = vmatpush.bf16.msra.mxu3 %v6587_v61  ;;  %v1605_v3 = vadd.f32 %v1604_v26, %v1603_v41 }
 0x1f8   : > { %v7060_v56 = vpop.eup %6418  ;;  %v1383_v2 = vmax.f32 %v1381_v21, %v1382_v32  ;;  %v1807_v61 = vpack.c.b16 %v1806_v37, %v1805_v1 }
 0x1f9   : > { %v1611_v17 = vsel %vm1316_vm2, %v7060_v56, 0.0  ;;  %v6421_v10 = vpop.eup %6420  ;;  %v1606_v44 = vrot.slane %v1605_v3, 2 }
 0x1fa   : > { %v1612_v53 = vadd.f32 %v1611_v17, %v1610_v60  ;;  %v1384_v42 = vrot.slane %v1383_v2, 2  ;;  %v7072_v18 = vmul.f32 %v6421_v10, %v6988_v49  ;;  %v7075_v48 = vmul.f32 %v6421_v10, %v6984_v38 }
 0x1fb   : > { %v1607_v21 = vadd.f32 %v1606_v44, %v1605_v3  ;;  %v6588_v44 = vld [vmem:[%s6707_s14 + $0x28] sm:$0xff] }
 0x1fc   : > { %v1613_v43 = vrot.slane %v1612_v53, 4  ;;  %v1385_v41 = vmax.f32 %v1383_v2, %v1384_v42  ;;  %v1757_v49 = vpack.c.bf16 %v7072_v18, %v7072_v18  ;;  %v1756_v32 = vpack.c.bf16 %v7075_v48, %v7075_v48  ;;  %v7083_v59 = vpop.f32.mrf.mxu3  ;;  %v6423_v2 = vpop.eup %6422 }
 0x1fd   : > { %v1608_v10 = vrot.slane %v1607_v21, 1 }
 0x1fe   : > { %v767_v5 = vld [vmem:[#allocation1] sm:$0xff]  ;;  %v1614_v25 = vadd.f32 %v1613_v43, %v1612_v53  ;;  %v1386_v54 = vrot.slane %v1385_v41, 1  ;;  %v1874_v42 = vunpack.c.l.b16 %v1756_v32  ;;  %v1875_v43 = vunpack.c.l.b16 %v1757_v49 }
 0x1ff   : > { %768 = vst [vmem:[#allocation1] ss:$9 sm:$0xff] %v586_v31  ;;  %6267 = vmatmul.msk.bf16.vlgmr.msra.gmra.mxu2 %vm361_vm0, %v1853_v12  ;;  %v832_v47 = vpack.c.bf16 %v767_v5, %v767_v5  ;;  %v1389_v12 = vsel %vm1316_vm2, %v7083_v59, -inf }
 0x200   : > { %2003 = vmatpush.bf16.msra.mxu2 %v6790_v9  ;;  %v1615_v9 = vrot.slane %v1614_v25, 2  ;;  %v1387_v28 = vmax.f32 %v1385_v41, %v1386_v54  ;;  %v7091_v37 = vpop.f32.mrf.mxu1  ;;  %v7099_v41 = vmul.f32 %v6423_v2, %v6973_v40 }
 0x201   : > { %v1287_v31 = vunpack.c.l.b16 %v832_v47 }
 0x202   : > { %v1616_v26 = vadd.f32 %v1615_v9, %v1614_v25  ;;  %v1474_v5 = vsub.f32 %v7020_v51, %v1387_v28  ;;  %v1475_v60 = vsub.f32 %v7048_v55, %v1387_v28  ;;  %v1609_v25 = vadd.f32 %v1608_v10, %v1607_v21 }
 0x203   : > { %v1753_v54 = vpack.c.bf16 %v7099_v41, %v7099_v41 }
 0x204   : > { %v1617_v1 = vrot.slane %v1616_v26, 1  ;;  %v1520_v53 = vmul.f32 1.442695, %v1474_v5  ;;  %v1522_v55 = vmul.f32 1.442695, %v1475_v60 }
 0x205   : > { %v1829_v32 = vunpack.c.l.b16 %v1753_v54 }
 0x206   : > { %v769_v24 = vld [vmem:[#allocation1] sm:$0xff]  ;;  %6265 = vmatmul.msk.bf16.vlgmr.msrb.gmra.mxu3 %vm361_vm0, %v1807_v61  ;;  %v1618_v16 = vadd.f32 %v1617_v1, %v1616_v26  ;;  %v7096_v61 = vmul.f32 %v6423_v2, %v6970_v6  ;;  %6424 = vpow2.f32 %v1520_v53  ;;  %v1397_v6 = vsel %vm361_vm0, %v7091_v37, -inf }
 0x207   : > { %v833_v46 = vpack.c.bf16 %v769_v24, %v769_v24  ;;  %1957 = vmatpush.bf16.msrb.mxu3 %v6775_v23  ;;  %v1388_v23 = vsel %vm361_vm0, %v7068_v50, -inf  ;;  %v1876_v24 = vpack.c.b16 %v1875_v43, %v1874_v42 }
 0x208   : > { %v1390_v17 = vmax.f32 %v1388_v23, %v1389_v12  ;;  %6426 = vrcp.f32 %v1618_v16  ;;  %v1752_v9 = vpack.c.bf16 %v7096_v61, %v7096_v61  ;;  %v1132_v49 = vpop.f32.mrf.mxu1 }
 0x209   : > { %v1288_v38 = vunpack.c.l.b16 %v833_v46  ;;  %6428 = vpow2.f32 %v1522_v55  ;;  %v1398_v40 = vsel %vm1316_vm2, %v1132_v49, -inf }
 0x20a   : > { %v1391_v51 = vrot.slane %v1390_v17, 4  ;;  %6430 = vrcp.f32 %v1609_v25  ;;  %v1399_v26 = vmax.f32 %v1397_v6, %v1398_v40 }
 0x20b   : > { %v1289_v3 = vpack.c.b16 %v1288_v38, %v1287_v31  ;;  %v1828_v38 = vunpack.c.l.b16 %v1752_v9 }
 0x20c   : > { %v1392_v47 = vmax.f32 %v1390_v17, %v1391_v51  ;;  %v7108_v28 = vpop.eup %6424  ;;  %v1400_v60 = vrot.slane %v1399_v26, 4 }
 0x20d   : > { %6263 = vmatmul.msk.bf16.vlgmr.msrb.gmra.mxu1 %vm844_vm1, %v1289_v3  ;;  %v1619_v1 = vsel %vm361_vm0, %v7108_v28, 0.0  ;;  %v1830_v16 = vpack.c.b16 %v1829_v32, %v1828_v38 }
 0x20e   : > { %1911 = vmatpush.bf16.msrb.mxu1 %v6588_v44  ;;  %v1393_v46 = vrot.slane %v1392_v47, 2  ;;  %v6427_v31 = vpop.eup %6426  ;;  %v1401_v10 = vmax.f32 %v1399_v26, %v1400_v60 }
 0x20f   : > { %v7112_v23 = vpop.eup %6428  ;;  %v7115_v12 = vmul.f32 %v6427_v31, %v7060_v56  ;;  %v7120_v3 = vmul.f32 %v6427_v31, %v7056_v14 }
 0x210   : > { %v1394_v21 = vmax.f32 %v1392_v47, %v1393_v46  ;;  %v1620_v17 = vsel %vm1316_vm2, %v7112_v23, 0.0  ;;  %v6431_v53 = vpop.eup %6430  ;;  %v1402_v42 = vrot.slane %v1401_v10, 2 }
 0x211   : > { %v1621_v51 = vadd.f32 %v1620_v17, %v1619_v1  ;;  %v7129_v14 = vmul.f32 %v6431_v53, %v7027_v4  ;;  %v7132_v43 = vmul.f32 %v6431_v53, %v7029_v13  ;;  %v1760_v44 = vpack.c.bf16 %v7120_v3, %v7120_v3 }
 0x212   : > { %v1395_v5 = vrot.slane %v1394_v21, 1  ;;  %v1403_v9 = vmax.f32 %v1401_v10, %v1402_v42 }
 0x213   : > { %v1622_v47 = vrot.slane %v1621_v51, 4  ;;  %v1759_v13 = vpack.c.bf16 %v7132_v43, %v7132_v43  ;;  %v1758_v6 = vpack.c.bf16 %v7129_v14, %v7129_v14 }
 0x214   : > { %v1396_v2 = vmax.f32 %v1394_v21, %v1395_v5  ;;  %v1404_v4 = vrot.slane %v1403_v9, 1 }
 0x215   : > { %v1623_v46 = vadd.f32 %v1622_v47, %v1621_v51  ;;  %v1897_v60 = vunpack.c.l.b16 %v1758_v6  ;;  %v1898_v1 = vunpack.c.l.b16 %v1759_v13 }
 0x216   : > { %6268 = vmatmul.msk.bf16.vlgmr.msra.gmra.mxu3 %vm361_vm0, %v1876_v24  ;;  %v1476_v56 = vsub.f32 %v7068_v50, %v1396_v2  ;;  %v1477_v55 = vsub.f32 %v7083_v59, %v1396_v2  ;;  %v6589_v50 = vld [vmem:[%s6707_s14 + $0x40] sm:$0xff]  ;;  %v1920_v59 = vunpack.c.l.b16 %v1760_v44  ;;  %v1405_v31 = vmax.f32 %v1403_v9, %v1404_v4 }
 0x217   : > { %2026 = vmatpush.bf16.msra.mxu3 %v6801_v15  ;;  %v1761_v15 = vpack.c.bf16 %v7115_v12, %v7115_v12  ;;  %v1624_v26 = vrot.slane %v1623_v46, 2 }
 0x218   : > { %v1524_v24 = vmul.f32 1.442695, %v1476_v56  ;;  %v1526_v54 = vmul.f32 1.442695, %v1477_v55  ;;  %v1478_v32 = vsub.f32 %v7091_v37, %v1405_v31  ;;  %v1479_v5 = vsub.f32 %v1132_v49, %v1405_v31 }
 0x219   : > { %v1921_v25 = vunpack.c.l.b16 %v1761_v15  ;;  %v1625_v38 = vadd.f32 %v1624_v26, %v1623_v46  ;;  %v1899_v37 = vpack.c.b16 %v1898_v1, %v1897_v60 }
 0x21a   : > { %6432 = vpow2.f32 %v1524_v24  ;;  %v1528_v10 = vmul.f32 1.442695, %v1478_v32  ;;  %v1530_v53 = vmul.f32 1.442695, %v1479_v5 }
 0x21b   : > { %6434 = vpow2.f32 %v1526_v54  ;;  %v1922_v40 = vpack.c.b16 %v1921_v25, %v1920_v59  ;;  %v1626_v2 = vrot.slane %v1625_v38, 1 }
 0x21c   : > { %6436 = vpow2.f32 %v1528_v10 }
 0x21d   : > { %6266 = vmatmul.msk.bf16.vlgmr.msra.gmra.mxu1 %vm361_vm0, %v1830_v16  ;;  %v7142_v21 = vpop.f32.mrf.mxu2  ;;  %6270 = vmatmul.msk.bf16.vlgmr.msrb.gmra.mxu2 %vm361_vm0, %v1922_v40  ;;  %v1627_v51 = vadd.f32 %v1626_v2, %v1625_v38  ;;  %6438 = vpow2.f32 %v1530_v53 }
 0x21e   : > { %1980 = vmatpush.bf16.msra.mxu1 %v6589_v50  ;;  %2095 = vmatpush.bf16.msrb.mxu2 %v6893_v62  ;;  %v1406_v62 = vsel %vm361_vm0, %v7142_v21, -inf }
 0x21f   : > { %6440 = vrcp.f32 %v1627_v51 }
 0x220   : > { %v7147_v17 = vpop.eup %6432 }
 0x221   : > { %v6435_v15 = vpop.eup %6434  ;;  %v1628_v16 = vsel %vm361_vm0, %v7147_v17, 0.0 }
 0x222   : > { %v1629_v56 = vsel %vm1316_vm2, %v6435_v15, 0.0  ;;  %v6437_v54 = vpop.eup %6436 }
 0x223   : > { %v1630_v55 = vadd.f32 %v1629_v56, %v1628_v16  ;;  %v6439_v9 = vpop.eup %6438  ;;  %v1637_v59 = vsel %vm361_vm0, %v6437_v54, 0.0 }
 0x224   : > { %v1638_v13 = vsel %vm1316_vm2, %v6439_v9, 0.0 }
 0x225   : > { %v1162_v49 = vpop.f32.mrf.mxu2  ;;  %v1631_v44 = vrot.slane %v1630_v55, 4  ;;  %v6441_v4 = vpop.eup %6440  ;;  %v1639_v26 = vadd.f32 %v1638_v13, %v1637_v59 }
 0x226   : > { %v1407_v42 = vsel %vm1316_vm2, %v1162_v49, -inf  ;;  %v7160_v6 = vmul.f32 %v6441_v4, %v7112_v23  ;;  %v7163_v31 = vmul.f32 %v6441_v4, %v7108_v28 }
 0x227   : > { %v1408_v25 = vmax.f32 %v1406_v62, %v1407_v42  ;;  %v1632_v47 = vadd.f32 %v1631_v44, %v1630_v55  ;;  %v1640_v60 = vrot.slane %v1639_v26, 4 }
 0x228   : > { %v1762_v2 = vpack.c.bf16 %v7163_v31, %v7163_v31 }
 0x229   : > { %v1409_v24 = vrot.slane %v1408_v25, 4  ;;  %v1633_v50 = vrot.slane %v1632_v47, 2  ;;  %v1641_v53 = vadd.f32 %v1640_v60, %v1639_v26 }
 0x22a   : > { %v1943_v51 = vunpack.c.l.b16 %v1762_v2 }
 0x22b   : > { %v1410_v46 = vmax.f32 %v1408_v25, %v1409_v24  ;;  %v1634_v40 = vadd.f32 %v1633_v50, %v1632_v47  ;;  %v1642_v28 = vrot.slane %v1641_v53, 2 }
 0x22d   : > { %6269 = vmatmul.msk.bf16.vlgmr.msrb.gmra.mxu1 %vm361_vm0, %v1899_v37  ;;  %v1411_v38 = vrot.slane %v1410_v46, 2  ;;  %v1635_v5 = vrot.slane %v1634_v40, 1  ;;  %v1643_v37 = vadd.f32 %v1642_v28, %v1641_v53 }
 0x22e   : > { %2072 = vmatpush.bf16.msrb.mxu1 %v6846_v36  ;;  %v1763_v36 = vpack.c.bf16 %v7160_v6, %v7160_v6 }
 0x22f   : > { %v1412_v1 = vmax.f32 %v1410_v46, %v1411_v38  ;;  %v1636_v23 = vadd.f32 %v1635_v5, %v1634_v40  ;;  %v1644_v47 = vrot.slane %v1643_v37, 1 }
 0x230   : > { %v1944_v10 = vunpack.c.l.b16 %v1763_v36 }
 0x231   : > { %v1413_v16 = vrot.slane %v1412_v1, 1  ;;  %6442 = vrcp.f32 %v1636_v23  ;;  %v1645_v13 = vadd.f32 %v1644_v47, %v1643_v37 }
 0x232   : > { %v1945_v55 = vpack.c.b16 %v1944_v10, %v1943_v51 }
 0x233   : > { %v1414_v56 = vmax.f32 %v1412_v1, %v1413_v16 }
 0x234   : > { %v7167_v32 = vpop.f32.mrf.mxu3  ;;  %6271 = vmatmul.msk.bf16.vlgmr.msrb.gmra.mxu3 %vm361_vm0, %v1945_v55 }
 0x235   : > { %v1480_v62 = vsub.f32 %v7142_v21, %v1414_v56  ;;  %v1481_v42 = vsub.f32 %v1162_v49, %v1414_v56  ;;  %v1415_v44 = vsel %vm361_vm0, %v7167_v32, -inf  ;;  %2118 = vmatpush.bf16.msrb.mxu3 %v6935_v58 }
 0x237   : > { %v1532_v24 = vmul.f32 1.442695, %v1480_v62  ;;  %v1534_v50 = vmul.f32 1.442695, %v1481_v42  ;;  %v6443_v4 = vpop.eup %6442 }
 0x238   : > { %v7178_v21 = vmul.f32 %v6443_v4, %v7147_v17  ;;  %v7180_v49 = vmul.f32 %v6443_v4, %v6435_v15 }
 0x239   : > { %6444 = vpow2.f32 %v1532_v24 }
 0x23a   : > { %6446 = vpow2.f32 %v1534_v50  ;;  %v1765_v26 = vpack.c.bf16 %v7180_v49, %v7180_v49  ;;  %v1764_v36 = vpack.c.bf16 %v7178_v21, %v7178_v21 }
 0x23b   : > { %6448 = vrcp.f32 %v1645_v13 }
 0x23c   : > { %v1192_v25 = vpop.f32.mrf.mxu3  ;;  %v1967_v60 = vunpack.c.l.b16 %v1765_v26  ;;  %v1966_v10 = vunpack.c.l.b16 %v1764_v36 }
 0x23d   : > { %v1416_v59 = vsel %vm1316_vm2, %v1192_v25, -inf }
 0x23e   : > { %v1417_v46 = vmax.f32 %v1415_v44, %v1416_v59  ;;  %v1968_v56 = vpack.c.b16 %v1967_v60, %v1966_v10 }
 0x23f   : > { %v6445_v58 = vpop.eup %6444 }
 0x240   : > { %v1418_v40 = vrot.slane %v1417_v46, 4  ;;  %v6447_v1 = vpop.eup %6446  ;;  %v1646_v2 = vsel %vm361_vm0, %v6445_v58, 0.0  ;;  %6272 = vmatmul.msk.bf16.vlgmr.msra.gmra.mxu1 %vm361_vm0, %v1968_v56 }
 0x241   : > { %v6449_v15 = vpop.eup %6448  ;;  %v1647_v23 = vsel %vm1316_vm2, %v6447_v1, 0.0 }
 0x242   : > { %v1419_v38 = vmax.f32 %v1417_v46, %v1418_v40  ;;  %v7188_v53 = vmul.f32 %v6449_v15, %v6437_v54  ;;  %v7190_v16 = vmul.f32 %v6449_v15, %v6439_v9  ;;  %v1648_v51 = vadd.f32 %v1647_v23, %v1646_v2 }
 0x244   : > { %v1420_v17 = vrot.slane %v1419_v38, 2  ;;  %v1767_v55 = vpack.c.bf16 %v7190_v16, %v7190_v16  ;;  %v1649_v37 = vrot.slane %v1648_v51, 4  ;;  %v1766_v42 = vpack.c.bf16 %v7188_v53, %v7188_v53 }
 0x245   : > { %v1220_v5 = vpop.f32.mrf.mxu1 }
 0x246   : > { %v1421_v28 = vmax.f32 %v1419_v38, %v1420_v17  ;;  %v1990_v44 = vunpack.c.l.b16 %v1767_v55  ;;  %v1424_v47 = vsel %vm361_vm0, %v1220_v5, -inf  ;;  %v1650_v24 = vadd.f32 %v1649_v37, %v1648_v51 }
 0x247   : > { %v1989_v59 = vunpack.c.l.b16 %v1766_v42 }
 0x248   : > { %v1422_v62 = vrot.slane %v1421_v28, 1  ;;  %v1651_v4 = vrot.slane %v1650_v24, 2 }
 0x249   : > { %v1991_v26 = vpack.c.b16 %v1990_v44, %v1989_v59 }
 0x24a   : > { %v1423_v9 = vmax.f32 %v1421_v28, %v1422_v62  ;;  %v1652_v36 = vadd.f32 %v1651_v4, %v1650_v24 }
 0x24b   : > { %6273 = vmatmul.msk.bf16.vlgmr.msra.gmra.mxu2 %vm361_vm0, %v1991_v26 }
 0x24c   : > { %v1482_v13 = vsub.f32 %v7167_v32, %v1423_v9  ;;  %v1483_v40 = vsub.f32 %v1192_v25, %v1423_v9  ;;  %v1653_v10 = vrot.slane %v1652_v36, 1 }
 0x24d   : > { %v1222_v54 = vpop.f32.mrf.mxu1 }
 0x24e   : > { %v1425_v50 = vsel %vm1316_vm2, %v1222_v54, -inf  ;;  %v1536_v60 = vmul.f32 1.442695, %v1482_v13  ;;  %v1538_v2 = vmul.f32 1.442695, %v1483_v40  ;;  %v1654_v23 = vadd.f32 %v1653_v10, %v1652_v36 }
 0x24f   : > { %v1426_v46 = vmax.f32 %v1424_v47, %v1425_v50 }
 0x250   : > { %6450 = vpow2.f32 %v1536_v60 }
 0x251   : > { %v1427_v38 = vrot.slane %v1426_v46, 4  ;;  %6452 = vpow2.f32 %v1538_v2 }
 0x252   : > { %6454 = vrcp.f32 %v1654_v23 }
 0x253   : > { %v1428_v17 = vmax.f32 %v1426_v46, %v1427_v38 }
 0x255   : > { %v1429_v15 = vrot.slane %v1428_v17, 2 }
 0x256   : > { %v6451_v56 = vpop.eup %6450 }
 0x257   : > { %v1430_v51 = vmax.f32 %v1428_v17, %v1429_v15  ;;  %v6453_v55 = vpop.eup %6452  ;;  %v1655_v32 = vsel %vm361_vm0, %v6451_v56, 0.0 }
 0x258   : > { %v1656_v37 = vsel %vm1316_vm2, %v6453_v55, 0.0  ;;  %v6455_v47 = vpop.eup %6454 }
 0x259   : > { %v1431_v28 = vrot.slane %v1430_v51, 1  ;;  %v1657_v62 = vadd.f32 %v1656_v37, %v1655_v32  ;;  %v7203_v24 = vmul.f32 %v6455_v47, %v6445_v58  ;;  %v7205_v9 = vmul.f32 %v6455_v47, %v6447_v1 }
 0x25b   : > { %v1432_v25 = vmax.f32 %v1430_v51, %v1431_v28  ;;  %v1658_v50 = vrot.slane %v1657_v62, 4  ;;  %v1769_v4 = vpack.c.bf16 %v7205_v9, %v7205_v9  ;;  %v1768_v26 = vpack.c.bf16 %v7203_v24, %v7203_v24 }
 0x25d   : > { %v1484_v42 = vsub.f32 %v1220_v5, %v1432_v25  ;;  %v1485_v44 = vsub.f32 %v1222_v54, %v1432_v25  ;;  %v1659_v13 = vadd.f32 %v1658_v50, %v1657_v62  ;;  %v2013_v38 = vunpack.c.l.b16 %v1769_v4 }
 0x25e   : > { %v2012_v54 = vunpack.c.l.b16 %v1768_v26 }
 0x25f   : > { %v1540_v59 = vmul.f32 1.442695, %v1484_v42  ;;  %v1542_v46 = vmul.f32 1.442695, %v1485_v44  ;;  %v1660_v5 = vrot.slane %v1659_v13, 2 }
 0x260   : > { %v2014_v36 = vpack.c.b16 %v2013_v38, %v2012_v54 }
 0x261   : > { %6456 = vpow2.f32 %v1540_v59  ;;  %v1661_v58 = vadd.f32 %v1660_v5, %v1659_v13 }
 0x262   : > { %v1250_v40 = vpop.f32.mrf.mxu2  ;;  %6458 = vpow2.f32 %v1542_v46  ;;  %6274 = vmatmul.msk.bf16.vlgmr.msra.gmra.mxu3 %vm361_vm0, %v2014_v36 }
 0x263   : > { %v1662_v60 = vrot.slane %v1661_v58, 1  ;;  %v1433_v28 = vsel %vm361_vm0, %v1250_v40, -inf }
 0x265   : > { %v1663_v10 = vadd.f32 %v1662_v60, %v1661_v58 }
 0x267   : > { %v7211_v1 = vpop.eup %6456  ;;  %6460 = vrcp.f32 %v1663_v10 }
 0x268   : > { %v6459_v2 = vpop.eup %6458  ;;  %v1664_v17 = vsel %vm361_vm0, %v7211_v1, 0.0 }
 0x269   : > { %v1665_v15 = vsel %vm1316_vm2, %v6459_v2, 0.0 }
 0x26a   : > { %v1252_v23 = vpop.f32.mrf.mxu2  ;;  %v1666_v51 = vadd.f32 %v1665_v15, %v1664_v17 }
 0x26b   : > { %v1434_v32 = vsel %vm1316_vm2, %v1252_v23, -inf }
 0x26c   : > { %v1435_v25 = vmax.f32 %v1433_v28, %v1434_v32  ;;  %v1667_v37 = vrot.slane %v1666_v51, 4 }
 0x26d   : > { %v6461_v50 = vpop.eup %6460 }
 0x26e   : > { %v1436_v62 = vrot.slane %v1435_v25, 4  ;;  %v1668_v42 = vadd.f32 %v1667_v37, %v1666_v51  ;;  %v7219_v4 = vmul.f32 %v6461_v50, %v6451_v56  ;;  %v7221_v13 = vmul.f32 %v6461_v50, %v6453_v55 }
 0x270   : > { %v1437_v44 = vmax.f32 %v1435_v25, %v1436_v62  ;;  %v1669_v47 = vrot.slane %v1668_v42, 2  ;;  %v1770_v55 = vpack.c.bf16 %v7219_v4, %v7219_v4  ;;  %v1771_v32 = vpack.c.bf16 %v7221_v13, %v7221_v13 }
 0x272   : > { %v1438_v59 = vrot.slane %v1437_v44, 2  ;;  %v1798_v46 = vpop.f32.mrf.mxu2  ;;  %v1670_v26 = vadd.f32 %v1669_v47, %v1668_v42  ;;  %v2035_v37 = vunpack.c.l.b16 %v1770_v55  ;;  %v2036_v62 = vunpack.c.l.b16 %v1771_v32 }
 0x273   : > { %v2180_v38 = vrot.slane %v1798_v46, 1  ;;  %2292 = vst [vmem:[#allocation1] ss:$9 sm:$0xff] %v1798_v46  ;;  %v2181_v54 = vrot.slane %v1798_v46, 2  ;;  %v2182_v58 = vrot.slane %v1798_v46, 3  ;;  %v2183_v36 = vrot.slane %v1798_v46, 4 }
 0x274   : > { %v1439_v5 = vmax.f32 %v1437_v44, %v1438_v59  ;;  %v1671_v60 = vrot.slane %v1670_v26, 1  ;;  %v2184_v10 = vrot.slane %v1798_v46, 5  ;;  %v2185_v15 = vrot.slane %v1798_v46, 6 }
 0x275   : > { %2294 = vst [vmem:[#allocation1 + $0x1] ss:$9 sm:$0xff] %v2180_v38  ;;  %v2186_v51 = vrot.slane %v1798_v46, 7  ;;  %v2037_v47 = vpack.c.b16 %v2036_v62, %v2035_v37 }
 0x276   : > { %2296 = vst [vmem:[#allocation1 + $0x2] ss:$9 sm:$0xff] %v2181_v54  ;;  %v1440_v17 = vrot.slane %v1439_v5, 1  ;;  %v1672_v28 = vadd.f32 %v1671_v60, %v1670_v26 }
 0x277   : > { %2298 = vst [vmem:[#allocation1 + $0x3] ss:$9 sm:$0xff] %v2182_v58  ;;  %6275 = vmatmul.msk.bf16.vlgmr.msrb.gmra.mxu0 %vm361_vm0, %v2037_v47 }
 0x278   : > { %2300 = vst [vmem:[#allocation1 + $0x4] ss:$9 sm:$0xff] %v2183_v36  ;;  %v1441_v25 = vmax.f32 %v1439_v5, %v1440_v17  ;;  %6462 = vrcp.f32 %v1672_v28 }
 0x279   : > { %v7223_v56 = vpop.f32.mrf.mxu3  ;;  %2302 = vst [vmem:[#allocation1 + $0x5] ss:$9 sm:$0xff] %v2184_v10 }
 0x27a   : > { %2304 = vst [vmem:[#allocation1 + $0x6] ss:$9 sm:$0xff] %v2185_v15  ;;  %v1486_v42 = vsub.f32 %v1250_v40, %v1441_v25  ;;  %v1487_v44 = vsub.f32 %v1252_v23, %v1441_v25  ;;  %v1442_v5 = vsel %vm361_vm0, %v7223_v56, -inf  ;;  %v1800_v23 = vpop.f32.mrf.mxu2 }
 0x27b   : > { %2306 = vst [vmem:[#allocation1 + $0x7] ss:$9 sm:$0xff] %v2186_v51 }
 0x27c   : > { %v1544_v50 = vmul.f32 1.442695, %v1486_v42  ;;  %v1546_v59 = vmul.f32 1.442695, %v1487_v44 }
 0x27e   : > { %6464 = vpow2.f32 %v1544_v50  ;;  %v6463_v46 = vpop.eup %6462 }
 0x27f   : > { %6466 = vpow2.f32 %v1546_v59  ;;  %v7230_v38 = vmul.f32 %v6463_v46, %v6459_v2  ;;  %v7238_v36 = vmul.f32 %v6463_v46, %v7211_v1 }
 0x281   : > { %v1282_v26 = vpop.f32.mrf.mxu3  ;;  %v1773_v60 = vpack.c.bf16 %v7230_v38, %v7230_v38  ;;  %v1772_v1 = vpack.c.bf16 %v7238_v36, %v7238_v36 }
 0x282   : > { %v1443_v54 = vsel %vm1316_vm2, %v1282_v26, -inf  ;;  %v7235_v58 = vld [vmem:[#allocation1] sm:$0xff] }
 0x283   : > { %v1444_v40 = vmax.f32 %v1442_v5, %v1443_v54  ;;  %2308 = vst [vmem:[#allocation1] ss:$9 sm:$0xff] %v1800_v23  ;;  %v2059_v25 = vunpack.c.l.b16 %v1773_v60  ;;  %v2058_v54 = vunpack.c.l.b16 %v1772_v1 }
 0x284   : > { %v7242_v17 = vpop.eup %6464 }
 0x285   : > { %v1445_v2 = vrot.slane %v1444_v40, 4  ;;  %v7244_v10 = vpop.eup %6466  ;;  %v1673_v15 = vsel %vm361_vm0, %v7242_v17, 0.0 }
 0x286   : > { %v1674_v51 = vsel %vm1316_vm2, %v7244_v10, 0.0 }
 0x287   : > { %v1446_v28 = vmax.f32 %v1444_v40, %v1445_v2  ;;  %v1675_v55 = vadd.f32 %v1674_v51, %v1673_v15  ;;  %v2060_v15 = vpack.c.b16 %v2059_v25, %v2058_v54 }
 0x289   : > { %v1821_v32 = vpop.f32.mrf.mxu3  ;;  %v1447_v37 = vrot.slane %v1446_v28, 2  ;;  %v1676_v50 = vrot.slane %v1675_v55, 4  ;;  %6276 = vmatmul.msk.bf16.vlgmr.msrb.gmra.mxu1 %vm361_vm0, %v2060_v15 }
 0x28a   : > { %v7252_v62 = vpop.f32.mrf.mxu1  ;;  %v2187_v42 = vrot.slane %v1821_v32, 1  ;;  %v2188_v44 = vrot.slane %v1821_v32, 2  ;;  %v2189_v47 = vrot.slane %v1821_v32, 3  ;;  %2309 = vst [vmem:[#allocation1 + $0x1] ss:$9 sm:$0xff] %v1821_v32  ;;  %v2190_v59 = vrot.slane %v1821_v32, 4 }
 0x28b   : > { %v1448_v46 = vmax.f32 %v1446_v28, %v1447_v37  ;;  %v2191_v5 = vrot.slane %v1821_v32, 5  ;;  %v1677_v40 = vadd.f32 %v1676_v50, %v1675_v55  ;;  %v2192_v23 = vrot.slane %v1821_v32, 6 }
 0x28c   : > { %2310 = vst [vmem:[#allocation1 + $0x2] ss:$9 sm:$0xff] %v2187_v42  ;;  %v1451_v1 = vsel %vm361_vm0, %v7252_v62, -inf }
 0x28d   : > { %2311 = vst [vmem:[#allocation1 + $0x3] ss:$9 sm:$0xff] %v2188_v44  ;;  %v1449_v2 = vrot.slane %v1448_v46, 1  ;;  %v1678_v60 = vrot.slane %v1677_v40, 2 }
 0x28e   : > { %2312 = vst [vmem:[#allocation1 + $0x4] ss:$9 sm:$0xff] %v2189_v47 }
 0x28f   : > { %2313 = vst [vmem:[#allocation1 + $0x5] ss:$9 sm:$0xff] %v2190_v59  ;;  %v1450_v51 = vmax.f32 %v1448_v46, %v1449_v2  ;;  %v1679_v8 = vadd.f32 %v1678_v60, %v1677_v40  ;;  %v2193_v46 = vrot.slane %v1821_v32, 7 }
 0x290   : > { %2314 = vst [vmem:[#allocation1 + $0x6] ss:$9 sm:$0xff] %v2191_v5 }
 0x291   : > { %2315 = vst [vmem:[#allocation1 + $0x7] ss:$9 sm:$0xff] %v2192_v23  ;;  %v1488_v22 = vsub.f32 %v7223_v56, %v1450_v51  ;;  %v1489_v28 = vsub.f32 %v1282_v26, %v1450_v51  ;;  %v1680_v42 = vrot.slane %v1679_v8, 1  ;;  %v1823_v56 = vpop.f32.mrf.mxu3 }
 0x292   : > { %v1312_v37 = vpop.f32.mrf.mxu1 }
 0x293   : > { %v1452_v55 = vsel %vm1316_vm2, %v1312_v37, -inf  ;;  %v1548_v44 = vmul.f32 1.442695, %v1488_v22  ;;  %v1550_v25 = vmul.f32 1.442695, %v1489_v28  ;;  %v1681_v50 = vadd.f32 %v1680_v42, %v1679_v8 }
 0x294   : > { %v1453_v47 = vmax.f32 %v1451_v1, %v1452_v55 }
 0x295   : > { %6468 = vpow2.f32 %v1548_v44 }
 0x296   : > { %v1454_v59 = vrot.slane %v1453_v47, 4  ;;  %6470 = vpow2.f32 %v1550_v25 }
 0x297   : > { %6472 = vrcp.f32 %v1681_v50 }
 0x298   : > { %v7259_v5 = vld [vmem:[#allocation1] sm:$0xff]  ;;  %v1455_v54 = vmax.f32 %v1453_v47, %v1454_v59 }
 0x299   : > { %2317 = vst [vmem:[#allocation1] ss:$9 sm:$0xff] %v2193_v46 }
 0x29a   : > { %v1456_v26 = vrot.slane %v1455_v54, 2  ;;  %2318 = vst [vmem:[#allocation1 + $0x1] ss:$9 sm:$0xff] %v1823_v56  ;;  %v1844_v40 = vpop.f32.mrf.mxu1 }
 0x29b   : > { %v2194_v23 = vrot.slane %v1844_v40, 1  ;;  %v2195_v2 = vrot.slane %v1844_v40, 2  ;;  %v2196_v15 = vrot.slane %v1844_v40, 3  ;;  %2319 = vst [vmem:[#allocation1 + $0x2] ss:$9 sm:$0xff] %v1844_v40  ;;  %v7261_v22 = vpop.eup %6468  ;;  %v2197_v60 = vrot.slane %v1844_v40, 4 }
 0x29c   : > { %v1457_v8 = vmax.f32 %v1455_v54, %v1456_v26  ;;  %v2198_v51 = vrot.slane %v1844_v40, 5  ;;  %v6471_v32 = vpop.eup %6470  ;;  %v1682_v1 = vsel %vm361_vm0, %v7261_v22, 0.0 }
 0x29d   : > { %2320 = vst [vmem:[#allocation1 + $0x3] ss:$9 sm:$0xff] %v2194_v23  ;;  %v6473_v42 = vpop.eup %6472  ;;  %v1683_v55 = vsel %vm1316_vm2, %v6471_v32, 0.0 }
 0x29e   : > { %v1458_v28 = vrot.slane %v1457_v8, 1  ;;  %2321 = vst [vmem:[#allocation1 + $0x4] ss:$9 sm:$0xff] %v2195_v2  ;;  %v7267_v44 = vmul.f32 %v6473_v42, %v7244_v10  ;;  %v1684_v25 = vadd.f32 %v1683_v55, %v1682_v1  ;;  %v7270_v50 = vmul.f32 %v6473_v42, %v7242_v17 }
 0x29f   : > { %2322 = vst [vmem:[#allocation1 + $0x5] ss:$9 sm:$0xff] %v2196_v15  ;;  %v1867_v15 = vpop.f32.mrf.mxu2  ;;  %v2200_v10 = vrot.slane %v1844_v40, 7 }
 0x2a0   : > { %2323 = vst [vmem:[#allocation1 + $0x6] ss:$9 sm:$0xff] %v2197_v60  ;;  %v1459_v47 = vmax.f32 %v1457_v8, %v1458_v28  ;;  %v1685_v59 = vrot.slane %v1684_v25, 4  ;;  %v1775_v56 = vpack.c.bf16 %v7267_v44, %v7267_v44  ;;  %v2199_v60 = vrot.slane %v1844_v40, 6 }
 0x2a1   : > { %2324 = vst [vmem:[#allocation1 + $0x7] ss:$9 sm:$0xff] %v2198_v51  ;;  %v1774_v17 = vpack.c.bf16 %v7270_v50, %v7270_v50  ;;  %v2203_v42 = vrot.slane %v1867_v15, 3 }
 0x2a2   : > { %v1490_v46 = vsub.f32 %v7252_v62, %v1459_v47  ;;  %v1491_v54 = vsub.f32 %v1312_v37, %v1459_v47  ;;  %v1686_v26 = vadd.f32 %v1685_v59, %v1684_v25  ;;  %v2202_v37 = vrot.slane %v1867_v15, 2 }
 0x2a3   : > { %v2081_v8 = vunpack.c.l.b16 %v1774_v17  ;;  %v2082_v28 = vunpack.c.l.b16 %v1775_v56  ;;  %v2204_v25 = vrot.slane %v1867_v15, 4  ;;  %v2201_v47 = vrot.slane %v1867_v15, 1 }
 0x2a4   : > { %v1552_v23 = vmul.f32 1.442695, %v1490_v46  ;;  %v1554_v2 = vmul.f32 1.442695, %v1491_v54  ;;  %v1687_v51 = vrot.slane %v1686_v26, 2  ;;  %v2207_v17 = vrot.slane %v1867_v15, 7 }
 0x2a5   : > { %v2083_v40 = vpack.c.b16 %v2082_v28, %v2081_v8 }
 0x2a6   : > { %6474 = vpow2.f32 %v1552_v23  ;;  %v1688_v62 = vadd.f32 %v1687_v51, %v1686_v26  ;;  %v1846_v26 = vpop.f32.mrf.mxu1 }
 0x2a7   : > { %6476 = vpow2.f32 %v1554_v2  ;;  %6277 = vmatmul.msk.bf16.vlgmr.msrb.gmra.mxu2 %vm361_vm0, %v2083_v40  ;;  %v1869_v40 = vpop.f32.mrf.mxu2 }
 0x2a8   : > { %v7275_v1 = vld [vmem:[#allocation1] sm:$0xff]  ;;  %v1689_v55 = vrot.slane %v1688_v62, 1 }
 0x2a9   : > { %2326 = vst [vmem:[#allocation1] ss:$9 sm:$0xff] %v2199_v60 }
 0x2aa   : > { %2327 = vst [vmem:[#allocation1 + $0x1] ss:$9 sm:$0xff] %v2200_v10  ;;  %v1690_v46 = vadd.f32 %v1689_v55, %v1688_v62  ;;  %v2205_v62 = vrot.slane %v1867_v15, 5  ;;  %v1890_v55 = vpop.f32.mrf.mxu3 }
 0x2ab   : > { %2329 = vst [vmem:[#allocation1 + $0x3] ss:$9 sm:$0xff] %v1867_v15 }
 0x2ac   : > { %2331 = vst [vmem:[#allocation1 + $0x5] ss:$9 sm:$0xff] %v2202_v37  ;;  %v6475_v59 = vpop.eup %6474  ;;  %6478 = vrcp.f32 %v1690_v46 }
 0x2ad   : > { %2332 = vst [vmem:[#allocation1 + $0x6] ss:$9 sm:$0xff] %v2203_v42  ;;  %v6477_v54 = vpop.eup %6476  ;;  %v1691_v23 = vsel %vm361_vm0, %v6475_v59, 0.0  ;;  %v2206_v42 = vrot.slane %v1867_v15, 6 }
 0x2ae   : > { %2333 = vst [vmem:[#allocation1 + $0x7] ss:$9 sm:$0xff] %v2204_v25  ;;  %v1692_v56 = vsel %vm1316_vm2, %v6477_v54, 0.0 }
 0x2af   : > { %2330 = vst [vmem:[#allocation1 + $0x4] ss:$9 sm:$0xff] %v2201_v47  ;;  %v1693_v2 = vadd.f32 %v1692_v56, %v1691_v23  ;;  %v2209_v23 = vrot.slane %v1890_v55, 2  ;;  %v2210_v56 = vrot.slane %v1890_v55, 3 }
 0x2b0   : > { %2328 = vst [vmem:[#allocation1 + $0x2] ss:$9 sm:$0xff] %v1846_v26 }
 0x2b1   : > { %v1694_v60 = vrot.slane %v1693_v2, 4 }
 0x2b2   : > { %v6479_v10 = vpop.eup %6478 }
 0x2b3   : > { %v1695_v51 = vadd.f32 %v1694_v60, %v1693_v2  ;;  %v7282_v37 = vmul.f32 %v6479_v10, %v6471_v32  ;;  %v7287_v25 = vmul.f32 %v6479_v10, %v7261_v22  ;;  %v2208_v32 = vrot.slane %v1890_v55, 1 }
 0x2b5   : > { %v1696_v8 = vrot.slane %v1695_v51, 2  ;;  %v1777_v47 = vpack.c.bf16 %v7282_v37, %v7282_v37  ;;  %v1776_v15 = vpack.c.bf16 %v7287_v25, %v7287_v25 }
 0x2b7   : > { %v7284_v28 = vld [vmem:[#allocation1] sm:$0xff]  ;;  %v1697_v46 = vadd.f32 %v1696_v8, %v1695_v51  ;;  %v2105_v2 = vunpack.c.l.b16 %v1777_v47  ;;  %v2104_v60 = vunpack.c.l.b16 %v1776_v15  ;;  %v2211_v51 = vrot.slane %v1890_v55, 4  ;;  %v1913_v47 = vpop.f32.mrf.mxu1 }
 0x2b8   : > { %2337 = vst [vmem:[#allocation1 + $0x2] ss:$9 sm:$0xff] %v2207_v17  ;;  %v2212_v17 = vrot.slane %v1890_v55, 5  ;;  %v2216_v15 = vrot.slane %v1913_v47, 2 }
 0x2b9   : > { %2335 = vst [vmem:[#allocation1] ss:$9 sm:$0xff] %v2205_v62  ;;  %v1698_v26 = vrot.slane %v1697_v46, 1  ;;  %v2106_v10 = vpack.c.b16 %v2105_v2, %v2104_v60  ;;  %v2218_v60 = vrot.slane %v1913_v47, 4 }
 0x2ba   : > { %2336 = vst [vmem:[#allocation1 + $0x1] ss:$9 sm:$0xff] %v2206_v42  ;;  %v2213_v42 = vrot.slane %v1890_v55, 6 }
 0x2bb   : > { %2338 = vst [vmem:[#allocation1 + $0x3] ss:$9 sm:$0xff] %v1869_v40  ;;  %v1699_v22 = vadd.f32 %v1698_v26, %v1697_v46  ;;  %6278 = vmatmul.msk.bf16.vlgmr.msrb.gmra.mxu3 %vm361_vm0, %v2106_v10  ;;  %v1892_v26 = vpop.f32.mrf.mxu3 }
 0x2bc   : > { %2339 = vst [vmem:[#allocation1 + $0x4] ss:$9 sm:$0xff] %v1890_v55 }
 0x2bd   : > { %2340 = vst [vmem:[#allocation1 + $0x5] ss:$9 sm:$0xff] %v2208_v32  ;;  %6480 = vrcp.f32 %v1699_v22  ;;  %v2217_v22 = vrot.slane %v1913_v47, 3 }
 0x2be   : > { %2341 = vst [vmem:[#allocation1 + $0x6] ss:$9 sm:$0xff] %v2209_v23  ;;  %v2214_v23 = vrot.slane %v1890_v55, 7 }
 0x2bf   : > { %2342 = vst [vmem:[#allocation1 + $0x7] ss:$9 sm:$0xff] %v2210_v56  ;;  %v2215_v56 = vrot.slane %v1913_v47, 1 }
 0x2c3   : > { %v6481_v8 = vpop.eup %6480 }
 0x2c4   : > { %v7296_v40 = vmul.f32 %v6481_v8, %v6475_v59  ;;  %v7298_v32 = vmul.f32 %v6481_v8, %v6477_v54  ;;  %v2220_v8 = vrot.slane %v1913_v47, 6 }
 0x2c6   : > { %v7294_v62 = vld [vmem:[#allocation1] sm:$0xff]  ;;  %v1779_v46 = vpack.c.bf16 %v7298_v32, %v7298_v32  ;;  %v1778_v2 = vpack.c.bf16 %v7296_v40, %v7296_v40 }
 0x2c7   : > { %2344 = vst [vmem:[#allocation1] ss:$9 sm:$0xff] %v2211_v51  ;;  %v2219_v51 = vrot.slane %v1913_v47, 5 }
 0x2c8   : > { %2345 = vst [vmem:[#allocation1 + $0x1] ss:$9 sm:$0xff] %v2212_v17  ;;  %v2128_v59 = vunpack.c.l.b16 %v1779_v46  ;;  %v2127_v54 = vunpack.c.l.b16 %v1778_v2  ;;  %v1936_v17 = vpop.f32.mrf.mxu2  ;;  %v1915_v46 = vpop.f32.mrf.mxu1 }
 0x2c9   : > { %2346 = vst [vmem:[#allocation1 + $0x2] ss:$9 sm:$0xff] %v2213_v42  ;;  %v2221_v42 = vrot.slane %v1913_v47, 7  ;;  %v2225_v2 = vrot.slane %v1936_v17, 4 }
 0x2ca   : > { %2347 = vst [vmem:[#allocation1 + $0x3] ss:$9 sm:$0xff] %v2214_v23  ;;  %v2129_v55 = vpack.c.b16 %v2128_v59, %v2127_v54  ;;  %v2222_v23 = vrot.slane %v1936_v17, 1  ;;  %v2226_v59 = vrot.slane %v1936_v17, 5  ;;  %v2227_v54 = vrot.slane %v1936_v17, 6 }
 0x2cb   : > { %2348 = vst [vmem:[#allocation1 + $0x4] ss:$9 sm:$0xff] %v1892_v26  ;;  %v2223_v26 = vrot.slane %v1936_v17, 2 }
 0x2cc   : > { %2349 = vst [vmem:[#allocation1 + $0x5] ss:$9 sm:$0xff] %v1913_v47  ;;  %6279 = vmatmul.msk.bf16.vlgmr.msra.gmra.mxu0 %vm361_vm0, %v2129_v55  ;;  %v2228_v55 = vrot.slane %v1936_v17, 7  ;;  %v1959_v47 = vpop.f32.mrf.mxu3 }
 0x2cd   : > { %2350 = vst [vmem:[#allocation1 + $0x6] ss:$9 sm:$0xff] %v2215_v56  ;;  %v2224_v56 = vrot.slane %v1936_v17, 3 }
 0x2ce   : > { %2351 = vst [vmem:[#allocation1 + $0x7] ss:$9 sm:$0xff] %v2216_v15 }
 0x2d5   : > { %v7305_v10 = vld [vmem:[#allocation1] sm:$0xff] }
 0x2d6   : > { %2353 = vst [vmem:[#allocation1] ss:$9 sm:$0xff] %v2217_v22  ;;  %v1938_v22 = vpop.f32.mrf.mxu2 }
 0x2d7   : > { %2354 = vst [vmem:[#allocation1 + $0x1] ss:$9 sm:$0xff] %v2218_v60  ;;  %v2229_v60 = vrot.slane %v1959_v47, 1 }
 0x2d8   : > { %2355 = vst [vmem:[#allocation1 + $0x2] ss:$9 sm:$0xff] %v2219_v51  ;;  %v2230_v51 = vrot.slane %v1959_v47, 2 }
 0x2d9   : > { %2356 = vst [vmem:[#allocation1 + $0x3] ss:$9 sm:$0xff] %v2220_v8 }
 0x2da   : > { %2357 = vst [vmem:[#allocation1 + $0x4] ss:$9 sm:$0xff] %v2221_v42  ;;  %v2231_v42 = vrot.slane %v1959_v47, 3 }
 0x2db   : > { %2358 = vst [vmem:[#allocation1 + $0x5] ss:$9 sm:$0xff] %v1915_v46  ;;  %v2233_v46 = vrot.slane %v1959_v47, 5 }
 0x2dc   : > { %2359 = vst [vmem:[#allocation1 + $0x6] ss:$9 sm:$0xff] %v1936_v17  ;;  %v2235_v17 = vrot.slane %v1959_v47, 7 }
 0x2dd   : > { %2360 = vst [vmem:[#allocation1 + $0x7] ss:$9 sm:$0xff] %v2222_v23  ;;  %v2232_v23 = vrot.slane %v1959_v47, 4 }
 0x2e4   : > { %v7307_v15 = vld [vmem:[#allocation1] sm:$0xff] }
 0x2e5   : > { %2362 = vst [vmem:[#allocation1] ss:$9 sm:$0xff] %v2223_v26  ;;  %v2234_v26 = vrot.slane %v1959_v47, 6 }
 0x2e6   : > { %2363 = vst [vmem:[#allocation1 + $0x1] ss:$9 sm:$0xff] %v2224_v56  ;;  %v1961_v56 = vpop.f32.mrf.mxu3 }
 0x2e7   : > { %2364 = vst [vmem:[#allocation1 + $0x2] ss:$9 sm:$0xff] %v2225_v2  ;;  %v1982_v2 = vpop.f32.mrf.mxu1 }
 0x2e8   : > { %2365 = vst [vmem:[#allocation1 + $0x3] ss:$9 sm:$0xff] %v2226_v59 }
 0x2e9   : > { %2366 = vst [vmem:[#allocation1 + $0x4] ss:$9 sm:$0xff] %v2227_v54  ;;  %v2236_v54 = vrot.slane %v1982_v2, 1 }
 0x2ea   : > { %2367 = vst [vmem:[#allocation1 + $0x5] ss:$9 sm:$0xff] %v2228_v55  ;;  %v2237_v55 = vrot.slane %v1982_v2, 2 }
 0x2eb   : > { %2368 = vst [vmem:[#allocation1 + $0x6] ss:$9 sm:$0xff] %v1938_v22  ;;  %v2238_v22 = vrot.slane %v1982_v2, 3 }
 0x2ec   : > { %2369 = vst [vmem:[#allocation1 + $0x7] ss:$9 sm:$0xff] %v1959_v47  ;;  %v2242_v47 = vrot.slane %v1982_v2, 7 }
 0x2f3   : > { %v7309_v8 = vld [vmem:[#allocation1] sm:$0xff] }
 0x2f4   : > { %2371 = vst [vmem:[#allocation1] ss:$9 sm:$0xff] %v2229_v60  ;;  %v2239_v60 = vrot.slane %v1982_v2, 4 }
 0x2f5   : > { %2372 = vst [vmem:[#allocation1 + $0x1] ss:$9 sm:$0xff] %v2230_v51  ;;  %v2240_v51 = vrot.slane %v1982_v2, 5 }
 0x2f6   : > { %2373 = vst [vmem:[#allocation1 + $0x2] ss:$9 sm:$0xff] %v2231_v42  ;;  %v2241_v42 = vrot.slane %v1982_v2, 6 }
 0x2f7   : > { %2374 = vst [vmem:[#allocation1 + $0x3] ss:$9 sm:$0xff] %v2232_v23  ;;  %v2005_v23 = vpop.f32.mrf.mxu2 }
 0x2f8   : > { %2375 = vst [vmem:[#allocation1 + $0x4] ss:$9 sm:$0xff] %v2233_v46  ;;  %v2243_v46 = vrot.slane %v2005_v23, 1  ;;  %v2245_v11 = vrot.slane %v2005_v23, 3  ;;  %v2246_v45 = vrot.slane %v2005_v23, 4 }
 0x2f9   : > { %2376 = vst [vmem:[#allocation1 + $0x5] ss:$9 sm:$0xff] %v2234_v26 }
 0x2fa   : > { %2377 = vst [vmem:[#allocation1 + $0x6] ss:$9 sm:$0xff] %v2235_v17  ;;  %v1984_v17 = vpop.f32.mrf.mxu1 }
 0x2fb   : > { %2378 = vst [vmem:[#allocation1 + $0x7] ss:$9 sm:$0xff] %v1961_v56  ;;  %v2244_v56 = vrot.slane %v2005_v23, 2 }
 0x302   : > { %v7311_v59 = vld [vmem:[#allocation1] sm:$0xff] }
 0x303   : > { %2380 = vst [vmem:[#allocation1] ss:$9 sm:$0xff] %v1982_v2  ;;  %v2028_v2 = vpop.f32.mrf.mxu3 }
 0x304   : > { %2381 = vst [vmem:[#allocation1 + $0x1] ss:$9 sm:$0xff] %v2236_v54  ;;  %v2247_v54 = vrot.slane %v2005_v23, 5  ;;  %v2253_v29 = vrot.slane %v2028_v2, 4  ;;  %v2254_v7 = vrot.slane %v2028_v2, 5 }
 0x305   : > { %2382 = vst [vmem:[#allocation1 + $0x2] ss:$9 sm:$0xff] %v2237_v55  ;;  %v2248_v55 = vrot.slane %v2005_v23, 6 }
 0x306   : > { %2383 = vst [vmem:[#allocation1 + $0x3] ss:$9 sm:$0xff] %v2238_v22  ;;  %v2249_v22 = vrot.slane %v2005_v23, 7 }
 0x307   : > { %2384 = vst [vmem:[#allocation1 + $0x4] ss:$9 sm:$0xff] %v2239_v60 }
 0x308   : > { %2385 = vst [vmem:[#allocation1 + $0x5] ss:$9 sm:$0xff] %v2240_v51  ;;  %v2250_v51 = vrot.slane %v2028_v2, 1 }
 0x309   : > { %2386 = vst [vmem:[#allocation1 + $0x6] ss:$9 sm:$0xff] %v2241_v42  ;;  %v2007_v42 = vpop.f32.mrf.mxu2 }
 0x30a   : > { %2387 = vst [vmem:[#allocation1 + $0x7] ss:$9 sm:$0xff] %v2242_v47  ;;  %v2251_v47 = vrot.slane %v2028_v2, 2 }
 0x311   : > { %v7313_v26 = vld [vmem:[#allocation1] sm:$0xff] }
 0x312   : > { %2389 = vst [vmem:[#allocation1] ss:$9 sm:$0xff] %v1984_v17  ;;  %v2252_v17 = vrot.slane %v2028_v2, 3 }
 0x313   : > { %2390 = vst [vmem:[#allocation1 + $0x1] ss:$9 sm:$0xff] %v2005_v23 }
 0x314   : > { %2391 = vst [vmem:[#allocation1 + $0x2] ss:$9 sm:$0xff] %v2243_v46  ;;  %v2256_v46 = vrot.slane %v2028_v2, 7 }
 0x315   : > { %2392 = vst [vmem:[#allocation1 + $0x3] ss:$9 sm:$0xff] %v2244_v56 }
 0x316   : > { %2393 = vst [vmem:[#allocation1 + $0x4] ss:$9 sm:$0xff] %v2245_v11  ;;  %v2255_v11 = vrot.slane %v2028_v2, 6 }
 0x317   : > { %2394 = vst [vmem:[#allocation1 + $0x5] ss:$9 sm:$0xff] %v2246_v45  ;;  %v2051_v45 = vpop.f32.mrf.mxu0 }
 0x318   : > { %2395 = vst [vmem:[#allocation1 + $0x6] ss:$9 sm:$0xff] %v2247_v54  ;;  %v2257_v56 = vrot.slane %v2051_v45, 1  ;;  %v2030_v54 = vpop.f32.mrf.mxu3 }
 0x319   : > { %2396 = vst [vmem:[#allocation1 + $0x7] ss:$9 sm:$0xff] %v2248_v55  ;;  %v2258_v55 = vrot.slane %v2051_v45, 2 }
 0x320   : > { %v7315_v60 = vld [vmem:[#allocation1] sm:$0xff] }
 0x321   : > { %2398 = vst [vmem:[#allocation1] ss:$9 sm:$0xff] %v2249_v22  ;;  %v2259_v22 = vrot.slane %v2051_v45, 3 }
 0x322   : > { %2399 = vst [vmem:[#allocation1 + $0x1] ss:$9 sm:$0xff] %v2007_v42  ;;  %v2260_v42 = vrot.slane %v2051_v45, 4 }
 0x323   : > { %2400 = vst [vmem:[#allocation1 + $0x2] ss:$9 sm:$0xff] %v2028_v2  ;;  %v2263_v2 = vrot.slane %v2051_v45, 7 }
 0x324   : > { %2401 = vst [vmem:[#allocation1 + $0x3] ss:$9 sm:$0xff] %v2250_v51  ;;  %v2262_v51 = vrot.slane %v2051_v45, 6 }
 0x325   : > { %2402 = vst [vmem:[#allocation1 + $0x4] ss:$9 sm:$0xff] %v2251_v47 }
 0x326   : > { %2403 = vst [vmem:[#allocation1 + $0x5] ss:$9 sm:$0xff] %v2252_v17 }
 0x327   : > { %2404 = vst [vmem:[#allocation1 + $0x6] ss:$9 sm:$0xff] %v2253_v29  ;;  %v2261_v29 = vrot.slane %v2051_v45, 5 }
 0x328   : > { %2405 = vst [vmem:[#allocation1 + $0x7] ss:$9 sm:$0xff] %v2254_v7  ;;  %v2074_v7 = vpop.f32.mrf.mxu1 }
 0x329   : > { %v2264_v17 = vrot.slane %v2074_v7, 1  ;;  %v2269_v39 = vrot.slane %v2074_v7, 6 }
 0x32f   : > { %v7317_v23 = vld [vmem:[#allocation1] sm:$0xff] }
 0x330   : > { %2407 = vst [vmem:[#allocation1] ss:$9 sm:$0xff] %v2255_v11  ;;  %v2053_v11 = vpop.f32.mrf.mxu0 }
 0x331   : > { %2408 = vst [vmem:[#allocation1 + $0x1] ss:$9 sm:$0xff] %v2256_v46  ;;  %v2265_v46 = vrot.slane %v2074_v7, 2 }
 0x332   : > { %2409 = vst [vmem:[#allocation1 + $0x2] ss:$9 sm:$0xff] %v2030_v54  ;;  %v2266_v54 = vrot.slane %v2074_v7, 3 }
 0x333   : > { %2410 = vst [vmem:[#allocation1 + $0x3] ss:$9 sm:$0xff] %v2051_v45  ;;  %v2270_v45 = vrot.slane %v2074_v7, 7 }
 0x334   : > { %2411 = vst [vmem:[#allocation1 + $0x4] ss:$9 sm:$0xff] %v2257_v56  ;;  %v2267_v56 = vrot.slane %v2074_v7, 4 }
 0x335   : > { %2412 = vst [vmem:[#allocation1 + $0x5] ss:$9 sm:$0xff] %v2258_v55  ;;  %v2268_v55 = vrot.slane %v2074_v7, 5 }
 0x336   : > { %2413 = vst [vmem:[#allocation1 + $0x6] ss:$9 sm:$0xff] %v2259_v22 }
 0x337   : > { %2414 = vst [vmem:[#allocation1 + $0x7] ss:$9 sm:$0xff] %v2260_v42  ;;  %v2097_v42 = vpop.f32.mrf.mxu2 }
 0x338   : > { %v2276_v57 = vrot.slane %v2097_v42, 6 }
 0x33e   : > { %v7319_v47 = vld [vmem:[#allocation1] sm:$0xff]  ;;  %v2120_v0 = vpop.f32.mrf.mxu3 }
 0x33f   : > { %2416 = vst [vmem:[#allocation1] ss:$9 sm:$0xff] %v2261_v29  ;;  %v2271_v29 = vrot.slane %v2097_v42, 1 }
 0x340   : > { %2417 = vst [vmem:[#allocation1 + $0x1] ss:$9 sm:$0xff] %v2262_v51  ;;  %v2076_v51 = vpop.f32.mrf.mxu1 }
 0x341   : > { %2418 = vst [vmem:[#allocation1 + $0x2] ss:$9 sm:$0xff] %v2263_v2  ;;  %v2272_v2 = vrot.slane %v2097_v42, 2 }
 0x342   : > { %2419 = vst [vmem:[#allocation1 + $0x3] ss:$9 sm:$0xff] %v2053_v11  ;;  %v2274_v11 = vrot.slane %v2097_v42, 4 }
 0x343   : > { %2420 = vst [vmem:[#allocation1 + $0x4] ss:$9 sm:$0xff] %v2074_v7  ;;  %v2277_v7 = vrot.slane %v2097_v42, 7 }
 0x344   : > { %2421 = vst [vmem:[#allocation1 + $0x5] ss:$9 sm:$0xff] %v2264_v17  ;;  %v2273_v17 = vrot.slane %v2097_v42, 3 }
 0x345   : > { %2422 = vst [vmem:[#allocation1 + $0x6] ss:$9 sm:$0xff] %v2265_v46 }
 0x346   : > { %2423 = vst [vmem:[#allocation1 + $0x7] ss:$9 sm:$0xff] %v2266_v54  ;;  %v2275_v54 = vrot.slane %v2097_v42, 5 }
 0x34d   : > { %v7321_v22 = vld [vmem:[#allocation1] sm:$0xff] }
 0x34e   : > { %2425 = vst [vmem:[#allocation1] ss:$9 sm:$0xff] %v2267_v56  ;;  %v2099_v56 = vpop.f32.mrf.mxu2 }
 0x34f   : > { %2426 = vst [vmem:[#allocation1 + $0x1] ss:$9 sm:$0xff] %v2268_v55  ;;  %v2279_v55 = vrot.slane %v2120_v0, 2 }
 0x350   : > { %2427 = vst [vmem:[#allocation1 + $0x2] ss:$9 sm:$0xff] %v2269_v39  ;;  %v2278_v39 = vrot.slane %v2120_v0, 1 }
 0x351   : > { %2428 = vst [vmem:[#allocation1 + $0x3] ss:$9 sm:$0xff] %v2270_v45  ;;  %v2280_v45 = vrot.slane %v2120_v0, 3 }
 0x352   : > { %2429 = vst [vmem:[#allocation1 + $0x4] ss:$9 sm:$0xff] %v2076_v51  ;;  %v2281_v51 = vrot.slane %v2120_v0, 4 }
 0x353   : > { %2430 = vst [vmem:[#allocation1 + $0x5] ss:$9 sm:$0xff] %v2097_v42  ;;  %v2122_v42 = vpop.f32.mrf.mxu3 }
 0x354   : > { %2431 = vst [vmem:[#allocation1 + $0x6] ss:$9 sm:$0xff] %v2271_v29 }
 0x355   : > { %2432 = vst [vmem:[#allocation1 + $0x7] ss:$9 sm:$0xff] %v2272_v2  ;;  %v2282_v2 = vrot.slane %v2120_v0, 5 }
 0x35c   : > { %v7323_v46 = vld [vmem:[#allocation1] sm:$0xff] }
 0x35d   : > { %2434 = vst [vmem:[#allocation1] ss:$9 sm:$0xff] %v2273_v17  ;;  %v2283_v17 = vrot.slane %v2120_v0, 6 }
 0x35e   : > { %2435 = vst [vmem:[#allocation1 + $0x1] ss:$9 sm:$0xff] %v2274_v11  ;;  %v2284_v11 = vrot.slane %v2120_v0, 7 }
 0x35f   : > { %2436 = vst [vmem:[#allocation1 + $0x2] ss:$9 sm:$0xff] %v2275_v54 }
 0x360   : > { %2437 = vst [vmem:[#allocation1 + $0x3] ss:$9 sm:$0xff] %v2276_v57  ;;  %v2143_v57 = vpop.f32.mrf.mxu0 }
 0x361   : > { %2438 = vst [vmem:[#allocation1 + $0x4] ss:$9 sm:$0xff] %v2277_v7  ;;  %v2291_v54 = vrot.slane %v2143_v57, 7  ;;  %v2285_v7 = vrot.slane %v2143_v57, 1  ;;  %v2287_v19 = vrot.slane %v2143_v57, 3 }
 0x362   : > { %2439 = vst [vmem:[#allocation1 + $0x5] ss:$9 sm:$0xff] %v2099_v56  ;;  %v2286_v56 = vrot.slane %v2143_v57, 2 }
 0x363   : > { %2440 = vst [vmem:[#allocation1 + $0x6] ss:$9 sm:$0xff] %v2120_v0  ;;  %v2290_v0 = vrot.slane %v2143_v57, 6 }
 0x364   : > { %2441 = vst [vmem:[#allocation1 + $0x7] ss:$9 sm:$0xff] %v2278_v39 }
 0x36b   : > { %v7325_v29 = vld [vmem:[#allocation1] sm:$0xff] }
 0x36c   : > { %2443 = vst [vmem:[#allocation1] ss:$9 sm:$0xff] %v2279_v55  ;;  %v2288_v55 = vrot.slane %v2143_v57, 4 }
 0x36d   : > { %2444 = vst [vmem:[#allocation1 + $0x1] ss:$9 sm:$0xff] %v2280_v45  ;;  %v2289_v45 = vrot.slane %v2143_v57, 5 }
 0x36e   : > { %2445 = vst [vmem:[#allocation1 + $0x2] ss:$9 sm:$0xff] %v2281_v51  ;;  %v2145_v51 = vpop.f32.mrf.mxu0 }
 0x36f   : > { %2446 = vst [vmem:[#allocation1 + $0x3] ss:$9 sm:$0xff] %v2282_v2  ;;  %v2560_v2 = vrot.slane %v6967_v34, 1 }
 0x370   : > { %2447 = vst [vmem:[#allocation1 + $0x4] ss:$9 sm:$0xff] %v2283_v17 }
 0x371   : > { %2448 = vst [vmem:[#allocation1 + $0x5] ss:$9 sm:$0xff] %v2284_v11  ;;  %v2561_v11 = vrot.slane %v6967_v34, 2 }
 0x372   : > { %2450 = vst [vmem:[#allocation1 + $0x7] ss:$9 sm:$0xff] %v2143_v57  ;;  %v2565_v57 = vrot.slane %v6967_v34, 6 }
 0x373   : > { %2449 = vst [vmem:[#allocation1 + $0x6] ss:$9 sm:$0xff] %v2122_v42  ;;  %v2562_v42 = vrot.slane %v6967_v34, 3 }
 0x37a   : > { %v7327_v39 = vld [vmem:[#allocation1] sm:$0xff] }
 0x37b   : > { %2458 = vst [vmem:[#allocation1 + $0x6] ss:$9 sm:$0xff] %v2291_v54  ;;  %v2563_v54 = vrot.slane %v6967_v34, 4 }
 0x37c   : > { %2452 = vst [vmem:[#allocation1] ss:$9 sm:$0xff] %v2285_v7  ;;  %v2566_v7 = vrot.slane %v6967_v34, 7 }
 0x37d   : > { %2453 = vst [vmem:[#allocation1 + $0x1] ss:$9 sm:$0xff] %v2286_v56 }
 0x37e   : > { %2454 = vst [vmem:[#allocation1 + $0x2] ss:$9 sm:$0xff] %v2287_v19  ;;  %v2564_v19 = vrot.slane %v6967_v34, 5 }
 0x37f   : > { %2455 = vst [vmem:[#allocation1 + $0x3] ss:$9 sm:$0xff] %v2288_v55  ;;  %v2567_v55 = vrot.slane %v7042_v63, 1 }
 0x380   : > { %2456 = vst [vmem:[#allocation1 + $0x4] ss:$9 sm:$0xff] %v2289_v45  ;;  %v2568_v45 = vrot.slane %v7042_v63, 2 }
 0x381   : > { %2457 = vst [vmem:[#allocation1 + $0x5] ss:$9 sm:$0xff] %v2290_v0  ;;  %v2569_v0 = vrot.slane %v7042_v63, 3 }
 0x382   : > { %2459 = vst [vmem:[#allocation1 + $0x7] ss:$9 sm:$0xff] %v2145_v51  ;;  %v2570_v51 = vrot.slane %v7042_v63, 4 }
 0x389   : > { %v7330_v17 = vld [vmem:[#allocation1] sm:$0xff] }
 0x38a   : > { %2672 = vst [vmem:[#allocation1] ss:$9 sm:$0xff] %v6967_v34  ;;  %v2571_v34 = vrot.slane %v7042_v63, 5 }
 0x38b   : > { %2674 = vst [vmem:[#allocation1 + $0x1] ss:$9 sm:$0xff] %v2560_v2  ;;  %v2572_v2 = vrot.slane %v7042_v63, 6 }
 0x38c   : > { %2676 = vst [vmem:[#allocation1 + $0x2] ss:$9 sm:$0xff] %v2561_v11 }
 0x38d   : > { %2678 = vst [vmem:[#allocation1 + $0x3] ss:$9 sm:$0xff] %v2562_v42  ;;  %v2574_v42 = vrot.slane %v7096_v61, 1 }
 0x38e   : > { %2680 = vst [vmem:[#allocation1 + $0x4] ss:$9 sm:$0xff] %v2563_v54  ;;  %v2575_v54 = vrot.slane %v7096_v61, 2 }
 0x38f   : > { %2682 = vst [vmem:[#allocation1 + $0x5] ss:$9 sm:$0xff] %v2564_v19  ;;  %v2576_v19 = vrot.slane %v7096_v61, 3 }
 0x390   : > { %2684 = vst [vmem:[#allocation1 + $0x6] ss:$9 sm:$0xff] %v2565_v57  ;;  %v2577_v57 = vrot.slane %v7096_v61, 4 }
 0x391   : > { %2686 = vst [vmem:[#allocation1 + $0x7] ss:$9 sm:$0xff] %v2566_v7  ;;  %v2578_v7 = vrot.slane %v7096_v61, 5 }
 0x398   : > { %v7339_v56 = vld [vmem:[#allocation1] sm:$0xff] }
 0x399   : > { %2688 = vst [vmem:[#allocation1] ss:$9 sm:$0xff] %v6964_v20  ;;  %v2573_v20 = vrot.slane %v7042_v63, 7 }
 0x39a   : > { %2689 = vst [vmem:[#allocation1 + $0x1] ss:$9 sm:$0xff] %v7042_v63  ;;  %v2579_v63 = vrot.slane %v7096_v61, 6 }
 0x39b   : > { %2690 = vst [vmem:[#allocation1 + $0x2] ss:$9 sm:$0xff] %v2567_v55  ;;  %v2580_v55 = vrot.slane %v7096_v61, 7 }
 0x39c   : > { %2691 = vst [vmem:[#allocation1 + $0x3] ss:$9 sm:$0xff] %v2568_v45  ;;  %v2581_v45 = vrot.slane %v7012_v35, 1 }
 0x39d   : > { %2692 = vst [vmem:[#allocation1 + $0x4] ss:$9 sm:$0xff] %v2569_v0  ;;  %v2582_v0 = vrot.slane %v7012_v35, 2 }
 0x39e   : > { %2693 = vst [vmem:[#allocation1 + $0x5] ss:$9 sm:$0xff] %v2570_v51  ;;  %v2583_v51 = vrot.slane %v7012_v35, 3 }
 0x39f   : > { %2694 = vst [vmem:[#allocation1 + $0x6] ss:$9 sm:$0xff] %v2571_v34  ;;  %v2584_v34 = vrot.slane %v7012_v35, 4 }
 0x3a0   : > { %2695 = vst [vmem:[#allocation1 + $0x7] ss:$9 sm:$0xff] %v2572_v2  ;;  %v2586_v2 = vrot.slane %v7012_v35, 6 }
 0x3a7   : > { %v7350_v11 = vld [vmem:[#allocation1] sm:$0xff] }
 0x3a8   : > { %2697 = vst [vmem:[#allocation1] ss:$9 sm:$0xff] %v2573_v20 }
 0x3a9   : > { %2698 = vst [vmem:[#allocation1 + $0x1] ss:$9 sm:$0xff] %v7046_v27 }
 0x3aa   : > { %2699 = vst [vmem:[#allocation1 + $0x2] ss:$9 sm:$0xff] %v7096_v61  ;;  %v2585_v61 = vrot.slane %v7012_v35, 5 }
 0x3ab   : > { %2700 = vst [vmem:[#allocation1 + $0x3] ss:$9 sm:$0xff] %v2574_v42  ;;  %v2588_v42 = vrot.slane %v7075_v48, 1 }
 0x3ac   : > { %2701 = vst [vmem:[#allocation1 + $0x4] ss:$9 sm:$0xff] %v2575_v54  ;;  %v2589_v54 = vrot.slane %v7075_v48, 2 }
 0x3ad   : > { %2702 = vst [vmem:[#allocation1 + $0x5] ss:$9 sm:$0xff] %v2576_v19  ;;  %v2590_v19 = vrot.slane %v7075_v48, 3 }
 0x3ae   : > { %2703 = vst [vmem:[#allocation1 + $0x6] ss:$9 sm:$0xff] %v2577_v57  ;;  %v2591_v57 = vrot.slane %v7075_v48, 4 }
 0x3af   : > { %2704 = vst [vmem:[#allocation1 + $0x7] ss:$9 sm:$0xff] %v2578_v7 }
 0x3b6   : > { %v7361_v27 = vld [vmem:[#allocation1] sm:$0xff] }
 0x3b7   : > { %2706 = vst [vmem:[#allocation1] ss:$9 sm:$0xff] %v2579_v63  ;;  %v2593_v63 = vrot.slane %v7075_v48, 6 }
 0x3b8   : > { %2707 = vst [vmem:[#allocation1 + $0x1] ss:$9 sm:$0xff] %v2580_v55  ;;  %v2486_v55 = vpack.c.bf16 %v7325_v29, %v7323_v46  ;;  %v2597_v46 = vrot.slane %v7129_v14, 3  ;;  %v2598_v29 = vrot.slane %v7129_v14, 4 }
 0x3b9   : > { %2708 = vst [vmem:[#allocation1 + $0x2] ss:$9 sm:$0xff] %v7099_v41  ;;  %v2587_v41 = vrot.slane %v7012_v35, 7 }
 0x3ba   : > { %2709 = vst [vmem:[#allocation1 + $0x3] ss:$9 sm:$0xff] %v7012_v35  ;;  %v2592_v35 = vrot.slane %v7075_v48, 5  ;;  %2500 = vmatpush.bf16.msra.mxu1 %v2486_v55  ;;  %v2623_v55 = vrot.slane %v7188_v53, 1 }
 0x3bb   : > { %2710 = vst [vmem:[#allocation1 + $0x4] ss:$9 sm:$0xff] %v2581_v45  ;;  %v2595_v45 = vrot.slane %v7129_v14, 1 }
 0x3bc   : > { %2711 = vst [vmem:[#allocation1 + $0x5] ss:$9 sm:$0xff] %v2582_v0  ;;  %v2596_v0 = vrot.slane %v7129_v14, 2 }
 0x3bd   : > { %2712 = vst [vmem:[#allocation1 + $0x6] ss:$9 sm:$0xff] %v2583_v51  ;;  %v2484_v51 = vpack.c.bf16 %v7317_v23, %v7315_v60  ;;  %v2482_v60 = vpack.c.bf16 %v7309_v8, %v7307_v15  ;;  %v2487_v23 = vpack.c.bf16 %v7330_v17, %v7327_v39  ;;  %v2603_v15 = vrot.slane %v7120_v3, 2 }
 0x3be   : > { %2713 = vst [vmem:[#allocation1 + $0x7] ss:$9 sm:$0xff] %v2584_v34  ;;  %v2599_v34 = vrot.slane %v7129_v14, 5  ;;  %v2604_v8 = vrot.slane %v7120_v3, 3  ;;  %v2606_v39 = vrot.slane %v7120_v3, 5  ;;  %v2610_v17 = vrot.slane %v7163_v31, 2 }
 0x3bf   : > { %2521 = vmatpush.bf16.msra.mxu2 %v2487_v23  ;;  %v2637_v23 = vrot.slane %v7219_v4, 1 }
 0x3c5   : > { %v7371_v20 = vld [vmem:[#allocation1] sm:$0xff] }
 0x3c6   : > { %2715 = vst [vmem:[#allocation1] ss:$9 sm:$0xff] %v2585_v61  ;;  %v2483_v61 = vpack.c.bf16 %v7313_v26, %v7311_v59  ;;  %v2480_v59 = vpack.c.bf16 %v7284_v28, %v7275_v1  ;;  %v2608_v1 = vrot.slane %v7120_v3, 7  ;;  %v2609_v28 = vrot.slane %v7163_v31, 1 }
 0x3c7   : > { %2716 = vst [vmem:[#allocation1 + $0x1] ss:$9 sm:$0xff] %v2586_v2  ;;  %v2600_v2 = vrot.slane %v7129_v14, 6 }
 0x3c8   : > { %2717 = vst [vmem:[#allocation1 + $0x2] ss:$9 sm:$0xff] %v2587_v41  ;;  %v2613_v41 = vrot.slane %v7163_v31, 5 }
 0x3c9   : > { %2718 = vst [vmem:[#allocation1 + $0x3] ss:$9 sm:$0xff] %v7015_v52  ;;  %v2594_v52 = vrot.slane %v7075_v48, 7 }
 0x3ca   : > { %2719 = vst [vmem:[#allocation1 + $0x4] ss:$9 sm:$0xff] %v7075_v48  ;;  %v2485_v48 = vpack.c.bf16 %v7321_v22, %v7319_v47  ;;  %v2601_v47 = vrot.slane %v7129_v14, 7  ;;  %v2602_v22 = vrot.slane %v7120_v3, 1 }
 0x3cb   : > { %2720 = vst [vmem:[#allocation1 + $0x5] ss:$9 sm:$0xff] %v2588_v42  ;;  %v2616_v42 = vrot.slane %v7178_v21, 1 }
 0x3cc   : > { %2721 = vst [vmem:[#allocation1 + $0x6] ss:$9 sm:$0xff] %v2589_v54  ;;  %2501 = vmatpush.bf16.msra.mxu1 %v2485_v48  ;;  %v2626_v48 = vrot.slane %v7188_v53, 4 }
 0x3cd   : > { %2722 = vst [vmem:[#allocation1 + $0x7] ss:$9 sm:$0xff] %v2590_v19  ;;  %v2617_v19 = vrot.slane %v7178_v21, 2 }
 0x3d0   : > { %2502 = vmatpush.bf16.msra.mxu1 %v2484_v51  ;;  %v2628_v51 = vrot.slane %v7188_v53, 6 }
 0x3d4   : > { %v7381_v7 = vld [vmem:[#allocation1] sm:$0xff]  ;;  %2503 = vmatpush.bf16.msra.mxu1 %v2483_v61  ;;  %v2632_v61 = vrot.slane %v7203_v24, 3 }
 0x3d5   : > { %2724 = vst [vmem:[#allocation1] ss:$9 sm:$0xff] %v2591_v57  ;;  %v2618_v57 = vrot.slane %v7178_v21, 3 }
 0x3d6   : > { %2725 = vst [vmem:[#allocation1 + $0x1] ss:$9 sm:$0xff] %v2592_v35  ;;  %v2619_v35 = vrot.slane %v7178_v21, 4 }
 0x3d7   : > { %2726 = vst [vmem:[#allocation1 + $0x2] ss:$9 sm:$0xff] %v2593_v63  ;;  %v2621_v63 = vrot.slane %v7178_v21, 6 }
 0x3d8   : > { %2727 = vst [vmem:[#allocation1 + $0x3] ss:$9 sm:$0xff] %v2594_v52  ;;  %2504 = vmatpush.bf16.msra.mxu1 %v2482_v60  ;;  %v2636_v60 = vrot.slane %v7203_v24, 7 }
 0x3d9   : > { %2728 = vst [vmem:[#allocation1 + $0x4] ss:$9 sm:$0xff] %v7072_v18 }
 0x3da   : > { %2729 = vst [vmem:[#allocation1 + $0x5] ss:$9 sm:$0xff] %v7129_v14  ;;  %v2481_v14 = vpack.c.bf16 %v7305_v10, %v7294_v62  ;;  %v2479_v62 = vpack.c.bf16 %v7259_v5, %v7235_v58  ;;  %v2607_v10 = vrot.slane %v7120_v3, 6  ;;  %v2611_v5 = vrot.slane %v7163_v31, 3 }
 0x3db   : > { %2730 = vst [vmem:[#allocation1 + $0x6] ss:$9 sm:$0xff] %v2595_v45  ;;  %v2624_v45 = vrot.slane %v7188_v53, 2 }
 0x3dc   : > { %2731 = vst [vmem:[#allocation1 + $0x7] ss:$9 sm:$0xff] %v2596_v0  ;;  %2505 = vmatpush.bf16.msra.mxu1 %v2481_v14  ;;  %v2625_v0 = vrot.slane %v7188_v53, 3  ;;  %v2638_v14 = vrot.slane %v7219_v4, 2 }
 0x3e0   : > { %2506 = vmatpush.bf16.msra.mxu1 %v2480_v59  ;;  %v2639_v59 = vrot.slane %v7219_v4, 3 }
 0x3e3   : > { %v7397_v18 = vld [vmem:[#allocation1] sm:$0xff] }
 0x3e4   : > { %2733 = vst [vmem:[#allocation1] ss:$9 sm:$0xff] %v2597_v46  ;;  %2507 = vmatpush.bf16.msra.mxu1 %v2479_v62  ;;  %v2644_v62 = vrot.slane %v7238_v36, 1 }
 0x3e5   : > { %2734 = vst [vmem:[#allocation1 + $0x1] ss:$9 sm:$0xff] %v2598_v29  ;;  %v2630_v29 = vrot.slane %v7203_v24, 1 }
 0x3e6   : > { %2735 = vst [vmem:[#allocation1 + $0x2] ss:$9 sm:$0xff] %v2599_v34  ;;  %v2631_v34 = vrot.slane %v7203_v24, 2 }
 0x3e7   : > { %2736 = vst [vmem:[#allocation1 + $0x3] ss:$9 sm:$0xff] %v2600_v2  ;;  %v2633_v2 = vrot.slane %v7203_v24, 4 }
 0x3e8   : > { %2737 = vst [vmem:[#allocation1 + $0x4] ss:$9 sm:$0xff] %v2601_v47  ;;  %3475 = vmatpush.bf16.xpose.msrb.mxu1 %v6726_v33  ;;  %v2614_v33 = vrot.slane %v7163_v31, 6  ;;  %v2634_v47 = vrot.slane %v7203_v24, 5 }
 0x3e9   : > { %2738 = vst [vmem:[#allocation1 + $0x5] ss:$9 sm:$0xff] %v7132_v43  ;;  %v2605_v43 = vrot.slane %v7120_v3, 4 }
 0x3ea   : > { %2739 = vst [vmem:[#allocation1 + $0x6] ss:$9 sm:$0xff] %v7120_v3  ;;  %v2612_v3 = vrot.slane %v7163_v31, 4 }
 0x3eb   : > { %2740 = vst [vmem:[#allocation1 + $0x7] ss:$9 sm:$0xff] %v2602_v22 }
 0x3f2   : > { %v7417_v26 = vld [vmem:[#allocation1] sm:$0xff] }
 0x3f3   : > { %2742 = vst [vmem:[#allocation1] ss:$9 sm:$0xff] %v2603_v15  ;;  %v2640_v15 = vrot.slane %v7219_v4, 4 }
 0x3f4   : > { %2743 = vst [vmem:[#allocation1 + $0x1] ss:$9 sm:$0xff] %v2604_v8  ;;  %v2642_v8 = vrot.slane %v7219_v4, 6 }
 0x3f5   : > { %2744 = vst [vmem:[#allocation1 + $0x2] ss:$9 sm:$0xff] %v2605_v43 }
 0x3f6   : > { %2745 = vst [vmem:[#allocation1 + $0x3] ss:$9 sm:$0xff] %v2606_v39  ;;  %v2643_v39 = vrot.slane %v7219_v4, 7 }
 0x3f7   : > { %2746 = vst [vmem:[#allocation1 + $0x4] ss:$9 sm:$0xff] %v2607_v10  ;;  %v2877_v10 = vsel %vm361_vm0, %v7417_v26, 0.0  ;;  %v2648_v26 = vrot.slane %v7238_v36, 5 }
 0x3f8   : > { %2747 = vst [vmem:[#allocation1 + $0x5] ss:$9 sm:$0xff] %v2608_v1 }
 0x3f9   : > { %2748 = vst [vmem:[#allocation1 + $0x6] ss:$9 sm:$0xff] %v7115_v12  ;;  %v2615_v12 = vrot.slane %v7163_v31, 7 }
 0x3fa   : > { %2749 = vst [vmem:[#allocation1 + $0x7] ss:$9 sm:$0xff] %v7163_v31  ;;  %v2620_v31 = vrot.slane %v7178_v21, 5 }
 0x401   : > { %v7430_v58 = vld [vmem:[#allocation1] sm:$0xff] }
 0x402   : > { %2751 = vst [vmem:[#allocation1] ss:$9 sm:$0xff] %v2609_v28  ;;  %v2645_v28 = vrot.slane %v7238_v36, 2 }
 0x403   : > { %2752 = vst [vmem:[#allocation1 + $0x1] ss:$9 sm:$0xff] %v2610_v17  ;;  %v2874_v17 = vsel %vm361_vm0, %v7397_v18, 0.0  ;;  %v2859_v18 = vsel %vm361_vm0, %v7339_v56, 0.0 }
 0x404   : > { %2753 = vst [vmem:[#allocation1 + $0x2] ss:$9 sm:$0xff] %v2611_v5 }
 0x405   : > { %2754 = vst [vmem:[#allocation1 + $0x3] ss:$9 sm:$0xff] %v2612_v3  ;;  %v2649_v3 = vrot.slane %v7238_v36, 6 }
 0x406   : > { %2755 = vst [vmem:[#allocation1 + $0x4] ss:$9 sm:$0xff] %v2613_v41 }
 0x407   : > { %2756 = vst [vmem:[#allocation1 + $0x5] ss:$9 sm:$0xff] %v2614_v33  ;;  %v2650_v33 = vrot.slane %v7238_v36, 7 }
 0x408   : > { %2757 = vst [vmem:[#allocation1 + $0x6] ss:$9 sm:$0xff] %v2615_v12  ;;  %v2651_v12 = vrot.slane %v7270_v50, 1 }
 0x409   : > { %2758 = vst [vmem:[#allocation1 + $0x7] ss:$9 sm:$0xff] %v7160_v6  ;;  %v2622_v6 = vrot.slane %v7178_v21, 7 }
 0x410   : > { %v7439_v54 = vld [vmem:[#allocation1] sm:$0xff] }
 0x411   : > { %2760 = vst [vmem:[#allocation1] ss:$9 sm:$0xff] %v7178_v21  ;;  %v2627_v21 = vrot.slane %v7188_v53, 5 }
 0x412   : > { %2761 = vst [vmem:[#allocation1 + $0x1] ss:$9 sm:$0xff] %v2616_v42  ;;  %v2652_v42 = vrot.slane %v7270_v50, 2 }
 0x413   : > { %2762 = vst [vmem:[#allocation1 + $0x2] ss:$9 sm:$0xff] %v2617_v19  ;;  %v2653_v19 = vrot.slane %v7270_v50, 3 }
 0x414   : > { %2763 = vst [vmem:[#allocation1 + $0x3] ss:$9 sm:$0xff] %v2618_v57  ;;  %v2654_v57 = vrot.slane %v7270_v50, 4 }
 0x415   : > { %2764 = vst [vmem:[#allocation1 + $0x4] ss:$9 sm:$0xff] %v2619_v35 }
 0x416   : > { %2765 = vst [vmem:[#allocation1 + $0x5] ss:$9 sm:$0xff] %v2620_v31  ;;  %v2656_v31 = vrot.slane %v7270_v50, 6 }
 0x417   : > { %2766 = vst [vmem:[#allocation1 + $0x6] ss:$9 sm:$0xff] %v2621_v63  ;;  %v2871_v63 = vsel %vm361_vm0, %v7381_v7, 0.0  ;;  %v2660_v7 = vrot.slane %v7287_v25, 3 }
 0x418   : > { %2767 = vst [vmem:[#allocation1 + $0x7] ss:$9 sm:$0xff] %v2622_v6  ;;  %v2657_v6 = vrot.slane %v7270_v50, 7 }
 0x41f   : > { %v7448_v52 = vld [vmem:[#allocation1] sm:$0xff] }
 0x420   : > { %2769 = vst [vmem:[#allocation1] ss:$9 sm:$0xff] %v7180_v49  ;;  %v2629_v49 = vrot.slane %v7188_v53, 7 }
 0x421   : > { %2770 = vst [vmem:[#allocation1 + $0x1] ss:$9 sm:$0xff] %v7188_v53  ;;  %v2635_v53 = vrot.slane %v7203_v24, 6 }
 0x422   : > { %2771 = vst [vmem:[#allocation1 + $0x2] ss:$9 sm:$0xff] %v2623_v55  ;;  %v2868_v55 = vsel %vm361_vm0, %v7371_v20, 0.0  ;;  %v2664_v20 = vrot.slane %v7287_v25, 7 }
 0x423   : > { %2772 = vst [vmem:[#allocation1 + $0x3] ss:$9 sm:$0xff] %v2624_v45  ;;  %v2659_v45 = vrot.slane %v7287_v25, 2 }
 0x424   : > { %2773 = vst [vmem:[#allocation1 + $0x4] ss:$9 sm:$0xff] %v2625_v0  ;;  %v2661_v0 = vrot.slane %v7287_v25, 4 }
 0x425   : > { %2774 = vst [vmem:[#allocation1 + $0x5] ss:$9 sm:$0xff] %v2626_v48 }
 0x426   : > { %2775 = vst [vmem:[#allocation1 + $0x6] ss:$9 sm:$0xff] %v2627_v21  ;;  %v2662_v21 = vrot.slane %v7287_v25, 5 }
 0x427   : > { %2776 = vst [vmem:[#allocation1 + $0x7] ss:$9 sm:$0xff] %v2628_v51  ;;  %v2883_v51 = vsel %vm361_vm0, %v7439_v54, 0.0  ;;  %v2669_v54 = vrot.slane %v7296_v40, 5 }
 0x42e   : > { %v2777_v46 = vld [vmem:[#allocation1] sm:$0xff] }
 0x42f   : > { %2778 = vst [vmem:[#allocation1] ss:$9 sm:$0xff] %v2629_v49  ;;  %v2889_v22 = vsel %vm361_vm0, %v2777_v46, 0.0  ;;  %v2665_v49 = vrot.slane %v7296_v40, 1  ;;  %v2666_v46 = vrot.slane %v7296_v40, 2 }
 0x430   : > { %2779 = vst [vmem:[#allocation1 + $0x1] ss:$9 sm:$0xff] %v7190_v16  ;;  %2890 = vadd.xlane.f32.xlu2 %v2889_v22 }
 0x431   : > { %2780 = vst [vmem:[#allocation1 + $0x2] ss:$9 sm:$0xff] %v7203_v24 }
 0x432   : > { %2781 = vst [vmem:[#allocation1 + $0x3] ss:$9 sm:$0xff] %v2630_v29 }
 0x433   : > { %2782 = vst [vmem:[#allocation1 + $0x4] ss:$9 sm:$0xff] %v2631_v34  ;;  %v2667_v34 = vrot.slane %v7296_v40, 3 }
 0x434   : > { %2783 = vst [vmem:[#allocation1 + $0x5] ss:$9 sm:$0xff] %v2632_v61  ;;  %v2668_v61 = vrot.slane %v7296_v40, 4 }
 0x435   : > { %2784 = vst [vmem:[#allocation1 + $0x6] ss:$9 sm:$0xff] %v2633_v2  ;;  %v2670_v2 = vrot.slane %v7296_v40, 6 }
 0x436   : > { %2785 = vst [vmem:[#allocation1 + $0x7] ss:$9 sm:$0xff] %v2634_v47  ;;  %v2671_v47 = vrot.slane %v7296_v40, 7 }
 0x43d   : > { %v2786_v16 = vld [vmem:[#allocation1] sm:$0xff] }
 0x43e   : > { %2787 = vst [vmem:[#allocation1] ss:$9 sm:$0xff] %v2635_v53  ;;  %v2892_v24 = vsel %vm361_vm0, %v2786_v16, 0.0  ;;  %v2865_v53 = vsel %vm361_vm0, %v7361_v27, 0.0  ;;  %v2862_v16 = vsel %vm361_vm0, %v7350_v11, 0.0 }
 0x43f   : > { %2788 = vst [vmem:[#allocation1 + $0x1] ss:$9 sm:$0xff] %v2636_v60  ;;  %2893 = vadd.xlane.f32.xlu2 %v2892_v24  ;;  %v6282_v27 = vld [vmem:[%s8944_s3] sm:$0xf] }
 0x440   : > { %2789 = vst [vmem:[#allocation1 + $0x2] ss:$9 sm:$0xff] %v7205_v9  ;;  %v2641_v9 = vrot.slane %v7219_v4, 5 }
 0x441   : > { %2790 = vst [vmem:[#allocation1 + $0x3] ss:$9 sm:$0xff] %v7219_v4  ;;  %v2646_v4 = vrot.slane %v7238_v36, 3 }
 0x442   : > { %2791 = vst [vmem:[#allocation1 + $0x4] ss:$9 sm:$0xff] %v2637_v23 }
 0x443   : > { %2792 = vst [vmem:[#allocation1 + $0x5] ss:$9 sm:$0xff] %v2638_v14 }
 0x444   : > { %2793 = vst [vmem:[#allocation1 + $0x6] ss:$9 sm:$0xff] %v2639_v59 }
 0x445   : > { %2794 = vst [vmem:[#allocation1 + $0x7] ss:$9 sm:$0xff] %v2640_v15 }
 0x447   : > { %2878 = vadd.xlane.f32.xlu2 %v2877_v10 }
 0x44c   : > { %v2795_v43 = vld [vmem:[#allocation1] sm:$0xff] }
 0x44d   : > { %2796 = vst [vmem:[#allocation1] ss:$9 sm:$0xff] %v2641_v9  ;;  %v2895_v1 = vsel %vm361_vm0, %v2795_v43, 0.0 }
 0x44e   : > { %2797 = vst [vmem:[#allocation1 + $0x1] ss:$9 sm:$0xff] %v2642_v8  ;;  %2896 = vadd.xlane.f32.xlu1 %v2895_v1  ;;  %v6365_v8 = vld [vmem:[%s8944_s3 + $0x4] sm:$0xf0] }
 0x44f   : > { %2798 = vst [vmem:[#allocation1 + $0x2] ss:$9 sm:$0xff] %v2643_v39  ;;  %2875 = vadd.xlane.f32.xlu2 %v2874_v17  ;;  %v7548_v11 = vor.u32 %v6365_v8, %v6282_v27  ;;  %v6364_v39 = vld [vmem:[%s8944_s3 + $0x4] sm:$0xf] }
 0x450   : > { %2799 = vst [vmem:[#allocation1 + $0x3] ss:$9 sm:$0xff] %v7221_v13  ;;  %v2647_v13 = vrot.slane %v7238_v36, 4 }
 0x451   : > { %2800 = vst [vmem:[#allocation1 + $0x4] ss:$9 sm:$0xff] %v7238_v36  ;;  %v2886_v36 = vsel %vm361_vm0, %v7448_v52, 0.0  ;;  %v2658_v52 = vrot.slane %v7287_v25, 1  ;;  %2508 = vmatmul.bf16.vlgmr.msra.gmra.mxu1 %v7548_v11 }
 0x452   : > { %2801 = vst [vmem:[#allocation1 + $0x5] ss:$9 sm:$0xff] %v2644_v62  ;;  %v6284_v62 = vld [vmem:[%s8944_s3 + $0x8] sm:$0xf0]  ;;  %3541 = vmatpush.bf16.xpose.msra.mxu1 %v6751_v30 }
 0x453   : > { %2802 = vst [vmem:[#allocation1 + $0x6] ss:$9 sm:$0xff] %v2645_v28  ;;  %v7557_v10 = vor.u32 %v6364_v39, %v6284_v62 }
 0x454   : > { %2803 = vst [vmem:[#allocation1 + $0x7] ss:$9 sm:$0xff] %v2646_v4 }
 0x455   : > { %6288 = vmatmul.msk.bf16.vlgmr.msra.gmra.mxu2 %vm361_vm0, %v7557_v10 }
 0x457   : > { %2860 = vadd.xlane.f32.xlu2 %v2859_v18 }
 0x45b   : > { %v2804_v5 = vld [vmem:[#allocation1] sm:$0xff] }
 0x45c   : > { %2805 = vst [vmem:[#allocation1] ss:$9 sm:$0xff] %v2647_v13  ;;  %v2898_v41 = vsel %vm361_vm0, %v2804_v5, 0.0 }
 0x45d   : > { %2806 = vst [vmem:[#allocation1 + $0x1] ss:$9 sm:$0xff] %v2648_v26  ;;  %2899 = vadd.xlane.f32.xlu1 %v2898_v41 }
 0x45e   : > { %2807 = vst [vmem:[#allocation1 + $0x2] ss:$9 sm:$0xff] %v2649_v3 }
 0x45f   : > { %2808 = vst [vmem:[#allocation1 + $0x3] ss:$9 sm:$0xff] %v2650_v33 }
 0x460   : > { %2809 = vst [vmem:[#allocation1 + $0x4] ss:$9 sm:$0xff] %v7230_v38  ;;  %v2655_v38 = vrot.slane %v7270_v50, 5 }
 0x461   : > { %2810 = vst [vmem:[#allocation1 + $0x5] ss:$9 sm:$0xff] %v7270_v50 }
 0x462   : > { %2811 = vst [vmem:[#allocation1 + $0x6] ss:$9 sm:$0xff] %v2651_v12 }
 0x463   : > { %2812 = vst [vmem:[#allocation1 + $0x7] ss:$9 sm:$0xff] %v2652_v42 }
 0x465   : > { %2887 = vadd.xlane.f32.xlu1 %v2886_v36 }
 0x46a   : > { %v2813_v35 = vld [vmem:[#allocation1] sm:$0xff] }
 0x46b   : > { %2814 = vst [vmem:[#allocation1] ss:$9 sm:$0xff] %v2653_v19  ;;  %v2901_v56 = vsel %vm361_vm0, %v2813_v35, 0.0  ;;  %v9014_v35 = vld [vmem:[#allocation2_spill] sm:$0xff] }
 0x46c   : > { %2815 = vst [vmem:[#allocation1 + $0x1] ss:$9 sm:$0xff] %v2654_v57  ;;  %2902 = vadd.xlane.f32.xlu0 %v2901_v56  ;;  %v9016_v56 = vld [vmem:[#allocation4_spill] sm:$0xff] }
 0x46d   : > { %2816 = vst [vmem:[#allocation1 + $0x2] ss:$9 sm:$0xff] %v2655_v38  ;;  %2872 = vadd.xlane.f32.xlu1 %v2871_v63  ;;  %v9015_v38 = vld [vmem:[#allocation3_spill] sm:$0xff]  ;;  %v6623_v63 = vmov 0  }
 0x46e   : > { %2817 = vst [vmem:[#allocation1 + $0x3] ss:$9 sm:$0xff] %v2656_v31  ;;  %v9017_v31 = vld [vmem:[#allocation5_spill] sm:$0xff]  ;;  %6384 = vset.pattern.permute.xlu0 %v6623_v63  ;;  %6385 = vset.pattern.permute.xlu1 %v6623_v63 }
 0x46f   : > { %2818 = vst [vmem:[#allocation1 + $0x4] ss:$9 sm:$0xff] %v2657_v6 }
 0x470   : > { %2819 = vst [vmem:[#allocation1 + $0x5] ss:$9 sm:$0xff] %v7267_v44  ;;  %v2663_v44 = vrot.slane %v7287_v25, 6 }
 0x471   : > { %2820 = vst [vmem:[#allocation1 + $0x6] ss:$9 sm:$0xff] %v7287_v25 }
 0x472   : > { %2821 = vst [vmem:[#allocation1 + $0x7] ss:$9 sm:$0xff] %v2658_v52 }
 0x475   : > { %2869 = vadd.xlane.f32.xlu1 %v2868_v55 }
 0x479   : > { %v2822_v50 = vld [vmem:[#allocation1] sm:$0xff] }
 0x47a   : > { %2823 = vst [vmem:[#allocation1] ss:$9 sm:$0xff] %v2659_v45  ;;  %v2904_v48 = vsel %vm361_vm0, %v2822_v50, 0.0 }
 0x47b   : > { %2824 = vst [vmem:[#allocation1 + $0x1] ss:$9 sm:$0xff] %v2660_v7  ;;  %2905 = vadd.xlane.f32.xlu0 %v2904_v48 }
 0x47c   : > { %2825 = vst [vmem:[#allocation1 + $0x2] ss:$9 sm:$0xff] %v2661_v0 }
 0x47d   : > { %2826 = vst [vmem:[#allocation1 + $0x3] ss:$9 sm:$0xff] %v2662_v21 }
 0x47e   : > { %2827 = vst [vmem:[#allocation1 + $0x4] ss:$9 sm:$0xff] %v2663_v44 }
 0x47f   : > { %2828 = vst [vmem:[#allocation1 + $0x5] ss:$9 sm:$0xff] %v2664_v20 }
 0x480   : > { %2829 = vst [vmem:[#allocation1 + $0x6] ss:$9 sm:$0xff] %v7282_v37  ;;  %v2880_v37 = vsel %vm361_vm0, %v7430_v58, 0.0 }
 0x481   : > { %2830 = vst [vmem:[#allocation1 + $0x7] ss:$9 sm:$0xff] %v7296_v40 }
 0x483   : > { %2884 = vadd.xlane.f32.xlu0 %v2883_v51 }
 0x488   : > { %v2831_v29 = vld [vmem:[#allocation1] sm:$0xff] }
 0x489   : > { %2832 = vst [vmem:[#allocation1] ss:$9 sm:$0xff] %v2665_v49  ;;  %v2907_v25 = vsel %vm361_vm0, %v2831_v29, 0.0 }
 0x48a   : > { %2833 = vst [vmem:[#allocation1 + $0x1] ss:$9 sm:$0xff] %v2666_v46  ;;  %2908 = vadd.xlane.f32.xlu1 %v2907_v25 }
 0x48b   : > { %2834 = vst [vmem:[#allocation1 + $0x2] ss:$9 sm:$0xff] %v2667_v34  ;;  %2881 = vadd.xlane.f32.xlu0 %v2880_v37 }
 0x48c   : > { %2835 = vst [vmem:[#allocation1 + $0x3] ss:$9 sm:$0xff] %v2668_v61 }
 0x48d   : > { %2836 = vst [vmem:[#allocation1 + $0x4] ss:$9 sm:$0xff] %v2669_v54 }
 0x48e   : > { %2837 = vst [vmem:[#allocation1 + $0x5] ss:$9 sm:$0xff] %v2670_v2 }
 0x48f   : > { %2838 = vst [vmem:[#allocation1 + $0x6] ss:$9 sm:$0xff] %v2671_v47 }
 0x490   : > { %2839 = vst [vmem:[#allocation1 + $0x7] ss:$9 sm:$0xff] %v7298_v32 }
 0x493   : > { %2866 = vadd.xlane.f32.xlu0 %v2865_v53 }
 0x497   : > { %v2840_v58 = vld [vmem:[#allocation1] sm:$0xff] }
 0x498   : > { %v2910_v60 = vsel %vm361_vm0, %v2840_v58, 0.0 }
 0x499   : > { %2911 = vadd.xlane.f32.xlu2 %v2910_v60 }
 0x49b   : > { %2863 = vadd.xlane.f32.xlu0 %v2862_v16 }
 0x4a3   : > { %v2891_v22 = vpop.xlane.xlu2 %2890 }
 0x4b2   : > { %v2894_v59 = vpop.xlane.xlu2 %2893 }
 0x4b3   : > { %v2918_v4 = vpack.c.bf16 %v2894_v59, %v2891_v22 }
 0x4ba   : > { %v2879_v9 = vpop.xlane.xlu2 %2878 }
 0x4c1   : > { %v2897_v23 = vpop.xlane.xlu1 %2896 }
 0x4c2   : > { %v2876_v17 = vpop.xlane.xlu2 %2875 }
 0x4ca   : > { %v2861_v33 = vpop.xlane.xlu2 %2860 }
 0x4ce   : > { %v2509_v46 = vpop.f32.mrf.mxu1 }
 0x4d0   : > { %v2900_v40 = vpop.xlane.xlu1 %2899 }
 0x4d1   : > { %v2919_v43 = vpack.c.bf16 %v2900_v40, %v2897_v23 }
 0x4d8   : > { %v2888_v15 = vpop.xlane.xlu1 %2887  ;;  %v2523_v29 = vpop.f32.mrf.mxu2 }
 0x4d9   : > { %v2524_v58 = vadd.f32 %v2523_v29, %v2509_v46  ;;  %v9018_v29 = vld [vmem:[#allocation6_spill] sm:$0xff] }
 0x4df   : > { %v2903_v14 = vpop.xlane.xlu0 %2902 }
 0x4e0   : > { %v2873_v1 = vpop.xlane.xlu1 %2872  ;;  %v2525_v59 = vpop.f32.mrf.mxu2 }
 0x4e1   : > { %v2915_v41 = vpack.c.bf16 %v2876_v17, %v2873_v1  ;;  %v6592_v17 = vld [vmem:[%s6707_s14 + $0x70] sm:$0xff] }
 0x4e8   : > { %v2870_v3 = vpop.xlane.xlu1 %2869 }
 0x4ee   : > { %v2906_v24 = vpop.xlane.xlu0 %2905 }
 0x4ef   : > { %v2920_v32 = vpack.c.bf16 %v2906_v24, %v2903_v14  ;;  %v2511_v14 = vpop.f32.mrf.mxu1 }
 0x4f1   : > { %2922 = vmatpush.bf16.msra.mxu3 %v2920_v32 }
 0x4f5   : > { %2923 = vmatpush.bf16.msra.mxu3 %v2919_v43 }
 0x4f6   : > { %v2885_v28 = vpop.xlane.xlu0 %2884 }
 0x4f7   : > { %v2917_v13 = vpack.c.bf16 %v2888_v15, %v2885_v28  ;;  %v6590_v28 = vld [vmem:[%s6707_s14 + $0x50] sm:$0xff] }
 0x4f9   : > { %2924 = vmatpush.bf16.msra.mxu3 %v2918_v4  ;;  %v6591_v4 = vld [vmem:[%s8943_s2] sm:$0xff] }
 0x4fd   : > { %2925 = vmatpush.bf16.msra.mxu3 %v2917_v13  ;;  %v2909_v30 = vpop.xlane.xlu1 %2908  ;;  %v6593_v13 = vld [vmem:[%s8943_s2 + $0x8] sm:$0xff] }
 0x4fe   : > { %v2882_v26 = vpop.xlane.xlu0 %2881 }
 0x4ff   : > { %v2916_v5 = vpack.c.bf16 %v2882_v26, %v2879_v9  ;;  %v2526_v9 = vadd.f32 %v2525_v59, %v2511_v14  ;;  %v6594_v26 = vld [vmem:[%s8943_s2 + $0x10] sm:$0xff] }
 0x501   : > { %2926 = vmatpush.bf16.msra.mxu3 %v2916_v5  ;;  %v6595_v5 = vld [vmem:[%s8943_s2 + $0x18] sm:$0xff] }
 0x505   : > { %2927 = vmatpush.bf16.msra.mxu3 %v2915_v41  ;;  %v6597_v41 = vld [vmem:[%s8943_s2 + $0x28] sm:$0xff] }
 0x506   : > { %v2867_v12 = vpop.xlane.xlu0 %2866 }
 0x507   : > { %v2914_v18 = vpack.c.bf16 %v2870_v3, %v2867_v12  ;;  %v6596_v3 = vld [vmem:[%s8943_s2 + $0x20] sm:$0xff]  ;;  %v6599_v12 = vld [vmem:[%s8943_s2 + $0x38] sm:$0xff] }
 0x509   : > { %2928 = vmatpush.bf16.msra.mxu3 %v2914_v18  ;;  %v6600_v18 = vld [vmem:[%s8943_s2 + $0x40] sm:$0xff] }
 0x50c   : > { %v2912_v42 = vpop.xlane.xlu2 %2911 }
 0x50d   : > { %v2921_v36 = vpack.c.bf16 %v2912_v42, %v2909_v30 }
 0x50e   : > { %v2864_v19 = vpop.xlane.xlu0 %2863 }
 0x50f   : > { %2943 = vmatpush.bf16.msrb.mxu0 %v2921_v36  ;;  %v2913_v57 = vpack.c.bf16 %v2864_v19, %v2861_v33  ;;  %v6598_v33 = vld [vmem:[%s8943_s2 + $0x30] sm:$0xff] }
 0x511   : > { %2929 = vmatpush.bf16.msra.mxu3 %v2913_v57 }
 0x512   : > { %6289 = vmatmul.msk.bf16.vlgmr.msrb.gmra.mxu0 %vm361_vm0, %v7557_v10 }
 0x513   : > { %3453 = vmatpush.bf16.xpose.msra.mxu0 %v9014_v35 }
 0x514   : > { %2930 = vmatmul.bf16.vlgmr.msra.gmra.mxu3 %v7548_v11 }
 0x515   : > { %3497 = vmatpush.bf16.xpose.msrb.mxu3 %v9015_v38 }
 0x51b   : > { %3519 = vmatpush.bf16.xpose.msrb.mxu0 %v9016_v56 }
 0x51d   : > { %3563 = vmatpush.bf16.xpose.msra.mxu3 %v9017_v31 }
 0x58f   : > { %v2945_v6 = vpop.f32.mrf.mxu0 }
 0x597   : > { %v2931_v52 = vpop.f32.mrf.mxu3  ;;  %v2947_v0 = vpop.f32.mrf.mxu0 }
 0x598   : > { %v2932_v55 = vadd.f32 1e-12, %v2931_v52 }
 0x59a   : > { %v2946_v45 = vadd.f32 %v2945_v6, %v2932_v55 }
 0x59c   : > { %2952 = vperm.xlu0 %6384, %v2946_v45  }
 0x59f   : > { %v2933_v7 = vpop.f32.mrf.mxu3 }
 0x5a0   : > { %v2934_v50 = vadd.f32 1e-12, %v2933_v7 }
 0x5a2   : > { %v2948_v48 = vadd.f32 %v2947_v0, %v2934_v50 }
 0x5a4   : > { %2957 = vperm.xlu1 %6385, %v2948_v48  }
 0x60e   : > { %v2953_v21 = vpop.permute.xlu0 %2952 }
 0x60f   : > { %6482 = vrcp.f32 %v2953_v21  ;;  %v2971_v37 = vand.u32 2147483648, %v2953_v21  ;;  %vm2965_vm4 = vweird.f32 %v2953_v21  ;;  %v2969_v54 = vand.u32 2147483647, %v2953_v21 }
 0x611   : > { %v2972_v60 = vor.u32 1.1754944e-38, %v2971_v37  ;;  %vm2970_vm6 = vcmp.eq.f32.partialorder %v2969_v54, 8.507059e+37 }
 0x615   : > { %v6483_v44 = vpop.eup %6482 }
 0x616   : > { %v2961_v20 = vmul.f32 %v6483_v44, %v2953_v21  ;;  %v2958_v51 = vpop.permute.xlu1 %2957  ;;  %vm2966_vm3 = vweird.f32 %v6483_v44 }
 0x617   : > { %6484 = vrcp.f32 %v2958_v51  ;;  %vm2967_vm5 = vmor %vm2965_vm4, %vm2966_vm3  ;;  %v2986_v16 = vand.u32 2147483648, %v2958_v51  ;;  %v2984_v22 = vand.u32 2147483647, %v2958_v51  ;;  %vm2980_vm8 = vweird.f32 %v2958_v51 }
 0x618   : > { %v2962_v49 = vsub.f32 1.0, %v2961_v20 }
 0x619   : > { %v2987_v24 = vor.u32 1.1754944e-38, %v2986_v16  ;;  %vm2985_vm10 = vcmp.eq.f32.partialorder %v2984_v22, 8.507059e+37 }
 0x61a   : > { %v2963_v34 = vmul.f32 %v6483_v44, %v2962_v49 }
 0x61c   : > { %v2964_v25 = vadd.f32 %v6483_v44, %v2963_v34 }
 0x61d   : > { %v6485_v61 = vpop.eup %6484 }
 0x61e   : > { %v2976_v2 = vmul.f32 %v6485_v61, %v2958_v51  ;;  %v2968_v47 = vsel %vm2967_vm5, %v6483_v44, %v2964_v25  ;;  %vm2981_vm7 = vweird.f32 %v6485_v61 }
 0x61f   : > { %v2973_v40 = vsel %vm2970_vm6, %v2972_v60, %v2968_v47  ;;  %vm2982_vm9 = vmor %vm2980_vm8, %vm2981_vm7 }
 0x620   : > { %v2977_v53 = vsub.f32 1.0, %v2976_v2  ;;  %v2974_v32 = vmul.f32 %v2973_v40, %v2524_v58 }
 0x622   : > { %v2978_v23 = vmul.f32 %v6485_v61, %v2977_v53  ;;  %v2990_v39 = vmul.f32 0.17677669, %v2974_v32 }
 0x624   : > { %v2979_v15 = vadd.f32 %v6485_v61, %v2978_v23 }
 0x626   : > { %v2983_v27 = vsel %vm2982_vm9, %v6485_v61, %v2979_v15  ;;  %v9019_v15 = vld [vmem:[#allocation7_spill] sm:$0xff] }
 0x627   : > { %v2988_v8 = vsel %vm2985_vm10, %v2987_v24, %v2983_v27 }
 0x628   : > { %v2989_v43 = vmul.f32 %v2988_v8, %v2526_v9 }
 0x62a   : > { %v2991_v62 = vmul.f32 0.17677669, %v2989_v43 }
 0x62c   : > { %v2992_v1 = vpack.c.bf16 %v2991_v62, %v2990_v39 }
 0x62e   : > { %3000 = vmatpush.bf16.msrb.mxu2 %v2992_v1 }
 0x631   : > { %6290 = vmatmul.msk.bf16.vlgmr.msrb.gmra.mxu2 %vm361_vm0, %v6591_v4 }
 0x632   : > { %4697 = vmatpush.bf16.msra.mxu2 %v6590_v28 }
 0x636   : > { %4785 = vmatpush.bf16.msrb.mxu2 %v6592_v17 }
 0x641   : > { %6291 = vmatmul.msk.bf16.gmra.mxu2 %vm361_vm0, %v6593_v13 }
 0x651   : > { %6292 = vmatmul.msk.bf16.gmra.mxu2 %vm361_vm0, %v6594_v26 }
 0x661   : > { %6293 = vmatmul.msk.bf16.gmra.mxu2 %vm361_vm0, %v6595_v5 }
 0x671   : > { %6294 = vmatmul.msk.bf16.gmra.mxu2 %vm361_vm0, %v6596_v3 }
 0x681   : > { %6295 = vmatmul.msk.bf16.gmra.mxu2 %vm361_vm0, %v6597_v41  ;;  %v9020_v41 = vld [vmem:[#allocation8_spill] sm:$0xff] }
 0x691   : > { %6296 = vmatmul.msk.bf16.gmra.mxu2 %vm361_vm0, %v6598_v33 }
 0x6a1   : > { %6297 = vmatmul.msk.bf16.gmra.mxu2 %vm361_vm0, %v6599_v12 }
 0x6b1   : > { %6298 = vmatmul.msk.bf16.gmra.mxu2 %vm361_vm0, %v6600_v18 }
 0x6b4   : > { %v3002_v30 = vpop.f32.mrf.mxu2 }
 0x6b5   : > { %v3065_v42 = vrot.slane %v3002_v30, 1  ;;  %v3066_v36 = vrot.slane %v3002_v30, 2  ;;  %v3067_v19 = vrot.slane %v3002_v30, 3  ;;  %3191 = vst [vmem:[#allocation1] ss:$9 sm:$0xff] %v3002_v30  ;;  %v3068_v57 = vrot.slane %v3002_v30, 4 }
 0x6b6   : > { %v3069_v35 = vrot.slane %v3002_v30, 5  ;;  %v3070_v38 = vrot.slane %v3002_v30, 6  ;;  %v3071_v56 = vrot.slane %v3002_v30, 7 }
 0x6b7   : > { %3193 = vst [vmem:[#allocation1 + $0x1] ss:$9 sm:$0xff] %v3065_v42 }
 0x6b8   : > { %3195 = vst [vmem:[#allocation1 + $0x2] ss:$9 sm:$0xff] %v3066_v36 }
 0x6b9   : > { %3197 = vst [vmem:[#allocation1 + $0x3] ss:$9 sm:$0xff] %v3067_v19 }
 0x6ba   : > { %3199 = vst [vmem:[#allocation1 + $0x4] ss:$9 sm:$0xff] %v3068_v57 }
 0x6bb   : > { %3201 = vst [vmem:[#allocation1 + $0x5] ss:$9 sm:$0xff] %v3069_v35 }
 0x6bc   : > { %3203 = vst [vmem:[#allocation1 + $0x6] ss:$9 sm:$0xff] %v3070_v38  ;;  %v3004_v63 = vpop.f32.mrf.mxu2 }
 0x6bd   : > { %3205 = vst [vmem:[#allocation1 + $0x7] ss:$9 sm:$0xff] %v3071_v56  ;;  %v3072_v6 = vrot.slane %v3004_v63, 1  ;;  %v3073_v52 = vrot.slane %v3004_v63, 2  ;;  %v3074_v7 = vrot.slane %v3004_v63, 3  ;;  %v3075_v50 = vrot.slane %v3004_v63, 4 }
 0x6be   : > { %v3076_v48 = vrot.slane %v3004_v63, 5  ;;  %v3077_v21 = vrot.slane %v3004_v63, 6  ;;  %v3078_v51 = vrot.slane %v3004_v63, 7 }
 0x6c4   : > { %v3206_v31 = vld [vmem:[#allocation1] sm:$0xff]  ;;  %v3007_v46 = vpop.f32.mrf.mxu2 }
 0x6c5   : > { %3207 = vst [vmem:[#allocation1] ss:$9 sm:$0xff] %v3004_v63  ;;  %v3406_v45 = vpack.c.bf16 %v3206_v31, %v3206_v31  ;;  %v3079_v34 = vrot.slane %v3007_v46, 1  ;;  %v3080_v61 = vrot.slane %v3007_v46, 2  ;;  %v3081_v54 = vrot.slane %v3007_v46, 3 }
 0x6c6   : > { %v3082_v47 = vrot.slane %v3007_v46, 4  ;;  %v3083_v58 = vrot.slane %v3007_v46, 5  ;;  %v3084_v60 = vrot.slane %v3007_v46, 6  ;;  %v3085_v40 = vrot.slane %v3007_v46, 7 }
 0x6c7   : > { %v3440_v44 = vunpack.c.l.b16 %v3406_v45  ;;  %v9021_v45 = vld [vmem:[#allocation9_spill] sm:$0xff] }
 0x6cc   : > { %v3208_v55 = vld [vmem:[#allocation1] sm:$0xff]  ;;  %v3009_v16 = vpop.f32.mrf.mxu2 }
 0x6cd   : > { %3209 = vst [vmem:[#allocation1] ss:$9 sm:$0xff] %v3072_v6  ;;  %v3407_v0 = vpack.c.bf16 %v3208_v55, %v3208_v55  ;;  %v3086_v59 = vrot.slane %v3009_v16, 1  ;;  %v3087_v24 = vrot.slane %v3009_v16, 2  ;;  %v3088_v9 = vrot.slane %v3009_v16, 3 }
 0x6ce   : > { %3210 = vst [vmem:[#allocation1 + $0x1] ss:$9 sm:$0xff] %v3073_v52  ;;  %v3089_v8 = vrot.slane %v3009_v16, 4  ;;  %v3090_v39 = vrot.slane %v3009_v16, 5  ;;  %v3091_v1 = vrot.slane %v3009_v16, 6  ;;  %v3092_v4 = vrot.slane %v3009_v16, 7 }
 0x6cf   : > { %3211 = vst [vmem:[#allocation1 + $0x2] ss:$9 sm:$0xff] %v3074_v7  ;;  %v3441_v20 = vunpack.c.l.b16 %v3407_v0 }
 0x6d0   : > { %3212 = vst [vmem:[#allocation1 + $0x3] ss:$9 sm:$0xff] %v3075_v50 }
 0x6d1   : > { %3213 = vst [vmem:[#allocation1 + $0x4] ss:$9 sm:$0xff] %v3076_v48  ;;  %v3442_v49 = vpack.c.b16 %v3441_v20, %v3440_v44 }
 0x6d2   : > { %3214 = vst [vmem:[#allocation1 + $0x5] ss:$9 sm:$0xff] %v3077_v21 }
 0x6d3   : > { %3215 = vst [vmem:[#allocation1 + $0x6] ss:$9 sm:$0xff] %v3078_v51  ;;  %6299 = vmatmul.msk.bf16.vlgmr.msra.gmra.mxu0 %vm844_vm1, %v3442_v49 }
 0x6d4   : > { %3216 = vst [vmem:[#allocation1 + $0x7] ss:$9 sm:$0xff] %v3007_v46  ;;  %3585 = vmatpush.bf16.xpose.msra.mxu0 %v9018_v29  ;;  %v3012_v28 = vpop.f32.mrf.mxu2 }
 0x6d5   : > { %v3093_v17 = vrot.slane %v3012_v28, 1  ;;  %v3094_v5 = vrot.slane %v3012_v28, 2  ;;  %v3095_v33 = vrot.slane %v3012_v28, 3  ;;  %v3096_v18 = vrot.slane %v3012_v28, 4 }
 0x6d6   : > { %v3097_v42 = vrot.slane %v3012_v28, 5  ;;  %v3098_v19 = vrot.slane %v3012_v28, 6  ;;  %v3099_v38 = vrot.slane %v3012_v28, 7 }
 0x6db   : > { %v3217_v25 = vld [vmem:[#allocation1] sm:$0xff] }
 0x6dc   : > { %3218 = vst [vmem:[#allocation1] ss:$9 sm:$0xff] %v3079_v34  ;;  %v3408_v37 = vpack.c.bf16 %v3217_v25, %v3217_v25  ;;  %v3014_v57 = vpop.f32.mrf.mxu2 }
 0x6dd   : > { %v3100_v63 = vrot.slane %v3014_v57, 1  ;;  %v3101_v6 = vrot.slane %v3014_v57, 2  ;;  %v3102_v55 = vrot.slane %v3014_v57, 3  ;;  %v3103_v7 = vrot.slane %v3014_v57, 4 }
 0x6de   : > { %v3462_v23 = vunpack.c.l.b16 %v3408_v37  ;;  %v3104_v0 = vrot.slane %v3014_v57, 5  ;;  %v3105_v21 = vrot.slane %v3014_v57, 6  ;;  %v3106_v51 = vrot.slane %v3014_v57, 7 }
 0x6e3   : > { %v3219_v2 = vld [vmem:[#allocation1] sm:$0xff] }
 0x6e4   : > { %3220 = vst [vmem:[#allocation1] ss:$9 sm:$0xff] %v3080_v61  ;;  %v3409_v53 = vpack.c.bf16 %v3219_v2, %v3219_v2  ;;  %v3017_v20 = vpop.f32.mrf.mxu2  ;;  %v9022_v2 = vld [vmem:[#allocation10_spill] sm:$0xff] }
 0x6e5   : > { %3221 = vst [vmem:[#allocation1 + $0x1] ss:$9 sm:$0xff] %v3081_v54  ;;  %v3107_v49 = vrot.slane %v3017_v20, 1  ;;  %v3108_v29 = vrot.slane %v3017_v20, 2  ;;  %v3109_v34 = vrot.slane %v3017_v20, 3  ;;  %v3110_v37 = vrot.slane %v3017_v20, 4 }
 0x6e6   : > { %3222 = vst [vmem:[#allocation1 + $0x2] ss:$9 sm:$0xff] %v3082_v47  ;;  %v3463_v22 = vunpack.c.l.b16 %v3409_v53  ;;  %v3111_v47 = vrot.slane %v3017_v20, 5 }
 0x6e7   : > { %3223 = vst [vmem:[#allocation1 + $0x3] ss:$9 sm:$0xff] %v3083_v58  ;;  %v3112_v58 = vrot.slane %v3017_v20, 6 }
 0x6e8   : > { %3224 = vst [vmem:[#allocation1 + $0x4] ss:$9 sm:$0xff] %v3084_v60  ;;  %v3464_v14 = vpack.c.b16 %v3463_v22, %v3462_v23  ;;  %v3113_v23 = vrot.slane %v3017_v20, 7 }
 0x6e9   : > { %3225 = vst [vmem:[#allocation1 + $0x5] ss:$9 sm:$0xff] %v3085_v40 }
 0x6ea   : > { %3226 = vst [vmem:[#allocation1 + $0x6] ss:$9 sm:$0xff] %v3009_v16  ;;  %6300 = vmatmul.msk.bf16.vlgmr.msrb.gmra.mxu1 %vm844_vm1, %v3464_v14 }
 0x6eb   : > { %3227 = vst [vmem:[#allocation1 + $0x7] ss:$9 sm:$0xff] %v3086_v59  ;;  %3607 = vmatpush.bf16.xpose.msrb.mxu1 %v9019_v15 }
 0x6ec   : > { %v3019_v60 = vpop.f32.mrf.mxu2 }
 0x6ed   : > { %v3114_v14 = vrot.slane %v3019_v60, 1  ;;  %v3115_v59 = vrot.slane %v3019_v60, 2 }
 0x6f2   : > { %v3228_v32 = vld [vmem:[#allocation1] sm:$0xff] }
 0x6f3   : > { %3229 = vst [vmem:[#allocation1] ss:$9 sm:$0xff] %v3087_v24  ;;  %v3410_v27 = vpack.c.bf16 %v3228_v32, %v3228_v32  ;;  %v3116_v32 = vrot.slane %v3019_v60, 3 }
 0x6f5   : > { %v3484_v13 = vunpack.c.l.b16 %v3410_v27 }
 0x6fa   : > { %v3230_v43 = vld [vmem:[#allocation1] sm:$0xff] }
 0x6fb   : > { %3231 = vst [vmem:[#allocation1] ss:$9 sm:$0xff] %v3088_v9  ;;  %v3411_v62 = vpack.c.bf16 %v3230_v43, %v3230_v43  ;;  %v3117_v9 = vrot.slane %v3019_v60, 4  ;;  %v9023_v43 = vld [vmem:[#allocation11_spill] sm:$0xff] }
 0x6fc   : > { %3232 = vst [vmem:[#allocation1 + $0x1] ss:$9 sm:$0xff] %v3089_v8  ;;  %v3118_v8 = vrot.slane %v3019_v60, 5 }
 0x6fd   : > { %3233 = vst [vmem:[#allocation1 + $0x2] ss:$9 sm:$0xff] %v3090_v39  ;;  %v3485_v26 = vunpack.c.l.b16 %v3411_v62  ;;  %v3119_v39 = vrot.slane %v3019_v60, 6 }
 0x6fe   : > { %3234 = vst [vmem:[#allocation1 + $0x3] ss:$9 sm:$0xff] %v3091_v1  ;;  %v3022_v1 = vpop.f32.mrf.mxu2 }
 0x6ff   : > { %3235 = vst [vmem:[#allocation1 + $0x4] ss:$9 sm:$0xff] %v3092_v4  ;;  %v3486_v3 = vpack.c.b16 %v3485_v26, %v3484_v13  ;;  %v3121_v4 = vrot.slane %v3022_v1, 1  ;;  %v3122_v26 = vrot.slane %v3022_v1, 2 }
 0x700   : > { %3236 = vst [vmem:[#allocation1 + $0x5] ss:$9 sm:$0xff] %v3012_v28  ;;  %v3120_v28 = vrot.slane %v3019_v60, 7 }
 0x701   : > { %3237 = vst [vmem:[#allocation1 + $0x6] ss:$9 sm:$0xff] %v3093_v17  ;;  %6301 = vmatmul.msk.bf16.vlgmr.msrb.gmra.mxu3 %vm844_vm1, %v3486_v3 }
 0x702   : > { %3238 = vst [vmem:[#allocation1 + $0x7] ss:$9 sm:$0xff] %v3094_v5  ;;  %3629 = vmatpush.bf16.xpose.msrb.mxu3 %v9020_v41  ;;  %v3123_v5 = vrot.slane %v3022_v1, 3  ;;  %v3124_v41 = vrot.slane %v3022_v1, 4 }
 0x709   : > { %v3239_v12 = vld [vmem:[#allocation1] sm:$0xff] }
 0x70a   : > { %3240 = vst [vmem:[#allocation1] ss:$9 sm:$0xff] %v3095_v33  ;;  %v3412_v30 = vpack.c.bf16 %v3239_v12, %v3239_v12  ;;  %v3125_v33 = vrot.slane %v3022_v1, 5 }
 0x70c   : > { %v3506_v56 = vunpack.c.l.b16 %v3412_v30  ;;  %v3126_v30 = vrot.slane %v3022_v1, 6 }
 0x711   : > { %v3241_v36 = vld [vmem:[#allocation1] sm:$0xff] }
 0x712   : > { %3242 = vst [vmem:[#allocation1] ss:$9 sm:$0xff] %v3096_v18  ;;  %v3413_v35 = vpack.c.bf16 %v3241_v36, %v3241_v36  ;;  %v9024_v36 = vld [vmem:[#allocation12_spill] sm:$0xff] }
 0x713   : > { %3243 = vst [vmem:[#allocation1 + $0x1] ss:$9 sm:$0xff] %v3097_v42 }
 0x714   : > { %3244 = vst [vmem:[#allocation1 + $0x2] ss:$9 sm:$0xff] %v3098_v19  ;;  %v3507_v31 = vunpack.c.l.b16 %v3413_v35  ;;  %v3127_v19 = vrot.slane %v3022_v1, 7  ;;  %v3024_v35 = vpop.f32.mrf.mxu2 }
 0x715   : > { %3245 = vst [vmem:[#allocation1 + $0x3] ss:$9 sm:$0xff] %v3099_v38 }
 0x716   : > { %3246 = vst [vmem:[#allocation1 + $0x4] ss:$9 sm:$0xff] %v3014_v57  ;;  %v3508_v52 = vpack.c.b16 %v3507_v31, %v3506_v56  ;;  %v3128_v31 = vrot.slane %v3024_v35, 1 }
 0x717   : > { %3247 = vst [vmem:[#allocation1 + $0x5] ss:$9 sm:$0xff] %v3100_v63  ;;  %v3129_v63 = vrot.slane %v3024_v35, 2 }
 0x718   : > { %3248 = vst [vmem:[#allocation1 + $0x6] ss:$9 sm:$0xff] %v3101_v6  ;;  %6302 = vmatmul.msk.bf16.vlgmr.msrb.gmra.mxu0 %vm844_vm1, %v3508_v52  ;;  %v3130_v52 = vrot.slane %v3024_v35, 3 }
 0x719   : > { %3249 = vst [vmem:[#allocation1 + $0x7] ss:$9 sm:$0xff] %v3102_v55  ;;  %3651 = vmatpush.bf16.xpose.msrb.mxu0 %v9021_v45  ;;  %v3131_v55 = vrot.slane %v3024_v35, 4 }
 0x720   : > { %v3250_v50 = vld [vmem:[#allocation1] sm:$0xff] }
 0x721   : > { %3251 = vst [vmem:[#allocation1] ss:$9 sm:$0xff] %v3103_v7  ;;  %v3414_v48 = vpack.c.bf16 %v3250_v50, %v3250_v50  ;;  %v3132_v50 = vrot.slane %v3024_v35, 5 }
 0x723   : > { %v3528_v25 = vunpack.c.l.b16 %v3414_v48 }
 0x728   : > { %v3252_v44 = vld [vmem:[#allocation1] sm:$0xff] }
 0x729   : > { %3253 = vst [vmem:[#allocation1] ss:$9 sm:$0xff] %v3104_v0  ;;  %v3415_v46 = vpack.c.bf16 %v3252_v44, %v3252_v44  ;;  %v3133_v0 = vrot.slane %v3024_v35, 6  ;;  %v9025_v44 = vld [vmem:[#allocation13_spill] sm:$0xff] }
 0x72a   : > { %3254 = vst [vmem:[#allocation1 + $0x1] ss:$9 sm:$0xff] %v3105_v21  ;;  %v3134_v21 = vrot.slane %v3024_v35, 7 }
 0x72b   : > { %3255 = vst [vmem:[#allocation1 + $0x2] ss:$9 sm:$0xff] %v3106_v51  ;;  %v3529_v61 = vunpack.c.l.b16 %v3415_v46  ;;  %v3027_v51 = vpop.f32.mrf.mxu2 }
 0x72c   : > { %3256 = vst [vmem:[#allocation1 + $0x3] ss:$9 sm:$0xff] %v3017_v20  ;;  %v3135_v46 = vrot.slane %v3027_v51, 1 }
 0x72d   : > { %3257 = vst [vmem:[#allocation1 + $0x4] ss:$9 sm:$0xff] %v3107_v49  ;;  %v3530_v54 = vpack.c.b16 %v3529_v61, %v3528_v25  ;;  %v3137_v61 = vrot.slane %v3027_v51, 3 }
 0x72e   : > { %3258 = vst [vmem:[#allocation1 + $0x5] ss:$9 sm:$0xff] %v3108_v29 }
 0x72f   : > { %3259 = vst [vmem:[#allocation1 + $0x6] ss:$9 sm:$0xff] %v3109_v34  ;;  %6303 = vmatmul.msk.bf16.vlgmr.msra.gmra.mxu1 %vm844_vm1, %v3530_v54  ;;  %v3136_v34 = vrot.slane %v3027_v51, 2  ;;  %v3138_v54 = vrot.slane %v3027_v51, 4 }
 0x730   : > { %3260 = vst [vmem:[#allocation1 + $0x7] ss:$9 sm:$0xff] %v3110_v37  ;;  %3673 = vmatpush.bf16.xpose.msra.mxu1 %v9022_v2  ;;  %v3139_v2 = vrot.slane %v3027_v51, 5 }
 0x737   : > { %v3261_v53 = vld [vmem:[#allocation1] sm:$0xff] }
 0x738   : > { %3262 = vst [vmem:[#allocation1] ss:$9 sm:$0xff] %v3111_v47  ;;  %v3416_v16 = vpack.c.bf16 %v3261_v53, %v3261_v53 }
 0x73a   : > { %v3550_v15 = vunpack.c.l.b16 %v3416_v16  ;;  %v3141_v16 = vrot.slane %v3027_v51, 7 }
 0x73f   : > { %v3263_v22 = vld [vmem:[#allocation1] sm:$0xff] }
 0x740   : > { %3264 = vst [vmem:[#allocation1] ss:$9 sm:$0xff] %v3112_v58  ;;  %v3417_v40 = vpack.c.bf16 %v3263_v22, %v3263_v22  ;;  %v3140_v58 = vrot.slane %v3027_v51, 6  ;;  %v3029_v22 = vpop.f32.mrf.mxu2 }
 0x741   : > { %3265 = vst [vmem:[#allocation1 + $0x1] ss:$9 sm:$0xff] %v3113_v23 }
 0x742   : > { %3266 = vst [vmem:[#allocation1 + $0x2] ss:$9 sm:$0xff] %v3019_v60  ;;  %v3551_v24 = vunpack.c.l.b16 %v3417_v40 }
 0x743   : > { %3267 = vst [vmem:[#allocation1 + $0x3] ss:$9 sm:$0xff] %v3114_v14  ;;  %v9026_v14 = vld [vmem:[#allocation14_spill] sm:$0xff] }
 0x744   : > { %3268 = vst [vmem:[#allocation1 + $0x4] ss:$9 sm:$0xff] %v3115_v59  ;;  %v3552_v27 = vpack.c.b16 %v3551_v24, %v3550_v15  ;;  %v3142_v24 = vrot.slane %v3029_v22, 1 }
 0x745   : > { %3269 = vst [vmem:[#allocation1 + $0x5] ss:$9 sm:$0xff] %v3116_v32 }
 0x746   : > { %3270 = vst [vmem:[#allocation1 + $0x6] ss:$9 sm:$0xff] %v3117_v9  ;;  %6304 = vmatmul.msk.bf16.vlgmr.msra.gmra.mxu3 %vm844_vm1, %v3552_v27 }
 0x747   : > { %3271 = vst [vmem:[#allocation1 + $0x7] ss:$9 sm:$0xff] %v3118_v8  ;;  %3695 = vmatpush.bf16.xpose.msra.mxu3 %v9023_v43  ;;  %v3143_v43 = vrot.slane %v3029_v22, 2 }
 0x74e   : > { %v3272_v62 = vld [vmem:[#allocation1] sm:$0xff] }
 0x74f   : > { %3273 = vst [vmem:[#allocation1] ss:$9 sm:$0xff] %v3119_v39  ;;  %v3418_v17 = vpack.c.bf16 %v3272_v62, %v3272_v62 }
 0x750   : > { %v7623_v49 = vpop.f32.mrf.mxu0 }
 0x751   : > { %v3572_v12 = vunpack.c.l.b16 %v3418_v17  ;;  %v3790_v59 = vsel %vm361_vm0, %v7623_v49, -inf }
 0x756   : > { %v3274_v13 = vld [vmem:[#allocation1] sm:$0xff] }
 0x757   : > { %3275 = vst [vmem:[#allocation1] ss:$9 sm:$0xff] %v3120_v28  ;;  %v3419_v3 = vpack.c.bf16 %v3274_v13, %v3274_v13  ;;  %v3146_v13 = vrot.slane %v3029_v22, 5 }
 0x758   : > { %3276 = vst [vmem:[#allocation1 + $0x1] ss:$9 sm:$0xff] %v3022_v1  ;;  %v3457_v60 = vpop.f32.mrf.mxu0  ;;  %v3144_v1 = vrot.slane %v3029_v22, 3 }
 0x759   : > { %3277 = vst [vmem:[#allocation1 + $0x2] ss:$9 sm:$0xff] %v3121_v4  ;;  %v3573_v18 = vunpack.c.l.b16 %v3419_v3  ;;  %v3791_v40 = vsel %vm1316_vm2, %v3457_v60, -inf  ;;  %v3145_v4 = vrot.slane %v3029_v22, 4  ;;  %v3032_v3 = vpop.f32.mrf.mxu2 }
 0x75a   : > { %3278 = vst [vmem:[#allocation1 + $0x3] ss:$9 sm:$0xff] %v3122_v26  ;;  %v3792_v15 = vmax.f32 %v3790_v59, %v3791_v40 }
 0x75b   : > { %3279 = vst [vmem:[#allocation1 + $0x4] ss:$9 sm:$0xff] %v3123_v5  ;;  %v3574_v42 = vpack.c.b16 %v3573_v18, %v3572_v12  ;;  %v3147_v5 = vrot.slane %v3029_v22, 6  ;;  %v3148_v18 = vrot.slane %v3029_v22, 7 }
 0x75c   : > { %3280 = vst [vmem:[#allocation1 + $0x5] ss:$9 sm:$0xff] %v3124_v41  ;;  %v3793_v32 = vrot.slane %v3792_v15, 4 }
 0x75d   : > { %3281 = vst [vmem:[#allocation1 + $0x6] ss:$9 sm:$0xff] %v3125_v33  ;;  %6305 = vmatmul.msk.bf16.vlgmr.msra.gmra.mxu0 %vm844_vm1, %v3574_v42 }
 0x75e   : > { %3282 = vst [vmem:[#allocation1 + $0x7] ss:$9 sm:$0xff] %v3126_v30  ;;  %3717 = vmatpush.bf16.xpose.msra.mxu0 %v9024_v36  ;;  %v3794_v8 = vmax.f32 %v3792_v15, %v3793_v32  ;;  %v3149_v30 = vrot.slane %v3032_v3, 1 }
 0x760   : > { %v3795_v39 = vrot.slane %v3794_v8, 2 }
 0x762   : > { %v3796_v41 = vmax.f32 %v3794_v8, %v3795_v39 }
 0x765   : > { %v3283_v57 = vld [vmem:[#allocation1] sm:$0xff] }
 0x766   : > { %3284 = vst [vmem:[#allocation1] ss:$9 sm:$0xff] %v3127_v19  ;;  %v3420_v38 = vpack.c.bf16 %v3283_v57, %v3283_v57  ;;  %v3797_v19 = vrot.slane %v3796_v41, 1 }
 0x767   : > { %v7630_v27 = vpop.f32.mrf.mxu1 }
 0x768   : > { %v3594_v45 = vunpack.c.l.b16 %v3420_v38  ;;  %v3799_v57 = vsel %vm361_vm0, %v7630_v27, -inf  ;;  %v9027_v38 = vld [vmem:[#allocation15_spill] sm:$0xff] }
 0x76d   : > { %v3285_v56 = vld [vmem:[#allocation1] sm:$0xff] }
 0x76e   : > { %3286 = vst [vmem:[#allocation1] ss:$9 sm:$0xff] %v3024_v35  ;;  %v3421_v6 = vpack.c.bf16 %v3285_v56, %v3285_v56  ;;  %v3798_v56 = vmax.f32 %v3796_v41, %v3797_v19 }
 0x76f   : > { %3287 = vst [vmem:[#allocation1 + $0x1] ss:$9 sm:$0xff] %v3128_v31  ;;  %v7632_v26 = vpop.f32.mrf.mxu1 }
 0x770   : > { %3288 = vst [vmem:[#allocation1 + $0x2] ss:$9 sm:$0xff] %v3129_v63  ;;  %v3595_v7 = vunpack.c.l.b16 %v3421_v6  ;;  %v3800_v36 = vsel %vm1316_vm2, %v7632_v26, -inf  ;;  %v3150_v63 = vrot.slane %v3032_v3, 2 }
 0x771   : > { %3289 = vst [vmem:[#allocation1 + $0x3] ss:$9 sm:$0xff] %v3130_v52  ;;  %v3801_v35 = vmax.f32 %v3799_v57, %v3800_v36  ;;  %v3934_v52 = vsub.f32 %v7623_v49, %v3798_v56  ;;  %v7643_v49 = vpop.f32.mrf.mxu2 }
 0x772   : > { %3290 = vst [vmem:[#allocation1 + $0x4] ss:$9 sm:$0xff] %v3131_v55  ;;  %v3596_v48 = vpack.c.b16 %v3595_v7, %v3594_v45  ;;  %v3935_v55 = vsub.f32 %v3457_v60, %v3798_v56  ;;  %v3157_v60 = vrot.slane %v7643_v49, 2  ;;  %v3161_v19 = vrot.slane %v7643_v49, 6 }
 0x773   : > { %3291 = vst [vmem:[#allocation1 + $0x5] ss:$9 sm:$0xff] %v3132_v50  ;;  %v3802_v31 = vrot.slane %v3801_v35, 4  ;;  %v3966_v7 = vmul.f32 1.442695, %v3934_v52  ;;  %v3162_v56 = vrot.slane %v7643_v49, 7 }
 0x774   : > { %3292 = vst [vmem:[#allocation1 + $0x6] ss:$9 sm:$0xff] %v3133_v0  ;;  %6306 = vmatmul.msk.bf16.vlgmr.msrb.gmra.mxu1 %vm844_vm1, %v3596_v48  ;;  %v3968_v50 = vmul.f32 1.442695, %v3935_v55 }
 0x775   : > { %3293 = vst [vmem:[#allocation1 + $0x7] ss:$9 sm:$0xff] %v3134_v21  ;;  %3739 = vmatpush.bf16.xpose.msrb.mxu1 %v9025_v44  ;;  %v3803_v45 = vmax.f32 %v3801_v35, %v3802_v31  ;;  %v3151_v21 = vrot.slane %v3032_v3, 3  ;;  %6486 = vpow2.f32 %v3966_v7 }
 0x776   : > { %6488 = vpow2.f32 %v3968_v50 }
 0x777   : > { %v3804_v0 = vrot.slane %v3803_v45, 2 }
 0x779   : > { %v7675_v57 = vpop.f32.mrf.mxu2 }
 0x77a   : > { %v3163_v31 = vrot.slane %v7675_v57, 1  ;;  %v3165_v50 = vrot.slane %v7675_v57, 3 }
 0x77c   : > { %v3294_v20 = vld [vmem:[#allocation1] sm:$0xff] }
 0x77d   : > { %3295 = vst [vmem:[#allocation1] ss:$9 sm:$0xff] %v3027_v51  ;;  %v3422_v29 = vpack.c.bf16 %v3294_v20, %v3294_v20  ;;  %v3152_v20 = vrot.slane %v3032_v3, 4 }
 0x77f   : > { %v3616_v47 = vunpack.c.l.b16 %v3422_v29  ;;  %v3805_v29 = vmax.f32 %v3803_v45, %v3804_v0 }
 0x784   : > { %v3296_v25 = vld [vmem:[#allocation1] sm:$0xff]  ;;  %v7641_v48 = vpop.f32.mrf.mxu3 }
 0x785   : > { %3297 = vst [vmem:[#allocation1] ss:$9 sm:$0xff] %v3135_v46  ;;  %v3423_v37 = vpack.c.bf16 %v3296_v25, %v3296_v25  ;;  %v3153_v46 = vrot.slane %v3032_v3, 5  ;;  %v3154_v25 = vrot.slane %v3032_v3, 6  ;;  %v3808_v8 = vsel %vm361_vm0, %v7641_v48, -inf }
 0x786   : > { %3298 = vst [vmem:[#allocation1 + $0x1] ss:$9 sm:$0xff] %v3136_v34 }
 0x787   : > { %3299 = vst [vmem:[#allocation1 + $0x2] ss:$9 sm:$0xff] %v3137_v61  ;;  %v3617_v53 = vunpack.c.l.b16 %v3423_v37  ;;  %v3155_v61 = vrot.slane %v3032_v3, 7 }
 0x788   : > { %3300 = vst [vmem:[#allocation1 + $0x3] ss:$9 sm:$0xff] %v3138_v54 }
 0x789   : > { %3301 = vst [vmem:[#allocation1 + $0x4] ss:$9 sm:$0xff] %v3139_v2  ;;  %v3618_v23 = vpack.c.b16 %v3617_v53, %v3616_v47  ;;  %v3156_v2 = vrot.slane %v7643_v49, 1  ;;  %v3806_v47 = vrot.slane %v3805_v29, 1 }
 0x78a   : > { %3302 = vst [vmem:[#allocation1 + $0x5] ss:$9 sm:$0xff] %v3140_v58  ;;  %v7646_v58 = vpop.eup %6486 }
 0x78b   : > { %3303 = vst [vmem:[#allocation1 + $0x6] ss:$9 sm:$0xff] %v3141_v16  ;;  %6307 = vmatmul.msk.bf16.vlgmr.msrb.gmra.mxu3 %vm844_vm1, %v3618_v23  ;;  %v7650_v16 = vpop.eup %6488  ;;  %v3807_v40 = vmax.f32 %v3805_v29, %v3806_v47 }
 0x78c   : > { %3304 = vst [vmem:[#allocation1 + $0x7] ss:$9 sm:$0xff] %v3029_v22  ;;  %3761 = vmatpush.bf16.xpose.msrb.mxu3 %v9026_v14  ;;  %v7653_v23 = vpop.f32.mrf.mxu3  ;;  %v6601_v22 = vld [vmem:[%s6707_s14] sm:$0xff]  ;;  %v4030_v14 = vsel %vm361_vm0, %v7646_v58, 0.0  ;;  %v4031_v59 = vsel %vm1316_vm2, %v7650_v16, 0.0 }
 0x78d   : > { %v4032_v32 = vadd.f32 %v4031_v59, %v4030_v14  ;;  %v3937_v39 = vsub.f32 %v7632_v26, %v3807_v40 }
 0x793   : > { %v3305_v9 = vld [vmem:[#allocation1] sm:$0xff] }
 0x794   : > { %3306 = vst [vmem:[#allocation1] ss:$9 sm:$0xff] %v3142_v24  ;;  %v3424_v62 = vpack.c.bf16 %v3305_v9, %v3305_v9  ;;  %v3809_v24 = vsel %vm1316_vm2, %v7653_v23, -inf  ;;  %v3936_v9 = vsub.f32 %v7630_v27, %v3807_v40  ;;  %v3166_v40 = vrot.slane %v7675_v57, 4 }
 0x795   : > { %v7660_v15 = vpop.f32.mrf.mxu0 }
 0x796   : > { %v3638_v33 = vunpack.c.l.b16 %v3424_v62  ;;  %v3810_v62 = vmax.f32 %v3808_v8, %v3809_v24  ;;  %v3817_v27 = vsel %vm361_vm0, %v7660_v15, -inf }
 0x79b   : > { %v3307_v28 = vld [vmem:[#allocation1] sm:$0xff] }
 0x79c   : > { %3308 = vst [vmem:[#allocation1] ss:$9 sm:$0xff] %v3143_v43  ;;  %v3425_v17 = vpack.c.bf16 %v3307_v28, %v3307_v28  ;;  %v3158_v43 = vrot.slane %v7643_v49, 3  ;;  %v4033_v28 = vrot.slane %v4032_v32, 4 }
 0x79d   : > { %3309 = vst [vmem:[#allocation1 + $0x1] ss:$9 sm:$0xff] %v3144_v1 }
 0x79e   : > { %3310 = vst [vmem:[#allocation1 + $0x2] ss:$9 sm:$0xff] %v3145_v4  ;;  %v3639_v12 = vunpack.c.l.b16 %v3425_v17  ;;  %v3970_v4 = vmul.f32 1.442695, %v3936_v9  ;;  %v3972_v17 = vmul.f32 1.442695, %v3937_v39  ;;  %v4034_v41 = vadd.f32 %v4033_v28, %v4032_v32 }
 0x79f   : > { %3311 = vst [vmem:[#allocation1 + $0x3] ss:$9 sm:$0xff] %v3146_v13  ;;  %v3811_v13 = vrot.slane %v3810_v62, 4  ;;  %v3167_v28 = vrot.slane %v7675_v57, 5 }
 0x7a0   : > { %3312 = vst [vmem:[#allocation1 + $0x4] ss:$9 sm:$0xff] %v3147_v5  ;;  %v3640_v42 = vpack.c.b16 %v3639_v12, %v3638_v33  ;;  %v3523_v5 = vpop.f32.mrf.mxu0  ;;  %6490 = vpow2.f32 %v3970_v4  ;;  %v3159_v12 = vrot.slane %v7643_v49, 4  ;;  %v7708_v4 = vpop.f32.mrf.mxu2 }
 0x7a1   : > { %3313 = vst [vmem:[#allocation1 + $0x5] ss:$9 sm:$0xff] %v3148_v18  ;;  %6492 = vpow2.f32 %v3972_v17  ;;  %v3812_v26 = vmax.f32 %v3810_v62, %v3811_v13 }
 0x7a2   : > { %3314 = vst [vmem:[#allocation1 + $0x6] ss:$9 sm:$0xff] %v3032_v3  ;;  %6308 = vmatmul.msk.bf16.vlgmr.msrb.gmra.mxu0 %vm844_vm1, %v3640_v42  ;;  %v3818_v3 = vsel %vm1316_vm2, %v3523_v5, -inf }
 0x7a3   : > { %3315 = vst [vmem:[#allocation1 + $0x7] ss:$9 sm:$0xff] %v3149_v30  ;;  %3783 = vmatpush.bf16.xpose.msrb.mxu0 %v9027_v38  ;;  %v3819_v33 = vmax.f32 %v3817_v27, %v3818_v3  ;;  %v3160_v30 = vrot.slane %v7643_v49, 5  ;;  %v4035_v38 = vrot.slane %v4034_v41, 2  ;;  %v3813_v52 = vrot.slane %v3812_v26, 2 }
 0x7a4   : > { %v3168_v3 = vrot.slane %v7675_v57, 6 }
 0x7a5   : > { %v3820_v36 = vrot.slane %v3819_v33, 4 }
 0x7a6   : > { %v7680_v7 = vpop.eup %6490 }
 0x7a7   : > { %v7683_v0 = vpop.eup %6492  ;;  %v4039_v29 = vsel %vm361_vm0, %v7680_v7, 0.0 }
 0x7aa   : > { %v3316_v6 = vld [vmem:[#allocation1] sm:$0xff] }
 0x7ab   : > { %3317 = vst [vmem:[#allocation1] ss:$9 sm:$0xff] %v3150_v63  ;;  %v3426_v44 = vpack.c.bf16 %v3316_v6, %v3316_v6  ;;  %v3821_v63 = vmax.f32 %v3819_v33, %v3820_v36  ;;  %v3164_v6 = vrot.slane %v7675_v57, 2  ;;  %v3172_v36 = vrot.slane %v7708_v4, 3 }
 0x7ad   : > { %v3660_v37 = vunpack.c.l.b16 %v3426_v44  ;;  %v3822_v44 = vrot.slane %v3821_v63, 2 }
 0x7b2   : > { %v3318_v51 = vld [vmem:[#allocation1] sm:$0xff] }
 0x7b3   : > { %3319 = vst [vmem:[#allocation1] ss:$9 sm:$0xff] %v3151_v21  ;;  %v3427_v34 = vpack.c.bf16 %v3318_v51, %v3318_v51  ;;  %v3814_v51 = vmax.f32 %v3812_v26, %v3813_v52 }
 0x7b4   : > { %3320 = vst [vmem:[#allocation1 + $0x1] ss:$9 sm:$0xff] %v3152_v20  ;;  %v4036_v20 = vadd.f32 %v4035_v38, %v4034_v41 }
 0x7b5   : > { %3321 = vst [vmem:[#allocation1 + $0x2] ss:$9 sm:$0xff] %v3153_v46  ;;  %v3661_v54 = vunpack.c.l.b16 %v3427_v34  ;;  %v3823_v46 = vmax.f32 %v3821_v63, %v3822_v44  ;;  %v4040_v34 = vsel %vm1316_vm2, %v7683_v0, 0.0 }
 0x7b6   : > { %3322 = vst [vmem:[#allocation1 + $0x3] ss:$9 sm:$0xff] %v3154_v25  ;;  %v7691_v25 = vpop.f32.mrf.mxu1 }
 0x7b7   : > { %3323 = vst [vmem:[#allocation1 + $0x4] ss:$9 sm:$0xff] %v3155_v61  ;;  %v3662_v53 = vpack.c.b16 %v3661_v54, %v3660_v37  ;;  %v3824_v61 = vrot.slane %v3823_v46, 1  ;;  %v4037_v37 = vrot.slane %v4036_v20, 1  ;;  %v4041_v54 = vadd.f32 %v4040_v34, %v4039_v29 }
 0x7b8   : > { %3324 = vst [vmem:[#allocation1 + $0x5] ss:$9 sm:$0xff] %v7643_v49  ;;  %v6602_v49 = vld [vmem:[%s6707_s14 + $0x8] sm:$0xff]  ;;  %v3826_v62 = vsel %vm361_vm0, %v7691_v25, -inf }
 0x7b9   : > { %3325 = vst [vmem:[#allocation1 + $0x6] ss:$9 sm:$0xff] %v3156_v2  ;;  %6309 = vmatmul.msk.bf16.vlgmr.msra.gmra.mxu1 %vm844_vm1, %v3662_v53  ;;  %v3815_v2 = vrot.slane %v3814_v51, 1  ;;  %v3825_v47 = vmax.f32 %v3823_v46, %v3824_v61  ;;  %v4042_v14 = vrot.slane %v4041_v54, 4  ;;  %v6603_v46 = vld [vmem:[%s6707_s14 + $0x10] sm:$0xff] }
 0x7ba   : > { %3326 = vst [vmem:[#allocation1 + $0x7] ss:$9 sm:$0xff] %v3157_v60  ;;  %4477 = vmatpush.bf16.msra.mxu1 %v6601_v22  ;;  %v7695_v22 = vadd.f32 %v4037_v37, %v4036_v20 }
 0x7bb   : > { %v3940_v53 = vsub.f32 %v7660_v15, %v3825_v47  ;;  %v3941_v60 = vsub.f32 %v3523_v5, %v3825_v47  ;;  %v3816_v24 = vmax.f32 %v3814_v51, %v3815_v2 }
 0x7bc   : > { %6494 = vrcp.f32 %v7695_v22  ;;  %vm4179_vm12 = vweird.f32 %v7695_v22 }
 0x7bd   : > { %v3978_v32 = vmul.f32 1.442695, %v3940_v53  ;;  %v3980_v9 = vmul.f32 1.442695, %v3941_v60  ;;  %v3938_v39 = vsub.f32 %v7641_v48, %v3816_v24  ;;  %v3939_v15 = vsub.f32 %v7653_v23, %v3816_v24 }
 0x7be   : > { %v7699_v8 = vpop.f32.mrf.mxu1  ;;  %v3169_v23 = vrot.slane %v7675_v57, 7 }
 0x7bf   : > { %6496 = vpow2.f32 %v3978_v32  ;;  %v3974_v27 = vmul.f32 1.442695, %v3938_v39  ;;  %v3976_v33 = vmul.f32 1.442695, %v3939_v15 }
 0x7c0   : > { %6498 = vpow2.f32 %v3980_v9 }
 0x7c1   : > { %v3327_v1 = vld [vmem:[#allocation1] sm:$0xff]  ;;  %6500 = vpow2.f32 %v3974_v27  ;;  %v7762_v27 = vpop.f32.mrf.mxu2 }
 0x7c2   : > { %3328 = vst [vmem:[#allocation1] ss:$9 sm:$0xff] %v3158_v43  ;;  %v3428_v18 = vpack.c.bf16 %v3327_v1, %v3327_v1  ;;  %v4043_v43 = vadd.f32 %v4042_v14, %v4041_v54  ;;  %v3827_v1 = vsel %vm1316_vm2, %v7699_v8, -inf  ;;  %v7711_v41 = vpop.eup %6494  ;;  %6502 = vpow2.f32 %v3976_v33 }
 0x7c3   : > { %v3828_v13 = vmax.f32 %v3826_v62, %v3827_v1  ;;  %v3174_v14 = vrot.slane %v7708_v4, 5  ;;  %vm4180_vm11 = vweird.f32 %v7711_v41  ;;  %v4183_v1 = vand.u32 2147483647, %v7695_v22 }
 0x7c4   : > { %v3682_v55 = vunpack.c.l.b16 %v3428_v18  ;;  %v4044_v5 = vrot.slane %v4043_v43, 2  ;;  %vm4181_vm13 = vmor %vm4179_vm12, %vm4180_vm11 }
 0x7c5   : > { %v3829_v26 = vrot.slane %v3828_v13, 4  ;;  %v7714_v18 = vpop.eup %6496  ;;  %vm4184_vm14 = vcmp.eq.f32.partialorder %v4183_v1, 8.507059e+37  ;;  %v6604_v1 = vld [vmem:[%s6707_s14 + $0x18] sm:$0xff] }
 0x7c6   : > { %v4045_v63 = vadd.f32 %v4044_v5, %v4043_v43 }
 0x7c8   : > { %v4046_v51 = vrot.slane %v4045_v63, 1 }
 0x7c9   : > { %v3329_v42 = vld [vmem:[#allocation1] sm:$0xff]  ;;  %v7747_v15 = vpop.f32.mrf.mxu3 }
 0x7ca   : > { %3330 = vst [vmem:[#allocation1] ss:$9 sm:$0xff] %v3159_v12  ;;  %v3429_v35 = vpack.c.bf16 %v3329_v42, %v3329_v42  ;;  %v3171_v42 = vrot.slane %v7708_v4, 2  ;;  %v7736_v47 = vadd.f32 %v4046_v51, %v4045_v63 }
 0x7cb   : > { %3331 = vst [vmem:[#allocation1 + $0x1] ss:$9 sm:$0xff] %v3160_v30  ;;  %v3170_v30 = vrot.slane %v7708_v4, 1 }
 0x7cc   : > { %3332 = vst [vmem:[#allocation1 + $0x2] ss:$9 sm:$0xff] %v3161_v19  ;;  %v3683_v45 = vunpack.c.l.b16 %v3429_v35  ;;  %v7719_v19 = vpop.eup %6498  ;;  %v4057_v35 = vsel %vm361_vm0, %v7714_v18, 0.0  ;;  %6504 = vrcp.f32 %v7736_v47  ;;  %vm4195_vm6 = vweird.f32 %v7736_v47 }
 0x7cd   : > { %3333 = vst [vmem:[#allocation1 + $0x3] ss:$9 sm:$0xff] %v3162_v56  ;;  %v3830_v56 = vmax.f32 %v3828_v13, %v3829_v26  ;;  %v3177_v26 = vrot.slane %v7762_v27, 1 }
 0x7ce   : > { %3334 = vst [vmem:[#allocation1 + $0x4] ss:$9 sm:$0xff] %v7675_v57  ;;  %v3684_v21 = vpack.c.b16 %v3683_v45, %v3682_v55 }
 0x7cf   : > { %3335 = vst [vmem:[#allocation1 + $0x5] ss:$9 sm:$0xff] %v3163_v31  ;;  %v4175_v31 = vmul.f32 %v7711_v41, %v7695_v22  ;;  %v3831_v45 = vrot.slane %v3830_v56, 2 }
 0x7d0   : > { %3336 = vst [vmem:[#allocation1 + $0x6] ss:$9 sm:$0xff] %v3164_v6  ;;  %6310 = vmatmul.msk.bf16.vlgmr.msra.gmra.mxu3 %vm844_vm1, %v3684_v21  ;;  %v4058_v6 = vsel %vm1316_vm2, %v7719_v19, 0.0 }
 0x7d1   : > { %3337 = vst [vmem:[#allocation1 + $0x7] ss:$9 sm:$0xff] %v3165_v50  ;;  %4499 = vmatpush.bf16.msra.mxu3 %v6602_v49  ;;  %v4059_v52 = vadd.f32 %v4058_v6, %v4057_v35  ;;  %v3173_v50 = vrot.slane %v7708_v4, 4  ;;  %v3832_v44 = vmax.f32 %v3830_v56, %v3831_v45  ;;  %v4176_v20 = vsub.f32 1.0, %v4175_v31  ;;  %v7731_v49 = vpop.eup %6500 }
 0x7d2   : > { %v7733_v61 = vpop.eup %6502  ;;  %v3179_v56 = vrot.slane %v7762_v27, 3  ;;  %v3180_v31 = vrot.slane %v7762_v27, 4 }
 0x7d3   : > { %v4060_v21 = vrot.slane %v4059_v52, 4  ;;  %v3833_v34 = vrot.slane %v3832_v44, 1  ;;  %v4177_v2 = vmul.f32 %v7711_v41, %v4176_v20  ;;  %v4049_v24 = vsel %vm1316_vm2, %v7733_v61, 0.0  ;;  %v7759_v5 = vpop.eup %6504 }
 0x7d4   : > { %v4191_v20 = vmul.f32 %v7759_v5, %v7736_v47  ;;  %vm4196_vm3 = vweird.f32 %v7759_v5 }
 0x7d5   : > { %v4061_v29 = vadd.f32 %v4060_v21, %v4059_v52  ;;  %v3834_v54 = vmax.f32 %v3832_v44, %v3833_v34  ;;  %v4178_v62 = vadd.f32 %v7711_v41, %v4177_v2  ;;  %v3181_v44 = vrot.slane %v7762_v27, 5  ;;  %vm7840_vm7 = vmor %vm4195_vm6, %vm4196_vm3 }
 0x7d7   : > { %v4062_v37 = vrot.slane %v4061_v29, 2  ;;  %v3942_v60 = vsub.f32 %v7691_v25, %v3834_v54  ;;  %v4185_v25 = vand.u32 2147483648, %v7695_v22  ;;  %v3176_v22 = vrot.slane %v7708_v4, 7 }
 0x7d8   : > { %v3338_v59 = vld [vmem:[#allocation1] sm:$0xff] }
 0x7d9   : > { %3339 = vst [vmem:[#allocation1] ss:$9 sm:$0xff] %v3166_v40  ;;  %v3430_v17 = vpack.c.bf16 %v3338_v59, %v3338_v59  ;;  %v4063_v53 = vadd.f32 %v4062_v37, %v4061_v29  ;;  %v3943_v40 = vsub.f32 %v7699_v8, %v3834_v54  ;;  %v4048_v59 = vsel %vm361_vm0, %v7731_v49, 0.0 }
 0x7da   : > { %v3982_v43 = vmul.f32 1.442695, %v3942_v60  ;;  %v4186_v13 = vor.u32 1.1754944e-38, %v4185_v25  ;;  %v7785_v52 = vpop.f32.mrf.mxu0  ;;  %v4192_v60 = vsub.f32 1.0, %v4191_v20 }
 0x7db   : > { %v3704_v57 = vunpack.c.l.b16 %v3430_v17  ;;  %v4064_v9 = vrot.slane %v4063_v53, 1  ;;  %v3984_v39 = vmul.f32 1.442695, %v3943_v40  ;;  %v4182_v17 = vsel %vm4181_vm13, %v7711_v41, %v4178_v62  ;;  %v7769_v41 = vpop.f32.mrf.mxu3 }
 0x7dc   : > { %6506 = vpow2.f32 %v3982_v43  ;;  %v4187_v33 = vsel %vm4184_vm14, %v4186_v13, %v4182_v17  ;;  %v3844_v62 = vsel %vm361_vm0, %v7785_v52, -inf }
 0x7dd   : > { %v7753_v8 = vadd.f32 %v4064_v9, %v4063_v53  ;;  %6508 = vpow2.f32 %v3984_v39  ;;  %v7796_v34 = vmul.f32 %v7646_v58, %v4187_v33  ;;  %v7799_v37 = vmul.f32 %v7650_v16, %v4187_v33 }
 0x7df   : > { %6510 = vrcp.f32 %v7753_v8  ;;  %v4431_v58 = vpack.c.bf16 %v7799_v37, %v7799_v37  ;;  %vm4227_vm4 = vweird.f32 %v7753_v8 }
 0x7e0   : > { %v3340_v48 = vld [vmem:[#allocation1] sm:$0xff] }
 0x7e1   : > { %3341 = vst [vmem:[#allocation1] ss:$9 sm:$0xff] %v3167_v28  ;;  %v3431_v12 = vpack.c.bf16 %v3340_v48, %v3340_v48  ;;  %v4050_v28 = vadd.f32 %v4049_v24, %v4048_v59  ;;  %v4430_v24 = vpack.c.bf16 %v7796_v34, %v7796_v34  ;;  %v4465_v33 = vunpack.c.l.b16 %v4431_v58 }
 0x7e2   : > { %3342 = vst [vmem:[#allocation1 + $0x1] ss:$9 sm:$0xff] %v3168_v3  ;;  %v3175_v3 = vrot.slane %v7708_v4, 6 }
 0x7e3   : > { %3343 = vst [vmem:[#allocation1 + $0x2] ss:$9 sm:$0xff] %v3169_v23  ;;  %v3705_v38 = vunpack.c.l.b16 %v3431_v12  ;;  %v4051_v48 = vrot.slane %v4050_v28, 4  ;;  %v7764_v23 = vpop.eup %6506 }
 0x7e4   : > { %3344 = vst [vmem:[#allocation1 + $0x3] ss:$9 sm:$0xff] %v7708_v4  ;;  %v3836_v4 = vsel %vm1316_vm2, %v7769_v41, -inf }
 0x7e5   : > { %3345 = vst [vmem:[#allocation1 + $0x4] ss:$9 sm:$0xff] %v3170_v30  ;;  %v3706_v55 = vpack.c.b16 %v3705_v38, %v3704_v57  ;;  %v3178_v30 = vrot.slane %v7762_v27, 2  ;;  %v3835_v57 = vsel %vm361_vm0, %v7747_v15, -inf }
 0x7e6   : > { %3346 = vst [vmem:[#allocation1 + $0x5] ss:$9 sm:$0xff] %v3171_v42  ;;  %v7771_v42 = vpop.eup %6508  ;;  %v3837_v6 = vmax.f32 %v3835_v57, %v3836_v4  ;;  %v4233_v57 = vand.u32 2147483648, %v7753_v8 }
 0x7e7   : > { %3347 = vst [vmem:[#allocation1 + $0x6] ss:$9 sm:$0xff] %v3172_v36  ;;  %6311 = vmatmul.msk.bf16.vlgmr.msra.gmra.mxu0 %vm844_vm1, %v3706_v55  ;;  %v4066_v36 = vsel %vm361_vm0, %v7764_v23, 0.0  ;;  %v7779_v38 = vpop.eup %6510  ;;  %v4067_v63 = vsel %vm1316_vm2, %v7771_v42, 0.0  ;;  %v4052_v55 = vadd.f32 %v4051_v48, %v4050_v28  ;;  %v4193_v28 = vmul.f32 %v7759_v5, %v4192_v60 }
 0x7e8   : > { %3348 = vst [vmem:[#allocation1 + $0x7] ss:$9 sm:$0xff] %v3173_v50  ;;  %4521 = vmatpush.bf16.msra.mxu0 %v6603_v46  ;;  %v4223_v45 = vmul.f32 %v7779_v38, %v7753_v8  ;;  %v4068_v50 = vadd.f32 %v4067_v63, %v4066_v36  ;;  %v3838_v29 = vrot.slane %v3837_v6, 4  ;;  %v7815_v48 = vunpack.c.l.b16 %v4430_v24 }
 0x7e9   : > { %v4053_v54 = vrot.slane %v4052_v55, 2  ;;  %vm4228_vm15 = vweird.f32 %v7779_v38  ;;  %v4194_v63 = vadd.f32 %v7759_v5, %v4193_v28 }
 0x7ea   : > { %v4069_v51 = vrot.slane %v4068_v50, 4  ;;  %v4224_v2 = vsub.f32 1.0, %v4223_v45  ;;  %v3839_v59 = vmax.f32 %v3837_v6, %v3838_v29  ;;  %v4231_v6 = vand.u32 2147483647, %v7753_v8  ;;  %vm7827_vm5 = vmor %vm4227_vm4, %vm4228_vm15 }
 0x7eb   : > { %v4054_v16 = vadd.f32 %v4053_v54, %v4052_v55  ;;  %v4466_v45 = vpack.c.b16 %v4465_v33, %v7815_v48  ;;  %v4234_v8 = vor.u32 1.1754944e-38, %v4233_v57  ;;  %v6605_v33 = vld [vmem:[%s6707_s14 + $0x30] sm:$0xff] }
 0x7ec   : > { %v4070_v40 = vadd.f32 %v4069_v51, %v4068_v50  ;;  %v4225_v9 = vmul.f32 %v7779_v38, %v4224_v2  ;;  %v3840_v39 = vrot.slane %v3839_v59, 2  ;;  %vm4232_vm9 = vcmp.eq.f32.partialorder %v4231_v6, 8.507059e+37  ;;  %v7849_v2 = vpop.f32.mrf.mxu2  ;;  %v6606_v6 = vld [vmem:[%s6707_s14 + $0x20] sm:$0xff] }
 0x7ed   : > { %v3184_v58 = vrot.slane %v7849_v2, 1 }
 0x7ee   : > { %v4071_v43 = vrot.slane %v4070_v40, 2  ;;  %v3841_v13 = vmax.f32 %v3839_v59, %v3840_v39  ;;  %v4226_v36 = vadd.f32 %v7779_v38, %v4225_v9 }
 0x7ef   : > { %v7745_v32 = vld [vmem:[#allocation1] sm:$0xff] }
 0x7f0   : > { %3350 = vst [vmem:[#allocation1] ss:$9 sm:$0xff] %v3174_v14  ;;  %v3432_v21 = vpack.c.bf16 %v7745_v32, %v7745_v32  ;;  %v7805_v32 = vpop.f32.mrf.mxu0  ;;  %v4072_v17 = vadd.f32 %v4071_v43, %v4070_v40  ;;  %v3186_v43 = vrot.slane %v7849_v2, 3 }
 0x7f1   : > { %v3845_v25 = vsel %vm1316_vm2, %v7805_v32, -inf }
 0x7f2   : > { %v3726_v53 = vunpack.c.l.b16 %v3432_v21  ;;  %v4073_v4 = vrot.slane %v4072_v17, 1  ;;  %v4230_v21 = vsel %vm7827_vm5, %v7779_v38, %v4226_v36 }
 0x7f3   : > { %v4235_v38 = vsel %vm4232_vm9, %v4234_v8, %v4230_v21 }
 0x7f4   : > { %v7844_v51 = vadd.f32 %v4073_v4, %v4072_v17 }
 0x7f6   : > { %6512 = vrcp.f32 %v7844_v51  ;;  %vm4243_vm11 = vweird.f32 %v7844_v51 }
 0x7f7   : > { %v3351_v12 = vld [vmem:[#allocation1] sm:$0xff] }
 0x7f8   : > { %3352 = vst [vmem:[#allocation1] ss:$9 sm:$0xff] %v3175_v3  ;;  %v3433_v35 = vpack.c.bf16 %v3351_v12, %v3351_v12  ;;  %v3846_v3 = vmax.f32 %v3844_v62, %v3845_v25  ;;  %v3182_v12 = vrot.slane %v7762_v27, 6 }
 0x7f9   : > { %3353 = vst [vmem:[#allocation1 + $0x1] ss:$9 sm:$0xff] %v3176_v22  ;;  %v4199_v22 = vand.u32 2147483647, %v7736_v47 }
 0x7fa   : > { %3354 = vst [vmem:[#allocation1 + $0x2] ss:$9 sm:$0xff] %v7762_v27  ;;  %v3727_v46 = vunpack.c.l.b16 %v3433_v35 }
 0x7fb   : > { %3355 = vst [vmem:[#allocation1 + $0x3] ss:$9 sm:$0xff] %v3177_v26  ;;  %v4201_v26 = vand.u32 2147483648, %v7736_v47  ;;  %v4198_v47 = vsel %vm7840_vm7, %v7759_v5, %v4194_v63  ;;  %vm4200_vm8 = vcmp.eq.f32.partialorder %v4199_v22, 8.507059e+37 }
 0x7fc   : > { %3356 = vst [vmem:[#allocation1 + $0x4] ss:$9 sm:$0xff] %v3178_v30  ;;  %v3728_v14 = vpack.c.b16 %v3727_v46, %v3726_v53  ;;  %v4055_v30 = vrot.slane %v4054_v16, 1  ;;  %v3183_v53 = vrot.slane %v7762_v27, 7  ;;  %v7859_v27 = vmul.f32 %v7714_v18, %v4235_v38 }
 0x7fd   : > { %3357 = vst [vmem:[#allocation1 + $0x5] ss:$9 sm:$0xff] %v3179_v56  ;;  %v3842_v56 = vrot.slane %v3841_v13, 1  ;;  %v4202_v54 = vor.u32 1.1754944e-38, %v4201_v26  ;;  %v3187_v18 = vrot.slane %v7849_v2, 4 }
 0x7fe   : > { %3358 = vst [vmem:[#allocation1 + $0x6] ss:$9 sm:$0xff] %v3180_v31  ;;  %6312 = vmatmul.msk.bf16.vlgmr.msrb.gmra.mxu1 %vm844_vm1, %v3728_v14  ;;  %v3847_v31 = vrot.slane %v3846_v3, 4  ;;  %v7833_v50 = vadd.f32 %v4055_v30, %v4054_v16  ;;  %v3185_v16 = vrot.slane %v7849_v2, 2 }
 0x7ff   : > { %3359 = vst [vmem:[#allocation1 + $0x7] ss:$9 sm:$0xff] %v3181_v44  ;;  %4543 = vmatpush.bf16.msrb.mxu1 %v6604_v1  ;;  %v7838_v44 = vpop.f32.mrf.mxu1  ;;  %v3843_v46 = vmax.f32 %v3841_v13, %v3842_v56  ;;  %v4203_v5 = vsel %vm4200_vm8, %v4202_v54, %v4198_v47  ;;  %v7871_v13 = vpop.eup %6512 }
 0x800   : > { %v3848_v29 = vmax.f32 %v3846_v3, %v3847_v31  ;;  %6514 = vrcp.f32 %v7833_v50  ;;  %9032 = vst [vmem:[#allocation2_spill] sm:$0xff] %v7859_v27  ;;  %v7867_v28 = vmul.f32 %v7680_v7, %v4203_v5  ;;  %v3188_v3 = vrot.slane %v7849_v2, 5 }
 0x801   : > { %v3944_v14 = vsub.f32 %v7747_v15, %v3843_v46  ;;  %v3945_v59 = vsub.f32 %v7769_v41, %v3843_v46  ;;  %v7864_v15 = vmul.f32 %v7719_v19, %v4235_v38  ;;  %v7874_v19 = vmul.f32 %v7683_v0, %v4203_v5 }
 0x802   : > { %v3849_v24 = vrot.slane %v3848_v29, 2  ;;  %v4239_v22 = vmul.f32 %v7871_v13, %v7844_v51  ;;  %v4436_v0 = vpack.c.bf16 %v7859_v27, %v7859_v27  ;;  %v4432_v55 = vpack.c.bf16 %v7867_v28, %v7867_v28 }
 0x803   : > { %v3986_v39 = vmul.f32 1.442695, %v3944_v14  ;;  %9033 = vst [vmem:[#allocation3_spill] sm:$0xff] %v7864_v15  ;;  %v3988_v41 = vmul.f32 1.442695, %v3945_v59  ;;  %v4437_v36 = vpack.c.bf16 %v7864_v15, %v7864_v15  ;;  %vm4244_vm10 = vweird.f32 %v7871_v13 }
 0x804   : > { %v3850_v62 = vmax.f32 %v3848_v29, %v3849_v24  ;;  %v4240_v4 = vsub.f32 1.0, %v4239_v22  ;;  %v4530_v47 = vunpack.c.l.b16 %v4436_v0  ;;  %v4249_v59 = vand.u32 2147483648, %v7844_v51  ;;  %vm4245_vm12 = vmor %vm4243_vm11, %vm4244_vm10 }
 0x805   : > { %6516 = vpow2.f32 %v3986_v39  ;;  %v4531_v54 = vunpack.c.l.b16 %v4437_v36  ;;  %v4247_v5 = vand.u32 2147483647, %v7844_v51  ;;  %v4215_v22 = vand.u32 2147483647, %v7833_v50 }
 0x806   : > { %v3360_v35 = vld [vmem:[#allocation1] sm:$0xff]  ;;  %v3851_v17 = vrot.slane %v3850_v62, 1  ;;  %6518 = vpow2.f32 %v3988_v41  ;;  %v7878_v7 = vpop.eup %6514  ;;  %v4241_v8 = vmul.f32 %v7871_v13, %v4240_v4  ;;  %v6607_v4 = vld [vmem:[%s6707_s14 + $0x48] sm:$0xff]  ;;  %vm4211_vm15 = vweird.f32 %v7833_v50 }
 0x807   : > { %3361 = vst [vmem:[#allocation1] ss:$9 sm:$0xff] %v3182_v12  ;;  %v3434_v60 = vpack.c.bf16 %v3360_v35, %v3360_v35  ;;  %v3189_v12 = vrot.slane %v7849_v2, 6  ;;  %v7883_v30 = vpop.f32.mrf.mxu1  ;;  %v3853_v35 = vsel %vm361_vm0, %v7838_v44, -inf  ;;  %v4207_v21 = vmul.f32 %v7878_v7, %v7833_v50 }
 0x808   : > { %v3852_v26 = vmax.f32 %v3850_v62, %v3851_v17  ;;  %v3854_v57 = vsel %vm1316_vm2, %v7883_v30, -inf  ;;  %v4532_v41 = vpack.c.b16 %v4531_v54, %v4530_v47  ;;  %vm4248_vm13 = vcmp.eq.f32.partialorder %v4247_v5, 8.507059e+37 }
 0x809   : > { %v3748_v25 = vunpack.c.l.b16 %v3434_v60  ;;  %v3855_v63 = vmax.f32 %v3853_v35, %v3854_v57  ;;  %v4208_v14 = vsub.f32 1.0, %v4207_v21  ;;  %vm4212_vm14 = vweird.f32 %v7878_v7 }
 0x80a   : > { %v3946_v56 = vsub.f32 %v7785_v52, %v3852_v26  ;;  %v3947_v31 = vsub.f32 %v7805_v32, %v3852_v26  ;;  %vm7948_vm3 = vmor %vm4211_vm15, %vm4212_vm14  ;;  %vm7952_vm4 = vcmp.eq.f32.partialorder %v4215_v22, 8.507059e+37 }
 0x80b   : > { %v7903_v20 = vpop.eup %6516  ;;  %v3856_v29 = vrot.slane %v3855_v63, 4 }
 0x80c   : > { %v3990_v46 = vmul.f32 1.442695, %v3946_v56  ;;  %v3992_v52 = vmul.f32 1.442695, %v3947_v31  ;;  %v7906_v32 = vpop.eup %6518  ;;  %v4075_v38 = vsel %vm361_vm0, %v7903_v20, 0.0 }
 0x80d   : > { %v4076_v60 = vsel %vm1316_vm2, %v7906_v32, 0.0 }
 0x80e   : > { %v3362_v40 = vld [vmem:[#allocation1] sm:$0xff]  ;;  %6315 = vmatmul.msk.bf16.vlgmr.msra.gmra.mxu1 %vm361_vm0, %v4466_v45  ;;  %v4433_v45 = vpack.c.bf16 %v7874_v19, %v7874_v19  ;;  %6520 = vpow2.f32 %v3990_v46  ;;  %v4077_v24 = vadd.f32 %v4076_v60, %v4075_v38  ;;  %v7930_v26 = vpop.f32.mrf.mxu3 }
 0x80f   : > { %3363 = vst [vmem:[#allocation1] ss:$9 sm:$0xff] %v3183_v53  ;;  %v3435_v9 = vpack.c.bf16 %v3362_v40, %v3362_v40  ;;  %4609 = vmatpush.bf16.msra.mxu1 %v6605_v33  ;;  %v4242_v53 = vadd.f32 %v7871_v13, %v4241_v8  ;;  %v3857_v40 = vmax.f32 %v3855_v63, %v3856_v29  ;;  %6522 = vpow2.f32 %v3992_v52 }
 0x810   : > { %3364 = vst [vmem:[#allocation1 + $0x1] ss:$9 sm:$0xff] %v7849_v2  ;;  %v4078_v62 = vrot.slane %v4077_v24, 4 }
 0x811   : > { %3365 = vst [vmem:[#allocation1 + $0x2] ss:$9 sm:$0xff] %v3184_v58  ;;  %v3749_v1 = vunpack.c.l.b16 %v3435_v9  ;;  %v3190_v58 = vrot.slane %v7849_v2, 7  ;;  %v4486_v9 = vunpack.c.l.b16 %v4432_v55 }
 0x812   : > { %3366 = vst [vmem:[#allocation1 + $0x3] ss:$9 sm:$0xff] %v3185_v16  ;;  %v3858_v16 = vrot.slane %v3857_v40, 2  ;;  %v4079_v17 = vadd.f32 %v4078_v62, %v4077_v24 }
 0x813   : > { %3367 = vst [vmem:[#allocation1 + $0x4] ss:$9 sm:$0xff] %v3186_v43  ;;  %v3750_v48 = vpack.c.b16 %v3749_v1, %v3748_v25  ;;  %v4487_v43 = vunpack.c.l.b16 %v4433_v45  ;;  %v4246_v25 = vsel %vm4245_vm12, %v7871_v13, %v4242_v53  ;;  %v4209_v1 = vmul.f32 %v7878_v7, %v4208_v14 }
 0x814   : > { %3368 = vst [vmem:[#allocation1 + $0x5] ss:$9 sm:$0xff] %v3187_v18  ;;  %v4250_v18 = vor.u32 1.1754944e-38, %v4249_v59  ;;  %v7922_v51 = vpop.eup %6520  ;;  %v4217_v13 = vand.u32 2147483648, %v7833_v50 }
 0x815   : > { %3369 = vst [vmem:[#allocation1 + $0x6] ss:$9 sm:$0xff] %v3188_v3  ;;  %6313 = vmatmul.msk.bf16.vlgmr.msrb.gmra.mxu3 %vm844_vm1, %v3750_v48  ;;  %v3859_v3 = vmax.f32 %v3857_v40, %v3858_v16  ;;  %v7924_v2 = vpop.eup %6522  ;;  %v4488_v48 = vpack.c.b16 %v4487_v43, %v4486_v9  ;;  %v4210_v0 = vadd.f32 %v7878_v7, %v4209_v1  ;;  %v4084_v36 = vsel %vm361_vm0, %v7922_v51, 0.0 }
 0x816   : > { %3370 = vst [vmem:[#allocation1 + $0x7] ss:$9 sm:$0xff] %v3189_v12  ;;  %4565 = vmatpush.bf16.msrb.mxu3 %v6606_v6  ;;  %v4251_v33 = vsel %vm4248_vm13, %v4250_v18, %v4246_v25  ;;  %v4080_v12 = vrot.slane %v4079_v17, 2  ;;  %v4085_v35 = vsel %vm1316_vm2, %v7924_v2, 0.0  ;;  %v4218_v47 = vor.u32 1.1754944e-38, %v4217_v13 }
 0x817   : > { %v3860_v57 = vrot.slane %v3859_v3, 1  ;;  %v7939_v56 = vmul.f32 %v7764_v23, %v4251_v33  ;;  %v4086_v63 = vadd.f32 %v4085_v35, %v4084_v36  ;;  %v7943_v6 = vmul.f32 %v7771_v42, %v4251_v33  ;;  %v6608_v42 = vld [vmem:[%s6707_s14 + $0x38] sm:$0xff] }
 0x818   : > { %v4081_v31 = vadd.f32 %v4080_v12, %v4079_v17  ;;  %v4214_v29 = vsel %vm7948_vm3, %v7878_v7, %v4210_v0 }
 0x819   : > { %v3861_v21 = vmax.f32 %v3859_v3, %v3860_v57  ;;  %v4087_v50 = vrot.slane %v4086_v63, 4  ;;  %v4438_v53 = vpack.c.bf16 %v7939_v56, %v7939_v56  ;;  %v4439_v59 = vpack.c.bf16 %v7943_v6, %v7943_v6  ;;  %v6609_v3 = vld [vmem:[%s6707_s14 + $0x28] sm:$0xff] }
 0x81a   : > { %v4082_v46 = vrot.slane %v4081_v31, 1  ;;  %v4219_v7 = vsel %vm7952_vm4, %v4218_v47, %v4214_v29 }
 0x81b   : > { %v3948_v54 = vsub.f32 %v7838_v44, %v3861_v21  ;;  %v3949_v38 = vsub.f32 %v7883_v30, %v3861_v21  ;;  %v4088_v40 = vadd.f32 %v4087_v50, %v4086_v63  ;;  %v3862_v44 = vsel %vm361_vm0, %v7930_v26, -inf  ;;  %v7973_v30 = vpop.f32.mrf.mxu3 }
 0x81c   : > { %v7964_v60 = vadd.f32 %v4082_v46, %v4081_v31  ;;  %v3863_v43 = vsel %vm1316_vm2, %v7973_v30, -inf  ;;  %v4553_v25 = vunpack.c.l.b16 %v4439_v59  ;;  %v7981_v18 = vmul.f32 %v7731_v49, %v4219_v7 }
 0x81d   : > { %v3371_v39 = vld [vmem:[#allocation1] sm:$0xff]  ;;  %v3994_v5 = vmul.f32 1.442695, %v3948_v54  ;;  %v4089_v16 = vrot.slane %v4088_v40, 2 }
 0x81e   : > { %3372 = vst [vmem:[#allocation1] ss:$9 sm:$0xff] %v3190_v58  ;;  %6318 = vmatmul.msk.bf16.vlgmr.msrb.gmra.mxu1 %vm361_vm0, %v4532_v41  ;;  %v3436_v45 = vpack.c.bf16 %v3371_v39, %v3371_v39  ;;  %v3996_v58 = vmul.f32 1.442695, %v3949_v38  ;;  %6524 = vrcp.f32 %v7964_v60  ;;  %v3864_v39 = vmax.f32 %v3862_v44, %v3863_v43  ;;  %v6610_v38 = vld [vmem:[%s6707_s14 + $0x58] sm:$0xff] }
 0x81f   : > { %4675 = vmatpush.bf16.msrb.mxu1 %v6607_v4  ;;  %6526 = vpow2.f32 %v3994_v5  ;;  %v7977_v62 = vpop.f32.mrf.mxu0  ;;  %v4552_v41 = vunpack.c.l.b16 %v4438_v53  ;;  %v4090_v1 = vadd.f32 %v4089_v16, %v4088_v40  ;;  %v4434_v49 = vpack.c.bf16 %v7981_v18, %v7981_v18 }
 0x820   : > { %v3770_v24 = vunpack.c.l.b16 %v3436_v45  ;;  %6528 = vpow2.f32 %v3996_v58  ;;  %v3865_v17 = vrot.slane %v3864_v39, 4  ;;  %v4265_v45 = vand.u32 2147483648, %v7964_v60 }
 0x821   : > { %v4091_v33 = vrot.slane %v4090_v1, 1  ;;  %v4554_v0 = vpack.c.b16 %v4553_v25, %v4552_v41  ;;  %v3871_v23 = vsel %vm361_vm0, %v7977_v62, -inf  ;;  %v4508_v29 = vunpack.c.l.b16 %v4434_v49 }
 0x822   : > { %v3866_v13 = vmax.f32 %v3864_v39, %v3865_v17  ;;  %vm4259_vm6 = vweird.f32 %v7964_v60  ;;  %v4266_v59 = vor.u32 1.1754944e-38, %v4265_v45 }
 0x823   : > { %v7990_v35 = vadd.f32 %v4091_v33, %v4090_v1 }
 0x824   : > { %v6525_v22 = vpop.eup %6524 }
 0x825   : > { %v3373_v55 = vld [vmem:[#allocation1] sm:$0xff]  ;;  %6316 = vmatmul.msk.bf16.vlgmr.msra.gmra.mxu3 %vm361_vm0, %v4488_v48  ;;  %v7985_v48 = vmul.f32 %v7733_v61, %v4219_v7  ;;  %v7987_v12 = vpop.eup %6526  ;;  %v4255_v36 = vmul.f32 %v6525_v22, %v7964_v60  ;;  %v3867_v61 = vrot.slane %v3866_v13, 2  ;;  %6530 = vrcp.f32 %v7990_v35 }
 0x826   : > { %v3437_v52 = vpack.c.bf16 %v3373_v55, %v3373_v55  ;;  %4631 = vmatpush.bf16.msra.mxu3 %v6608_v42  ;;  %v7992_v57 = vpop.eup %6528  ;;  %v4093_v4 = vsel %vm361_vm0, %v7987_v12, 0.0  ;;  %v4263_v55 = vand.u32 2147483647, %v7964_v60  ;;  %vm4260_vm5 = vweird.f32 %v6525_v22 }
 0x827   : > { %9038 = vst [vmem:[#allocation4_spill] sm:$0xff] %v7985_v48  ;;  %v4435_v31 = vpack.c.bf16 %v7985_v48, %v7985_v48  ;;  %v4256_v63 = vsub.f32 1.0, %v4255_v36  ;;  %v4094_v21 = vsel %vm1316_vm2, %v7992_v57, 0.0  ;;  %v3868_v8 = vmax.f32 %v3866_v13, %v3867_v61  ;;  %v8007_v46 = vpop.f32.mrf.mxu0  ;;  %vm4261_vm7 = vmor %vm4259_vm6, %vm4260_vm5 }
 0x828   : > { %v3771_v14 = vunpack.c.l.b16 %v3437_v52  ;;  %v4095_v52 = vadd.f32 %v4094_v21, %v4093_v4  ;;  %v3872_v42 = vsel %vm1316_vm2, %v8007_v46, -inf  ;;  %vm4264_vm8 = vcmp.eq.f32.partialorder %v4263_v55, 8.507059e+37 }
 0x829   : > { %v4257_v50 = vmul.f32 %v6525_v22, %v4256_v63  ;;  %v3869_v47 = vrot.slane %v3868_v8, 1  ;;  %v3873_v54 = vmax.f32 %v3871_v23, %v3872_v42  ;;  %v4509_v53 = vunpack.c.l.b16 %v4435_v31 }
 0x82a   : > { %v3772_v9 = vpack.c.b16 %v3771_v14, %v3770_v24  ;;  %v4096_v14 = vrot.slane %v4095_v52, 4  ;;  %v4281_v13 = vand.u32 2147483648, %v7990_v35  ;;  %vm4275_vm10 = vweird.f32 %v7990_v35 }
 0x82b   : > { %v4258_v40 = vadd.f32 %v6525_v22, %v4257_v50  ;;  %v3870_v24 = vmax.f32 %v3868_v8, %v3869_v47  ;;  %v3874_v5 = vrot.slane %v3873_v54, 4  ;;  %v6531_v58 = vpop.eup %6530  ;;  %v4510_v39 = vpack.c.b16 %v4509_v53, %v4508_v29 }
 0x82c   : > { %6314 = vmatmul.msk.bf16.vlgmr.msrb.gmra.mxu0 %vm844_vm1, %v3772_v9  ;;  %v4097_v44 = vadd.f32 %v4096_v14, %v4095_v52  ;;  %v4271_v9 = vmul.f32 %v6531_v58, %v7990_v35  ;;  %vm4276_vm9 = vweird.f32 %v6531_v58  ;;  %v4282_v31 = vor.u32 1.1754944e-38, %v4281_v13 }
 0x82d   : > { %4587 = vmatpush.bf16.msrb.mxu0 %v6609_v3  ;;  %v4262_v7 = vsel %vm4261_vm7, %v6525_v22, %v4258_v40  ;;  %v3950_v43 = vsub.f32 %v7930_v26, %v3870_v24  ;;  %v3951_v60 = vsub.f32 %v7973_v30, %v3870_v24  ;;  %v3875_v1 = vmax.f32 %v3873_v54, %v3874_v5  ;;  %v6611_v26 = vld [vmem:[%s6707_s14 + $0x40] sm:$0xff]  ;;  %vm4277_vm11 = vmor %vm4275_vm10, %vm4276_vm9 }
 0x82e   : > { %v4267_v16 = vsel %vm4264_vm8, %v4266_v59, %v4262_v7  ;;  %v4272_v41 = vsub.f32 1.0, %v4271_v9  ;;  %v4098_v25 = vrot.slane %v4097_v44, 2  ;;  %v4279_v30 = vand.u32 2147483647, %v7990_v35 }
 0x82f   : > { %v8020_v3 = vmul.f32 %v7903_v20, %v4267_v16  ;;  %v8023_v33 = vmul.f32 %v7906_v32, %v4267_v16  ;;  %v3998_v22 = vmul.f32 1.442695, %v3950_v43  ;;  %v4000_v49 = vmul.f32 1.442695, %v3951_v60 }
 0x830   : > { %v4099_v36 = vadd.f32 %v4098_v25, %v4097_v44  ;;  %v3876_v20 = vrot.slane %v3875_v1, 2  ;;  %vm4280_vm12 = vcmp.eq.f32.partialorder %v4279_v30, 8.507059e+37 }
 0x831   : > { %v4440_v32 = vpack.c.bf16 %v8020_v3, %v8020_v3  ;;  %v4441_v4 = vpack.c.bf16 %v8023_v33, %v8023_v33  ;;  %6532 = vpow2.f32 %v3998_v22  ;;  %v6613_v22 = vld [vmem:[%s6707_s14 + $0x68] sm:$0xff] }
 0x832   : > { %v4100_v63 = vrot.slane %v4099_v36, 1  ;;  %6534 = vpow2.f32 %v4000_v49  ;;  %v3877_v45 = vmax.f32 %v3875_v1, %v3876_v20  ;;  %v6612_v1 = vld [vmem:[%s6707_s14 + $0x60] sm:$0xff] }
 0x833   : > { %v4574_v8 = vunpack.c.l.b16 %v4440_v32  ;;  %v4575_v23 = vunpack.c.l.b16 %v4441_v4 }
 0x834   : > { %v4101_v35 = vadd.f32 %v4100_v63, %v4099_v36 }
 0x835   : > { %6319 = vmatmul.msk.bf16.vlgmr.msrb.gmra.mxu3 %vm361_vm0, %v4554_v0  ;;  %v4273_v0 = vmul.f32 %v6531_v58, %v4272_v41  ;;  %v4576_v40 = vpack.c.b16 %v4575_v23, %v4574_v8 }
 0x836   : > { %4719 = vmatpush.bf16.msrb.mxu3 %v6610_v38  ;;  %v8017_v17 = vpop.f32.mrf.mxu1  ;;  %6536 = vrcp.f32 %v4101_v35  ;;  %v3878_v38 = vrot.slane %v3877_v45, 1  ;;  %v4297_v30 = vand.u32 2147483648, %v4101_v35  ;;  %vm4291_vm14 = vweird.f32 %v4101_v35 }
 0x837   : > { %v4274_v61 = vadd.f32 %v6531_v58, %v4273_v0  ;;  %v8042_v29 = vpop.eup %6532  ;;  %v3880_v44 = vsel %vm361_vm0, %v8017_v17, -inf }
 0x838   : > { %v8048_v53 = vpop.eup %6534  ;;  %v4102_v59 = vsel %vm361_vm0, %v8042_v29, 0.0  ;;  %v3879_v7 = vmax.f32 %v3877_v45, %v3878_v38  ;;  %v4298_v63 = vor.u32 1.1754944e-38, %v4297_v30 }
 0x839   : > { %v4278_v55 = vsel %vm4277_vm11, %v6531_v58, %v4274_v61  ;;  %v4103_v24 = vsel %vm1316_vm2, %v8048_v53, 0.0 }
 0x83a   : > { %v4283_v21 = vsel %vm4280_vm12, %v4282_v31, %v4278_v55  ;;  %v4104_v58 = vadd.f32 %v4103_v24, %v4102_v59  ;;  %v3952_v41 = vsub.f32 %v7977_v62, %v3879_v7  ;;  %v3953_v25 = vsub.f32 %v8007_v46, %v3879_v7 }
 0x83b   : > { %v8035_v50 = vmul.f32 %v7922_v51, %v4283_v21  ;;  %v8038_v52 = vmul.f32 %v7924_v2, %v4283_v21  ;;  %v4295_v62 = vand.u32 2147483647, %v4101_v35 }
 0x83c   : > { %6317 = vmatmul.msk.bf16.vlgmr.msra.gmra.mxu0 %vm361_vm0, %v4510_v39  ;;  %v6537_v16 = vpop.eup %6536  ;;  %v4105_v39 = vrot.slane %v4104_v58, 4  ;;  %v4002_v0 = vmul.f32 1.442695, %v3952_v41  ;;  %v4004_v36 = vmul.f32 1.442695, %v3953_v25 }
 0x83d   : > { %4653 = vmatpush.bf16.msra.mxu0 %v6611_v26  ;;  %9039 = vst [vmem:[#allocation5_spill] sm:$0xff] %v8038_v52  ;;  %v4442_v47 = vpack.c.bf16 %v8035_v50, %v8035_v50  ;;  %v4443_v54 = vpack.c.bf16 %v8038_v52, %v8038_v52  ;;  %v4287_v43 = vmul.f32 %v6537_v16, %v4101_v35  ;;  %vm4292_vm13 = vweird.f32 %v6537_v16 }
 0x83e   : > { %v8040_v42 = vpop.f32.mrf.mxu1  ;;  %v4106_v26 = vadd.f32 %v4105_v39, %v4104_v58  ;;  %6538 = vpow2.f32 %v4002_v0  ;;  %vm4293_vm15 = vmor %vm4291_vm14, %vm4292_vm13  ;;  %vm4296_vm3 = vcmp.eq.f32.partialorder %v4295_v62, 8.507059e+37 }
 0x83f   : > { %v4596_v51 = vunpack.c.l.b16 %v4442_v47  ;;  %v4597_v14 = vunpack.c.l.b16 %v4443_v54  ;;  %v3881_v2 = vsel %vm1316_vm2, %v8040_v42, -inf  ;;  %v4288_v13 = vsub.f32 1.0, %v4287_v43 }
 0x840   : > { %v3882_v9 = vmax.f32 %v3880_v44, %v3881_v2  ;;  %v4107_v32 = vrot.slane %v4106_v26, 2  ;;  %6540 = vpow2.f32 %v4004_v36 }
 0x841   : > { %v4598_v5 = vpack.c.b16 %v4597_v14, %v4596_v51  ;;  %v4289_v20 = vmul.f32 %v6537_v16, %v4288_v13 }
 0x842   : > { %v3883_v60 = vrot.slane %v3882_v9, 4  ;;  %v4108_v46 = vadd.f32 %v4107_v32, %v4106_v26 }
 0x843   : > { %6321 = vmatmul.msk.bf16.vlgmr.msra.gmra.mxu1 %vm361_vm0, %v4598_v5  ;;  %v4290_v61 = vadd.f32 %v6537_v16, %v4289_v20 }
 0x844   : > { %4763 = vmatpush.bf16.msra.mxu1 %v6613_v22  ;;  %v3884_v49 = vmax.f32 %v3882_v9, %v3883_v60  ;;  %v4109_v21 = vrot.slane %v4108_v46, 1  ;;  %v8072_v38 = vpop.eup %6538  ;;  %v6614_v60 = vld [vmem:[%s6707_s14 + $0x78] sm:$0xff]  ;;  %s6338_s14 = sshll.u32 %s9116_s19, 5 }
 0x845   : > { %v4294_v45 = vsel %vm4293_vm15, %v6537_v16, %v4290_v61  ;;  %s8473_s6 = scalar_lea.vmem %s8946_s5, %s6338_s14 }
 0x846   : > { %v3885_v4 = vrot.slane %v3884_v49, 2  ;;  %v4299_v8 = vsel %vm4296_vm3, %v4298_v63, %v4294_v45  ;;  %v4110_v35 = vadd.f32 %v4109_v21, %v4108_v46  ;;  %v8078_v2 = vpop.eup %6540 }
 0x847   : > { %v8067_v47 = vmul.f32 %v7987_v12, %v4299_v8  ;;  %v8070_v54 = vmul.f32 %v7992_v57, %v4299_v8  ;;  %v4111_v12 = vsel %vm361_vm0, %v8072_v38, 0.0  ;;  %v4112_v58 = vsel %vm1316_vm2, %v8078_v2, 0.0 }
 0x848   : > { %v3886_v55 = vmax.f32 %v3884_v49, %v3885_v4  ;;  %6542 = vrcp.f32 %v4110_v35  ;;  %v4113_v44 = vadd.f32 %v4112_v58, %v4111_v12  ;;  %v4313_v49 = vand.u32 2147483648, %v4110_v35 }
 0x849   : > { %9040 = vst [vmem:[#allocation6_spill] sm:$0xff] %v8067_v47  ;;  %v4445_v51 = vpack.c.bf16 %v8070_v54, %v8070_v54  ;;  %v4311_v61 = vand.u32 2147483647, %v4110_v35  ;;  %vm4307_vm5 = vweird.f32 %v4110_v35 }
 0x84a   : > { %v3887_v23 = vrot.slane %v3886_v55, 1  ;;  %9041 = vst [vmem:[#allocation7_spill] sm:$0xff] %v8070_v54  ;;  %v4114_v41 = vrot.slane %v4113_v44, 4  ;;  %v4314_v8 = vor.u32 1.1754944e-38, %v4313_v49 }
 0x84b   : > { %v4619_v24 = vunpack.c.l.b16 %v4445_v51  ;;  %vm4312_vm7 = vcmp.eq.f32.partialorder %v4311_v61, 8.507059e+37 }
 0x84c   : > { %6320 = vmatmul.msk.bf16.vlgmr.msrb.gmra.mxu0 %vm361_vm0, %v4576_v40  ;;  %v4444_v40 = vpack.c.bf16 %v8067_v47, %v8067_v47  ;;  %v3888_v14 = vmax.f32 %v3886_v55, %v3887_v23 }
 0x84d   : > { %4741 = vmatpush.bf16.msrb.mxu0 %v6612_v1 }
 0x84e   : > { %v4618_v59 = vunpack.c.l.b16 %v4444_v40  ;;  %v3954_v7 = vsub.f32 %v8017_v17, %v3888_v14  ;;  %v3955_v16 = vsub.f32 %v8040_v42, %v3888_v14  ;;  %v6543_v22 = vpop.eup %6542  ;;  %v4115_v17 = vadd.f32 %v4114_v41, %v4113_v44 }
 0x84f   : > { %v4303_v26 = vmul.f32 %v6543_v22, %v4110_v35  ;;  %vm4308_vm4 = vweird.f32 %v6543_v22 }
 0x850   : > { %v4620_v5 = vpack.c.b16 %v4619_v24, %v4618_v59  ;;  %v4006_v9 = vmul.f32 1.442695, %v3954_v7  ;;  %v4008_v1 = vmul.f32 1.442695, %v3955_v16  ;;  %v4116_v42 = vrot.slane %v4115_v17, 2  ;;  %vm4309_vm6 = vmor %vm4307_vm5, %vm4308_vm4 }
 0x851   : > { %v4304_v36 = vsub.f32 1.0, %v4303_v26 }
 0x852   : > { %6322 = vmatmul.msk.bf16.vlgmr.msra.gmra.mxu3 %vm361_vm0, %v4620_v5  ;;  %6544 = vpow2.f32 %v4006_v9  ;;  %v4117_v20 = vadd.f32 %v4116_v42, %v4115_v17 }
 0x853   : > { %v8064_v31 = vpop.f32.mrf.mxu3  ;;  %4807 = vmatpush.bf16.msra.mxu3 %v6614_v60  ;;  %6546 = vpow2.f32 %v4008_v1  ;;  %v4305_v4 = vmul.f32 %v6543_v22, %v4304_v36 }
 0x854   : > { %v3889_v43 = vsel %vm361_vm0, %v8064_v31, -inf  ;;  %v4118_v46 = vrot.slane %v4117_v20, 1 }
 0x855   : > { %v4306_v21 = vadd.f32 %v6543_v22, %v4305_v4 }
 0x856   : > { %v4119_v23 = vadd.f32 %v4118_v46, %v4117_v20 }
 0x857   : > { %v4310_v14 = vsel %vm4309_vm6, %v6543_v22, %v4306_v21 }
 0x858   : > { %v8096_v32 = vpop.eup %6544  ;;  %v4315_v24 = vsel %vm4312_vm7, %v4314_v8, %v4310_v14  ;;  %6548 = vrcp.f32 %v4119_v23  ;;  %v4329_v49 = vand.u32 2147483648, %v4119_v23  ;;  %v4327_v61 = vand.u32 2147483647, %v4119_v23 }
 0x859   : > { %v4120_v63 = vsel %vm361_vm0, %v8096_v32, 0.0  ;;  %v8100_v45 = vpop.eup %6546  ;;  %v8107_v5 = vmul.f32 %v8042_v29, %v4315_v24  ;;  %v8110_v58 = vmul.f32 %v8048_v53, %v4315_v24  ;;  %vm4323_vm9 = vweird.f32 %v4119_v23 }
 0x85a   : > { %v4121_v40 = vsel %vm1316_vm2, %v8100_v45, 0.0  ;;  %vm4328_vm11 = vcmp.eq.f32.partialorder %v4327_v61, 8.507059e+37 }
 0x85b   : > { %v8082_v57 = vpop.f32.mrf.mxu3  ;;  %v4122_v59 = vadd.f32 %v4121_v40, %v4120_v63  ;;  %v4446_v44 = vpack.c.bf16 %v8107_v5, %v8107_v5  ;;  %v4447_v16 = vpack.c.bf16 %v8110_v58, %v8110_v58  ;;  %v4330_v63 = vor.u32 1.1754944e-38, %v4329_v49 }
 0x85c   : > { %v3890_v39 = vsel %vm1316_vm2, %v8082_v57, -inf }
 0x85d   : > { %v3891_v25 = vmax.f32 %v3889_v43, %v3890_v39  ;;  %v4123_v35 = vrot.slane %v4122_v59, 4  ;;  %v4640_v43 = vunpack.c.l.b16 %v4446_v44  ;;  %v4641_v39 = vunpack.c.l.b16 %v4447_v16 }
 0x85e   : > { %v6549_v41 = vpop.eup %6548 }
 0x85f   : > { %v3892_v13 = vrot.slane %v3891_v25, 4  ;;  %v4642_v22 = vpack.c.b16 %v4641_v39, %v4640_v43  ;;  %v4319_v17 = vmul.f32 %v6549_v41, %v4119_v23  ;;  %vm4324_vm8 = vweird.f32 %v6549_v41 }
 0x860   : > { %vm4325_vm10 = vmor %vm4323_vm9, %vm4324_vm8 }
 0x861   : > { %v3893_v0 = vmax.f32 %v3891_v25, %v3892_v13  ;;  %v4124_v25 = vadd.f32 %v4123_v35, %v4122_v59  ;;  %v4320_v36 = vsub.f32 1.0, %v4319_v17  ;;  %6323 = vmatmul.msk.bf16.vlgmr.msra.gmra.mxu0 %vm361_vm0, %v4642_v22 }
 0x863   : > { %v3894_v62 = vrot.slane %v3893_v0, 2  ;;  %v4125_v13 = vrot.slane %v4124_v25, 2  ;;  %v4321_v4 = vmul.f32 %v6549_v41, %v4320_v36 }
 0x864   : > { %v8094_v30 = vpop.f32.mrf.mxu0 }
 0x865   : > { %v3895_v55 = vmax.f32 %v3893_v0, %v3894_v62  ;;  %v3898_v29 = vsel %vm361_vm0, %v8094_v30, -inf  ;;  %v4126_v20 = vadd.f32 %v4125_v13, %v4124_v25  ;;  %v4322_v46 = vadd.f32 %v6549_v41, %v4321_v4 }
 0x867   : > { %v3896_v51 = vrot.slane %v3895_v55, 1  ;;  %v4326_v8 = vsel %vm4325_vm10, %v6549_v41, %v4322_v46 }
 0x869   : > { %v3897_v7 = vmax.f32 %v3895_v55, %v3896_v51  ;;  %v4331_v51 = vsel %vm4328_vm11, %v4330_v63, %v4326_v8  ;;  %vm5647_vm11 = vcmask 1047556  }
 0x86a   : > { %v8128_v59 = vmul.f32 %v8072_v38, %v4331_v51  ;;  %v8131_v24 = vmul.f32 %v8078_v2, %v4331_v51 }
 0x86b   : > { %v3956_v53 = vsub.f32 %v8064_v31, %v3897_v7  ;;  %v3957_v60 = vsub.f32 %v8082_v57, %v3897_v7  ;;  %v4127_v31 = vrot.slane %v4126_v20, 1 }
 0x86c   : > { %v8104_v12 = vpop.f32.mrf.mxu0  ;;  %v4448_v23 = vpack.c.bf16 %v8128_v59, %v8128_v59  ;;  %v4449_v7 = vpack.c.bf16 %v8131_v24, %v8131_v24 }
 0x86d   : > { %v3899_v9 = vsel %vm1316_vm2, %v8104_v12, -inf  ;;  %v4010_v26 = vmul.f32 1.442695, %v3956_v53  ;;  %v4012_v42 = vmul.f32 1.442695, %v3957_v60  ;;  %v4128_v55 = vadd.f32 %v4127_v31, %v4126_v20 }
 0x86e   : > { %v3900_v1 = vmax.f32 %v3898_v29, %v3899_v9  ;;  %v4662_v38 = vunpack.c.l.b16 %v4448_v23  ;;  %v4663_v43 = vunpack.c.l.b16 %v4449_v7 }
 0x86f   : > { %6550 = vpow2.f32 %v4010_v26  ;;  %v4345_v17 = vand.u32 2147483648, %v4128_v55  ;;  %v4343_v36 = vand.u32 2147483647, %v4128_v55  ;;  %vm4339_vm13 = vweird.f32 %v4128_v55 }
 0x870   : > { %v3901_v0 = vrot.slane %v3900_v1, 4  ;;  %6552 = vpow2.f32 %v4012_v42  ;;  %v4664_v41 = vpack.c.b16 %v4663_v43, %v4662_v38 }
 0x871   : > { %6554 = vrcp.f32 %v4128_v55  ;;  %v4346_v61 = vor.u32 1.1754944e-38, %v4345_v17  ;;  %vm4344_vm15 = vcmp.eq.f32.partialorder %v4343_v36, 8.507059e+37 }
 0x872   : > { %v3902_v62 = vmax.f32 %v3900_v1, %v3901_v0  ;;  %6324 = vmatmul.msk.bf16.vlgmr.msrb.gmra.mxu1 %vm361_vm0, %v4664_v41 }
 0x874   : > { %v3903_v57 = vrot.slane %v3902_v62, 2 }
 0x875   : > { %v8123_v40 = vpop.eup %6550 }
 0x876   : > { %v3904_v21 = vmax.f32 %v3902_v62, %v3903_v57  ;;  %v8125_v14 = vpop.eup %6552  ;;  %v4129_v44 = vsel %vm361_vm0, %v8123_v40, 0.0 }
 0x877   : > { %v4130_v16 = vsel %vm1316_vm2, %v8125_v14, 0.0  ;;  %v6555_v39 = vpop.eup %6554 }
 0x878   : > { %v3905_v35 = vrot.slane %v3904_v21, 1  ;;  %v4131_v2 = vadd.f32 %v4130_v16, %v4129_v44  ;;  %v4335_v25 = vmul.f32 %v6555_v39, %v4128_v55  ;;  %vm4340_vm12 = vweird.f32 %v6555_v39 }
 0x879   : > { %vm4341_vm14 = vmor %vm4339_vm13, %vm4340_vm12 }
 0x87a   : > { %v3906_v29 = vmax.f32 %v3904_v21, %v3905_v35  ;;  %v4132_v53 = vrot.slane %v4131_v2, 4  ;;  %v4336_v22 = vsub.f32 1.0, %v4335_v25 }
 0x87b   : > { %v8141_v9 = vpop.f32.mrf.mxu1 }
 0x87c   : > { %v3958_v60 = vsub.f32 %v8094_v30, %v3906_v29  ;;  %v3959_v1 = vsub.f32 %v8104_v12, %v3906_v29  ;;  %v4133_v13 = vadd.f32 %v4132_v53, %v4131_v2  ;;  %v4337_v0 = vmul.f32 %v6555_v39, %v4336_v22 }
 0x87d   : > { %v3907_v62 = vsel %vm361_vm0, %v8141_v9, -inf }
 0x87e   : > { %v4014_v26 = vmul.f32 1.442695, %v3958_v60  ;;  %v4016_v42 = vmul.f32 1.442695, %v3959_v1  ;;  %v4134_v20 = vrot.slane %v4133_v13, 2  ;;  %v4338_v12 = vadd.f32 %v6555_v39, %v4337_v0 }
 0x880   : > { %6556 = vpow2.f32 %v4014_v26  ;;  %v4135_v31 = vadd.f32 %v4134_v20, %v4133_v13  ;;  %v4342_v57 = vsel %vm4341_vm14, %v6555_v39, %v4338_v12 }
 0x881   : > { %6558 = vpow2.f32 %v4016_v42  ;;  %v4347_v46 = vsel %vm4344_vm15, %v4346_v61, %v4342_v57 }
 0x882   : > { %v4136_v63 = vrot.slane %v4135_v31, 1  ;;  %v8153_v21 = vmul.f32 %v8096_v32, %v4347_v46  ;;  %v8156_v8 = vmul.f32 %v8100_v45, %v4347_v46 }
 0x883   : > { %v8146_v49 = vpop.f32.mrf.mxu1 }
 0x884   : > { %v3908_v30 = vsel %vm1316_vm2, %v8146_v49, -inf  ;;  %9042 = vst [vmem:[#allocation8_spill] sm:$0xff] %v8156_v8  ;;  %v4137_v35 = vadd.f32 %v4136_v63, %v4135_v31  ;;  %v4450_v55 = vpack.c.bf16 %v8153_v21, %v8153_v21  ;;  %v4451_v7 = vpack.c.bf16 %v8156_v8, %v8156_v8 }
 0x885   : > { %v3909_v4 = vmax.f32 %v3907_v62, %v3908_v30 }
 0x886   : > { %v8158_v23 = vpop.eup %6556  ;;  %v4684_v38 = vunpack.c.l.b16 %v4450_v55  ;;  %v4685_v32 = vunpack.c.l.b16 %v4451_v7  ;;  %6560 = vrcp.f32 %v4137_v35  ;;  %v4359_v31 = vand.u32 2147483647, %v4137_v35 }
 0x887   : > { %v3910_v51 = vrot.slane %v3909_v4, 4  ;;  %v8164_v16 = vpop.eup %6558  ;;  %v4138_v39 = vsel %vm361_vm0, %v8158_v23, 0.0  ;;  %v4361_v57 = vand.u32 2147483648, %v4137_v35  ;;  %vm4355_vm4 = vweird.f32 %v4137_v35 }
 0x888   : > { %v4686_v45 = vpack.c.b16 %v4685_v32, %v4684_v38  ;;  %v4139_v2 = vsel %vm1316_vm2, %v8164_v16, 0.0  ;;  %vm4360_vm6 = vcmp.eq.f32.partialorder %v4359_v31, 8.507059e+37 }
 0x889   : > { %v3911_v43 = vmax.f32 %v3909_v4, %v3910_v51  ;;  %v4140_v29 = vadd.f32 %v4139_v2, %v4138_v39 }
 0x88a   : > { %6325 = vmatmul.msk.bf16.vlgmr.msra.gmra.mxu2 %vm361_vm0, %v4686_v45 }
 0x88b   : > { %v4479_v44 = vpop.f32.mrf.mxu1  ;;  %v3912_v41 = vrot.slane %v3911_v43, 2  ;;  %v4141_v1 = vrot.slane %v4140_v29, 4 }
 0x88c   : > { %4958 = vst [vmem:[#allocation1] ss:$9 sm:$0xff] %v4479_v44  ;;  %v4846_v25 = vrot.slane %v4479_v44, 1  ;;  %v4847_v53 = vrot.slane %v4479_v44, 2  ;;  %v4848_v60 = vrot.slane %v4479_v44, 3  ;;  %v4849_v22 = vrot.slane %v4479_v44, 4  ;;  %v6561_v26 = vpop.eup %6560 }
 0x88d   : > { %v3913_v17 = vmax.f32 %v3911_v43, %v3912_v41  ;;  %v4850_v13 = vrot.slane %v4479_v44, 5  ;;  %v4142_v42 = vadd.f32 %v4141_v1, %v4140_v29  ;;  %v4851_v0 = vrot.slane %v4479_v44, 6 }
 0x88e   : > { %4960 = vst [vmem:[#allocation1 + $0x1] ss:$9 sm:$0xff] %v4846_v25  ;;  %v4351_v20 = vmul.f32 %v6561_v26, %v4137_v35  ;;  %v4852_v30 = vrot.slane %v4479_v44, 7  ;;  %vm4356_vm3 = vweird.f32 %v6561_v26  ;;  %v4362_v43 = vor.u32 1.1754944e-38, %v4361_v57 }
 0x88f   : > { %4962 = vst [vmem:[#allocation1 + $0x2] ss:$9 sm:$0xff] %v4847_v53  ;;  %v3914_v62 = vrot.slane %v3913_v17, 1  ;;  %v4143_v12 = vrot.slane %v4142_v42, 2  ;;  %vm4357_vm5 = vmor %vm4355_vm4, %vm4356_vm3 }
 0x890   : > { %4964 = vst [vmem:[#allocation1 + $0x3] ss:$9 sm:$0xff] %v4848_v60  ;;  %v4352_v4 = vsub.f32 1.0, %v4351_v20 }
 0x891   : > { %4966 = vst [vmem:[#allocation1 + $0x4] ss:$9 sm:$0xff] %v4849_v22  ;;  %v3915_v61 = vmax.f32 %v3913_v17, %v3914_v62  ;;  %v4144_v46 = vadd.f32 %v4143_v12, %v4142_v42 }
 0x892   : > { %4968 = vst [vmem:[#allocation1 + $0x5] ss:$9 sm:$0xff] %v4850_v13  ;;  %v4353_v63 = vmul.f32 %v6561_v26, %v4352_v4 }
 0x893   : > { %4970 = vst [vmem:[#allocation1 + $0x6] ss:$9 sm:$0xff] %v4851_v0  ;;  %v3960_v51 = vsub.f32 %v8141_v9, %v3915_v61  ;;  %v3961_v55 = vsub.f32 %v8146_v49, %v3915_v61  ;;  %v4145_v7 = vrot.slane %v4144_v46, 1  ;;  %v4481_v53 = vpop.f32.mrf.mxu1 }
 0x894   : > { %4972 = vst [vmem:[#allocation1 + $0x7] ss:$9 sm:$0xff] %v4852_v30  ;;  %v4354_v38 = vadd.f32 %v6561_v26, %v4353_v63 }
 0x895   : > { %v4018_v44 = vmul.f32 1.442695, %v3960_v51  ;;  %v4020_v32 = vmul.f32 1.442695, %v3961_v55  ;;  %v8175_v45 = vadd.f32 %v4145_v7, %v4144_v46 }
 0x896   : > { %v4358_v2 = vsel %vm4357_vm5, %v6561_v26, %v4354_v38 }
 0x897   : > { %6562 = vpow2.f32 %v4018_v44  ;;  %v4363_v29 = vsel %vm4360_vm6, %v4362_v43, %v4358_v2  ;;  %v4375_v12 = vand.u32 2147483647, %v8175_v45  ;;  %v4377_v63 = vand.u32 2147483648, %v8175_v45 }
 0x898   : > { %v8171_v36 = vpop.f32.mrf.mxu3  ;;  %6564 = vrcp.f32 %v8175_v45  ;;  %v8183_v49 = vmul.f32 %v8123_v40, %v4363_v29  ;;  %v8186_v35 = vmul.f32 %v8125_v14, %v4363_v29  ;;  %vm4371_vm8 = vweird.f32 %v8175_v45 }
 0x899   : > { %6566 = vpow2.f32 %v4020_v32  ;;  %v3916_v41 = vsel %vm361_vm0, %v8171_v36, -inf  ;;  %vm4376_vm10 = vcmp.eq.f32.partialorder %v4375_v12, 8.507059e+37 }
 0x89a   : > { %9043 = vst [vmem:[#allocation9_spill] sm:$0xff] %v8186_v35  ;;  %v4452_v1 = vpack.c.bf16 %v8183_v49, %v8183_v49  ;;  %v4453_v22 = vpack.c.bf16 %v8186_v35, %v8186_v35 }
 0x89b   : > { %v8190_v25 = vld [vmem:[#allocation1] sm:$0xff] }
 0x89c   : > { %4974 = vst [vmem:[#allocation1] ss:$9 sm:$0xff] %v4481_v53  ;;  %v4706_v17 = vunpack.c.l.b16 %v4452_v1  ;;  %v4707_v14 = vunpack.c.l.b16 %v4453_v22  ;;  %v4378_v1 = vor.u32 1.1754944e-38, %v4377_v63 }
 0x89d   : > { %v8196_v40 = vpop.eup %6562 }
 0x89e   : > { %v6565_v13 = vpop.eup %6564  ;;  %v4147_v26 = vsel %vm361_vm0, %v8196_v40, 0.0  ;;  %v4708_v62 = vpack.c.b16 %v4707_v14, %v4706_v17  ;;  %v6624_v17 = vmov 1983009808  }
 0x89f   : > { %v8202_v20 = vpop.eup %6566  ;;  %v4367_v30 = vmul.f32 %v6565_v13, %v8175_v45  ;;  %vm4372_vm7 = vweird.f32 %v6565_v13  ;;  %v5652_v14 = vunpack.c.l.s4 %v6624_v17 }
 0x8a0   : > { %v8177_v39 = vpop.f32.mrf.mxu3  ;;  %v4148_v4 = vsel %vm1316_vm2, %v8202_v20, 0.0  ;;  %6326 = vmatmul.msk.bf16.vlgmr.msrb.gmra.mxu3 %vm361_vm0, %v4708_v62  ;;  %vm4373_vm9 = vmor %vm4371_vm8, %vm4372_vm7 }
 0x8a1   : > { %v3917_v9 = vsel %vm1316_vm2, %v8177_v39, -inf  ;;  %v4368_v46 = vsub.f32 1.0, %v4367_v30  ;;  %v4149_v51 = vadd.f32 %v4148_v4, %v4147_v26 }
 0x8a2   : > { %v3918_v60 = vmax.f32 %v3916_v41, %v3917_v9 }
 0x8a3   : > { %v4369_v32 = vmul.f32 %v6565_v13, %v4368_v46  ;;  %v4150_v43 = vrot.slane %v4149_v51, 4 }
 0x8a4   : > { %v3919_v42 = vrot.slane %v3918_v60, 4 }
 0x8a5   : > { %v4370_v41 = vadd.f32 %v6565_v13, %v4369_v32  ;;  %v4151_v53 = vadd.f32 %v4150_v43, %v4149_v51 }
 0x8a6   : > { %v3920_v61 = vmax.f32 %v3918_v60, %v3919_v42  ;;  %v8961_v60 = vrot.slane %v7867_v28, 4 }
 0x8a7   : > { %v4374_v26 = vsel %vm4373_vm9, %v6565_v13, %v4370_v41  ;;  %v4152_v42 = vrot.slane %v4151_v53, 2  ;;  %v8962_v41 = vrot.slane %v7796_v34, 4 }
 0x8a8   : > { %v8200_v0 = vpop.f32.mrf.mxu3  ;;  %v3921_v7 = vrot.slane %v3920_v61, 2  ;;  %v4379_v62 = vsel %vm4376_vm10, %v4378_v1, %v4374_v26 }
 0x8a9   : > { %4975 = vst [vmem:[#allocation1 + $0x1] ss:$9 sm:$0xff] %v8200_v0  ;;  %v8209_v31 = vpop.f32.mrf.mxu0  ;;  %v4853_v57 = vrot.slane %v8200_v0, 1  ;;  %v4854_v55 = vrot.slane %v8200_v0, 2  ;;  %v4855_v38 = vrot.slane %v8200_v0, 3  ;;  %v4856_v44 = vrot.slane %v8200_v0, 4 }
 0x8aa   : > { %v4857_v2 = vrot.slane %v8200_v0, 5  ;;  %v4858_v9 = vrot.slane %v8200_v0, 6  ;;  %v3922_v29 = vmax.f32 %v3920_v61, %v3921_v7  ;;  %v3925_v45 = vsel %vm361_vm0, %v8209_v31, -inf }
 0x8ab   : > { %4976 = vst [vmem:[#allocation1 + $0x2] ss:$9 sm:$0xff] %v4853_v57  ;;  %v8227_v61 = vmul.f32 %v8158_v23, %v4379_v62  ;;  %v8230_v57 = vmul.f32 %v8164_v16, %v4379_v62  ;;  %v4153_v46 = vadd.f32 %v4152_v42, %v4151_v53  ;;  %v8240_v7 = vunpack.c.0.s8 %v5652_v14 }
 0x8ac   : > { %4977 = vst [vmem:[#allocation1 + $0x3] ss:$9 sm:$0xff] %v4854_v55  ;;  %v3923_v22 = vrot.slane %v3922_v29, 1  ;;  %v5662_v55 = vsel %vm5647_vm11, %v7859_v27, %v8961_v60  ;;  %v5650_v14 = vsel %vm5647_vm11, %v7981_v18, %v8962_v41 }
 0x8ad   : > { %4978 = vst [vmem:[#allocation1 + $0x4] ss:$9 sm:$0xff] %v4855_v38  ;;  %v4454_v23 = vpack.c.bf16 %v8227_v61, %v8227_v61  ;;  %v4455_v16 = vpack.c.bf16 %v8230_v57, %v8230_v57  ;;  %v4859_v38 = vrot.slane %v8200_v0, 7  ;;  %v4154_v32 = vrot.slane %v4153_v46, 1 }
 0x8ae   : > { %4979 = vst [vmem:[#allocation1 + $0x5] ss:$9 sm:$0xff] %v4856_v44  ;;  %v3924_v30 = vmax.f32 %v3922_v29, %v3923_v22 }
 0x8af   : > { %4980 = vst [vmem:[#allocation1 + $0x6] ss:$9 sm:$0xff] %v4857_v2  ;;  %v4728_v44 = vunpack.c.l.b16 %v4454_v23  ;;  %v4155_v1 = vadd.f32 %v4154_v32, %v4153_v46 }
 0x8b0   : > { %4981 = vst [vmem:[#allocation1 + $0x7] ss:$9 sm:$0xff] %v4858_v9  ;;  %v3962_v12 = vsub.f32 %v8171_v36, %v3924_v30  ;;  %v3963_v63 = vsub.f32 %v8177_v39, %v3924_v30  ;;  %v4729_v36 = vunpack.c.l.b16 %v4455_v16  ;;  %v8248_v39 = vperm.slane %v5662_v55, %v8240_v7  ;;  %v4503_v22 = vpop.f32.mrf.mxu3 }
 0x8b1   : > { %v8224_v4 = vpop.f32.mrf.mxu0  ;;  %9044 = vst [vmem:[#allocation10_spill] sm:$0xff] %v8227_v61  ;;  %vm4387_vm13 = vweird.f32 %v4155_v1 }
 0x8b2   : > { %9045 = vst [vmem:[#allocation11_spill] sm:$0xff] %v8230_v57  ;;  %v3926_v13 = vsel %vm1316_vm2, %v8224_v4, -inf  ;;  %v4022_v43 = vmul.f32 1.442695, %v3962_v12  ;;  %v4024_v2 = vmul.f32 1.442695, %v3963_v63  ;;  %v4730_v53 = vpack.c.b16 %v4729_v36, %v4728_v44 }
 0x8b3   : > { %v3927_v51 = vmax.f32 %v3925_v45, %v3926_v13  ;;  %v5707_v26 = vrot.slane %v8248_v39, 4  ;;  %v8260_v63 = vperm.slane %v5650_v14, %v8240_v7  ;;  %v4393_v14 = vand.u32 2147483648, %v4155_v1 }
 0x8b4   : > { %6568 = vpow2.f32 %v4022_v43  ;;  %6327 = vmatmul.msk.bf16.vlgmr.msrb.gmra.mxu0 %vm361_vm0, %v4730_v53 }
 0x8b5   : > { %v3928_v29 = vrot.slane %v3927_v51, 4  ;;  %6570 = vrcp.f32 %v4155_v1  ;;  %v8266_v23 = vsel %vm5647_vm11, %v5707_v26, %v8260_v63 }
 0x8b6   : > { %6572 = vpow2.f32 %v4024_v2 }
 0x8b7   : > { %v8250_v9 = vld [vmem:[#allocation1] sm:$0xff]  ;;  %v3929_v17 = vmax.f32 %v3927_v51, %v3928_v29 }
 0x8b8   : > { %4983 = vst [vmem:[#allocation1] ss:$9 sm:$0xff] %v4859_v38 }
 0x8b9   : > { %4984 = vst [vmem:[#allocation1 + $0x1] ss:$9 sm:$0xff] %v4503_v22  ;;  %v4523_v0 = vpop.f32.mrf.mxu0  ;;  %v3930_v42 = vrot.slane %v3929_v17, 2 }
 0x8ba   : > { %4985 = vst [vmem:[#allocation1 + $0x2] ss:$9 sm:$0xff] %v4523_v0  ;;  %v4860_v62 = vrot.slane %v4523_v0, 1  ;;  %v4861_v30 = vrot.slane %v4523_v0, 2  ;;  %v4862_v45 = vrot.slane %v4523_v0, 3  ;;  %v4863_v46 = vrot.slane %v4523_v0, 4  ;;  %v8262_v51 = vpop.eup %6568 }
 0x8bb   : > { %v3931_v13 = vmax.f32 %v3929_v17, %v3930_v42  ;;  %v4864_v12 = vrot.slane %v4523_v0, 5  ;;  %v6571_v16 = vpop.eup %6570  ;;  %v4156_v38 = vsel %vm361_vm0, %v8262_v51, 0.0  ;;  %v4391_v17 = vand.u32 2147483647, %v4155_v1 }
 0x8bc   : > { %4986 = vst [vmem:[#allocation1 + $0x3] ss:$9 sm:$0xff] %v4860_v62  ;;  %v8270_v44 = vpop.eup %6572  ;;  %v4383_v36 = vmul.f32 %v6571_v16, %v4155_v1  ;;  %vm4388_vm12 = vweird.f32 %v6571_v16 }
 0x8bd   : > { %4987 = vst [vmem:[#allocation1 + $0x4] ss:$9 sm:$0xff] %v4861_v30  ;;  %v3932_v55 = vrot.slane %v3931_v13, 1  ;;  %v4157_v43 = vsel %vm1316_vm2, %v8270_v44, 0.0  ;;  %vm4389_vm14 = vmor %vm4387_vm13, %vm4388_vm12  ;;  %vm4392_vm15 = vcmp.eq.f32.partialorder %v4391_v17, 8.507059e+37 }
 0x8be   : > { %4988 = vst [vmem:[#allocation1 + $0x5] ss:$9 sm:$0xff] %v4862_v45  ;;  %v4384_v2 = vsub.f32 1.0, %v4383_v36  ;;  %v4158_v29 = vadd.f32 %v4157_v43, %v4156_v38  ;;  %v4545_v45 = vpop.f32.mrf.mxu1  ;;  %v4866_v38 = vrot.slane %v4523_v0, 7 }
 0x8bf   : > { %4989 = vst [vmem:[#allocation1 + $0x6] ss:$9 sm:$0xff] %v4863_v46  ;;  %v3933_v32 = vmax.f32 %v3931_v13, %v3932_v55  ;;  %v4394_v55 = vor.u32 1.1754944e-38, %v4393_v14  ;;  %v4867_v14 = vrot.slane %v4545_v45, 1 }
 0x8c0   : > { %4990 = vst [vmem:[#allocation1 + $0x7] ss:$9 sm:$0xff] %v4864_v12  ;;  %v4385_v26 = vmul.f32 %v6571_v16, %v4384_v2  ;;  %v4159_v42 = vrot.slane %v4158_v29, 4  ;;  %v4865_v12 = vrot.slane %v4523_v0, 6  ;;  %v4869_v2 = vrot.slane %v4545_v45, 3 }
 0x8c1   : > { %v3964_v53 = vsub.f32 %v8209_v31, %v3933_v32  ;;  %v3965_v22 = vsub.f32 %v8224_v4, %v3933_v32  ;;  %v4868_v32 = vrot.slane %v4545_v45, 2 }
 0x8c2   : > { %v4386_v46 = vadd.f32 %v6571_v16, %v4385_v26  ;;  %v4160_v13 = vadd.f32 %v4159_v42, %v4158_v29 }
 0x8c3   : > { %v4026_v62 = vmul.f32 1.442695, %v3964_v53  ;;  %v4028_v30 = vmul.f32 1.442695, %v3965_v22  ;;  %v4870_v22 = vrot.slane %v4545_v45, 4 }
 0x8c4   : > { %v4390_v4 = vsel %vm4389_vm14, %v6571_v16, %v4386_v46  ;;  %v4161_v36 = vrot.slane %v4160_v13, 2 }
 0x8c5   : > { %6574 = vpow2.f32 %v4026_v62  ;;  %v4395_v43 = vsel %vm4392_vm15, %v4394_v55, %v4390_v4  ;;  %v4525_v62 = vpop.f32.mrf.mxu0  ;;  %vm6007_vm15 = vcmask 392192  }
 0x8c6   : > { %6576 = vpow2.f32 %v4028_v30  ;;  %v8279_v1 = vmul.f32 %v8196_v40, %v4395_v43  ;;  %v8282_v29 = vmul.f32 %v8202_v20, %v4395_v43  ;;  %v4162_v53 = vadd.f32 %v4161_v36, %v4160_v13 }
 0x8c7   : > { %v8276_v31 = vld [vmem:[#allocation1] sm:$0xff]  ;;  %v4873_v36 = vrot.slane %v4545_v45, 7 }
 0x8c8   : > { %4992 = vst [vmem:[#allocation1] ss:$9 sm:$0xff] %v4865_v12  ;;  %v4456_v16 = vpack.c.bf16 %v8279_v1, %v8279_v1  ;;  %v4457_v17 = vpack.c.bf16 %v8282_v29, %v8282_v29  ;;  %v4163_v42 = vrot.slane %v4162_v53, 1 }
 0x8c9   : > { %4993 = vst [vmem:[#allocation1 + $0x1] ss:$9 sm:$0xff] %v4866_v38 }
 0x8ca   : > { %9046 = vst [vmem:[#allocation12_spill] sm:$0xff] %v8279_v1  ;;  %v4750_v40 = vunpack.c.l.b16 %v4456_v16  ;;  %v4751_v20 = vunpack.c.l.b16 %v4457_v17  ;;  %v4164_v12 = vadd.f32 %v4163_v42, %v4162_v53  ;;  %v8299_v16 = vpop.f32.mrf.mxu3  ;;  %v4547_v53 = vpop.f32.mrf.mxu1  ;;  %v5877_v42 = vrot.slane %v7864_v15, 4 }
 0x8cb   : > { %9047 = vst [vmem:[#allocation13_spill] sm:$0xff] %v8282_v29  ;;  %v8284_v0 = vpop.eup %6574 }
 0x8cc   : > { %4997 = vst [vmem:[#allocation1 + $0x5] ss:$9 sm:$0xff] %v4868_v32  ;;  %v8290_v26 = vpop.eup %6576  ;;  %v4165_v30 = vsel %vm361_vm0, %v8284_v0, 0.0  ;;  %v4752_v13 = vpack.c.b16 %v4751_v20, %v4750_v40  ;;  %6578 = vrcp.f32 %v4164_v12  ;;  %v4871_v32 = vrot.slane %v4545_v45, 5 }
 0x8cd   : > { %4998 = vst [vmem:[#allocation1 + $0x6] ss:$9 sm:$0xff] %v4869_v2  ;;  %v4166_v46 = vsel %vm1316_vm2, %v8290_v26, 0.0  ;;  %v4874_v20 = vrot.slane %v8299_v16, 1  ;;  %vm4403_vm3 = vweird.f32 %v4164_v12 }
 0x8ce   : > { %4999 = vst [vmem:[#allocation1 + $0x7] ss:$9 sm:$0xff] %v4870_v22  ;;  %v4167_v55 = vadd.f32 %v4166_v46, %v4165_v30  ;;  %6328 = vmatmul.msk.bf16.vlgmr.msra.gmra.mxu1 %vm361_vm0, %v4752_v13  ;;  %v4872_v22 = vrot.slane %v4545_v45, 6  ;;  %v4875_v46 = vrot.slane %v8299_v16, 2  ;;  %v4876_v13 = vrot.slane %v8299_v16, 3 }
 0x8cf   : > { %4995 = vst [vmem:[#allocation1 + $0x3] ss:$9 sm:$0xff] %v4545_v45  ;;  %v4409_v45 = vand.u32 2147483648, %v4164_v12 }
 0x8d0   : > { %4996 = vst [vmem:[#allocation1 + $0x4] ss:$9 sm:$0xff] %v4867_v14  ;;  %v4168_v38 = vrot.slane %v4167_v55, 4 }
 0x8d1   : > { %4994 = vst [vmem:[#allocation1 + $0x2] ss:$9 sm:$0xff] %v4525_v62 }
 0x8d2   : > { %v4169_v4 = vadd.f32 %v4168_v38, %v4167_v55  ;;  %v6579_v17 = vpop.eup %6578  ;;  %v4407_v38 = vand.u32 2147483647, %v4164_v12  ;;  %v4569_v15 = vpop.f32.mrf.mxu3 }
 0x8d3   : > { %v4399_v14 = vmul.f32 %v6579_v17, %v4164_v12  ;;  %vm4404_vm2 = vweird.f32 %v6579_v17 }
 0x8d4   : > { %v4170_v2 = vrot.slane %v4169_v4, 2  ;;  %vm4405_vm4 = vmor %vm4403_vm3, %vm4404_vm2  ;;  %vm4408_vm5 = vcmp.eq.f32.partialorder %v4407_v38, 8.507059e+37  ;;  %vm6010_vm3 = vcmask 523264  }
 0x8d5   : > { %v4400_v62 = vsub.f32 1.0, %v4399_v14 }
 0x8d6   : > { %v4171_v40 = vadd.f32 %v4170_v2, %v4169_v4 }
 0x8d7   : > { %v4401_v55 = vmul.f32 %v6579_v17, %v4400_v62 }
 0x8d8   : > { %v8297_v43 = vld [vmem:[#allocation1] sm:$0xff]  ;;  %v4172_v30 = vrot.slane %v4171_v40, 1 }
 0x8d9   : > { %5003 = vst [vmem:[#allocation1 + $0x2] ss:$9 sm:$0xff] %v4873_v36  ;;  %v5871_v36 = vrot.slane %v7985_v48, 4  ;;  %v4402_v2 = vadd.f32 %v6579_v17, %v4401_v55 }
 0x8da   : > { %5001 = vst [vmem:[#allocation1] ss:$9 sm:$0xff] %v4871_v32  ;;  %v8306_v4 = vadd.f32 %v4172_v30, %v4171_v40  ;;  %v5878_v32 = vsel %vm5647_vm11, %v5877_v42, %v7874_v19  ;;  %v6625_v42 = vmov 1934713408  }
 0x8db   : > { %5002 = vst [vmem:[#allocation1 + $0x1] ss:$9 sm:$0xff] %v4872_v22  ;;  %v4410_v22 = vor.u32 1.1754944e-38, %v4409_v45  ;;  %v4406_v14 = vsel %vm4405_vm4, %v6579_v17, %v4402_v2  ;;  %v8316_v62 = vsel %vm5647_vm11, %v5871_v36, %v7799_v37  ;;  %v8965_v17 = vrot.slane %v7939_v56, 4 }
 0x8dc   : > { %5004 = vst [vmem:[#allocation1 + $0x3] ss:$9 sm:$0xff] %v4547_v53  ;;  %6580 = vrcp.f32 %v8306_v4  ;;  %v5882_v53 = vperm.slane %v5878_v32, %v8240_v7  ;;  %v4877_v45 = vrot.slane %v8299_v16, 4  ;;  %vm4419_vm7 = vweird.f32 %v8306_v4 }
 0x8dd   : > { %5005 = vst [vmem:[#allocation1 + $0x4] ss:$9 sm:$0xff] %v8299_v16  ;;  %v5674_v40 = vsel %vm5647_vm11, %v8035_v50, %v8965_v17 }
 0x8de   : > { %5006 = vst [vmem:[#allocation1 + $0x5] ss:$9 sm:$0xff] %v4874_v20  ;;  %v4411_v20 = vsel %vm4408_vm5, %v4410_v22, %v4406_v14  ;;  %v8337_v32 = vrot.slane %v5882_v53, 4  ;;  %v4879_v22 = vrot.slane %v8299_v16, 6  ;;  %v4880_v14 = vrot.slane %v8299_v16, 7 }
 0x8df   : > { %5007 = vst [vmem:[#allocation1 + $0x6] ss:$9 sm:$0xff] %v4875_v46  ;;  %v8319_v30 = vmul.f32 %v8262_v51, %v4411_v20  ;;  %v8322_v12 = vmul.f32 %v8270_v44, %v4411_v20  ;;  %v5889_v46 = vrot.slane %v8070_v54, 4  ;;  %v4878_v51 = vrot.slane %v8299_v16, 5  ;;  %v8335_v44 = vpop.f32.mrf.mxu0 }
 0x8e0   : > { %5008 = vst [vmem:[#allocation1 + $0x7] ss:$9 sm:$0xff] %v4876_v13  ;;  %v5883_v53 = vrot.slane %v8038_v52, 4  ;;  %v4881_v2 = vrot.slane %v8335_v44, 1  ;;  %v5700_v54 = vunpack.c.l.s4 %v6625_v42  ;;  %v9050_v16 = vrot.slane %v7859_v27, 4 }
 0x8e1   : > { %9048 = vst [vmem:[#allocation14_spill] sm:$0xff] %v8319_v30  ;;  %v4458_v55 = vpack.c.bf16 %v8319_v30, %v8319_v30  ;;  %v4459_v38 = vpack.c.bf16 %v8322_v12, %v8322_v12  ;;  %v4882_v17 = vrot.slane %v8335_v44, 2  ;;  %v8970_v52 = vrot.slane %v8067_v47, 4 }
 0x8e2   : > { %9049 = vst [vmem:[#allocation15_spill] sm:$0xff] %v8322_v12  ;;  %v6581_v13 = vpop.eup %6580  ;;  %v4425_v42 = vand.u32 2147483648, %v8306_v4  ;;  %v5682_v48 = vperm.slane %v5674_v40, %v8240_v7  ;;  %v5709_v40 = vrot.slane %v8260_v63, 4 }
 0x8e3   : > { %v4772_v20 = vunpack.c.l.b16 %v4458_v55  ;;  %v4773_v60 = vunpack.c.l.b16 %v4459_v38  ;;  %v4415_v41 = vmul.f32 %v6581_v13, %v8306_v4  ;;  %v5890_v55 = vsel %vm5647_vm11, %v5889_v46, %v8023_v33 }
 0x8e4   : > { %vm4420_vm6 = vweird.f32 %v6581_v13  ;;  %v5894_v46 = vperm.slane %v5890_v55, %v8240_v7  ;;  %v5733_v63 = vrot.slane %v5682_v48, 4 }
 0x8e5   : > { %v4774_v38 = vpack.c.b16 %v4773_v60, %v4772_v20  ;;  %v9052_v20 = vrot.slane %v7981_v18, 4  ;;  %vm4421_vm8 = vmor %vm4419_vm7, %vm4420_vm6  ;;  %vm6016_vm6 = vcmask 785408  }
 0x8e7   : > { %v8333_v36 = vld [vmem:[#allocation1] sm:$0xff]  ;;  %6329 = vmatmul.msk.bf16.vlgmr.msrb.gmra.mxu2 %vm361_vm0, %v4774_v38  ;;  %v9053_v38 = vrot.slane %v8020_v3, 4 }
 0x8e8   : > { %5010 = vst [vmem:[#allocation1] ss:$9 sm:$0xff] %v4877_v45  ;;  %v5660_v45 = vsel %vm5647_vm11, %v9050_v16, %v7867_v28  ;;  %v4423_v16 = vand.u32 2147483647, %v8306_v4 }
 0x8e9   : > { %5011 = vst [vmem:[#allocation1 + $0x1] ss:$9 sm:$0xff] %v4878_v51  ;;  %v4416_v51 = vsub.f32 1.0, %v4415_v41  ;;  %v8364_v60 = vperm.slane %v5660_v45, %v8240_v7  ;;  %v8368_v41 = vsel %vm5647_vm11, %v5883_v53, %v7943_v6  ;;  %v5648_v45 = vsel %vm5647_vm11, %v9052_v20, %v7796_v34 }
 0x8ea   : > { %5012 = vst [vmem:[#allocation1 + $0x2] ss:$9 sm:$0xff] %v4879_v22  ;;  %v8971_v22 = vrot.slane %v8035_v50, 4  ;;  %v5686_v53 = vsel %vm5647_vm11, %v8067_v47, %v9053_v38  ;;  %vm4424_vm9 = vcmp.eq.f32.partialorder %v4423_v16, 8.507059e+37 }
 0x8eb   : > { %5013 = vst [vmem:[#allocation1 + $0x3] ss:$9 sm:$0xff] %v4880_v14  ;;  %v4417_v27 = vmul.f32 %v6581_v13, %v4416_v51  ;;  %v5695_v55 = vrot.slane %v8364_v60, 4 }
 0x8ec   : > { %5014 = vst [vmem:[#allocation1 + $0x4] ss:$9 sm:$0xff] %v4569_v15  ;;  %v8371_v15 = vunpack.c.0.s8 %v5700_v54  ;;  %v4426_v54 = vor.u32 1.1754944e-38, %v4425_v42 }
 0x8ed   : > { %5015 = vst [vmem:[#allocation1 + $0x5] ss:$9 sm:$0xff] %v8335_v44  ;;  %v4418_v14 = vadd.f32 %v6581_v13, %v4417_v27  ;;  %v5710_v27 = vsel %vm5647_vm11, %v8248_v39, %v5709_v40  ;;  %v8410_v40 = vperm.slane %v5648_v45, %v8240_v7  ;;  %v5901_v45 = vrot.slane %v5894_v46, 4 }
 0x8ee   : > { %9051 = vst [vmem:[#allocation16_spill] sm:$0xff] %v8364_v60  ;;  %v8407_v16 = vperm.slane %v5710_v27, %v8371_v15  ;;  %v4886_v46 = vrot.slane %v8335_v44, 6 }
 0x8ef   : > { %5016 = vst [vmem:[#allocation1 + $0x6] ss:$9 sm:$0xff] %v4881_v2  ;;  %v5694_v2 = vperm.slane %v5686_v53, %v8240_v7  ;;  %v4422_v4 = vsel %vm4421_vm8, %v6581_v13, %v4418_v14  ;;  %v5672_v13 = vsel %vm5647_vm11, %v8971_v22, %v7939_v56  ;;  %v4611_v22 = vpop.f32.mrf.mxu1 }
 0x8f0   : > { %5017 = vst [vmem:[#allocation1 + $0x7] ss:$9 sm:$0xff] %v4882_v17  ;;  %v5684_v17 = vsel %vm5647_vm11, %v8970_v52, %v8020_v3  ;;  %v4427_v51 = vsel %vm4424_vm9, %v4426_v54, %v4422_v4  ;;  %v4884_v4 = vrot.slane %v8335_v44, 4  ;;  %v4885_v52 = vrot.slane %v8335_v44, 5 }
 0x8f1   : > { %v8393_v20 = vperm.slane %v5684_v17, %v8240_v7  ;;  %v5734_v42 = vsel %vm5647_vm11, %v5694_v2, %v5733_v63  ;;  %v5731_v38 = vrot.slane %v5694_v2, 4  ;;  %v8397_v53 = vmul.f32 %v8284_v0, %v4427_v51  ;;  %9057 = vst [vmem:[#allocation20_spill] sm:$0xff] %v8407_v16 }
 0x8f2   : > { %v8400_v39 = vmul.f32 %v8290_v26, %v4427_v51  ;;  %9058 = vst [vmem:[#allocation21_spill] sm:$0xff] %v8410_v40  ;;  %v5714_v0 = vperm.slane %v8266_v23, %v8371_v15  ;;  %v4883_v63 = vrot.slane %v8335_v44, 3  ;;  %v8422_v27 = vperm.slane %v5734_v42, %v8371_v15 }
 0x8f3   : > { %9054 = vst [vmem:[#allocation17_spill] sm:$0xff] %v8393_v20  ;;  %v5719_v14 = vrot.slane %v8393_v20, 4  ;;  %v5732_v54 = vsel %vm5647_vm11, %v5731_v38, %v5682_v48  ;;  %v4460_v26 = vpack.c.bf16 %v8397_v53, %v8397_v53  ;;  %v8428_v23 = vperm.slane %v5672_v13, %v8240_v7 }
 0x8f4   : > { %9055 = vst [vmem:[#allocation18_spill] sm:$0xff] %v8397_v53  ;;  %v4461_v2 = vpack.c.bf16 %v8400_v39, %v8400_v39  ;;  %v5696_v48 = vsel %vm5647_vm11, %v5695_v55, %v8410_v40  ;;  %v5757_v42 = vrot.slane %v8407_v16, 4  ;;  %v5738_v13 = vperm.slane %v5732_v54, %v8371_v15 }
 0x8f5   : > { %9056 = vst [vmem:[#allocation19_spill] sm:$0xff] %v8400_v39  ;;  %v4794_v51 = vunpack.c.l.b16 %v4460_v26  ;;  %v5720_v60 = vsel %vm5647_vm11, %v5719_v14, %v8428_v23  ;;  %v5753_v20 = vrot.slane %v5714_v0, 4  ;;  %v4887_v55 = vrot.slane %v8335_v44, 7 }
 0x8f6   : > { %9059 = vst [vmem:[#allocation22_spill] sm:$0xff] %v8422_v27  ;;  %v4795_v38 = vunpack.c.l.b16 %v4461_v2  ;;  %v8440_v26 = vperm.slane %v5720_v60, %v8371_v15  ;;  %v8444_v2 = vsel %vm5647_vm11, %v8422_v27, %v5757_v42  ;;  %v5888_v14 = vperm.slane %v8368_v41, %v8240_v7 }
 0x8f7   : > { %v8425_v17 = vld [vmem:[#allocation1] sm:$0xff]  ;;  %9060 = vst [vmem:[#allocation23_spill] sm:$0xff] %v8428_v23  ;;  %v4888_v54 = vrot.slane %v4611_v22, 1  ;;  %v5751_v60 = vrot.slane %v5738_v13, 4  ;;  %v4889_v42 = vrot.slane %v4611_v22, 2  ;;  %v5909_v16 = vrot.slane %v8156_v8, 4 }
 0x8f8   : > { %5019 = vst [vmem:[#allocation1] ss:$9 sm:$0xff] %v4883_v63  ;;  %v4796_v47 = vpack.c.b16 %v4795_v38, %v4794_v51  ;;  %v5876_v63 = vperm.slane %v8316_v62, %v8240_v7  ;;  %v5743_v44 = vrot.slane %v8440_v26, 4  ;;  %v8456_v51 = vsel %vm5647_vm11, %v5738_v13, %v5753_v20 }
 0x8f9   : > { %5020 = vst [vmem:[#allocation1 + $0x1] ss:$9 sm:$0xff] %v4884_v4  ;;  %v4591_v4 = vpop.f32.mrf.mxu0  ;;  %v5902_v41 = vsel %vm5647_vm11, %v5901_v45, %v5888_v14  ;;  %v4891_v13 = vrot.slane %v4611_v22, 4  ;;  %v4894_v14 = vrot.slane %v4611_v22, 7  ;;  %v5921_v27 = vrot.slane %v8322_v12, 4 }
 0x8fa   : > { %5021 = vst [vmem:[#allocation1 + $0x2] ss:$9 sm:$0xff] %v4885_v52  ;;  %6330 = vmatmul.msk.bf16.vlgmr.msra.gmra.mxu3 %vm361_vm0, %v4796_v47  ;;  %v8452_v52 = vperm.slane %v5696_v48, %v8371_v15  ;;  %v5896_v62 = vsel %vm5647_vm11, %v8337_v32, %v5876_v63  ;;  %v8467_v48 = vsel %vm5647_vm11, %v5751_v60, %v5714_v0  ;;  %v4893_v63 = vrot.slane %v4611_v22, 6 }
 0x8fb   : > { %9061 = vst [vmem:[#allocation24_spill] sm:$0xff] %v8440_v26  ;;  %v5906_v38 = vperm.slane %v5902_v41, %v8371_v15  ;;  %v5900_v32 = vperm.slane %v5896_v62, %v8371_v15  ;;  %v5910_v40 = vsel %vm5647_vm11, %v5909_v16, %v8110_v58 }
 0x8fc   : > { %9062 = vst [vmem:[#allocation25_spill] sm:$0xff] %v8444_v2  ;;  %v8464_v47 = vsel %vm5647_vm11, %v5743_v44, %v8452_v52 }
 0x8fd   : > { %5022 = vst [vmem:[#allocation1 + $0x3] ss:$9 sm:$0xff] %v4886_v46  ;;  %v5907_v20 = vrot.slane %v5906_v38, 4  ;;  %v4890_v46 = vrot.slane %v4611_v22, 3 }
 0x8fe   : > { %5023 = vst [vmem:[#allocation1 + $0x4] ss:$9 sm:$0xff] %v4887_v55  ;;  %v4892_v55 = vrot.slane %v4611_v22, 5 }
 0x8ff   : > { %9063 = vst [vmem:[#allocation26_spill] sm:$0xff] %v8452_v52  ;;  %v5908_v45 = vsel %vm5647_vm11, %v5907_v20, %v5900_v32 }
 0x900   : > { %9064 = vst [vmem:[#allocation27_spill] sm:$0xff] %v8456_v51  ;;  %v5927_v51 = vrot.slane %v8400_v39, 4 }
 0x901   : > { %5024 = vst [vmem:[#allocation1 + $0x5] ss:$9 sm:$0xff] %v4591_v4  ;;  %v4613_v4 = vpop.f32.mrf.mxu1 }
 0x902   : > { %5025 = vst [vmem:[#allocation1 + $0x6] ss:$9 sm:$0xff] %v4611_v22 }
 0x903   : > { %9065 = vst [vmem:[#allocation28_spill] sm:$0xff] %v8464_v47 }
 0x904   : > { %9066 = vst [vmem:[#allocation29_spill] sm:$0xff] %v8467_v48 }
 0x905   : > { %5026 = vst [vmem:[#allocation1 + $0x7] ss:$9 sm:$0xff] %v4888_v54  ;;  %v4633_v54 = vpop.f32.mrf.mxu3 }
 0x906   : > { %6023 = vst.msk [vmem:[%s8473_s6 + $0x8] sm:$0xff] %vm361_vm0, %v5908_v45  ;;  %v4895_v44 = vrot.slane %v4633_v54, 1  ;;  %v4896_v60 = vrot.slane %v4633_v54, 2  ;;  %v4897_v41 = vrot.slane %v4633_v54, 3  ;;  %v4898_v38 = vrot.slane %v4633_v54, 4 }
 0x907   : > { %v4899_v32 = vrot.slane %v4633_v54, 5  ;;  %v4900_v20 = vrot.slane %v4633_v54, 6  ;;  %v4901_v22 = vrot.slane %v4633_v54, 7 }
 0x90c   : > { %v8479_v0 = vld [vmem:[#allocation1] sm:$0xff] }
 0x90d   : > { %5028 = vst [vmem:[#allocation1] ss:$9 sm:$0xff] %v4889_v42  ;;  %v4635_v45 = vpop.f32.mrf.mxu3  ;;  %v4655_v42 = vpop.f32.mrf.mxu0 }
 0x90e   : > { %5029 = vst [vmem:[#allocation1 + $0x1] ss:$9 sm:$0xff] %v4890_v46  ;;  %v4902_v46 = vrot.slane %v4655_v42, 1 }
 0x90f   : > { %5030 = vst [vmem:[#allocation1 + $0x2] ss:$9 sm:$0xff] %v4891_v13  ;;  %v4903_v13 = vrot.slane %v4655_v42, 2 }
 0x910   : > { %5031 = vst [vmem:[#allocation1 + $0x3] ss:$9 sm:$0xff] %v4892_v55 }
 0x911   : > { %5032 = vst [vmem:[#allocation1 + $0x4] ss:$9 sm:$0xff] %v4893_v63  ;;  %v4904_v63 = vrot.slane %v4655_v42, 3 }
 0x912   : > { %5033 = vst [vmem:[#allocation1 + $0x5] ss:$9 sm:$0xff] %v4894_v14  ;;  %v4905_v14 = vrot.slane %v4655_v42, 4 }
 0x913   : > { %5034 = vst [vmem:[#allocation1 + $0x6] ss:$9 sm:$0xff] %v4613_v4  ;;  %v4906_v4 = vrot.slane %v4655_v42, 5 }
 0x914   : > { %5035 = vst [vmem:[#allocation1 + $0x7] ss:$9 sm:$0xff] %v4633_v54  ;;  %v4677_v54 = vpop.f32.mrf.mxu1 }
 0x915   : > { %v4913_v47 = vrot.slane %v4677_v54, 5 }
 0x91b   : > { %v8481_v62 = vld [vmem:[#allocation1] sm:$0xff] }
 0x91c   : > { %5037 = vst [vmem:[#allocation1] ss:$9 sm:$0xff] %v4895_v44  ;;  %v4907_v44 = vrot.slane %v4655_v42, 6 }
 0x91d   : > { %5038 = vst [vmem:[#allocation1 + $0x1] ss:$9 sm:$0xff] %v4896_v60  ;;  %v4908_v60 = vrot.slane %v4655_v42, 7 }
 0x91e   : > { %5039 = vst [vmem:[#allocation1 + $0x2] ss:$9 sm:$0xff] %v4897_v41  ;;  %v4909_v41 = vrot.slane %v4677_v54, 1 }
 0x91f   : > { %5040 = vst [vmem:[#allocation1 + $0x3] ss:$9 sm:$0xff] %v4898_v38 }
 0x920   : > { %5041 = vst [vmem:[#allocation1 + $0x4] ss:$9 sm:$0xff] %v4899_v32  ;;  %v4657_v32 = vpop.f32.mrf.mxu0 }
 0x921   : > { %5042 = vst [vmem:[#allocation1 + $0x5] ss:$9 sm:$0xff] %v4900_v20  ;;  %v4910_v20 = vrot.slane %v4677_v54, 2 }
 0x922   : > { %5043 = vst [vmem:[#allocation1 + $0x6] ss:$9 sm:$0xff] %v4901_v22  ;;  %v4911_v22 = vrot.slane %v4677_v54, 3 }
 0x923   : > { %5044 = vst [vmem:[#allocation1 + $0x7] ss:$9 sm:$0xff] %v4635_v45  ;;  %v4912_v45 = vrot.slane %v4677_v54, 4 }
 0x92a   : > { %v8483_v55 = vld [vmem:[#allocation1] sm:$0xff] }
 0x92b   : > { %5046 = vst [vmem:[#allocation1] ss:$9 sm:$0xff] %v4655_v42  ;;  %v4699_v42 = vpop.f32.mrf.mxu2 }
 0x92c   : > { %5047 = vst [vmem:[#allocation1 + $0x1] ss:$9 sm:$0xff] %v4902_v46  ;;  %v4914_v46 = vrot.slane %v4677_v54, 6  ;;  %v4920_v2 = vrot.slane %v4699_v42, 5 }
 0x92d   : > { %5048 = vst [vmem:[#allocation1 + $0x2] ss:$9 sm:$0xff] %v4903_v13  ;;  %v4915_v13 = vrot.slane %v4677_v54, 7 }
 0x92e   : > { %5049 = vst [vmem:[#allocation1 + $0x3] ss:$9 sm:$0xff] %v4904_v63 }
 0x92f   : > { %5050 = vst [vmem:[#allocation1 + $0x4] ss:$9 sm:$0xff] %v4905_v14  ;;  %v4916_v14 = vrot.slane %v4699_v42, 1 }
 0x930   : > { %5051 = vst [vmem:[#allocation1 + $0x5] ss:$9 sm:$0xff] %v4906_v4  ;;  %v4679_v4 = vpop.f32.mrf.mxu1 }
 0x931   : > { %5052 = vst [vmem:[#allocation1 + $0x6] ss:$9 sm:$0xff] %v4907_v44  ;;  %v4917_v44 = vrot.slane %v4699_v42, 2 }
 0x932   : > { %5053 = vst [vmem:[#allocation1 + $0x7] ss:$9 sm:$0xff] %v4908_v60  ;;  %v4918_v60 = vrot.slane %v4699_v42, 3 }
 0x939   : > { %v8485_v38 = vld [vmem:[#allocation1] sm:$0xff] }
 0x93a   : > { %5055 = vst [vmem:[#allocation1] ss:$9 sm:$0xff] %v4657_v32  ;;  %v4919_v32 = vrot.slane %v4699_v42, 4 }
 0x93b   : > { %5056 = vst [vmem:[#allocation1 + $0x1] ss:$9 sm:$0xff] %v4677_v54 }
 0x93c   : > { %5057 = vst [vmem:[#allocation1 + $0x2] ss:$9 sm:$0xff] %v4909_v41  ;;  %v4921_v41 = vrot.slane %v4699_v42, 6 }
 0x93d   : > { %5058 = vst [vmem:[#allocation1 + $0x3] ss:$9 sm:$0xff] %v4910_v20  ;;  %v4922_v20 = vrot.slane %v4699_v42, 7 }
 0x93e   : > { %5059 = vst [vmem:[#allocation1 + $0x4] ss:$9 sm:$0xff] %v4911_v22 }
 0x93f   : > { %5060 = vst [vmem:[#allocation1 + $0x5] ss:$9 sm:$0xff] %v4912_v45  ;;  %v4701_v45 = vpop.f32.mrf.mxu2 }
 0x940   : > { %5061 = vst [vmem:[#allocation1 + $0x6] ss:$9 sm:$0xff] %v4913_v47  ;;  %v4721_v47 = vpop.f32.mrf.mxu3 }
 0x941   : > { %5062 = vst [vmem:[#allocation1 + $0x7] ss:$9 sm:$0xff] %v4914_v46  ;;  %v4923_v22 = vrot.slane %v4721_v47, 1  ;;  %v4924_v46 = vrot.slane %v4721_v47, 2 }
 0x948   : > { %v8487_v63 = vld [vmem:[#allocation1] sm:$0xff] }
 0x949   : > { %5064 = vst [vmem:[#allocation1] ss:$9 sm:$0xff] %v4915_v13  ;;  %v4925_v13 = vrot.slane %v4721_v47, 3 }
 0x94a   : > { %5065 = vst [vmem:[#allocation1 + $0x1] ss:$9 sm:$0xff] %v4679_v4  ;;  %v4926_v4 = vrot.slane %v4721_v47, 4 }
 0x94b   : > { %5066 = vst [vmem:[#allocation1 + $0x2] ss:$9 sm:$0xff] %v4699_v42  ;;  %v8493_v42 = vpop.f32.mrf.mxu0 }
 0x94c   : > { %5067 = vst [vmem:[#allocation1 + $0x3] ss:$9 sm:$0xff] %v4916_v14  ;;  %v4927_v14 = vrot.slane %v4721_v47, 5  ;;  %v4933_v12 = vrot.slane %v8493_v42, 4 }
 0x94d   : > { %5068 = vst [vmem:[#allocation1 + $0x4] ss:$9 sm:$0xff] %v4917_v44 }
 0x94e   : > { %5069 = vst [vmem:[#allocation1 + $0x5] ss:$9 sm:$0xff] %v4918_v60  ;;  %v8977_v60 = vrot.slane %v8153_v21, 4 }
 0x94f   : > { %5070 = vst [vmem:[#allocation1 + $0x6] ss:$9 sm:$0xff] %v4919_v32  ;;  %v4929_v32 = vrot.slane %v4721_v47, 7 }
 0x950   : > { %5071 = vst [vmem:[#allocation1 + $0x7] ss:$9 sm:$0xff] %v4920_v2  ;;  %v4928_v2 = vrot.slane %v4721_v47, 6 }
 0x957   : > { %v8489_v54 = vld [vmem:[#allocation1] sm:$0xff] }
 0x958   : > { %5073 = vst [vmem:[#allocation1] ss:$9 sm:$0xff] %v4921_v41  ;;  %v8976_v41 = vrot.slane %v8128_v59, 4 }
 0x959   : > { %5074 = vst [vmem:[#allocation1 + $0x1] ss:$9 sm:$0xff] %v4922_v20  ;;  %v4930_v20 = vrot.slane %v8493_v42, 1 }
 0x95a   : > { %5075 = vst [vmem:[#allocation1 + $0x2] ss:$9 sm:$0xff] %v4701_v45  ;;  %v4931_v45 = vrot.slane %v8493_v42, 2 }
 0x95b   : > { %5076 = vst [vmem:[#allocation1 + $0x3] ss:$9 sm:$0xff] %v4721_v47  ;;  %v5774_v47 = vsel %vm5647_vm11, %v8183_v49, %v8976_v41 }
 0x95c   : > { %5077 = vst [vmem:[#allocation1 + $0x4] ss:$9 sm:$0xff] %v4923_v22  ;;  %v8978_v22 = vrot.slane %v8183_v49, 4 }
 0x95d   : > { %5078 = vst [vmem:[#allocation1 + $0x5] ss:$9 sm:$0xff] %v4924_v46  ;;  %v5782_v46 = vperm.slane %v5774_v47, %v8240_v7 }
 0x95e   : > { %5079 = vst [vmem:[#allocation1 + $0x6] ss:$9 sm:$0xff] %v4925_v13  ;;  %v4932_v13 = vrot.slane %v8493_v42, 3  ;;  %v5772_v41 = vsel %vm5647_vm11, %v8978_v22, %v8128_v59 }
 0x95f   : > { %5080 = vst [vmem:[#allocation1 + $0x7] ss:$9 sm:$0xff] %v4926_v4  ;;  %v5760_v4 = vsel %vm5647_vm11, %v8977_v60, %v8107_v5  ;;  %v8531_v47 = vperm.slane %v5772_v41, %v8240_v7  ;;  %v5819_v41 = vrot.slane %v5782_v46, 4 }
 0x960   : > { %v8521_v60 = vperm.slane %v5760_v4, %v8240_v7  ;;  %v9069_v4 = vrot.slane %v8107_v5, 4 }
 0x962   : > { %v5762_v48 = vsel %vm5647_vm11, %v8153_v21, %v9069_v4  ;;  %v5809_v26 = vrot.slane %v8521_v60, 4 }
 0x963   : > { %v5770_v52 = vperm.slane %v5762_v48, %v8240_v7 }
 0x964   : > { %v5810_v23 = vsel %vm5647_vm11, %v8531_v47, %v5809_v26  ;;  %v4934_v26 = vrot.slane %v8493_v42, 5 }
 0x965   : > { %v5820_v48 = vsel %vm5647_vm11, %v5819_v41, %v5770_v52 }
 0x966   : > { %v8491_v44 = vld [vmem:[#allocation1] sm:$0xff] }
 0x967   : > { %5082 = vst [vmem:[#allocation1] ss:$9 sm:$0xff] %v4927_v14  ;;  %v5915_v14 = vrot.slane %v8186_v35, 4  ;;  %v4935_v35 = vrot.slane %v8493_v42, 6 }
 0x968   : > { %5083 = vst [vmem:[#allocation1 + $0x1] ss:$9 sm:$0xff] %v4928_v2  ;;  %v8984_v2 = vrot.slane %v8227_v61, 4 }
 0x969   : > { %5084 = vst [vmem:[#allocation1 + $0x2] ss:$9 sm:$0xff] %v4929_v32  ;;  %v4723_v32 = vpop.f32.mrf.mxu3  ;;  %v5916_v22 = vsel %vm5647_vm11, %v5915_v14, %v8131_v24 }
 0x96a   : > { %5086 = vst [vmem:[#allocation1 + $0x4] ss:$9 sm:$0xff] %v8493_v42  ;;  %v5786_v14 = vsel %vm5647_vm11, %v8319_v30, %v8984_v2  ;;  %v5920_v4 = vperm.slane %v5916_v22, %v8240_v7  ;;  %v4936_v2 = vrot.slane %v8493_v42, 7  ;;  %v4765_v22 = vpop.f32.mrf.mxu1  ;;  %v4745_v42 = vpop.f32.mrf.mxu0 }
 0x96b   : > { %5087 = vst [vmem:[#allocation1 + $0x5] ss:$9 sm:$0xff] %v4930_v20  ;;  %v9068_v20 = vrot.slane %v8397_v53, 4  ;;  %v5794_v39 = vperm.slane %v5786_v14, %v8240_v7  ;;  %v9070_v14 = vrot.slane %v8279_v1, 4 }
 0x96c   : > { %5088 = vst [vmem:[#allocation1 + $0x6] ss:$9 sm:$0xff] %v4931_v45  ;;  %v9067_v45 = vrot.slane %v8319_v30, 4  ;;  %v5922_v30 = vsel %vm5647_vm11, %v5921_v27, %v8230_v57  ;;  %v4937_v27 = vrot.slane %v4765_v22, 1  ;;  %v5821_v57 = vrot.slane %v5770_v52, 4 }
 0x96d   : > { %5089 = vst [vmem:[#allocation1 + $0x7] ss:$9 sm:$0xff] %v4932_v13  ;;  %v5933_v8 = vrot.slane %v5920_v4, 4 }
 0x96e   : > { %5085 = vst [vmem:[#allocation1 + $0x3] ss:$9 sm:$0xff] %v4723_v32  ;;  %v5784_v13 = vsel %vm5647_vm11, %v9067_v45, %v8227_v61  ;;  %v5796_v32 = vsel %vm5647_vm11, %v9068_v20, %v8279_v1  ;;  %v5928_v20 = vsel %vm5647_vm11, %v5927_v51, %v8282_v29  ;;  %v8580_v61 = vperm.slane %v5810_v23, %v8371_v15 }
 0x96f   : > { %v8542_v45 = vperm.slane %v5784_v13, %v8240_v7  ;;  %v8555_v13 = vperm.slane %v5796_v32, %v8240_v7  ;;  %v5932_v51 = vperm.slane %v5928_v20, %v8240_v7  ;;  %v5798_v20 = vsel %vm5647_vm11, %v8397_v53, %v9070_v14 }
 0x970   : > { %v5806_v41 = vperm.slane %v5798_v20, %v8240_v7  ;;  %v5845_v1 = vrot.slane %v5794_v39, 4  ;;  %v5914_v20 = vperm.slane %v5910_v40, %v8240_v7 }
 0x971   : > { %v5833_v32 = vrot.slane %v8542_v45, 4  ;;  %v5939_v14 = vrot.slane %v5932_v51, 4  ;;  %v5861_v51 = vrot.slane %v8580_v61, 4 }
 0x972   : > { %v5843_v53 = vrot.slane %v5806_v41, 4 }
 0x973   : > { %v5834_v16 = vsel %vm5647_vm11, %v8555_v13, %v5833_v32  ;;  %v5822_v32 = vsel %vm5647_vm11, %v5782_v46, %v5821_v57 }
 0x974   : > { %v8589_v23 = vperm.slane %v5834_v16, %v8371_v15  ;;  %v5844_v52 = vsel %vm5647_vm11, %v5843_v53, %v5794_v39 }
 0x975   : > { %v8565_v29 = vld [vmem:[#allocation1] sm:$0xff]  ;;  %v8600_v4 = vperm.slane %v5844_v52, %v8371_v15 }
 0x976   : > { %5094 = vst [vmem:[#allocation1 + $0x3] ss:$9 sm:$0xff] %v4936_v2  ;;  %v8586_v2 = vperm.slane %v5820_v48, %v8371_v15  ;;  %v5926_v48 = vperm.slane %v5922_v30, %v8240_v7  ;;  %v5934_v30 = vsel %vm5647_vm11, %v5933_v8, %v5914_v20  ;;  %v8612_v39 = vsel %vm5647_vm11, %v8589_v23, %v5861_v51  ;;  %v4767_v51 = vpop.f32.mrf.mxu1 }
 0x977   : > { %5091 = vst [vmem:[#allocation1] ss:$9 sm:$0xff] %v4933_v12  ;;  %v4938_v12 = vrot.slane %v4765_v22, 2  ;;  %v4942_v20 = vrot.slane %v4765_v22, 6 }
 0x978   : > { %5092 = vst [vmem:[#allocation1 + $0x1] ss:$9 sm:$0xff] %v4934_v26  ;;  %v5846_v26 = vsel %vm5647_vm11, %v5806_v41, %v5845_v1  ;;  %v5865_v57 = vrot.slane %v8586_v2, 4  ;;  %v8605_v1 = vperm.slane %v5822_v32, %v8371_v15  ;;  %v5940_v53 = vsel %vm5647_vm11, %v5939_v14, %v5926_v48 }
 0x979   : > { %5093 = vst [vmem:[#allocation1 + $0x2] ss:$9 sm:$0xff] %v4935_v35  ;;  %v8597_v35 = vperm.slane %v5846_v26, %v8371_v15  ;;  %v5944_v46 = vperm.slane %v5940_v53, %v8371_v15  ;;  %v5938_v41 = vperm.slane %v5934_v30, %v8371_v15  ;;  %v4939_v14 = vrot.slane %v4765_v22, 3  ;;  %v4787_v26 = vpop.f32.mrf.mxu2 }
 0x97a   : > { %5095 = vst [vmem:[#allocation1 + $0x4] ss:$9 sm:$0xff] %v4745_v42  ;;  %v8616_v40 = vsel %vm5647_vm11, %v8600_v4, %v5865_v57  ;;  %v4940_v42 = vrot.slane %v4765_v22, 4  ;;  %v4941_v32 = vrot.slane %v4765_v22, 5  ;;  %v4943_v48 = vrot.slane %v4765_v22, 7 }
 0x97b   : > { %5096 = vst [vmem:[#allocation1 + $0x5] ss:$9 sm:$0xff] %v4765_v22  ;;  %v5867_v7 = vrot.slane %v8597_v35, 4  ;;  %v4944_v52 = vrot.slane %v4787_v26, 1  ;;  %v4945_v57 = vrot.slane %v4787_v26, 2  ;;  %v4947_v53 = vrot.slane %v4787_v26, 4 }
 0x97c   : > { %5097 = vst [vmem:[#allocation1 + $0x6] ss:$9 sm:$0xff] %v4937_v27  ;;  %v5945_v27 = vrot.slane %v5944_v46, 4  ;;  %v4950_v22 = vrot.slane %v4787_v26, 7 }
 0x97d   : > { %5098 = vst [vmem:[#allocation1 + $0x7] ss:$9 sm:$0xff] %v4938_v12  ;;  %v8621_v16 = vsel %vm5647_vm11, %v5867_v7, %v8605_v1  ;;  %v4946_v7 = vrot.slane %v4787_v26, 3 }
 0x97e   : > { %v5946_v8 = vsel %vm5647_vm11, %v5945_v27, %v5938_v41  ;;  %v4948_v41 = vrot.slane %v4787_v26, 5  ;;  %v4949_v27 = vrot.slane %v4787_v26, 6 }
 0x97f   : > { %6025 = vst.msk [vmem:[%s8473_s6 + $0x18] sm:$0xff] %vm361_vm0, %v5946_v8  ;;  %v4809_v8 = vpop.f32.mrf.mxu3 }
 0x984   : > { %v5099_v12 = vld [vmem:[#allocation1] sm:$0xff] }
 0x985   : > { %5100 = vst [vmem:[#allocation1] ss:$9 sm:$0xff] %v4939_v14  ;;  %v5151_v14 = vpack.c.bf16 %v8565_v29, %v8491_v44  ;;  %v5148_v29 = vpack.c.bf16 %v8481_v62, %v8479_v0  ;;  %v4955_v44 = vrot.slane %v4809_v8, 5  ;;  %v5145_v0 = vpack.c.bf16 %v8250_v9, %v8190_v25 }
 0x986   : > { %5101 = vst [vmem:[#allocation1 + $0x1] ss:$9 sm:$0xff] %v4940_v42  ;;  %v4789_v42 = vpop.f32.mrf.mxu2  ;;  %v5214_v62 = vrot.slane %v7796_v34, 1  ;;  %v5219_v25 = vrot.slane %v7796_v34, 6  ;;  %v9071_v9 = vrot.slane %v7796_v34, 4 }
 0x987   : > { %5102 = vst [vmem:[#allocation1 + $0x2] ss:$9 sm:$0xff] %v4941_v32  ;;  %v5149_v32 = vpack.c.bf16 %v8485_v38, %v8483_v55  ;;  %v5147_v55 = vpack.c.bf16 %v8425_v17, %v8333_v36  ;;  %v5146_v38 = vpack.c.bf16 %v8297_v43, %v8276_v31  ;;  %v5216_v36 = vrot.slane %v7796_v34, 3 }
 0x988   : > { %5103 = vst [vmem:[#allocation1 + $0x3] ss:$9 sm:$0xff] %v4942_v20  ;;  %v4951_v20 = vrot.slane %v4809_v8, 1  ;;  %v5218_v31 = vrot.slane %v7796_v34, 5  ;;  %v5220_v43 = vrot.slane %v7796_v34, 7 }
 0x989   : > { %5104 = vst [vmem:[#allocation1 + $0x4] ss:$9 sm:$0xff] %v4943_v48 }
 0x98a   : > { %5105 = vst [vmem:[#allocation1 + $0x5] ss:$9 sm:$0xff] %v4767_v51  ;;  %v4954_v51 = vrot.slane %v4809_v8, 4 }
 0x98b   : > { %5106 = vst [vmem:[#allocation1 + $0x6] ss:$9 sm:$0xff] %v4787_v26  ;;  %v4952_v26 = vrot.slane %v4809_v8, 2 }
 0x98c   : > { %5107 = vst [vmem:[#allocation1 + $0x7] ss:$9 sm:$0xff] %v4944_v52  ;;  %v4953_v52 = vrot.slane %v4809_v8, 3 }
 0x993   : > { %v5108_v30 = vld [vmem:[#allocation1] sm:$0xff] }
 0x994   : > { %5109 = vst [vmem:[#allocation1] ss:$9 sm:$0xff] %v4945_v57  ;;  %v5152_v46 = vpack.c.bf16 %v5108_v30, %v5099_v12  ;;  %v5150_v12 = vpack.c.bf16 %v8489_v54, %v8487_v63  ;;  %v4956_v57 = vrot.slane %v4809_v8, 6  ;;  %v4957_v63 = vrot.slane %v4809_v8, 7  ;;  %v4811_v54 = vpop.f32.mrf.mxu3 }
 0x995   : > { %5110 = vst [vmem:[#allocation1 + $0x1] ss:$9 sm:$0xff] %v4946_v7  ;;  %v5215_v30 = vrot.slane %v7796_v34, 2 }
 0x996   : > { %5111 = vst [vmem:[#allocation1 + $0x2] ss:$9 sm:$0xff] %v4947_v53  ;;  %5154 = vmatpush.bf16.msra.mxu0 %v5152_v46  ;;  %v5221_v46 = vrot.slane %v7867_v28, 1 }
 0x997   : > { %5112 = vst [vmem:[#allocation1 + $0x3] ss:$9 sm:$0xff] %v4948_v41  ;;  %v5222_v41 = vrot.slane %v7867_v28, 2 }
 0x998   : > { %5113 = vst [vmem:[#allocation1 + $0x4] ss:$9 sm:$0xff] %v4949_v27  ;;  %v5223_v27 = vrot.slane %v7867_v28, 3 }
 0x999   : > { %5114 = vst [vmem:[#allocation1 + $0x5] ss:$9 sm:$0xff] %v4950_v22  ;;  %v5226_v22 = vrot.slane %v7867_v28, 6 }
 0x99a   : > { %5115 = vst [vmem:[#allocation1 + $0x6] ss:$9 sm:$0xff] %v4789_v42  ;;  %5155 = vmatpush.bf16.msra.mxu0 %v5151_v14  ;;  %v5228_v42 = vrot.slane %v7981_v18, 1 }
 0x99b   : > { %5116 = vst [vmem:[#allocation1 + $0x7] ss:$9 sm:$0xff] %v4809_v8  ;;  %v9072_v8 = vrot.slane %v7867_v28, 4 }
 0x99e   : > { %5156 = vmatpush.bf16.msra.mxu0 %v5150_v12  ;;  %v5229_v12 = vrot.slane %v7981_v18, 2 }
 0x9a2   : > { %v5117_v48 = vld [vmem:[#allocation1] sm:$0xff]  ;;  %5157 = vmatpush.bf16.msra.mxu0 %v5149_v32  ;;  %v5230_v32 = vrot.slane %v7981_v18, 3 }
 0x9a3   : > { %5118 = vst [vmem:[#allocation1] ss:$9 sm:$0xff] %v4951_v20  ;;  %v5232_v20 = vrot.slane %v7981_v18, 5 }
 0x9a4   : > { %5119 = vst [vmem:[#allocation1 + $0x1] ss:$9 sm:$0xff] %v4952_v26  ;;  %v5233_v26 = vrot.slane %v7981_v18, 6 }
 0x9a5   : > { %5120 = vst [vmem:[#allocation1 + $0x2] ss:$9 sm:$0xff] %v4953_v52  ;;  %v9074_v52 = vld [vmem:[#allocation2_spill] sm:$0xff] }
 0x9a6   : > { %5121 = vst [vmem:[#allocation1 + $0x3] ss:$9 sm:$0xff] %v4954_v51  ;;  %5158 = vmatpush.bf16.msra.mxu0 %v5148_v29  ;;  %v5235_v51 = vrot.slane %v9074_v52, 1  ;;  %v9075_v29 = vld [vmem:[#allocation4_spill] sm:$0xff] }
 0x9a7   : > { %5122 = vst [vmem:[#allocation1 + $0x4] ss:$9 sm:$0xff] %v4955_v44  ;;  %v5236_v44 = vrot.slane %v9074_v52, 2 }
 0x9a8   : > { %5123 = vst [vmem:[#allocation1 + $0x5] ss:$9 sm:$0xff] %v4956_v57  ;;  %v5237_v57 = vrot.slane %v9074_v52, 3 }
 0x9a9   : > { %5124 = vst [vmem:[#allocation1 + $0x6] ss:$9 sm:$0xff] %v4957_v63  ;;  %v9076_v63 = vrot.slane %v9074_v52, 4 }
 0x9aa   : > { %5125 = vst [vmem:[#allocation1 + $0x7] ss:$9 sm:$0xff] %v4811_v54  ;;  %5159 = vmatpush.bf16.msra.mxu0 %v5147_v55  ;;  %v5240_v54 = vrot.slane %v9074_v52, 6 }
 0x9ae   : > { %5160 = vmatpush.bf16.msra.mxu0 %v5146_v38  ;;  %v5241_v38 = vrot.slane %v9074_v52, 7 }
 0x9b1   : > { %v5126_v7 = vld [vmem:[#allocation1] sm:$0xff] }
 0x9b2   : > { %5326 = vst [vmem:[#allocation1] ss:$9 sm:$0xff] %v7796_v34  ;;  %v5153_v53 = vpack.c.bf16 %v5126_v7, %v5117_v48  ;;  %5161 = vmatpush.bf16.msra.mxu0 %v5145_v0  ;;  %v5225_v34 = vrot.slane %v7867_v28, 5  ;;  %v5234_v48 = vrot.slane %v7981_v18, 7  ;;  %v5242_v0 = vrot.slane %v7939_v56, 1 }
 0x9b3   : > { %5328 = vst [vmem:[#allocation1 + $0x1] ss:$9 sm:$0xff] %v5214_v62  ;;  %v9077_v62 = vld [vmem:[#allocation3_spill] sm:$0xff]  ;;  %v5243_v7 = vrot.slane %v7939_v56, 2 }
 0x9b4   : > { %5330 = vst [vmem:[#allocation1 + $0x2] ss:$9 sm:$0xff] %v5215_v30  ;;  %5175 = vmatpush.bf16.msrb.mxu1 %v5153_v53  ;;  %v5244_v30 = vrot.slane %v7939_v56, 3  ;;  %v5246_v53 = vrot.slane %v7939_v56, 5 }
 0x9b5   : > { %5332 = vst [vmem:[#allocation1 + $0x3] ss:$9 sm:$0xff] %v5216_v36  ;;  %5162 = vmatmul.bf16.vlgmr.msra.gmra.mxu0 %v7548_v11 }
 0x9b6   : > { %5334 = vst [vmem:[#allocation1 + $0x4] ss:$9 sm:$0xff] %v9071_v9  ;;  %v5248_v9 = vrot.slane %v7939_v56, 7 }
 0x9b7   : > { %5336 = vst [vmem:[#allocation1 + $0x5] ss:$9 sm:$0xff] %v5218_v31  ;;  %6331 = vmatmul.msk.bf16.vlgmr.msrb.gmra.mxu1 %vm361_vm0, %v7557_v10  ;;  %v5247_v31 = vrot.slane %v7939_v56, 6 }
 0x9b8   : > { %5338 = vst [vmem:[#allocation1 + $0x6] ss:$9 sm:$0xff] %v5219_v25  ;;  %v9078_v25 = vrot.slane %v7939_v56, 4 }
 0x9b9   : > { %5340 = vst [vmem:[#allocation1 + $0x7] ss:$9 sm:$0xff] %v5220_v43  ;;  %v5249_v43 = vrot.slane %v8020_v3, 1 }
 0x9c0   : > { %v8653_v17 = vld [vmem:[#allocation1] sm:$0xff] }
 0x9c1   : > { %5342 = vst [vmem:[#allocation1] ss:$9 sm:$0xff] %v7799_v37  ;;  %v5227_v37 = vrot.slane %v7867_v28, 7 }
 0x9c2   : > { %5343 = vst [vmem:[#allocation1 + $0x1] ss:$9 sm:$0xff] %v7867_v28  ;;  %v9073_v28 = vrot.slane %v7981_v18, 4 }
 0x9c3   : > { %5344 = vst [vmem:[#allocation1 + $0x2] ss:$9 sm:$0xff] %v5221_v46  ;;  %v5250_v46 = vrot.slane %v8020_v3, 2 }
 0x9c4   : > { %5345 = vst [vmem:[#allocation1 + $0x3] ss:$9 sm:$0xff] %v5222_v41  ;;  %v5251_v41 = vrot.slane %v8020_v3, 3 }
 0x9c5   : > { %5346 = vst [vmem:[#allocation1 + $0x4] ss:$9 sm:$0xff] %v5223_v27 }
 0x9c6   : > { %5347 = vst [vmem:[#allocation1 + $0x5] ss:$9 sm:$0xff] %v9072_v8  ;;  %v5256_v8 = vrot.slane %v8035_v50, 1 }
 0x9c7   : > { %5348 = vst [vmem:[#allocation1 + $0x6] ss:$9 sm:$0xff] %v5225_v34  ;;  %v5253_v34 = vrot.slane %v8020_v3, 5 }
 0x9c8   : > { %5349 = vst [vmem:[#allocation1 + $0x7] ss:$9 sm:$0xff] %v5226_v22  ;;  %v9079_v22 = vrot.slane %v8020_v3, 4 }
 0x9cf   : > { %v8665_v14 = vld [vmem:[#allocation1] sm:$0xff] }
 0x9d0   : > { %5351 = vst [vmem:[#allocation1] ss:$9 sm:$0xff] %v5227_v37  ;;  %v5257_v37 = vrot.slane %v8035_v50, 2 }
 0x9d1   : > { %5352 = vst [vmem:[#allocation1 + $0x1] ss:$9 sm:$0xff] %v7874_v19 }
 0x9d2   : > { %5353 = vst [vmem:[#allocation1 + $0x2] ss:$9 sm:$0xff] %v7981_v18  ;;  %v5239_v18 = vrot.slane %v9074_v52, 5 }
 0x9d3   : > { %5354 = vst [vmem:[#allocation1 + $0x3] ss:$9 sm:$0xff] %v5228_v42  ;;  %v5258_v42 = vrot.slane %v8035_v50, 3 }
 0x9d4   : > { %5355 = vst [vmem:[#allocation1 + $0x4] ss:$9 sm:$0xff] %v5229_v12 }
 0x9d5   : > { %5356 = vst [vmem:[#allocation1 + $0x5] ss:$9 sm:$0xff] %v5230_v32 }
 0x9d6   : > { %5357 = vst [vmem:[#allocation1 + $0x6] ss:$9 sm:$0xff] %v9073_v28  ;;  %v9080_v28 = vrot.slane %v8035_v50, 4 }
 0x9d7   : > { %5358 = vst [vmem:[#allocation1 + $0x7] ss:$9 sm:$0xff] %v5232_v20  ;;  %v5261_v20 = vrot.slane %v8035_v50, 6 }
 0x9de   : > { %v8677_v19 = vld [vmem:[#allocation1] sm:$0xff] }
 0x9df   : > { %5360 = vst [vmem:[#allocation1] ss:$9 sm:$0xff] %v5233_v26  ;;  %v9081_v26 = vld [vmem:[#allocation5_spill] sm:$0xff] }
 0x9e0   : > { %5361 = vst [vmem:[#allocation1 + $0x1] ss:$9 sm:$0xff] %v5234_v48  ;;  %v9082_v48 = vld [vmem:[#allocation6_spill] sm:$0xff] }
 0x9e1   : > { %5362 = vst [vmem:[#allocation1 + $0x2] ss:$9 sm:$0xff] %v9075_v29 }
 0x9e2   : > { %5363 = vst [vmem:[#allocation1 + $0x3] ss:$9 sm:$0xff] %v9074_v52  ;;  %v5263_v52 = vrot.slane %v9082_v48, 1 }
 0x9e3   : > { %5364 = vst [vmem:[#allocation1 + $0x4] ss:$9 sm:$0xff] %v5235_v51  ;;  %v5264_v51 = vrot.slane %v9082_v48, 2 }
 0x9e4   : > { %5365 = vst [vmem:[#allocation1 + $0x5] ss:$9 sm:$0xff] %v5236_v44  ;;  %v5265_v44 = vrot.slane %v9082_v48, 3 }
 0x9e5   : > { %5366 = vst [vmem:[#allocation1 + $0x6] ss:$9 sm:$0xff] %v5237_v57 }
 0x9e6   : > { %5367 = vst [vmem:[#allocation1 + $0x7] ss:$9 sm:$0xff] %v9076_v63  ;;  %v5268_v63 = vrot.slane %v9082_v48, 6 }
 0x9ed   : > { %v8688_v55 = vld [vmem:[#allocation1] sm:$0xff] }
 0x9ee   : > { %5369 = vst [vmem:[#allocation1] ss:$9 sm:$0xff] %v5239_v18  ;;  %v9083_v18 = vrot.slane %v9082_v48, 4 }
 0x9ef   : > { %5370 = vst [vmem:[#allocation1 + $0x1] ss:$9 sm:$0xff] %v5240_v54  ;;  %v5269_v54 = vrot.slane %v9082_v48, 7 }
 0x9f0   : > { %5371 = vst [vmem:[#allocation1 + $0x2] ss:$9 sm:$0xff] %v5241_v38  ;;  %v9084_v38 = vld [vmem:[#allocation7_spill] sm:$0xff] }
 0x9f1   : > { %5372 = vst [vmem:[#allocation1 + $0x3] ss:$9 sm:$0xff] %v9077_v62 }
 0x9f2   : > { %5373 = vst [vmem:[#allocation1 + $0x4] ss:$9 sm:$0xff] %v7939_v56  ;;  %v5254_v56 = vrot.slane %v8020_v3, 6 }
 0x9f3   : > { %5374 = vst [vmem:[#allocation1 + $0x5] ss:$9 sm:$0xff] %v5242_v0  ;;  %v5270_v0 = vrot.slane %v8107_v5, 1 }
 0x9f4   : > { %5375 = vst [vmem:[#allocation1 + $0x6] ss:$9 sm:$0xff] %v5243_v7  ;;  %v5271_v7 = vrot.slane %v8107_v5, 2 }
 0x9f5   : > { %5376 = vst [vmem:[#allocation1 + $0x7] ss:$9 sm:$0xff] %v5244_v30 }
 0x9fc   : > { %v8697_v36 = vld [vmem:[#allocation1] sm:$0xff] }
 0x9fd   : > { %5378 = vst [vmem:[#allocation1] ss:$9 sm:$0xff] %v9078_v25  ;;  %v5275_v25 = vrot.slane %v8107_v5, 6 }
 0x9fe   : > { %5379 = vst [vmem:[#allocation1 + $0x1] ss:$9 sm:$0xff] %v5246_v53  ;;  %v5272_v53 = vrot.slane %v8107_v5, 3 }
 0x9ff   : > { %5380 = vst [vmem:[#allocation1 + $0x2] ss:$9 sm:$0xff] %v5247_v31  ;;  %v5274_v31 = vrot.slane %v8107_v5, 5 }
 0xa00   : > { %5381 = vst [vmem:[#allocation1 + $0x3] ss:$9 sm:$0xff] %v5248_v9  ;;  %v9085_v9 = vrot.slane %v8107_v5, 4 }
 0xa01   : > { %5382 = vst [vmem:[#allocation1 + $0x4] ss:$9 sm:$0xff] %v7943_v6  ;;  %v5255_v6 = vrot.slane %v8020_v3, 7 }
 0xa02   : > { %5383 = vst [vmem:[#allocation1 + $0x5] ss:$9 sm:$0xff] %v8020_v3  ;;  %v5260_v3 = vrot.slane %v8035_v50, 5 }
 0xa03   : > { %5384 = vst [vmem:[#allocation1 + $0x6] ss:$9 sm:$0xff] %v5249_v43  ;;  %v5276_v43 = vrot.slane %v8107_v5, 7 }
 0xa04   : > { %5385 = vst [vmem:[#allocation1 + $0x7] ss:$9 sm:$0xff] %v5250_v46  ;;  %v5516_v46 = vsel %vm361_vm0, %v8665_v14, 0.0  ;;  %v5831_v14 = vrot.slane %v8555_v13, 4 }
 0xa0b   : > { %v8708_v27 = vld [vmem:[#allocation1] sm:$0xff] }
 0xa0c   : > { %5387 = vst [vmem:[#allocation1] ss:$9 sm:$0xff] %v5251_v41 }
 0xa0d   : > { %5388 = vst [vmem:[#allocation1 + $0x1] ss:$9 sm:$0xff] %v9079_v22  ;;  %v5807_v22 = vrot.slane %v8531_v47, 4  ;;  %v9086_v47 = vrot.slane %v8128_v59, 4 }
 0xa0e   : > { %5389 = vst [vmem:[#allocation1 + $0x2] ss:$9 sm:$0xff] %v5253_v34  ;;  %v5277_v34 = vrot.slane %v8128_v59, 1 }
 0xa0f   : > { %5390 = vst [vmem:[#allocation1 + $0x3] ss:$9 sm:$0xff] %v5254_v56 }
 0xa10   : > { %5391 = vst [vmem:[#allocation1 + $0x4] ss:$9 sm:$0xff] %v5255_v6  ;;  %v5278_v6 = vrot.slane %v8128_v59, 2 }
 0xa11   : > { %5392 = vst [vmem:[#allocation1 + $0x5] ss:$9 sm:$0xff] %v8023_v33  ;;  %v5262_v33 = vrot.slane %v8035_v50, 7 }
 0xa12   : > { %5393 = vst [vmem:[#allocation1 + $0x6] ss:$9 sm:$0xff] %v8035_v50  ;;  %v5267_v50 = vrot.slane %v9082_v48, 5 }
 0xa13   : > { %5394 = vst [vmem:[#allocation1 + $0x7] ss:$9 sm:$0xff] %v5256_v8  ;;  %v5281_v8 = vrot.slane %v8128_v59, 5 }
 0xa1a   : > { %v5395_v12 = vld [vmem:[#allocation1] sm:$0xff] }
 0xa1b   : > { %v5531_v32 = vsel %vm361_vm0, %v5395_v12, 0.0  ;;  %5396 = vst [vmem:[#allocation1] ss:$9 sm:$0xff] %v5257_v37  ;;  %v5808_v37 = vsel %vm5647_vm11, %v5807_v22, %v8521_v60  ;;  %v5283_v60 = vrot.slane %v8128_v59, 7 }
 0xa1c   : > { %5532 = vadd.xlane.f32.xlu2 %v5531_v32  ;;  %5397 = vst [vmem:[#allocation1 + $0x1] ss:$9 sm:$0xff] %v5258_v42  ;;  %v5832_v42 = vsel %vm5647_vm11, %v5831_v14, %v8542_v45  ;;  %v8767_v12 = vperm.slane %v5808_v37, %v8371_v15 }
 0xa1d   : > { %5398 = vst [vmem:[#allocation1 + $0x2] ss:$9 sm:$0xff] %v9080_v28  ;;  %v8770_v13 = vperm.slane %v5832_v42, %v8371_v15  ;;  %v5284_v28 = vrot.slane %v8153_v21, 1 }
 0xa1e   : > { %5399 = vst [vmem:[#allocation1 + $0x3] ss:$9 sm:$0xff] %v5260_v3  ;;  %v5857_v32 = vrot.slane %v8767_v12, 4 }
 0xa1f   : > { %5400 = vst [vmem:[#allocation1 + $0x4] ss:$9 sm:$0xff] %v5261_v20 }
 0xa20   : > { %5401 = vst [vmem:[#allocation1 + $0x5] ss:$9 sm:$0xff] %v5262_v33  ;;  %v5858_v3 = vsel %vm5647_vm11, %v8770_v13, %v5857_v32  ;;  %v5285_v33 = vrot.slane %v8153_v21, 2 }
 0xa21   : > { %5402 = vst [vmem:[#allocation1 + $0x6] ss:$9 sm:$0xff] %v9081_v26  ;;  %v5286_v26 = vrot.slane %v8153_v21, 3 }
 0xa22   : > { %5403 = vst [vmem:[#allocation1 + $0x7] ss:$9 sm:$0xff] %v9082_v48  ;;  %v5288_v48 = vrot.slane %v8153_v21, 5 }
 0xa29   : > { %v5404_v29 = vld [vmem:[#allocation1] sm:$0xff] }
 0xa2a   : > { %v5534_v57 = vsel %vm361_vm0, %v5404_v29, 0.0  ;;  %5405 = vst [vmem:[#allocation1] ss:$9 sm:$0xff] %v5263_v52  ;;  %v9087_v52 = vrot.slane %v8153_v21, 4  ;;  %v5290_v29 = vrot.slane %v8153_v21, 7 }
 0xa2b   : > { %5535 = vadd.xlane.f32.xlu2 %v5534_v57  ;;  %5406 = vst [vmem:[#allocation1 + $0x1] ss:$9 sm:$0xff] %v5264_v51 }
 0xa2c   : > { %5407 = vst [vmem:[#allocation1 + $0x2] ss:$9 sm:$0xff] %v5265_v44 }
 0xa2d   : > { %5408 = vst [vmem:[#allocation1 + $0x3] ss:$9 sm:$0xff] %v9083_v18  ;;  %v9089_v18 = vrot.slane %v8183_v49, 4 }
 0xa2e   : > { %5409 = vst [vmem:[#allocation1 + $0x4] ss:$9 sm:$0xff] %v5267_v50  ;;  %v5291_v50 = vrot.slane %v8183_v49, 1 }
 0xa2f   : > { %5410 = vst [vmem:[#allocation1 + $0x5] ss:$9 sm:$0xff] %v5268_v63  ;;  %v9088_v63 = vld [vmem:[#allocation8_spill] sm:$0xff] }
 0xa30   : > { %5411 = vst [vmem:[#allocation1 + $0x6] ss:$9 sm:$0xff] %v5269_v54  ;;  %v5295_v54 = vrot.slane %v8183_v49, 5 }
 0xa31   : > { %5412 = vst [vmem:[#allocation1 + $0x7] ss:$9 sm:$0xff] %v9084_v38 }
 0xa38   : > { %v5413_v62 = vld [vmem:[#allocation1] sm:$0xff] }
 0xa39   : > { %v5537_v30 = vsel %vm361_vm0, %v5413_v62, 0.0  ;;  %5414 = vst [vmem:[#allocation1] ss:$9 sm:$0xff] %v8107_v5  ;;  %v5279_v5 = vrot.slane %v8128_v59, 3 }
 0xa3a   : > { %5538 = vadd.xlane.f32.xlu0 %v5537_v30  ;;  %5415 = vst [vmem:[#allocation1 + $0x1] ss:$9 sm:$0xff] %v5270_v0  ;;  %v5297_v0 = vrot.slane %v8183_v49, 7 }
 0xa3b   : > { %5416 = vst [vmem:[#allocation1 + $0x2] ss:$9 sm:$0xff] %v5271_v7  ;;  %v9090_v7 = vld [vmem:[#allocation10_spill] sm:$0xff] }
 0xa3c   : > { %5417 = vst [vmem:[#allocation1 + $0x3] ss:$9 sm:$0xff] %v5272_v53  ;;  %v5298_v30 = vrot.slane %v9090_v7, 1  ;;  %v9091_v53 = vld [vmem:[#allocation9_spill] sm:$0xff] }
 0xa3d   : > { %5418 = vst [vmem:[#allocation1 + $0x4] ss:$9 sm:$0xff] %v9085_v9 }
 0xa3e   : > { %5419 = vst [vmem:[#allocation1 + $0x5] ss:$9 sm:$0xff] %v5274_v31  ;;  %v5299_v31 = vrot.slane %v9090_v7, 2 }
 0xa3f   : > { %5420 = vst [vmem:[#allocation1 + $0x6] ss:$9 sm:$0xff] %v5275_v25  ;;  %v5300_v25 = vrot.slane %v9090_v7, 3 }
 0xa40   : > { %5421 = vst [vmem:[#allocation1 + $0x7] ss:$9 sm:$0xff] %v5276_v43  ;;  %v5303_v43 = vrot.slane %v9090_v7, 6 }
 0xa42   : > { %5517 = vadd.xlane.f32.xlu0 %v5516_v46 }
 0xa47   : > { %v5422_v41 = vld [vmem:[#allocation1] sm:$0xff] }
 0xa48   : > { %v5540_v56 = vsel %vm361_vm0, %v5422_v41, 0.0  ;;  %5423 = vst [vmem:[#allocation1] ss:$9 sm:$0xff] %v8110_v58  ;;  %v5282_v58 = vrot.slane %v8128_v59, 6  ;;  %v9092_v41 = vrot.slane %v9090_v7, 4 }
 0xa49   : > { %5541 = vadd.xlane.f32.xlu2 %v5540_v56  ;;  %5424 = vst [vmem:[#allocation1 + $0x1] ss:$9 sm:$0xff] %v8128_v59  ;;  %v5859_v59 = vrot.slane %v8589_v23, 4  ;;  %v5289_v23 = vrot.slane %v8153_v21, 6  ;;  %v9093_v56 = vld [vmem:[#allocation12_spill] sm:$0xff] }
 0xa4a   : > { %5425 = vst [vmem:[#allocation1 + $0x2] ss:$9 sm:$0xff] %v5277_v34  ;;  %v5304_v34 = vrot.slane %v9090_v7, 7  ;;  %v5305_v22 = vrot.slane %v9093_v56, 1  ;;  %v5307_v14 = vrot.slane %v9093_v56, 3  ;;  %v5309_v37 = vrot.slane %v9093_v56, 5 }
 0xa4b   : > { %5426 = vst [vmem:[#allocation1 + $0x3] ss:$9 sm:$0xff] %v5278_v6  ;;  %v5860_v51 = vsel %vm5647_vm11, %v5859_v59, %v8580_v61  ;;  %v5522_v61 = vsel %vm361_vm0, %v8688_v55, 0.0  ;;  %v5296_v55 = vrot.slane %v8183_v49, 6  ;;  %v9094_v6 = vld [vmem:[#allocation11_spill] sm:$0xff]  ;;  %v9095_v42 = vrot.slane %v9093_v56, 4 }
 0xa4c   : > { %5427 = vst [vmem:[#allocation1 + $0x4] ss:$9 sm:$0xff] %v5279_v5  ;;  %v5306_v5 = vrot.slane %v9093_v56, 2  ;;  %v5311_v32 = vrot.slane %v9093_v56, 7 }
 0xa4d   : > { %5428 = vst [vmem:[#allocation1 + $0x5] ss:$9 sm:$0xff] %v9086_v47  ;;  %v5310_v47 = vrot.slane %v9093_v56, 6 }
 0xa4e   : > { %5429 = vst [vmem:[#allocation1 + $0x6] ss:$9 sm:$0xff] %v5281_v8 }
 0xa4f   : > { %5430 = vst [vmem:[#allocation1 + $0x7] ss:$9 sm:$0xff] %v5282_v58 }
 0xa56   : > { %v5431_v20 = vld [vmem:[#allocation1] sm:$0xff]  ;;  %5951 = vrot.lane.b32.xlu0 %v5858_v3, %s6626_s7 }
 0xa57   : > { %v5543_v45 = vsel %vm361_vm0, %v5431_v20, 0.0  ;;  %5432 = vst [vmem:[#allocation1] ss:$9 sm:$0xff] %v5283_v60  ;;  %v9096_v60 = vld [vmem:[#allocation14_spill] sm:$0xff]  ;;  %v9097_v20 = vld [vmem:[#allocation13_spill] sm:$0xff] }
 0xa58   : > { %5544 = vadd.xlane.f32.xlu1 %v5543_v45  ;;  %5433 = vst [vmem:[#allocation1 + $0x1] ss:$9 sm:$0xff] %v8131_v24  ;;  %v5528_v24 = vsel %vm361_vm0, %v8708_v27, 0.0  ;;  %v5292_v27 = vrot.slane %v8183_v49, 2  ;;  %v5312_v3 = vrot.slane %v9096_v60, 1  ;;  %v5313_v45 = vrot.slane %v9096_v60, 2 }
 0xa59   : > { %5434 = vst [vmem:[#allocation1 + $0x2] ss:$9 sm:$0xff] %v8153_v21  ;;  %v5293_v21 = vrot.slane %v8183_v49, 3 }
 0xa5a   : > { %5435 = vst [vmem:[#allocation1 + $0x3] ss:$9 sm:$0xff] %v5284_v28  ;;  %v5314_v28 = vrot.slane %v9096_v60, 3 }
 0xa5b   : > { %5436 = vst [vmem:[#allocation1 + $0x4] ss:$9 sm:$0xff] %v5285_v33 }
 0xa5c   : > { %5437 = vst [vmem:[#allocation1 + $0x5] ss:$9 sm:$0xff] %v5286_v26  ;;  %v5316_v26 = vrot.slane %v9096_v60, 5 }
 0xa5d   : > { %5438 = vst [vmem:[#allocation1 + $0x6] ss:$9 sm:$0xff] %v9087_v52  ;;  %v9098_v52 = vrot.slane %v9096_v60, 4 }
 0xa5e   : > { %5439 = vst [vmem:[#allocation1 + $0x7] ss:$9 sm:$0xff] %v5288_v48  ;;  %5959 = vrot.lane.b32.xlu0 %v5860_v51, %s6627_s8  ;;  %v5317_v48 = vrot.slane %v9096_v60, 6  ;;  %v5318_v51 = vrot.slane %v9096_v60, 7 }
 0xa60   : > { %5529 = vadd.xlane.f32.xlu1 %v5528_v24  ;;  %v9099_v24 = vld [vmem:[#allocation15_spill] sm:$0xff] }
 0xa65   : > { %v5440_v44 = vld [vmem:[#allocation1] sm:$0xff] }
 0xa66   : > { %v5546_v57 = vsel %vm361_vm0, %v5440_v44, 0.0  ;;  %5441 = vst [vmem:[#allocation1] ss:$9 sm:$0xff] %v5289_v23  ;;  %v9100_v23 = vld [vmem:[#allocation18_spill] sm:$0xff] }
 0xa67   : > { %5547 = vadd.xlane.f32.xlu2 %v5546_v57  ;;  %5442 = vst [vmem:[#allocation1 + $0x1] ss:$9 sm:$0xff] %v5290_v29  ;;  %v5525_v29 = vsel %vm361_vm0, %v8697_v36, 0.0  ;;  %v5319_v57 = vrot.slane %v9100_v23, 1  ;;  %v5323_v36 = vrot.slane %v9100_v23, 5 }
 0xa68   : > { %5443 = vst [vmem:[#allocation1 + $0x2] ss:$9 sm:$0xff] %v9088_v63  ;;  %5523 = vadd.xlane.f32.xlu1 %v5522_v61  ;;  %v5320_v61 = vrot.slane %v9100_v23, 2  ;;  %v5321_v63 = vrot.slane %v9100_v23, 3 }
 0xa69   : > { %5444 = vst [vmem:[#allocation1 + $0x3] ss:$9 sm:$0xff] %v8183_v49  ;;  %v5302_v49 = vrot.slane %v9090_v7, 5 }
 0xa6a   : > { %5445 = vst [vmem:[#allocation1 + $0x4] ss:$9 sm:$0xff] %v5291_v50 }
 0xa6b   : > { %5446 = vst [vmem:[#allocation1 + $0x5] ss:$9 sm:$0xff] %v5292_v27 }
 0xa6c   : > { %5447 = vst [vmem:[#allocation1 + $0x6] ss:$9 sm:$0xff] %v5293_v21  ;;  %v5519_v21 = vsel %vm361_vm0, %v8677_v19, 0.0  ;;  %v5513_v19 = vsel %vm361_vm0, %v8653_v17, 0.0 }
 0xa6d   : > { %5448 = vst [vmem:[#allocation1 + $0x7] ss:$9 sm:$0xff] %v9089_v18 }
 0xa74   : > { %v5449_v38 = vld [vmem:[#allocation1] sm:$0xff] }
 0xa75   : > { %v5549_v62 = vsel %vm361_vm0, %v5449_v38, 0.0  ;;  %5450 = vst [vmem:[#allocation1] ss:$9 sm:$0xff] %v5295_v54  ;;  %v5324_v54 = vrot.slane %v9100_v23, 6 }
 0xa76   : > { %5550 = vadd.xlane.f32.xlu2 %v5549_v62  ;;  %5451 = vst [vmem:[#allocation1 + $0x1] ss:$9 sm:$0xff] %v5296_v55  ;;  %v9101_v55 = vrot.slane %v9100_v23, 4  ;;  %v9102_v62 = vld [vmem:[#allocation19_spill] sm:$0xff] }
 0xa77   : > { %5452 = vst [vmem:[#allocation1 + $0x2] ss:$9 sm:$0xff] %v5297_v0  ;;  %v5325_v0 = vrot.slane %v9100_v23, 7 }
 0xa78   : > { %5453 = vst [vmem:[#allocation1 + $0x3] ss:$9 sm:$0xff] %v9091_v53 }
 0xa79   : > { %5454 = vst [vmem:[#allocation1 + $0x4] ss:$9 sm:$0xff] %v9090_v7  ;;  %v9103_v7 = vld [vmem:[#allocation23_spill] sm:$0xff] }
 0xa7a   : > { %5455 = vst [vmem:[#allocation1 + $0x5] ss:$9 sm:$0xff] %v5298_v30  ;;  %v5721_v30 = vrot.slane %v9103_v7, 4 }
 0xa7b   : > { %5456 = vst [vmem:[#allocation1 + $0x6] ss:$9 sm:$0xff] %v5299_v31  ;;  %v9104_v31 = vld [vmem:[#allocation17_spill] sm:$0xff] }
 0xa7c   : > { %5457 = vst [vmem:[#allocation1 + $0x7] ss:$9 sm:$0xff] %v5300_v25  ;;  %v5722_v25 = vsel %vm5647_vm11, %v9104_v31, %v5721_v30  ;;  %v9111_v31 = vld [vmem:[#allocation29_spill] sm:$0xff] }
 0xa83   : > { %v5458_v9 = vld [vmem:[#allocation1] sm:$0xff] }
 0xa84   : > { %v5552_v46 = vsel %vm361_vm0, %v5458_v9, 0.0  ;;  %5459 = vst [vmem:[#allocation1] ss:$9 sm:$0xff] %v9092_v41  ;;  %v5730_v9 = vperm.slane %v5722_v25, %v8371_v15  ;;  %v9106_v41 = vld [vmem:[#allocation16_spill] sm:$0xff] }
 0xa85   : > { %5553 = vadd.xlane.f32.xlu2 %v5552_v46  ;;  %5460 = vst [vmem:[#allocation1 + $0x1] ss:$9 sm:$0xff] %v5302_v49 }
 0xa86   : > { %5461 = vst [vmem:[#allocation1 + $0x2] ss:$9 sm:$0xff] %v5303_v43  ;;  %v9105_v43 = vld [vmem:[#allocation21_spill] sm:$0xff] }
 0xa87   : > { %5462 = vst [vmem:[#allocation1 + $0x3] ss:$9 sm:$0xff] %v5304_v34  ;;  %v5697_v46 = vrot.slane %v9105_v43, 4 }
 0xa88   : > { %5463 = vst [vmem:[#allocation1 + $0x4] ss:$9 sm:$0xff] %v9094_v6  ;;  %v9107_v6 = vld [vmem:[#allocation26_spill] sm:$0xff] }
 0xa89   : > { %5464 = vst [vmem:[#allocation1 + $0x5] ss:$9 sm:$0xff] %v9093_v56  ;;  %v5698_v34 = vsel %vm5647_vm11, %v9106_v41, %v5697_v46  ;;  %v5747_v56 = vrot.slane %v5730_v9, 4 }
 0xa8a   : > { %5465 = vst [vmem:[#allocation1 + $0x6] ss:$9 sm:$0xff] %v5305_v22  ;;  %v5706_v17 = vperm.slane %v5698_v34, %v8371_v15  ;;  %v5863_v15 = vrot.slane %v8600_v4, 4 }
 0xa8b   : > { %5466 = vst [vmem:[#allocation1 + $0x7] ss:$9 sm:$0xff] %v5306_v5  ;;  %v5745_v5 = vrot.slane %v9107_v6, 4 }
 0xa8c   : > { %v5748_v22 = vsel %vm5647_vm11, %v5747_v56, %v5706_v17 }
 0xa8f   : > { %v8845_v44 = vpop.xlane.xlu2 %5532 }
 0xa92   : > { %v5467_v8 = vld [vmem:[#allocation1] sm:$0xff] }
 0xa93   : > { %v5555_v58 = vsel %vm361_vm0, %v5467_v8, 0.0  ;;  %5468 = vst [vmem:[#allocation1] ss:$9 sm:$0xff] %v5307_v14  ;;  %v9108_v14 = vld [vmem:[#allocation24_spill] sm:$0xff] }
 0xa94   : > { %5556 = vadd.xlane.f32.xlu2 %v5555_v58  ;;  %5469 = vst [vmem:[#allocation1 + $0x1] ss:$9 sm:$0xff] %v9095_v42  ;;  %v5746_v8 = vsel %vm5647_vm11, %v9108_v14, %v5745_v5  ;;  %v5864_v42 = vsel %vm5647_vm11, %v5863_v15, %v8586_v2  ;;  %v5855_v15 = vrot.slane %v8770_v13, 4 }
 0xa95   : > { %5470 = vst [vmem:[#allocation1 + $0x2] ss:$9 sm:$0xff] %v5309_v37  ;;  %v5749_v37 = vrot.slane %v5706_v17, 4  ;;  %v5163_v17 = vpop.f32.mrf.mxu0 }
 0xa96   : > { %5471 = vst [vmem:[#allocation1 + $0x3] ss:$9 sm:$0xff] %v5310_v47  ;;  %v5856_v13 = vsel %vm5647_vm11, %v5855_v15, %v8767_v12 }
 0xa97   : > { %5472 = vst [vmem:[#allocation1 + $0x4] ss:$9 sm:$0xff] %v5311_v32  ;;  %v5750_v58 = vsel %vm5647_vm11, %v5730_v9, %v5749_v37  ;;  %v9109_v32 = vld [vmem:[#allocation22_spill] sm:$0xff] }
 0xa98   : > { %5473 = vst [vmem:[#allocation1 + $0x5] ss:$9 sm:$0xff] %v9097_v20  ;;  %v9110_v20 = vld [vmem:[#allocation20_spill] sm:$0xff] }
 0xa99   : > { %5474 = vst [vmem:[#allocation1 + $0x6] ss:$9 sm:$0xff] %v9096_v60  ;;  %v5755_v60 = vrot.slane %v9109_v32, 4 }
 0xa9a   : > { %5475 = vst [vmem:[#allocation1 + $0x7] ss:$9 sm:$0xff] %v5312_v3 }
 0xa9e   : > { %v5536_v18 = vpop.xlane.xlu2 %5535 }
 0xa9f   : > { %v5570_v38 = vpack.c.bf16 %v5536_v18, %v8845_v44 }
 0xaa1   : > { %v5476_v33 = vld [vmem:[#allocation1] sm:$0xff] }
 0xaa2   : > { %v5558_v59 = vsel %vm361_vm0, %v5476_v33, 0.0  ;;  %5477 = vst [vmem:[#allocation1] ss:$9 sm:$0xff] %v5313_v45  ;;  %v5756_v45 = vsel %vm5647_vm11, %v5755_v60, %v9110_v20 }
 0xaa3   : > { %5559 = vadd.xlane.f32.xlu2 %v5558_v59  ;;  %5478 = vst [vmem:[#allocation1 + $0x1] ss:$9 sm:$0xff] %v5314_v28  ;;  %v5869_v28 = vrot.slane %v8605_v1, 4 }
 0xaa4   : > { %5479 = vst [vmem:[#allocation1 + $0x2] ss:$9 sm:$0xff] %v9098_v52 }
 0xaa5   : > { %5480 = vst [vmem:[#allocation1 + $0x3] ss:$9 sm:$0xff] %v5316_v26  ;;  %v5870_v4 = vsel %vm5647_vm11, %v8597_v35, %v5869_v28  ;;  %vm6013_vm11 = vcmask 654336  }
 0xaa6   : > { %5481 = vst [vmem:[#allocation1 + $0x4] ss:$9 sm:$0xff] %v5317_v48 }
 0xaa7   : > { %5482 = vst [vmem:[#allocation1 + $0x5] ss:$9 sm:$0xff] %v5318_v51 }
 0xaa8   : > { %5483 = vst [vmem:[#allocation1 + $0x6] ss:$9 sm:$0xff] %v9099_v24 }
 0xaa9   : > { %5484 = vst [vmem:[#allocation1 + $0x7] ss:$9 sm:$0xff] %v9100_v23 }
 0xaab   : > { %5526 = vadd.xlane.f32.xlu2 %v5525_v29 }
 0xaad   : > { %v5539_v29 = vpop.xlane.xlu0 %5538 }
 0xab0   : > { %v5485_v50 = vld [vmem:[#allocation1] sm:$0xff] }
 0xab1   : > { %v5561_v27 = vsel %vm361_vm0, %v5485_v50, 0.0  ;;  %5486 = vst [vmem:[#allocation1] ss:$9 sm:$0xff] %v5319_v57 }
 0xab2   : > { %5562 = vadd.xlane.f32.xlu1 %v5561_v27  ;;  %5487 = vst [vmem:[#allocation1 + $0x1] ss:$9 sm:$0xff] %v5320_v61 }
 0xab3   : > { %5488 = vst [vmem:[#allocation1 + $0x2] ss:$9 sm:$0xff] %v5321_v63  ;;  %5520 = vadd.xlane.f32.xlu2 %v5519_v21 }
 0xab4   : > { %5489 = vst [vmem:[#allocation1 + $0x3] ss:$9 sm:$0xff] %v9101_v55 }
 0xab5   : > { %5490 = vst [vmem:[#allocation1 + $0x4] ss:$9 sm:$0xff] %v5323_v36  ;;  %v5518_v27 = vpop.xlane.xlu0 %5517 }
 0xab6   : > { %5491 = vst [vmem:[#allocation1 + $0x5] ss:$9 sm:$0xff] %v5324_v54 }
 0xab7   : > { %5492 = vst [vmem:[#allocation1 + $0x6] ss:$9 sm:$0xff] %v5325_v0 }
 0xab8   : > { %5493 = vst [vmem:[#allocation1 + $0x7] ss:$9 sm:$0xff] %v9102_v62 }
 0xabb   : > { %5514 = vadd.xlane.f32.xlu2 %v5513_v19 }
 0xabc   : > { %v5542_v47 = vpop.xlane.xlu2 %5541 }
 0xabd   : > { %v5571_v1 = vpack.c.bf16 %v5542_v47, %v5539_v29 }
 0xabf   : > { %v5494_v53 = vld [vmem:[#allocation1] sm:$0xff] }
 0xac0   : > { %v5564_v49 = vsel %vm361_vm0, %v5494_v53, 0.0 }
 0xac3   : > { %5565 = vadd.xlane.f32.xlu2 %v5564_v49 }
 0xac8   : > { %v5952_v25 = vpop.permute.xlu0 %5951 }
 0xacb   : > { %5957 = vrot.lane.b32.xlu1 %v5748_v22, %s6627_s8  ;;  %v5545_v52 = vpop.xlane.xlu1 %5544  ;;  %v5177_v22 = vpop.f32.mrf.mxu1 }
 0xacc   : > { %v5178_v37 = vadd.f32 %v5177_v22, %v5163_v17 }
 0xad0   : > { %v8904_v49 = vpop.permute.xlu0 %5959 }
 0xad3   : > { %v5530_v44 = vpop.xlane.xlu1 %5529 }
 0xada   : > { %v5548_v3 = vpop.xlane.xlu2 %5547 }
 0xadb   : > { %5949 = vrot.lane.b32.xlu2 %v5746_v8, %s6626_s7  ;;  %v5572_v23 = vpack.c.bf16 %v5548_v3, %v5545_v52  ;;  %v5524_v61 = vpop.xlane.xlu1 %5523 }
 0xae3   : > { %5965 = vrot.lane.b32.xlu2 %v5750_v58, %s6628_s9 }
 0xae9   : > { %v5551_v33 = vpop.xlane.xlu2 %5550 }
 0xaeb   : > { %5975 = vrot.lane.b32.xlu2 %v5864_v42, %s6629_s10 }
 0xaf3   : > { %5989 = vrot.lane.b32.xlu2 %v5756_v45, %s6630_s11 }
 0xaf8   : > { %v5554_v2 = vpop.xlane.xlu2 %5553 }
 0xaf9   : > { %v5573_v51 = vpack.c.bf16 %v5554_v2, %v5551_v33 }
 0xafb   : > { %5999 = vrot.lane.b32.xlu2 %v5870_v4, %s6631_s12  ;;  %v9114_v4 = vld [vmem:[#allocation28_spill] sm:$0xff] }
 0xb07   : > { %v5557_v59 = vpop.xlane.xlu2 %5556 }
 0xb16   : > { %v5560_v26 = vpop.xlane.xlu2 %5559 }
 0xb17   : > { %v5574_v48 = vpack.c.bf16 %v5560_v26, %v5557_v59  ;;  %v5165_v59 = vpop.f32.mrf.mxu0  ;;  %v5179_v26 = vpop.f32.mrf.mxu1 }
 0xb18   : > { %v5180_v29 = vadd.f32 %v5179_v26, %v5165_v59 }
 0xb19   : > { %5576 = vmatpush.bf16.msra.mxu2 %v5574_v48 }
 0xb1d   : > { %5577 = vmatpush.bf16.msra.mxu2 %v5573_v51 }
 0xb1e   : > { %v5527_v24 = vpop.xlane.xlu2 %5526 }
 0xb1f   : > { %v5569_v35 = vpack.c.bf16 %v5530_v44, %v5527_v24  ;;  %v6004_v24 = vsel %vm361_vm0, %v5856_v13, %v5952_v25 }
 0xb21   : > { %5578 = vmatpush.bf16.msra.mxu2 %v5572_v23 }
 0xb25   : > { %5579 = vmatpush.bf16.msra.mxu2 %v5571_v1  ;;  %v5563_v36 = vpop.xlane.xlu1 %5562 }
 0xb26   : > { %v5521_v57 = vpop.xlane.xlu2 %5520 }
 0xb27   : > { %v5568_v63 = vpack.c.bf16 %v5524_v61, %v5521_v57 }
 0xb29   : > { %5580 = vmatpush.bf16.msra.mxu2 %v5570_v38 }
 0xb2d   : > { %5581 = vmatpush.bf16.msra.mxu2 %v5569_v35 }
 0xb2e   : > { %v5515_v50 = vpop.xlane.xlu2 %5514 }
 0xb2f   : > { %v5567_v21 = vpack.c.bf16 %v5518_v27, %v5515_v50 }
 0xb31   : > { %5582 = vmatpush.bf16.msra.mxu2 %v5568_v63  ;;  %v6006_v63 = vsel %vm844_vm1, %v6004_v24, %v8904_v49 }
 0xb35   : > { %5583 = vmatpush.bf16.msra.mxu2 %v5567_v21 }
 0xb36   : > { %v5566_v18 = vpop.xlane.xlu2 %5565 }
 0xb37   : > { %v5575_v54 = vpack.c.bf16 %v5566_v18, %v5563_v36 }
 0xb38   : > { %5584 = vmatmul.bf16.vlgmr.msra.gmra.mxu2 %v7548_v11  ;;  %v9112_v11 = vld [vmem:[#allocation27_spill] sm:$0xff] }
 0xb39   : > { %5597 = vmatpush.bf16.msrb.mxu3 %v5575_v54 }
 0xb3c   : > { %6332 = vmatmul.msk.bf16.vlgmr.msrb.gmra.mxu3 %vm361_vm0, %v7557_v10  ;;  %v9113_v10 = vld [vmem:[#allocation25_spill] sm:$0xff] }
 0xb3d   : > { %v5958_v43 = vpop.permute.xlu1 %5957 }
 0xb3e   : > { %v5950_v9 = vpop.permute.xlu2 %5949 }
 0xb3f   : > { %v6003_v2 = vsel %vm361_vm0, %v9114_v4, %v5950_v9  ;;  %vm6019_vm0 = vcmask 916480  }
 0xb40   : > { %v6005_v23 = vsel %vm844_vm1, %v6003_v2, %v5958_v43 }
 0xb46   : > { %v5966_v41 = vpop.permute.xlu2 %5965 }
 0xb47   : > { %v6008_v1 = vsel %vm6007_vm15, %v6005_v23, %v5966_v41 }
 0xb4e   : > { %v5976_v8 = vpop.permute.xlu2 %5975 }
 0xb56   : > { %v5990_v44 = vpop.permute.xlu2 %5989 }
 0xbbb   : > { %v5585_v55 = vpop.f32.mrf.mxu2 }
 0xbbc   : > { %v5586_v38 = vadd.f32 1e-12, %v5585_v55 }
 0xbbf   : > { %v5599_v0 = vpop.f32.mrf.mxu3 }
 0xbc0   : > { %v5600_v62 = vadd.f32 %v5599_v0, %v5586_v38 }
 0xbc2   : > { %5606 = vperm.xlu0 %6384, %v5600_v62  }
 0xbc3   : > { %v5587_v19 = vpop.f32.mrf.mxu2 }
 0xbc4   : > { %v5588_v7 = vadd.f32 1e-12, %v5587_v19 }
 0xbc7   : > { %v5601_v30 = vpop.f32.mrf.mxu3 }
 0xbc8   : > { %v5602_v53 = vadd.f32 %v5601_v30, %v5588_v7  ;;  %v6000_v7 = vpop.permute.xlu2 %5999 }
 0xbca   : > { %5611 = vperm.xlu1 %6385, %v5602_v53   ;;  %5973 = vrot.lane.b32.xlu0 %v9111_v31, %s6629_s10 }
 0xbd2   : > { %5967 = vrot.lane.b32.xlu1 %v8612_v39, %s6628_s9  ;;  %5983 = vrot.lane.b32.xlu0 %v8616_v40, %s6632_s13 }
 0xbda   : > { %5981 = vrot.lane.b32.xlu1 %v9112_v11, %s6632_s13  ;;  %5997 = vrot.lane.b32.xlu0 %v9113_v10, %s6631_s12 }
 0xbe2   : > { %5991 = vrot.lane.b32.xlu1 %v8621_v16, %s6630_s11 }
 0xc34   : > { %v5607_v46 = vpop.permute.xlu0 %5606 }
 0xc35   : > { %6582 = vrcp.f32 %v5607_v46  ;;  %v5625_v5 = vand.u32 2147483648, %v5607_v46  ;;  %v5623_v16 = vand.u32 2147483647, %v5607_v46  ;;  %vm5619_vm12 = vweird.f32 %v5607_v46 }
 0xc37   : > { %v5626_v42 = vor.u32 1.1754944e-38, %v5625_v5  ;;  %vm5624_vm14 = vcmp.eq.f32.partialorder %v5623_v16, 8.507059e+37 }
 0xc3b   : > { %v6583_v39 = vpop.eup %6582 }
 0xc3c   : > { %v5615_v34 = vmul.f32 %v6583_v39, %v5607_v46  ;;  %v5612_v56 = vpop.permute.xlu1 %5611  ;;  %v5974_v40 = vpop.permute.xlu0 %5973  ;;  %vm5620_vm10 = vweird.f32 %v6583_v39 }
 0xc3d   : > { %6584 = vrcp.f32 %v5612_v56  ;;  %vm5621_vm13 = vmor %vm5619_vm12, %vm5620_vm10  ;;  %v5640_v48 = vand.u32 2147483648, %v5612_v56  ;;  %v5638_v51 = vand.u32 2147483647, %v5612_v56  ;;  %vm5634_vm4 = vweird.f32 %v5612_v56 }
 0xc3e   : > { %v5616_v6 = vsub.f32 1.0, %v5615_v34  ;;  %v6011_v35 = vsel %vm6010_vm3, %v6008_v1, %v5974_v40 }
 0xc3f   : > { %v5641_v57 = vor.u32 1.1754944e-38, %v5640_v48  ;;  %vm5639_vm7 = vcmp.eq.f32.partialorder %v5638_v51, 8.507059e+37 }
 0xc40   : > { %v5617_v14 = vmul.f32 %v6583_v39, %v5616_v6 }
 0xc42   : > { %v5618_v58 = vadd.f32 %v6583_v39, %v5617_v14 }
 0xc43   : > { %v6585_v47 = vpop.eup %6584 }
 0xc44   : > { %v5630_v32 = vmul.f32 %v6585_v47, %v5612_v56  ;;  %v5622_v60 = vsel %vm5621_vm13, %v6583_v39, %v5618_v58  ;;  %v5968_v3 = vpop.permute.xlu1 %5967  ;;  %v5984_v20 = vpop.permute.xlu0 %5983  ;;  %vm5635_vm2 = vweird.f32 %v6585_v47 }
 0xc45   : > { %v5627_v45 = vsel %vm5624_vm14, %v5626_v42, %v5622_v60  ;;  %vm5636_vm5 = vmor %vm5634_vm4, %vm5635_vm2  ;;  %v6009_v36 = vsel %vm6007_vm15, %v6006_v63, %v5968_v3 }
 0xc46   : > { %v5631_v28 = vsub.f32 1.0, %v5630_v32  ;;  %v5628_v33 = vmul.f32 %v5627_v45, %v5178_v37  ;;  %v6012_v0 = vsel %vm6010_vm3, %v6009_v36, %v5976_v8 }
 0xc47   : > { %v6015_v62 = vsel %vm6013_vm11, %v6012_v0, %v5984_v20 }
 0xc48   : > { %v5632_v52 = vmul.f32 %v6585_v47, %v5631_v28  ;;  %5644 = vst.msk [vmem:[%s8912_s17] sm:$0xff] %vm844_vm1, %v5628_v33 }
 0xc4a   : > { %v5633_v12 = vadd.f32 %v6585_v47, %v5632_v52 }
 0xc4c   : > { %v5637_v61 = vsel %vm5636_vm5, %v6585_v47, %v5633_v12  ;;  %v5982_v50 = vpop.permute.xlu1 %5981  ;;  %v5998_v54 = vpop.permute.xlu0 %5997 }
 0xc4d   : > { %v5642_v27 = vsel %vm5639_vm7, %v5641_v57, %v5637_v61  ;;  %v6014_v21 = vsel %vm6013_vm11, %v6011_v35, %v5982_v50 }
 0xc4e   : > { %v5643_v18 = vmul.f32 %v5642_v27, %v5180_v29  ;;  %v6017_v55 = vsel %vm6016_vm6, %v6014_v21, %v5990_v44 }
 0xc4f   : > { %v6020_v38 = vsel %vm6019_vm0, %v6017_v55, %v5998_v54 }
 0xc50   : > { %5645 = vst.msk [vmem:[%s8912_s17 + $0x8] sm:$0xff] %vm844_vm1, %v5643_v18 }
 0xc51   : > { %6022 = vst [vmem:[%s8473_s6] sm:$0xff] %v6020_v38 }
 0xc54   : > { %v5992_v19 = vpop.permute.xlu1 %5991 }
 0xc55   : > { %v6018_v30 = vsel %vm6016_vm6, %v6015_v62, %v5992_v19 }
 0xc56   : > { %v6021_v53 = vsel %vm6019_vm0, %v6018_v30, %v6000_v7 }
 0xc57   : > { %6024 = vst [vmem:[%s8473_s6 + $0x10] sm:$0xff] %v6021_v53 }
 0xc58 PF: > { %s16_s18 = sadd.s32 1, %s6621_s18  }
 0xc59   : > { %p13_p4 = scmp.ge.s32.totalorder %s16_s18, 4  }
 0xc5b   :  { %15 = sbr.rel (!%p13_p4) target bundleno = 1 (0x1), region = 123 }

</bundles_post_ra>
